<compile_context>
chip_gen: v5e
topology: v5e:2x2
jax: 0.10.0
libtpu: 0.0.40
codegen_flags: <defaults>
</compile_context>

<pallas_src>
import jax
import jax.numpy as jnp
from jax.experimental import pallas as pl
from jax.experimental.pallas import tpu as pltpu

# Small hyper-params consistent with the module's forward.
VOCAB = 50
EMB = 32          # embedding_dim
HID = 32          # n_hidden (divisible by 4: conv halves it, avgpool halves again)
LAYERS = 3        # n_layers
BATCH = 2
SEQ = 8
N_OUT = 1

assert EMB == HID, "stacked-layer weight sharing assumes embedding_dim == n_hidden"


def _vmem_specs(n):
    return [pl.BlockSpec(memory_space=pltpu.MemorySpace.VMEM) for _ in range(n)]


# --------------------------------------------------------------------------
# Fused kernel: 3-layer LSTM + 3-layer GRU (interleaved) + fused conv/pool/fc head
# --------------------------------------------------------------------------
def fused_kernel(embeds_ref,
                 lwih_ref, lwhh_ref, lbih_ref, lbhh_ref,
                 gwih_ref, gwhh_ref, gbih_ref, gbhh_ref,
                 lh0_ref, lc0_ref, gh0_ref,
                 head_al_ref, head_ag_ref, head_b_ref,
                 sig_ref, lhn_ref, lcn_ref, ghn_ref,
                 xp_l_scr, xp_g_scr, seq_l_scr, seq_g_scr, flat_l_scr, flat_g_scr):
    L, B, H = lh0_ref.shape
    TB = embeds_ref.shape[0]
    T = TB // B

    emb = embeds_ref[...]                                  # (T*B, H), time-major rows

    for layer in range(L):
        w_hh_l = lwhh_ref[layer]                           # (H, 4H)
        w_hh_g = gwhh_ref[layer]                           # (H, 3H)
        b_l = lbih_ref[layer] + lbhh_ref[layer]            # (1, 4H) combined LSTM bias
        b_hh_g = jnp.broadcast_to(gbhh_ref[layer], (B, 3 * H))   # hoisted broadcast

        # Hoisted input projections: ONE matmul per branch per layer covering all
        # timesteps (removes T small matmuls from the serial recurrence chain).
        x_l = emb if layer == 0 else seq_l_scr[...]        # (T*B, H)
        x_g = emb if layer == 0 else seq_g_scr[...]
        xp_l_scr[...] = (jnp.dot(x_l, lwih_ref[layer],
                                 preferred_element_type=jnp.float32) + b_l)
        xp_g_scr[...] = (jnp.dot(x_g, gwih_ref[layer],
                                 preferred_element_type=jnp.float32) + gbih_ref[layer])

        h_l = lh0_ref[layer]                               # (B, H)
        c_l = lc0_ref[layer]
        h_g = gh0_ref[layer]
        last = (layer == L - 1)

        for t in range(T):
            r0, r1 = t * B, (t + 1) * B
            # ---- LSTM step (gate columns: i | f | o | g) ----
            gates = xp_l_scr[r0:r1, :] + jnp.dot(h_l, w_hh_l,
                                                 preferred_element_type=jnp.float32)
            s = jax.nn.sigmoid(gates[:, 0:3 * H])          # i, f, o in one wide op
            g = jnp.tanh(gates[:, 3 * H:4 * H])
            c_l = s[:, H:2 * H] * c_l + s[:, 0:H] * g
            h_l = s[:, 2 * H:3 * H] * jnp.tanh(c_l)
            # ---- GRU step (gate columns: r | z | n); independent chain interleaves ----
            gh = jnp.dot(h_g, w_hh_g, preferred_element_type=jnp.float32) + b_hh_g
            gx = xp_g_scr[r0:r1, :]
            rz = jax.nn.sigmoid(gx[:, 0:2 * H] + gh[:, 0:2 * H])
            n = jnp.tanh(gx[:, 2 * H:3 * H] + rz[:, 0:H] * gh[:, 2 * H:3 * H])
            h_g = (1.0 - rz[:, H:2 * H]) * n + rz[:, H:2 * H] * h_g
            # ---- stage outputs for the next consumer (VMEM scratch only, never HBM) ----
            if not last:
                seq_l_scr[r0:r1, :] = h_l                  # time-major input of next layer
                seq_g_scr[r0:r1, :] = h_g
            else:
                # lane-dense (B, T*H): column t*H+h == torch row-major (B, T, H) flat
                flat_l_scr[:, t * H:(t + 1) * H] = h_l
                flat_g_scr[:, t * H:(t + 1) * H] = h_g

        lhn_ref[layer] = h_l
        lcn_ref[layer] = c_l
        ghn_ref[layer] = h_g

    # Fused head: Conv1d(k=1) -> .view -> AvgPool1d(2) -> cat -> Linear, folded at
    # init into two (T*H, T) matrices + (1, T) bias  =>  two matmuls + sigmoid.
    logits = (jnp.dot(flat_l_scr[...], head_al_ref[...],
                      preferred_element_type=jnp.float32)
              + jnp.dot(flat_g_scr[...], head_ag_ref[...],
                        preferred_element_type=jnp.float32)
              + head_b_ref[...])
    sig_ref[...] = jax.nn.sigmoid(logits)                  # (B, T); wrapper keeps col T-1


# --------------------------------------------------------------------------
# Wrapper (glue: embedding gather, time-major layout, final [:, -1] slice)
# --------------------------------------------------------------------------
def sentiment_rnn_forward(params, x_tokens, hidden):
    (lh0, lc0), gh0 = hidden
    B, T = x_tokens.shape

    # Embedding lookup (frozen table) — plain-JAX glue (data-dependent gather).
    embeds = jnp.take(params['embedding'], x_tokens, axis=0).astype(jnp.float32)  # (B,T,H)
    # Time-major (T*B, H): each timestep's batch rows are one contiguous slice.
    embeds_tm = jnp.transpose(embeds, (1, 0, 2)).reshape(T * B, EMB)

    out_shapes = (
        jax.ShapeDtypeStruct((B, T), jnp.float32),            # sigmoid(fc(...)) all steps
        jax.ShapeDtypeStruct((LAYERS, B, HID), jnp.float32),  # lstm h_n
        jax.ShapeDtypeStruct((LAYERS, B, HID), jnp.float32),  # lstm c_n
        jax.ShapeDtypeStruct((LAYERS, B, HID), jnp.float32),  # gru h_n
    )
    inputs = (embeds_tm,
              params['lstm_w_ih'], params['lstm_w_hh'],
              params['lstm_b_ih'], params['lstm_b_hh'],
              params['gru_w_ih'], params['gru_w_hh'],
              params['gru_b_ih'], params['gru_b_hh'],
              lh0, lc0, gh0,
              params['head_a_l'], params['head_a_g'], params['head_bias'])

    sig_full, lhn, lcn, ghn = pl.pallas_call(
        fused_kernel,
        out_shape=out_shapes,
        in_specs=_vmem_specs(len(inputs)),
        out_specs=tuple(_vmem_specs(len(out_shapes))),
        scratch_shapes=[
            pltpu.VMEM((T * B, 4 * HID), jnp.float32),   # hoisted LSTM x-projection
            pltpu.VMEM((T * B, 3 * HID), jnp.float32),   # hoisted GRU x-projection
            pltpu.VMEM((T * B, HID), jnp.float32),       # lstm inter-layer activations
            pltpu.VMEM((T * B, HID), jnp.float32),       # gru inter-layer activations
            pltpu.VMEM((B, T * HID), jnp.float32),       # lane-dense lstm out (head input)
            pltpu.VMEM((B, T * HID), jnp.float32),       # lane-dense gru out (head input)
        ],
    )(*inputs)

    # torch: sig_out.view(B, -1)[:, -1]
    sig_out = sig_full[:, -1]
    return sig_out, ((lhn, lcn), ghn)


# --------------------------------------------------------------------------
# Fused-head construction (done ONCE at init): the exact torch ops
#   .view(-1,H,T) -> Conv1d(k=1) -> .view(-1,T,H/2) -> AvgPool1d(2) -> cat -> Linear
# are linear in each branch's row-major RNN output, so fold them into matrices.
# --------------------------------------------------------------------------
def _torch_head_branch(flat, conv_w, conv_b):
    """flat: (T*H,) row-major flatten of one sample's (T, H) RNN output. -> (T, H//4)."""
    x = flat.reshape(HID, SEQ)                 # .view(-1, n_hidden, seq_len)  (row-major!)
    y = conv_w @ x + conv_b                    # Conv1d kernel_size=1          -> (H/2, T)
    y = y.reshape(SEQ, HID // 2)               # .view(-1, seq_len, n_hidden//2)
    return 0.5 * (y[:, 0::2] + y[:, 1::2])     # AvgPool1d(2)                  -> (T, H/4)


def _build_fused_head(conv_w, conv_b, fc_w, fc_b):
    th = SEQ * HID
    eye = jnp.eye(th, dtype=jnp.float32)
    zero_b = jnp.zeros_like(conv_b)
    basis = jax.vmap(lambda v: _torch_head_branch(v, conv_w, zero_b))(eye)  # (T*H, T, H/4)
    fc_l = fc_w[0, :HID // 4]                  # Linear cols for the LSTM branch
    fc_g = fc_w[0, HID // 4:]                  # Linear cols for the GRU branch
    a_l = jnp.einsum('jtp,p->jt', basis, fc_l)                             # (T*H, T)
    a_g = jnp.einsum('jtp,p->jt', basis, fc_g)
    zero_branch = _torch_head_branch(jnp.zeros((th,), jnp.float32), conv_w, conv_b)
    bias = (zero_branch @ (fc_l + fc_g) + fc_b[0, 0])[None, :]             # (1, T)
    return a_l, a_g, bias


def init_params(key):
    keys = jax.random.split(key, 13)

    def rnd(k, shape, scale=0.1):
        return (scale * jax.random.normal(k, shape)).astype(jnp.float32)

    p = {}
    p['embedding'] = rnd(keys[0], (VOCAB, EMB), 1.0)
    # Stacked RNN weights, pre-transposed to (in_features, gates*H).
    # LSTM gate column order: (i, f, o, g) — sigmoid gates contiguous so the kernel
    # applies one sigmoid to [0:3H] and one tanh to [3H:4H].  (A PyTorch checkpoint,
    # stored as (i,f,g,o), would need its g/o column blocks swapped.)
    p['lstm_w_ih'] = rnd(keys[1], (LAYERS, HID, 4 * HID))
    p['lstm_w_hh'] = rnd(keys[2], (LAYERS, HID, 4 * HID))
    p['lstm_b_ih'] = rnd(keys[3], (LAYERS, 1, 4 * HID))
    p['lstm_b_hh'] = rnd(keys[4], (LAYERS, 1, 4 * HID))
    # GRU gate column order: (r, z, n) — PyTorch order; r,z sigmoids contiguous.
    p['gru_w_ih'] = rnd(keys[5], (LAYERS, HID, 3 * HID))
    p['gru_w_hh'] = rnd(keys[6], (LAYERS, HID, 3 * HID))
    p['gru_b_ih'] = rnd(keys[7], (LAYERS, 1, 3 * HID))
    p['gru_b_hh'] = rnd(keys[8], (LAYERS, 1, 3 * HID))
    # Conv1d(H, H//2, 1) weight (H/2, H, 1) squeezed; bias as column vector.
    p['conv_w'] = rnd(keys[9], (HID // 2, HID))
    p['conv_b'] = rnd(keys[10], (HID // 2, 1))
    # Linear(H//2, 1) in torch layout; bias stored as (1, 1).
    p['fc_w'] = rnd(keys[11], (N_OUT, HID // 2))
    p['fc_b'] = rnd(keys[12], (N_OUT, N_OUT))
    # Fused head matrices (pure function of the weights; built once at init).
    p['head_a_l'], p['head_a_g'], p['head_bias'] = _build_fused_head(
        p['conv_w'], p['conv_b'], p['fc_w'], p['fc_b'])
    return p


# --------------------------------------------------------------------------
# Pure-JAX reference (torch-style, unfused) for a correctness check.
# --------------------------------------------------------------------------
def reference_forward(params, x_tokens, hidden):
    (lh0, lc0), gh0 = hidden
    B, T = x_tokens.shape
    H = HID
    embeds = jnp.take(params['embedding'], x_tokens, axis=0).astype(jnp.float32)

    # stacked LSTM, gate order (i, f, o, g)
    xs = embeds
    lhn, lcn = [], []
    for l in range(LAYERS):
        w_ih = params['lstm_w_ih'][l]; w_hh = params['lstm_w_hh'][l]
        b = params['lstm_b_ih'][l] + params['lstm_b_hh'][l]
        h, c = lh0[l], lc0[l]
        ys = []
        for t in range(T):
            gg = xs[:, t, :] @ w_ih + h @ w_hh + b
            i = jax.nn.sigmoid(gg[:, :H]); f = jax.nn.sigmoid(gg[:, H:2 * H])
            o = jax.nn.sigmoid(gg[:, 2 * H:3 * H]); g = jnp.tanh(gg[:, 3 * H:])
            c = f * c + i * g
            h = o * jnp.tanh(c)
            ys.append(h)
        xs = jnp.stack(ys, axis=1)
        lhn.append(h); lcn.append(c)
    lstm_out = xs

    # stacked GRU, gate order (r, z, n)
    xs = embeds
    ghn = []
    for l in range(LAYERS):
        w_ih = params['gru_w_ih'][l]; w_hh = params['gru_w_hh'][l]
        b_ih = params['gru_b_ih'][l]; b_hh = params['gru_b_hh'][l]
        h = gh0[l]
        ys = []
        for t in range(T):
            gx = xs[:, t, :] @ w_ih + b_ih
            gh = h @ w_hh + b_hh
            r = jax.nn.sigmoid(gx[:, :H] + gh[:, :H])
            z = jax.nn.sigmoid(gx[:, H:2 * H] + gh[:, H:2 * H])
            n = jnp.tanh(gx[:, 2 * H:] + r * gh[:, 2 * H:])
            h = (1.0 - z) * n + z * h
            ys.append(h)
        xs = jnp.stack(ys, axis=1)
        ghn.append(h)
    gru_out = xs

    # torch head (row-major .view reshapes, conv1d k=1, avgpool(2), cat, fc, sigmoid)
    def branch(seq):
        y = seq.reshape(B, H, T)
        y = jnp.einsum('oc,bct->bot', params['conv_w'], y) + params['conv_b'][None]
        y = y.reshape(B, T, H // 2)
        return 0.5 * (y[:, :, 0::2] + y[:, :, 1::2])

    cat = jnp.concatenate([branch(lstm_out), branch(gru_out)], axis=2)
    logits = cat @ params['fc_w'].T + params['fc_b']
    sig = jax.nn.sigmoid(logits).reshape(B, -1)[:, -1]
    return sig, (jnp.stack(lhn), jnp.stack(lcn), jnp.stack(ghn))


if __name__ == "__main__":
    key = jax.random.PRNGKey(0)
    pkey, xkey = jax.random.split(key)
    params = init_params(pkey)

    x = jax.random.randint(xkey, (BATCH, SEQ), 0, VOCAB, dtype=jnp.int32)
    lh0 = jnp.zeros((LAYERS, BATCH, HID), jnp.float32)
    lc0 = jnp.zeros((LAYERS, BATCH, HID), jnp.float32)
    gh0 = jnp.zeros((LAYERS, BATCH, HID), jnp.float32)
    hidden = ((lh0, lc0), gh0)

    fwd = jax.jit(sentiment_rnn_forward)
    sig_out, ((lhn, lcn), ghn) = fwd(params, x, hidden)
    jax.block_until_ready((sig_out, lhn, lcn, ghn))
    assert sig_out.shape == (BATCH,)
    assert lhn.shape == (LAYERS, BATCH, HID)

    # Correctness check against the unfused pure-JAX reference.  Tolerance allows
    # for MXU pass-precision differences between in-kernel and XLA matmuls.
    ref_sig, (ref_lhn, ref_lcn, ref_ghn) = jax.jit(reference_forward)(params, x, hidden)
    tol = dict(atol=2e-2, rtol=2e-2)
    assert bool(jnp.allclose(sig_out, ref_sig, **tol))
    assert bool(jnp.allclose(lhn, ref_lhn, **tol))
    assert bool(jnp.allclose(lcn, ref_lcn, **tol))
    assert bool(jnp.allclose(ghn, ref_ghn, **tol))

    print("KERNEL_OK")
</pallas_src>

<mosaic_0001>
module attributes {stable_mosaic.version = 11 : i64} {
  func.func @fused_kernel(%arg0: memref<16x32xf32, #tpu.memory_space<vmem>>, %arg1: memref<3x32x128xf32, #tpu.memory_space<vmem>>, %arg2: memref<3x32x128xf32, #tpu.memory_space<vmem>>, %arg3: memref<3x1x128xf32, #tpu.memory_space<vmem>>, %arg4: memref<3x1x128xf32, #tpu.memory_space<vmem>>, %arg5: memref<3x32x96xf32, #tpu.memory_space<vmem>>, %arg6: memref<3x32x96xf32, #tpu.memory_space<vmem>>, %arg7: memref<3x1x96xf32, #tpu.memory_space<vmem>>, %arg8: memref<3x1x96xf32, #tpu.memory_space<vmem>>, %arg9: memref<3x2x32xf32, #tpu.memory_space<vmem>>, %arg10: memref<3x2x32xf32, #tpu.memory_space<vmem>>, %arg11: memref<3x2x32xf32, #tpu.memory_space<vmem>>, %arg12: memref<256x8xf32, #tpu.memory_space<vmem>>, %arg13: memref<256x8xf32, #tpu.memory_space<vmem>>, %arg14: memref<1x8xf32, #tpu.memory_space<vmem>>, %arg15: memref<2x8xf32, #tpu.memory_space<vmem>>, %arg16: memref<3x2x32xf32, #tpu.memory_space<vmem>>, %arg17: memref<3x2x32xf32, #tpu.memory_space<vmem>>, %arg18: memref<3x2x32xf32, #tpu.memory_space<vmem>>, %arg19: memref<16x128xf32, #tpu.memory_space<vmem>>, %arg20: memref<16x96xf32, #tpu.memory_space<vmem>>, %arg21: memref<16x32xf32, #tpu.memory_space<vmem>>, %arg22: memref<16x32xf32, #tpu.memory_space<vmem>>, %arg23: memref<2x256xf32, #tpu.memory_space<vmem>>, %arg24: memref<2x256xf32, #tpu.memory_space<vmem>>) attributes {dimension_semantics = [], scalar_prefetch = 0 : i64, scratch_operands = 6 : i64, tpu.core_type = #tpu.core_type<tc>} {
    %c0 = arith.constant 0 : index
    %c0_0 = arith.constant 0 : index
    %0 = vector.load %arg0[%c0, %c0_0] : memref<16x32xf32, #tpu.memory_space<vmem>>, vector<16x32xf32>
    %c0_1 = arith.constant 0 : index
    %c0_2 = arith.constant 0 : index
    %c0_3 = arith.constant 0 : index
    %1 = vector.load %arg2[%c0_1, %c0_2, %c0_3] : memref<3x32x128xf32, #tpu.memory_space<vmem>>, vector<1x32x128xf32>
    %2 = vector.shape_cast %1 : vector<1x32x128xf32> to vector<32x128xf32>
    %c0_4 = arith.constant 0 : index
    %c0_5 = arith.constant 0 : index
    %c0_6 = arith.constant 0 : index
    %3 = vector.load %arg6[%c0_4, %c0_5, %c0_6] : memref<3x32x96xf32, #tpu.memory_space<vmem>>, vector<1x32x96xf32>
    %4 = vector.shape_cast %3 : vector<1x32x96xf32> to vector<32x96xf32>
    %c0_7 = arith.constant 0 : index
    %c0_8 = arith.constant 0 : index
    %c0_9 = arith.constant 0 : index
    %5 = vector.load %arg3[%c0_7, %c0_8, %c0_9] : memref<3x1x128xf32, #tpu.memory_space<vmem>>, vector<1x1x128xf32>
    %6 = vector.shape_cast %5 : vector<1x1x128xf32> to vector<1x128xf32>
    %c0_10 = arith.constant 0 : index
    %c0_11 = arith.constant 0 : index
    %c0_12 = arith.constant 0 : index
    %7 = vector.load %arg4[%c0_10, %c0_11, %c0_12] : memref<3x1x128xf32, #tpu.memory_space<vmem>>, vector<1x1x128xf32>
    %8 = vector.shape_cast %7 : vector<1x1x128xf32> to vector<1x128xf32>
    %9 = arith.addf %6, %8 : vector<1x128xf32>
    %c0_13 = arith.constant 0 : index
    %c0_14 = arith.constant 0 : index
    %c0_15 = arith.constant 0 : index
    %10 = vector.load %arg8[%c0_13, %c0_14, %c0_15] : memref<3x1x96xf32, #tpu.memory_space<vmem>>, vector<1x1x96xf32>
    %11 = vector.shape_cast %10 : vector<1x1x96xf32> to vector<1x96xf32>
    %12 = vector.shape_cast %11 : vector<1x96xf32> to vector<1x96xf32>
    %13 = vector.broadcast %12 : vector<1x96xf32> to vector<2x96xf32>
    %c0_16 = arith.constant 0 : index
    %c0_17 = arith.constant 0 : index
    %c0_18 = arith.constant 0 : index
    %14 = vector.load %arg1[%c0_16, %c0_17, %c0_18] : memref<3x32x128xf32, #tpu.memory_space<vmem>>, vector<1x32x128xf32>
    %15 = vector.shape_cast %14 : vector<1x32x128xf32> to vector<32x128xf32>
    %cst = arith.constant dense<0.000000e+00> : vector<16x128xf32>
    %16 = tpu.matmul %0, %15, %cst {dimension_numbers = #tpu.dot_dimension_numbers<[1], [0], [0], [1], [0, 0, 1, 1], [], []>} : vector<16x32xf32>, vector<32x128xf32>, vector<16x128xf32> -> vector<16x128xf32>
    %17 = vector.broadcast %9 : vector<1x128xf32> to vector<16x128xf32>
    %18 = arith.addf %16, %17 : vector<16x128xf32>
    %c0_19 = arith.constant 0 : index
    %c0_20 = arith.constant 0 : index
    %19 = vector.load %arg19[%c0_19, %c0_20] : memref<16x128xf32, #tpu.memory_space<vmem>>, vector<16x128xf32>
    tpu.vector_store %arg19[%c0_19, %c0_20], %18 {strides = array<i32>} : memref<16x128xf32, #tpu.memory_space<vmem>>, vector<16x128xf32>,
    %c0_21 = arith.constant 0 : index
    %c0_22 = arith.constant 0 : index
    %c0_23 = arith.constant 0 : index
    %20 = vector.load %arg5[%c0_21, %c0_22, %c0_23] : memref<3x32x96xf32, #tpu.memory_space<vmem>>, vector<1x32x96xf32>
    %21 = vector.shape_cast %20 : vector<1x32x96xf32> to vector<32x96xf32>
    %cst_24 = arith.constant dense<0.000000e+00> : vector<16x96xf32>
    %22 = tpu.matmul %0, %21, %cst_24 {dimension_numbers = #tpu.dot_dimension_numbers<[1], [0], [0], [1], [0, 0, 1, 1], [], []>} : vector<16x32xf32>, vector<32x96xf32>, vector<16x96xf32> -> vector<16x96xf32>
    %c0_25 = arith.constant 0 : index
    %c0_26 = arith.constant 0 : index
    %c0_27 = arith.constant 0 : index
    %23 = vector.load %arg7[%c0_25, %c0_26, %c0_27] : memref<3x1x96xf32, #tpu.memory_space<vmem>>, vector<1x1x96xf32>
    %24 = vector.shape_cast %23 : vector<1x1x96xf32> to vector<1x96xf32>
    %25 = vector.broadcast %24 : vector<1x96xf32> to vector<16x96xf32>
    %26 = arith.addf %22, %25 : vector<16x96xf32>
    %c0_28 = arith.constant 0 : index
    %c0_29 = arith.constant 0 : index
    %27 = vector.load %arg20[%c0_28, %c0_29] : memref<16x96xf32, #tpu.memory_space<vmem>>, vector<16x96xf32>
    tpu.vector_store %arg20[%c0_28, %c0_29], %26 {strides = array<i32>} : memref<16x96xf32, #tpu.memory_space<vmem>>, vector<16x96xf32>,
    %c0_30 = arith.constant 0 : index
    %c0_31 = arith.constant 0 : index
    %c0_32 = arith.constant 0 : index
    %28 = vector.load %arg9[%c0_30, %c0_31, %c0_32] : memref<3x2x32xf32, #tpu.memory_space<vmem>>, vector<1x2x32xf32>
    %29 = vector.shape_cast %28 : vector<1x2x32xf32> to vector<2x32xf32>
    %c0_33 = arith.constant 0 : index
    %c0_34 = arith.constant 0 : index
    %c0_35 = arith.constant 0 : index
    %30 = vector.load %arg10[%c0_33, %c0_34, %c0_35] : memref<3x2x32xf32, #tpu.memory_space<vmem>>, vector<1x2x32xf32>
    %31 = vector.shape_cast %30 : vector<1x2x32xf32> to vector<2x32xf32>
    %c0_36 = arith.constant 0 : index
    %c0_37 = arith.constant 0 : index
    %c0_38 = arith.constant 0 : index
    %32 = vector.load %arg11[%c0_36, %c0_37, %c0_38] : memref<3x2x32xf32, #tpu.memory_space<vmem>>, vector<1x2x32xf32>
    %33 = vector.shape_cast %32 : vector<1x2x32xf32> to vector<2x32xf32>
    %c0_39 = arith.constant 0 : index
    %c0_40 = arith.constant 0 : index
    %34 = vector.load %arg19[%c0_39, %c0_40] : memref<16x128xf32, #tpu.memory_space<vmem>>, vector<2x128xf32>
    %cst_41 = arith.constant dense<0.000000e+00> : vector<2x128xf32>
    %35 = tpu.matmul %29, %2, %cst_41 {dimension_numbers = #tpu.dot_dimension_numbers<[1], [0], [0], [1], [0, 0, 1, 1], [], []>} : vector<2x32xf32>, vector<32x128xf32>, vector<2x128xf32> -> vector<2x128xf32>
    %36 = arith.addf %34, %35 : vector<2x128xf32>
    %37 = vector.extract_strided_slice %36 {offsets = [0, 0], sizes = [2, 96], strides = [1, 1]} : vector<2x128xf32> to vector<2x96xf32>
    %38 = arith.negf %37 : vector<2x96xf32>
    %39 = math.exp %38 : vector<2x96xf32>
    %cst_42 = arith.constant 1.000000e+00 : f32
    %40 = vector.broadcast %cst_42 : f32 to vector<2x96xf32>
    %41 = arith.addf %40, %39 : vector<2x96xf32>
    %42 = arith.divf %40, %41 : vector<2x96xf32>
    %43 = vector.extract_strided_slice %36 {offsets = [0, 96], sizes = [2, 32], strides = [1, 1]} : vector<2x128xf32> to vector<2x32xf32>
    %44 = math.tanh %43 : vector<2x32xf32>
    %45 = vector.extract_strided_slice %42 {offsets = [0, 32], sizes = [2, 32], strides = [1, 1]} : vector<2x96xf32> to vector<2x32xf32>
    %46 = arith.mulf %45, %31 : vector<2x32xf32>
    %47 = vector.extract_strided_slice %42 {offsets = [0, 0], sizes = [2, 32], strides = [1, 1]} : vector<2x96xf32> to vector<2x32xf32>
    %48 = arith.mulf %47, %44 : vector<2x32xf32>
    %49 = arith.addf %46, %48 : vector<2x32xf32>
    %50 = vector.extract_strided_slice %42 {offsets = [0, 64], sizes = [2, 32], strides = [1, 1]} : vector<2x96xf32> to vector<2x32xf32>
    %51 = math.tanh %49 : vector<2x32xf32>
    %52 = arith.mulf %50, %51 : vector<2x32xf32>
    %cst_43 = arith.constant dense<0.000000e+00> : vector<2x96xf32>
    %53 = tpu.matmul %33, %4, %cst_43 {dimension_numbers = #tpu.dot_dimension_numbers<[1], [0], [0], [1], [0, 0, 1, 1], [], []>} : vector<2x32xf32>, vector<32x96xf32>, vector<2x96xf32> -> vector<2x96xf32>
    %54 = arith.addf %53, %13 : vector<2x96xf32>
    %c0_44 = arith.constant 0 : index
    %c0_45 = arith.constant 0 : index
    %55 = vector.load %arg20[%c0_44, %c0_45] : memref<16x96xf32, #tpu.memory_space<vmem>>, vector<2x96xf32>
    %56 = vector.extract_strided_slice %55 {offsets = [0, 0], sizes = [2, 64], strides = [1, 1]} : vector<2x96xf32> to vector<2x64xf32>
    %57 = vector.extract_strided_slice %54 {offsets = [0, 0], sizes = [2, 64], strides = [1, 1]} : vector<2x96xf32> to vector<2x64xf32>
    %58 = arith.addf %56, %57 : vector<2x64xf32>
    %59 = arith.negf %58 : vector<2x64xf32>
    %60 = math.exp %59 : vector<2x64xf32>
    %cst_46 = arith.constant 1.000000e+00 : f32
    %61 = vector.broadcast %cst_46 : f32 to vector<2x64xf32>
    %62 = arith.addf %61, %60 : vector<2x64xf32>
    %63 = arith.divf %61, %62 : vector<2x64xf32>
    %64 = vector.extract_strided_slice %55 {offsets = [0, 64], sizes = [2, 32], strides = [1, 1]} : vector<2x96xf32> to vector<2x32xf32>
    %65 = vector.extract_strided_slice %63 {offsets = [0, 0], sizes = [2, 32], strides = [1, 1]} : vector<2x64xf32> to vector<2x32xf32>
    %66 = vector.extract_strided_slice %54 {offsets = [0, 64], sizes = [2, 32], strides = [1, 1]} : vector<2x96xf32> to vector<2x32xf32>
    %67 = arith.mulf %65, %66 : vector<2x32xf32>
    %68 = arith.addf %64, %67 : vector<2x32xf32>
    %69 = math.tanh %68 : vector<2x32xf32>
    %70 = vector.extract_strided_slice %63 {offsets = [0, 32], sizes = [2, 32], strides = [1, 1]} : vector<2x64xf32> to vector<2x32xf32>
    %cst_47 = arith.constant 1.000000e+00 : f32
    %71 = vector.broadcast %cst_47 : f32 to vector<2x32xf32>
    %72 = arith.subf %71, %70 : vector<2x32xf32>
    %73 = arith.mulf %72, %69 : vector<2x32xf32>
    %74 = vector.extract_strided_slice %63 {offsets = [0, 32], sizes = [2, 32], strides = [1, 1]} : vector<2x64xf32> to vector<2x32xf32>
    %75 = arith.mulf %74, %33 : vector<2x32xf32>
    %76 = arith.addf %73, %75 : vector<2x32xf32>
    %c0_48 = arith.constant 0 : index
    %c0_49 = arith.constant 0 : index
    %77 = vector.load %arg21[%c0_48, %c0_49] : memref<16x32xf32, #tpu.memory_space<vmem>>, vector<2x32xf32>
    tpu.vector_store %arg21[%c0_48, %c0_49], %52 {strides = array<i32>} : memref<16x32xf32, #tpu.memory_space<vmem>>, vector<2x32xf32>,
    %c0_50 = arith.constant 0 : index
    %c0_51 = arith.constant 0 : index
    %78 = vector.load %arg22[%c0_50, %c0_51] : memref<16x32xf32, #tpu.memory_space<vmem>>, vector<2x32xf32>
    tpu.vector_store %arg22[%c0_50, %c0_51], %76 {strides = array<i32>} : memref<16x32xf32, #tpu.memory_space<vmem>>, vector<2x32xf32>,
    %c2 = arith.constant 2 : index
    %c0_52 = arith.constant 0 : index
    %79 = vector.load %arg19[%c2, %c0_52] : memref<16x128xf32, #tpu.memory_space<vmem>>, vector<2x128xf32>
    %cst_53 = arith.constant dense<0.000000e+00> : vector<2x128xf32>
    %80 = tpu.matmul %52, %2, %cst_53 {dimension_numbers = #tpu.dot_dimension_numbers<[1], [0], [0], [1], [0, 0, 1, 1], [], []>} : vector<2x32xf32>, vector<32x128xf32>, vector<2x128xf32> -> vector<2x128xf32>
    %81 = arith.addf %79, %80 : vector<2x128xf32>
    %82 = vector.extract_strided_slice %81 {offsets = [0, 0], sizes = [2, 96], strides = [1, 1]} : vector<2x128xf32> to vector<2x96xf32>
    %83 = arith.negf %82 : vector<2x96xf32>
    %84 = math.exp %83 : vector<2x96xf32>
    %cst_54 = arith.constant 1.000000e+00 : f32
    %85 = vector.broadcast %cst_54 : f32 to vector<2x96xf32>
    %86 = arith.addf %85, %84 : vector<2x96xf32>
    %87 = arith.divf %85, %86 : vector<2x96xf32>
    %88 = vector.extract_strided_slice %81 {offsets = [0, 96], sizes = [2, 32], strides = [1, 1]} : vector<2x128xf32> to vector<2x32xf32>
    %89 = math.tanh %88 : vector<2x32xf32>
    %90 = vector.extract_strided_slice %87 {offsets = [0, 32], sizes = [2, 32], strides = [1, 1]} : vector<2x96xf32> to vector<2x32xf32>
    %91 = arith.mulf %90, %49 : vector<2x32xf32>
    %92 = vector.extract_strided_slice %87 {offsets = [0, 0], sizes = [2, 32], strides = [1, 1]} : vector<2x96xf32> to vector<2x32xf32>
    %93 = arith.mulf %92, %89 : vector<2x32xf32>
    %94 = arith.addf %91, %93 : vector<2x32xf32>
    %95 = vector.extract_strided_slice %87 {offsets = [0, 64], sizes = [2, 32], strides = [1, 1]} : vector<2x96xf32> to vector<2x32xf32>
    %96 = math.tanh %94 : vector<2x32xf32>
    %97 = arith.mulf %95, %96 : vector<2x32xf32>
    %cst_55 = arith.constant dense<0.000000e+00> : vector<2x96xf32>
    %98 = tpu.matmul %76, %4, %cst_55 {dimension_numbers = #tpu.dot_dimension_numbers<[1], [0], [0], [1], [0, 0, 1, 1], [], []>} : vector<2x32xf32>, vector<32x96xf32>, vector<2x96xf32> -> vector<2x96xf32>
    %99 = arith.addf %98, %13 : vector<2x96xf32>
    %c2_56 = arith.constant 2 : index
    %c0_57 = arith.constant 0 : index
    %100 = vector.load %arg20[%c2_56, %c0_57] : memref<16x96xf32, #tpu.memory_space<vmem>>, vector<2x96xf32>
    %101 = vector.extract_strided_slice %100 {offsets = [0, 0], sizes = [2, 64], strides = [1, 1]} : vector<2x96xf32> to vector<2x64xf32>
    %102 = vector.extract_strided_slice %99 {offsets = [0, 0], sizes = [2, 64], strides = [1, 1]} : vector<2x96xf32> to vector<2x64xf32>
    %103 = arith.addf %101, %102 : vector<2x64xf32>
    %104 = arith.negf %103 : vector<2x64xf32>
    %105 = math.exp %104 : vector<2x64xf32>
    %cst_58 = arith.constant 1.000000e+00 : f32
    %106 = vector.broadcast %cst_58 : f32 to vector<2x64xf32>
    %107 = arith.addf %106, %105 : vector<2x64xf32>
    %108 = arith.divf %106, %107 : vector<2x64xf32>
    %109 = vector.extract_strided_slice %100 {offsets = [0, 64], sizes = [2, 32], strides = [1, 1]} : vector<2x96xf32> to vector<2x32xf32>
    %110 = vector.extract_strided_slice %108 {offsets = [0, 0], sizes = [2, 32], strides = [1, 1]} : vector<2x64xf32> to vector<2x32xf32>
    %111 = vector.extract_strided_slice %99 {offsets = [0, 64], sizes = [2, 32], strides = [1, 1]} : vector<2x96xf32> to vector<2x32xf32>
    %112 = arith.mulf %110, %111 : vector<2x32xf32>
    %113 = arith.addf %109, %112 : vector<2x32xf32>
    %114 = math.tanh %113 : vector<2x32xf32>
    %115 = vector.extract_strided_slice %108 {offsets = [0, 32], sizes = [2, 32], strides = [1, 1]} : vector<2x64xf32> to vector<2x32xf32>
    %cst_59 = arith.constant 1.000000e+00 : f32
    %116 = vector.broadcast %cst_59 : f32 to vector<2x32xf32>
    %117 = arith.subf %116, %115 : vector<2x32xf32>
    %118 = arith.mulf %117, %114 : vector<2x32xf32>
    %119 = vector.extract_strided_slice %108 {offsets = [0, 32], sizes = [2, 32], strides = [1, 1]} : vector<2x64xf32> to vector<2x32xf32>
    %120 = arith.mulf %119, %76 : vector<2x32xf32>
    %121 = arith.addf %118, %120 : vector<2x32xf32>
    %c2_60 = arith.constant 2 : index
    %c0_61 = arith.constant 0 : index
    %122 = vector.load %arg21[%c2_60, %c0_61] : memref<16x32xf32, #tpu.memory_space<vmem>>, vector<2x32xf32>
    tpu.vector_store %arg21[%c2_60, %c0_61], %97 {strides = array<i32>} : memref<16x32xf32, #tpu.memory_space<vmem>>, vector<2x32xf32>,
    %c2_62 = arith.constant 2 : index
    %c0_63 = arith.constant 0 : index
    %123 = vector.load %arg22[%c2_62, %c0_63] : memref<16x32xf32, #tpu.memory_space<vmem>>, vector<2x32xf32>
    tpu.vector_store %arg22[%c2_62, %c0_63], %121 {strides = array<i32>} : memref<16x32xf32, #tpu.memory_space<vmem>>, vector<2x32xf32>,
    %c4 = arith.constant 4 : index
    %c0_64 = arith.constant 0 : index
    %124 = vector.load %arg19[%c4, %c0_64] : memref<16x128xf32, #tpu.memory_space<vmem>>, vector<2x128xf32>
    %cst_65 = arith.constant dense<0.000000e+00> : vector<2x128xf32>
    %125 = tpu.matmul %97, %2, %cst_65 {dimension_numbers = #tpu.dot_dimension_numbers<[1], [0], [0], [1], [0, 0, 1, 1], [], []>} : vector<2x32xf32>, vector<32x128xf32>, vector<2x128xf32> -> vector<2x128xf32>
    %126 = arith.addf %124, %125 : vector<2x128xf32>
    %127 = vector.extract_strided_slice %126 {offsets = [0, 0], sizes = [2, 96], strides = [1, 1]} : vector<2x128xf32> to vector<2x96xf32>
    %128 = arith.negf %127 : vector<2x96xf32>
    %129 = math.exp %128 : vector<2x96xf32>
    %cst_66 = arith.constant 1.000000e+00 : f32
    %130 = vector.broadcast %cst_66 : f32 to vector<2x96xf32>
    %131 = arith.addf %130, %129 : vector<2x96xf32>
    %132 = arith.divf %130, %131 : vector<2x96xf32>
    %133 = vector.extract_strided_slice %126 {offsets = [0, 96], sizes = [2, 32], strides = [1, 1]} : vector<2x128xf32> to vector<2x32xf32>
    %134 = math.tanh %133 : vector<2x32xf32>
    %135 = vector.extract_strided_slice %132 {offsets = [0, 32], sizes = [2, 32], strides = [1, 1]} : vector<2x96xf32> to vector<2x32xf32>
    %136 = arith.mulf %135, %94 : vector<2x32xf32>
    %137 = vector.extract_strided_slice %132 {offsets = [0, 0], sizes = [2, 32], strides = [1, 1]} : vector<2x96xf32> to vector<2x32xf32>
    %138 = arith.mulf %137, %134 : vector<2x32xf32>
    %139 = arith.addf %136, %138 : vector<2x32xf32>
    %140 = vector.extract_strided_slice %132 {offsets = [0, 64], sizes = [2, 32], strides = [1, 1]} : vector<2x96xf32> to vector<2x32xf32>
    %141 = math.tanh %139 : vector<2x32xf32>
    %142 = arith.mulf %140, %141 : vector<2x32xf32>
    %cst_67 = arith.constant dense<0.000000e+00> : vector<2x96xf32>
    %143 = tpu.matmul %121, %4, %cst_67 {dimension_numbers = #tpu.dot_dimension_numbers<[1], [0], [0], [1], [0, 0, 1, 1], [], []>} : vector<2x32xf32>, vector<32x96xf32>, vector<2x96xf32> -> vector<2x96xf32>
    %144 = arith.addf %143, %13 : vector<2x96xf32>
    %c4_68 = arith.constant 4 : index
    %c0_69 = arith.constant 0 : index
    %145 = vector.load %arg20[%c4_68, %c0_69] : memref<16x96xf32, #tpu.memory_space<vmem>>, vector<2x96xf32>
    %146 = vector.extract_strided_slice %145 {offsets = [0, 0], sizes = [2, 64], strides = [1, 1]} : vector<2x96xf32> to vector<2x64xf32>
    %147 = vector.extract_strided_slice %144 {offsets = [0, 0], sizes = [2, 64], strides = [1, 1]} : vector<2x96xf32> to vector<2x64xf32>
    %148 = arith.addf %146, %147 : vector<2x64xf32>
    %149 = arith.negf %148 : vector<2x64xf32>
    %150 = math.exp %149 : vector<2x64xf32>
    %cst_70 = arith.constant 1.000000e+00 : f32
    %151 = vector.broadcast %cst_70 : f32 to vector<2x64xf32>
    %152 = arith.addf %151, %150 : vector<2x64xf32>
    %153 = arith.divf %151, %152 : vector<2x64xf32>
    %154 = vector.extract_strided_slice %145 {offsets = [0, 64], sizes = [2, 32], strides = [1, 1]} : vector<2x96xf32> to vector<2x32xf32>
    %155 = vector.extract_strided_slice %153 {offsets = [0, 0], sizes = [2, 32], strides = [1, 1]} : vector<2x64xf32> to vector<2x32xf32>
    %156 = vector.extract_strided_slice %144 {offsets = [0, 64], sizes = [2, 32], strides = [1, 1]} : vector<2x96xf32> to vector<2x32xf32>
    %157 = arith.mulf %155, %156 : vector<2x32xf32>
    %158 = arith.addf %154, %157 : vector<2x32xf32>
    %159 = math.tanh %158 : vector<2x32xf32>
    %160 = vector.extract_strided_slice %153 {offsets = [0, 32], sizes = [2, 32], strides = [1, 1]} : vector<2x64xf32> to vector<2x32xf32>
    %cst_71 = arith.constant 1.000000e+00 : f32
    %161 = vector.broadcast %cst_71 : f32 to vector<2x32xf32>
    %162 = arith.subf %161, %160 : vector<2x32xf32>
    %163 = arith.mulf %162, %159 : vector<2x32xf32>
    %164 = vector.extract_strided_slice %153 {offsets = [0, 32], sizes = [2, 32], strides = [1, 1]} : vector<2x64xf32> to vector<2x32xf32>
    %165 = arith.mulf %164, %121 : vector<2x32xf32>
    %166 = arith.addf %163, %165 : vector<2x32xf32>
    %c4_72 = arith.constant 4 : index
    %c0_73 = arith.constant 0 : index
    %167 = vector.load %arg21[%c4_72, %c0_73] : memref<16x32xf32, #tpu.memory_space<vmem>>, vector<2x32xf32>
    tpu.vector_store %arg21[%c4_72, %c0_73], %142 {strides = array<i32>} : memref<16x32xf32, #tpu.memory_space<vmem>>, vector<2x32xf32>,
    %c4_74 = arith.constant 4 : index
    %c0_75 = arith.constant 0 : index
    %168 = vector.load %arg22[%c4_74, %c0_75] : memref<16x32xf32, #tpu.memory_space<vmem>>, vector<2x32xf32>
    tpu.vector_store %arg22[%c4_74, %c0_75], %166 {strides = array<i32>} : memref<16x32xf32, #tpu.memory_space<vmem>>, vector<2x32xf32>,
    %c6 = arith.constant 6 : index
    %c0_76 = arith.constant 0 : index
    %169 = vector.load %arg19[%c6, %c0_76] : memref<16x128xf32, #tpu.memory_space<vmem>>, vector<2x128xf32>
    %cst_77 = arith.constant dense<0.000000e+00> : vector<2x128xf32>
    %170 = tpu.matmul %142, %2, %cst_77 {dimension_numbers = #tpu.dot_dimension_numbers<[1], [0], [0], [1], [0, 0, 1, 1], [], []>} : vector<2x32xf32>, vector<32x128xf32>, vector<2x128xf32> -> vector<2x128xf32>
    %171 = arith.addf %169, %170 : vector<2x128xf32>
    %172 = vector.extract_strided_slice %171 {offsets = [0, 0], sizes = [2, 96], strides = [1, 1]} : vector<2x128xf32> to vector<2x96xf32>
    %173 = arith.negf %172 : vector<2x96xf32>
    %174 = math.exp %173 : vector<2x96xf32>
    %cst_78 = arith.constant 1.000000e+00 : f32
    %175 = vector.broadcast %cst_78 : f32 to vector<2x96xf32>
    %176 = arith.addf %175, %174 : vector<2x96xf32>
    %177 = arith.divf %175, %176 : vector<2x96xf32>
    %178 = vector.extract_strided_slice %171 {offsets = [0, 96], sizes = [2, 32], strides = [1, 1]} : vector<2x128xf32> to vector<2x32xf32>
    %179 = math.tanh %178 : vector<2x32xf32>
    %180 = vector.extract_strided_slice %177 {offsets = [0, 32], sizes = [2, 32], strides = [1, 1]} : vector<2x96xf32> to vector<2x32xf32>
    %181 = arith.mulf %180, %139 : vector<2x32xf32>
    %182 = vector.extract_strided_slice %177 {offsets = [0, 0], sizes = [2, 32], strides = [1, 1]} : vector<2x96xf32> to vector<2x32xf32>
    %183 = arith.mulf %182, %179 : vector<2x32xf32>
    %184 = arith.addf %181, %183 : vector<2x32xf32>
    %185 = vector.extract_strided_slice %177 {offsets = [0, 64], sizes = [2, 32], strides = [1, 1]} : vector<2x96xf32> to vector<2x32xf32>
    %186 = math.tanh %184 : vector<2x32xf32>
    %187 = arith.mulf %185, %186 : vector<2x32xf32>
    %cst_79 = arith.constant dense<0.000000e+00> : vector<2x96xf32>
    %188 = tpu.matmul %166, %4, %cst_79 {dimension_numbers = #tpu.dot_dimension_numbers<[1], [0], [0], [1], [0, 0, 1, 1], [], []>} : vector<2x32xf32>, vector<32x96xf32>, vector<2x96xf32> -> vector<2x96xf32>
    %189 = arith.addf %188, %13 : vector<2x96xf32>
    %c6_80 = arith.constant 6 : index
    %c0_81 = arith.constant 0 : index
    %190 = vector.load %arg20[%c6_80, %c0_81] : memref<16x96xf32, #tpu.memory_space<vmem>>, vector<2x96xf32>
    %191 = vector.extract_strided_slice %190 {offsets = [0, 0], sizes = [2, 64], strides = [1, 1]} : vector<2x96xf32> to vector<2x64xf32>
    %192 = vector.extract_strided_slice %189 {offsets = [0, 0], sizes = [2, 64], strides = [1, 1]} : vector<2x96xf32> to vector<2x64xf32>
    %193 = arith.addf %191, %192 : vector<2x64xf32>
    %194 = arith.negf %193 : vector<2x64xf32>
    %195 = math.exp %194 : vector<2x64xf32>
    %cst_82 = arith.constant 1.000000e+00 : f32
    %196 = vector.broadcast %cst_82 : f32 to vector<2x64xf32>
    %197 = arith.addf %196, %195 : vector<2x64xf32>
    %198 = arith.divf %196, %197 : vector<2x64xf32>
    %199 = vector.extract_strided_slice %190 {offsets = [0, 64], sizes = [2, 32], strides = [1, 1]} : vector<2x96xf32> to vector<2x32xf32>
    %200 = vector.extract_strided_slice %198 {offsets = [0, 0], sizes = [2, 32], strides = [1, 1]} : vector<2x64xf32> to vector<2x32xf32>
    %201 = vector.extract_strided_slice %189 {offsets = [0, 64], sizes = [2, 32], strides = [1, 1]} : vector<2x96xf32> to vector<2x32xf32>
    %202 = arith.mulf %200, %201 : vector<2x32xf32>
    %203 = arith.addf %199, %202 : vector<2x32xf32>
    %204 = math.tanh %203 : vector<2x32xf32>
    %205 = vector.extract_strided_slice %198 {offsets = [0, 32], sizes = [2, 32], strides = [1, 1]} : vector<2x64xf32> to vector<2x32xf32>
    %cst_83 = arith.constant 1.000000e+00 : f32
    %206 = vector.broadcast %cst_83 : f32 to vector<2x32xf32>
    %207 = arith.subf %206, %205 : vector<2x32xf32>
    %208 = arith.mulf %207, %204 : vector<2x32xf32>
    %209 = vector.extract_strided_slice %198 {offsets = [0, 32], sizes = [2, 32], strides = [1, 1]} : vector<2x64xf32> to vector<2x32xf32>
    %210 = arith.mulf %209, %166 : vector<2x32xf32>
    %211 = arith.addf %208, %210 : vector<2x32xf32>
    %c6_84 = arith.constant 6 : index
    %c0_85 = arith.constant 0 : index
    %212 = vector.load %arg21[%c6_84, %c0_85] : memref<16x32xf32, #tpu.memory_space<vmem>>, vector<2x32xf32>
    tpu.vector_store %arg21[%c6_84, %c0_85], %187 {strides = array<i32>} : memref<16x32xf32, #tpu.memory_space<vmem>>, vector<2x32xf32>,
    %c6_86 = arith.constant 6 : index
    %c0_87 = arith.constant 0 : index
    %213 = vector.load %arg22[%c6_86, %c0_87] : memref<16x32xf32, #tpu.memory_space<vmem>>, vector<2x32xf32>
    tpu.vector_store %arg22[%c6_86, %c0_87], %211 {strides = array<i32>} : memref<16x32xf32, #tpu.memory_space<vmem>>, vector<2x32xf32>,
    %c8 = arith.constant 8 : index
    %c0_88 = arith.constant 0 : index
    %214 = vector.load %arg19[%c8, %c0_88] : memref<16x128xf32, #tpu.memory_space<vmem>>, vector<2x128xf32>
    %cst_89 = arith.constant dense<0.000000e+00> : vector<2x128xf32>
    %215 = tpu.matmul %187, %2, %cst_89 {dimension_numbers = #tpu.dot_dimension_numbers<[1], [0], [0], [1], [0, 0, 1, 1], [], []>} : vector<2x32xf32>, vector<32x128xf32>, vector<2x128xf32> -> vector<2x128xf32>
    %216 = arith.addf %214, %215 : vector<2x128xf32>
    %217 = vector.extract_strided_slice %216 {offsets = [0, 0], sizes = [2, 96], strides = [1, 1]} : vector<2x128xf32> to vector<2x96xf32>
    %218 = arith.negf %217 : vector<2x96xf32>
    %219 = math.exp %218 : vector<2x96xf32>
    %cst_90 = arith.constant 1.000000e+00 : f32
    %220 = vector.broadcast %cst_90 : f32 to vector<2x96xf32>
    %221 = arith.addf %220, %219 : vector<2x96xf32>
    %222 = arith.divf %220, %221 : vector<2x96xf32>
    %223 = vector.extract_strided_slice %216 {offsets = [0, 96], sizes = [2, 32], strides = [1, 1]} : vector<2x128xf32> to vector<2x32xf32>
    %224 = math.tanh %223 : vector<2x32xf32>
    %225 = vector.extract_strided_slice %222 {offsets = [0, 32], sizes = [2, 32], strides = [1, 1]} : vector<2x96xf32> to vector<2x32xf32>
    %226 = arith.mulf %225, %184 : vector<2x32xf32>
    %227 = vector.extract_strided_slice %222 {offsets = [0, 0], sizes = [2, 32], strides = [1, 1]} : vector<2x96xf32> to vector<2x32xf32>
    %228 = arith.mulf %227, %224 : vector<2x32xf32>
    %229 = arith.addf %226, %228 : vector<2x32xf32>
    %230 = vector.extract_strided_slice %222 {offsets = [0, 64], sizes = [2, 32], strides = [1, 1]} : vector<2x96xf32> to vector<2x32xf32>
    %231 = math.tanh %229 : vector<2x32xf32>
    %232 = arith.mulf %230, %231 : vector<2x32xf32>
    %cst_91 = arith.constant dense<0.000000e+00> : vector<2x96xf32>
    %233 = tpu.matmul %211, %4, %cst_91 {dimension_numbers = #tpu.dot_dimension_numbers<[1], [0], [0], [1], [0, 0, 1, 1], [], []>} : vector<2x32xf32>, vector<32x96xf32>, vector<2x96xf32> -> vector<2x96xf32>
    %234 = arith.addf %233, %13 : vector<2x96xf32>
    %c8_92 = arith.constant 8 : index
    %c0_93 = arith.constant 0 : index
    %235 = vector.load %arg20[%c8_92, %c0_93] : memref<16x96xf32, #tpu.memory_space<vmem>>, vector<2x96xf32>
    %236 = vector.extract_strided_slice %235 {offsets = [0, 0], sizes = [2, 64], strides = [1, 1]} : vector<2x96xf32> to vector<2x64xf32>
    %237 = vector.extract_strided_slice %234 {offsets = [0, 0], sizes = [2, 64], strides = [1, 1]} : vector<2x96xf32> to vector<2x64xf32>
    %238 = arith.addf %236, %237 : vector<2x64xf32>
    %239 = arith.negf %238 : vector<2x64xf32>
    %240 = math.exp %239 : vector<2x64xf32>
    %cst_94 = arith.constant 1.000000e+00 : f32
    %241 = vector.broadcast %cst_94 : f32 to vector<2x64xf32>
    %242 = arith.addf %241, %240 : vector<2x64xf32>
    %243 = arith.divf %241, %242 : vector<2x64xf32>
    %244 = vector.extract_strided_slice %235 {offsets = [0, 64], sizes = [2, 32], strides = [1, 1]} : vector<2x96xf32> to vector<2x32xf32>
    %245 = vector.extract_strided_slice %243 {offsets = [0, 0], sizes = [2, 32], strides = [1, 1]} : vector<2x64xf32> to vector<2x32xf32>
    %246 = vector.extract_strided_slice %234 {offsets = [0, 64], sizes = [2, 32], strides = [1, 1]} : vector<2x96xf32> to vector<2x32xf32>
    %247 = arith.mulf %245, %246 : vector<2x32xf32>
    %248 = arith.addf %244, %247 : vector<2x32xf32>
    %249 = math.tanh %248 : vector<2x32xf32>
    %250 = vector.extract_strided_slice %243 {offsets = [0, 32], sizes = [2, 32], strides = [1, 1]} : vector<2x64xf32> to vector<2x32xf32>
    %cst_95 = arith.constant 1.000000e+00 : f32
    %251 = vector.broadcast %cst_95 : f32 to vector<2x32xf32>
    %252 = arith.subf %251, %250 : vector<2x32xf32>
    %253 = arith.mulf %252, %249 : vector<2x32xf32>
    %254 = vector.extract_strided_slice %243 {offsets = [0, 32], sizes = [2, 32], strides = [1, 1]} : vector<2x64xf32> to vector<2x32xf32>
    %255 = arith.mulf %254, %211 : vector<2x32xf32>
    %256 = arith.addf %253, %255 : vector<2x32xf32>
    %c8_96 = arith.constant 8 : index
    %c0_97 = arith.constant 0 : index
    %257 = vector.load %arg21[%c8_96, %c0_97] : memref<16x32xf32, #tpu.memory_space<vmem>>, vector<2x32xf32>
    tpu.vector_store %arg21[%c8_96, %c0_97], %232 {strides = array<i32>} : memref<16x32xf32, #tpu.memory_space<vmem>>, vector<2x32xf32>,
    %c8_98 = arith.constant 8 : index
    %c0_99 = arith.constant 0 : index
    %258 = vector.load %arg22[%c8_98, %c0_99] : memref<16x32xf32, #tpu.memory_space<vmem>>, vector<2x32xf32>
    tpu.vector_store %arg22[%c8_98, %c0_99], %256 {strides = array<i32>} : memref<16x32xf32, #tpu.memory_space<vmem>>, vector<2x32xf32>,
    %c10 = arith.constant 10 : index
    %c0_100 = arith.constant 0 : index
    %259 = vector.load %arg19[%c10, %c0_100] : memref<16x128xf32, #tpu.memory_space<vmem>>, vector<2x128xf32>
    %cst_101 = arith.constant dense<0.000000e+00> : vector<2x128xf32>
    %260 = tpu.matmul %232, %2, %cst_101 {dimension_numbers = #tpu.dot_dimension_numbers<[1], [0], [0], [1], [0, 0, 1, 1], [], []>} : vector<2x32xf32>, vector<32x128xf32>, vector<2x128xf32> -> vector<2x128xf32>
    %261 = arith.addf %259, %260 : vector<2x128xf32>
    %262 = vector.extract_strided_slice %261 {offsets = [0, 0], sizes = [2, 96], strides = [1, 1]} : vector<2x128xf32> to vector<2x96xf32>
    %263 = arith.negf %262 : vector<2x96xf32>
    %264 = math.exp %263 : vector<2x96xf32>
    %cst_102 = arith.constant 1.000000e+00 : f32
    %265 = vector.broadcast %cst_102 : f32 to vector<2x96xf32>
    %266 = arith.addf %265, %264 : vector<2x96xf32>
    %267 = arith.divf %265, %266 : vector<2x96xf32>
    %268 = vector.extract_strided_slice %261 {offsets = [0, 96], sizes = [2, 32], strides = [1, 1]} : vector<2x128xf32> to vector<2x32xf32>
    %269 = math.tanh %268 : vector<2x32xf32>
    %270 = vector.extract_strided_slice %267 {offsets = [0, 32], sizes = [2, 32], strides = [1, 1]} : vector<2x96xf32> to vector<2x32xf32>
    %271 = arith.mulf %270, %229 : vector<2x32xf32>
    %272 = vector.extract_strided_slice %267 {offsets = [0, 0], sizes = [2, 32], strides = [1, 1]} : vector<2x96xf32> to vector<2x32xf32>
    %273 = arith.mulf %272, %269 : vector<2x32xf32>
    %274 = arith.addf %271, %273 : vector<2x32xf32>
    %275 = vector.extract_strided_slice %267 {offsets = [0, 64], sizes = [2, 32], strides = [1, 1]} : vector<2x96xf32> to vector<2x32xf32>
    %276 = math.tanh %274 : vector<2x32xf32>
    %277 = arith.mulf %275, %276 : vector<2x32xf32>
    %cst_103 = arith.constant dense<0.000000e+00> : vector<2x96xf32>
    %278 = tpu.matmul %256, %4, %cst_103 {dimension_numbers = #tpu.dot_dimension_numbers<[1], [0], [0], [1], [0, 0, 1, 1], [], []>} : vector<2x32xf32>, vector<32x96xf32>, vector<2x96xf32> -> vector<2x96xf32>
    %279 = arith.addf %278, %13 : vector<2x96xf32>
    %c10_104 = arith.constant 10 : index
    %c0_105 = arith.constant 0 : index
    %280 = vector.load %arg20[%c10_104, %c0_105] : memref<16x96xf32, #tpu.memory_space<vmem>>, vector<2x96xf32>
    %281 = vector.extract_strided_slice %280 {offsets = [0, 0], sizes = [2, 64], strides = [1, 1]} : vector<2x96xf32> to vector<2x64xf32>
    %282 = vector.extract_strided_slice %279 {offsets = [0, 0], sizes = [2, 64], strides = [1, 1]} : vector<2x96xf32> to vector<2x64xf32>
    %283 = arith.addf %281, %282 : vector<2x64xf32>
    %284 = arith.negf %283 : vector<2x64xf32>
    %285 = math.exp %284 : vector<2x64xf32>
    %cst_106 = arith.constant 1.000000e+00 : f32
    %286 = vector.broadcast %cst_106 : f32 to vector<2x64xf32>
    %287 = arith.addf %286, %285 : vector<2x64xf32>
    %288 = arith.divf %286, %287 : vector<2x64xf32>
    %289 = vector.extract_strided_slice %280 {offsets = [0, 64], sizes = [2, 32], strides = [1, 1]} : vector<2x96xf32> to vector<2x32xf32>
    %290 = vector.extract_strided_slice %288 {offsets = [0, 0], sizes = [2, 32], strides = [1, 1]} : vector<2x64xf32> to vector<2x32xf32>
    %291 = vector.extract_strided_slice %279 {offsets = [0, 64], sizes = [2, 32], strides = [1, 1]} : vector<2x96xf32> to vector<2x32xf32>
    %292 = arith.mulf %290, %291 : vector<2x32xf32>
    %293 = arith.addf %289, %292 : vector<2x32xf32>
    %294 = math.tanh %293 : vector<2x32xf32>
    %295 = vector.extract_strided_slice %288 {offsets = [0, 32], sizes = [2, 32], strides = [1, 1]} : vector<2x64xf32> to vector<2x32xf32>
    %cst_107 = arith.constant 1.000000e+00 : f32
    %296 = vector.broadcast %cst_107 : f32 to vector<2x32xf32>
    %297 = arith.subf %296, %295 : vector<2x32xf32>
    %298 = arith.mulf %297, %294 : vector<2x32xf32>
    %299 = vector.extract_strided_slice %288 {offsets = [0, 32], sizes = [2, 32], strides = [1, 1]} : vector<2x64xf32> to vector<2x32xf32>
    %300 = arith.mulf %299, %256 : vector<2x32xf32>
    %301 = arith.addf %298, %300 : vector<2x32xf32>
    %c10_108 = arith.constant 10 : index
    %c0_109 = arith.constant 0 : index
    %302 = vector.load %arg21[%c10_108, %c0_109] : memref<16x32xf32, #tpu.memory_space<vmem>>, vector<2x32xf32>
    tpu.vector_store %arg21[%c10_108, %c0_109], %277 {strides = array<i32>} : memref<16x32xf32, #tpu.memory_space<vmem>>, vector<2x32xf32>,
    %c10_110 = arith.constant 10 : index
    %c0_111 = arith.constant 0 : index
    %303 = vector.load %arg22[%c10_110, %c0_111] : memref<16x32xf32, #tpu.memory_space<vmem>>, vector<2x32xf32>
    tpu.vector_store %arg22[%c10_110, %c0_111], %301 {strides = array<i32>} : memref<16x32xf32, #tpu.memory_space<vmem>>, vector<2x32xf32>,
    %c12 = arith.constant 12 : index
    %c0_112 = arith.constant 0 : index
    %304 = vector.load %arg19[%c12, %c0_112] : memref<16x128xf32, #tpu.memory_space<vmem>>, vector<2x128xf32>
    %cst_113 = arith.constant dense<0.000000e+00> : vector<2x128xf32>
    %305 = tpu.matmul %277, %2, %cst_113 {dimension_numbers = #tpu.dot_dimension_numbers<[1], [0], [0], [1], [0, 0, 1, 1], [], []>} : vector<2x32xf32>, vector<32x128xf32>, vector<2x128xf32> -> vector<2x128xf32>
    %306 = arith.addf %304, %305 : vector<2x128xf32>
    %307 = vector.extract_strided_slice %306 {offsets = [0, 0], sizes = [2, 96], strides = [1, 1]} : vector<2x128xf32> to vector<2x96xf32>
    %308 = arith.negf %307 : vector<2x96xf32>
    %309 = math.exp %308 : vector<2x96xf32>
    %cst_114 = arith.constant 1.000000e+00 : f32
    %310 = vector.broadcast %cst_114 : f32 to vector<2x96xf32>
    %311 = arith.addf %310, %309 : vector<2x96xf32>
    %312 = arith.divf %310, %311 : vector<2x96xf32>
    %313 = vector.extract_strided_slice %306 {offsets = [0, 96], sizes = [2, 32], strides = [1, 1]} : vector<2x128xf32> to vector<2x32xf32>
    %314 = math.tanh %313 : vector<2x32xf32>
    %315 = vector.extract_strided_slice %312 {offsets = [0, 32], sizes = [2, 32], strides = [1, 1]} : vector<2x96xf32> to vector<2x32xf32>
    %316 = arith.mulf %315, %274 : vector<2x32xf32>
    %317 = vector.extract_strided_slice %312 {offsets = [0, 0], sizes = [2, 32], strides = [1, 1]} : vector<2x96xf32> to vector<2x32xf32>
    %318 = arith.mulf %317, %314 : vector<2x32xf32>
    %319 = arith.addf %316, %318 : vector<2x32xf32>
    %320 = vector.extract_strided_slice %312 {offsets = [0, 64], sizes = [2, 32], strides = [1, 1]} : vector<2x96xf32> to vector<2x32xf32>
    %321 = math.tanh %319 : vector<2x32xf32>
    %322 = arith.mulf %320, %321 : vector<2x32xf32>
    %cst_115 = arith.constant dense<0.000000e+00> : vector<2x96xf32>
    %323 = tpu.matmul %301, %4, %cst_115 {dimension_numbers = #tpu.dot_dimension_numbers<[1], [0], [0], [1], [0, 0, 1, 1], [], []>} : vector<2x32xf32>, vector<32x96xf32>, vector<2x96xf32> -> vector<2x96xf32>
    %324 = arith.addf %323, %13 : vector<2x96xf32>
    %c12_116 = arith.constant 12 : index
    %c0_117 = arith.constant 0 : index
    %325 = vector.load %arg20[%c12_116, %c0_117] : memref<16x96xf32, #tpu.memory_space<vmem>>, vector<2x96xf32>
    %326 = vector.extract_strided_slice %325 {offsets = [0, 0], sizes = [2, 64], strides = [1, 1]} : vector<2x96xf32> to vector<2x64xf32>
    %327 = vector.extract_strided_slice %324 {offsets = [0, 0], sizes = [2, 64], strides = [1, 1]} : vector<2x96xf32> to vector<2x64xf32>
    %328 = arith.addf %326, %327 : vector<2x64xf32>
    %329 = arith.negf %328 : vector<2x64xf32>
    %330 = math.exp %329 : vector<2x64xf32>
    %cst_118 = arith.constant 1.000000e+00 : f32
    %331 = vector.broadcast %cst_118 : f32 to vector<2x64xf32>
    %332 = arith.addf %331, %330 : vector<2x64xf32>
    %333 = arith.divf %331, %332 : vector<2x64xf32>
    %334 = vector.extract_strided_slice %325 {offsets = [0, 64], sizes = [2, 32], strides = [1, 1]} : vector<2x96xf32> to vector<2x32xf32>
    %335 = vector.extract_strided_slice %333 {offsets = [0, 0], sizes = [2, 32], strides = [1, 1]} : vector<2x64xf32> to vector<2x32xf32>
    %336 = vector.extract_strided_slice %324 {offsets = [0, 64], sizes = [2, 32], strides = [1, 1]} : vector<2x96xf32> to vector<2x32xf32>
    %337 = arith.mulf %335, %336 : vector<2x32xf32>
    %338 = arith.addf %334, %337 : vector<2x32xf32>
    %339 = math.tanh %338 : vector<2x32xf32>
    %340 = vector.extract_strided_slice %333 {offsets = [0, 32], sizes = [2, 32], strides = [1, 1]} : vector<2x64xf32> to vector<2x32xf32>
    %cst_119 = arith.constant 1.000000e+00 : f32
    %341 = vector.broadcast %cst_119 : f32 to vector<2x32xf32>
    %342 = arith.subf %341, %340 : vector<2x32xf32>
    %343 = arith.mulf %342, %339 : vector<2x32xf32>
    %344 = vector.extract_strided_slice %333 {offsets = [0, 32], sizes = [2, 32], strides = [1, 1]} : vector<2x64xf32> to vector<2x32xf32>
    %345 = arith.mulf %344, %301 : vector<2x32xf32>
    %346 = arith.addf %343, %345 : vector<2x32xf32>
    %c12_120 = arith.constant 12 : index
    %c0_121 = arith.constant 0 : index
    %347 = vector.load %arg21[%c12_120, %c0_121] : memref<16x32xf32, #tpu.memory_space<vmem>>, vector<2x32xf32>
    tpu.vector_store %arg21[%c12_120, %c0_121], %322 {strides = array<i32>} : memref<16x32xf32, #tpu.memory_space<vmem>>, vector<2x32xf32>,
    %c12_122 = arith.constant 12 : index
    %c0_123 = arith.constant 0 : index
    %348 = vector.load %arg22[%c12_122, %c0_123] : memref<16x32xf32, #tpu.memory_space<vmem>>, vector<2x32xf32>
    tpu.vector_store %arg22[%c12_122, %c0_123], %346 {strides = array<i32>} : memref<16x32xf32, #tpu.memory_space<vmem>>, vector<2x32xf32>,
    %c14 = arith.constant 14 : index
    %c0_124 = arith.constant 0 : index
    %349 = vector.load %arg19[%c14, %c0_124] : memref<16x128xf32, #tpu.memory_space<vmem>>, vector<2x128xf32>
    %cst_125 = arith.constant dense<0.000000e+00> : vector<2x128xf32>
    %350 = tpu.matmul %322, %2, %cst_125 {dimension_numbers = #tpu.dot_dimension_numbers<[1], [0], [0], [1], [0, 0, 1, 1], [], []>} : vector<2x32xf32>, vector<32x128xf32>, vector<2x128xf32> -> vector<2x128xf32>
    %351 = arith.addf %349, %350 : vector<2x128xf32>
    %352 = vector.extract_strided_slice %351 {offsets = [0, 0], sizes = [2, 96], strides = [1, 1]} : vector<2x128xf32> to vector<2x96xf32>
    %353 = arith.negf %352 : vector<2x96xf32>
    %354 = math.exp %353 : vector<2x96xf32>
    %cst_126 = arith.constant 1.000000e+00 : f32
    %355 = vector.broadcast %cst_126 : f32 to vector<2x96xf32>
    %356 = arith.addf %355, %354 : vector<2x96xf32>
    %357 = arith.divf %355, %356 : vector<2x96xf32>
    %358 = vector.extract_strided_slice %351 {offsets = [0, 96], sizes = [2, 32], strides = [1, 1]} : vector<2x128xf32> to vector<2x32xf32>
    %359 = math.tanh %358 : vector<2x32xf32>
    %360 = vector.extract_strided_slice %357 {offsets = [0, 32], sizes = [2, 32], strides = [1, 1]} : vector<2x96xf32> to vector<2x32xf32>
    %361 = arith.mulf %360, %319 : vector<2x32xf32>
    %362 = vector.extract_strided_slice %357 {offsets = [0, 0], sizes = [2, 32], strides = [1, 1]} : vector<2x96xf32> to vector<2x32xf32>
    %363 = arith.mulf %362, %359 : vector<2x32xf32>
    %364 = arith.addf %361, %363 : vector<2x32xf32>
    %365 = vector.extract_strided_slice %357 {offsets = [0, 64], sizes = [2, 32], strides = [1, 1]} : vector<2x96xf32> to vector<2x32xf32>
    %366 = math.tanh %364 : vector<2x32xf32>
    %367 = arith.mulf %365, %366 : vector<2x32xf32>
    %cst_127 = arith.constant dense<0.000000e+00> : vector<2x96xf32>
    %368 = tpu.matmul %346, %4, %cst_127 {dimension_numbers = #tpu.dot_dimension_numbers<[1], [0], [0], [1], [0, 0, 1, 1], [], []>} : vector<2x32xf32>, vector<32x96xf32>, vector<2x96xf32> -> vector<2x96xf32>
    %369 = arith.addf %368, %13 : vector<2x96xf32>
    %c14_128 = arith.constant 14 : index
    %c0_129 = arith.constant 0 : index
    %370 = vector.load %arg20[%c14_128, %c0_129] : memref<16x96xf32, #tpu.memory_space<vmem>>, vector<2x96xf32>
    %371 = vector.extract_strided_slice %370 {offsets = [0, 0], sizes = [2, 64], strides = [1, 1]} : vector<2x96xf32> to vector<2x64xf32>
    %372 = vector.extract_strided_slice %369 {offsets = [0, 0], sizes = [2, 64], strides = [1, 1]} : vector<2x96xf32> to vector<2x64xf32>
    %373 = arith.addf %371, %372 : vector<2x64xf32>
    %374 = arith.negf %373 : vector<2x64xf32>
    %375 = math.exp %374 : vector<2x64xf32>
    %cst_130 = arith.constant 1.000000e+00 : f32
    %376 = vector.broadcast %cst_130 : f32 to vector<2x64xf32>
    %377 = arith.addf %376, %375 : vector<2x64xf32>
    %378 = arith.divf %376, %377 : vector<2x64xf32>
    %379 = vector.extract_strided_slice %370 {offsets = [0, 64], sizes = [2, 32], strides = [1, 1]} : vector<2x96xf32> to vector<2x32xf32>
    %380 = vector.extract_strided_slice %378 {offsets = [0, 0], sizes = [2, 32], strides = [1, 1]} : vector<2x64xf32> to vector<2x32xf32>
    %381 = vector.extract_strided_slice %369 {offsets = [0, 64], sizes = [2, 32], strides = [1, 1]} : vector<2x96xf32> to vector<2x32xf32>
    %382 = arith.mulf %380, %381 : vector<2x32xf32>
    %383 = arith.addf %379, %382 : vector<2x32xf32>
    %384 = math.tanh %383 : vector<2x32xf32>
    %385 = vector.extract_strided_slice %378 {offsets = [0, 32], sizes = [2, 32], strides = [1, 1]} : vector<2x64xf32> to vector<2x32xf32>
    %cst_131 = arith.constant 1.000000e+00 : f32
    %386 = vector.broadcast %cst_131 : f32 to vector<2x32xf32>
    %387 = arith.subf %386, %385 : vector<2x32xf32>
    %388 = arith.mulf %387, %384 : vector<2x32xf32>
    %389 = vector.extract_strided_slice %378 {offsets = [0, 32], sizes = [2, 32], strides = [1, 1]} : vector<2x64xf32> to vector<2x32xf32>
    %390 = arith.mulf %389, %346 : vector<2x32xf32>
    %391 = arith.addf %388, %390 : vector<2x32xf32>
    %c14_132 = arith.constant 14 : index
    %c0_133 = arith.constant 0 : index
    %392 = vector.load %arg21[%c14_132, %c0_133] : memref<16x32xf32, #tpu.memory_space<vmem>>, vector<2x32xf32>
    tpu.vector_store %arg21[%c14_132, %c0_133], %367 {strides = array<i32>} : memref<16x32xf32, #tpu.memory_space<vmem>>, vector<2x32xf32>,
    %c14_134 = arith.constant 14 : index
    %c0_135 = arith.constant 0 : index
    %393 = vector.load %arg22[%c14_134, %c0_135] : memref<16x32xf32, #tpu.memory_space<vmem>>, vector<2x32xf32>
    tpu.vector_store %arg22[%c14_134, %c0_135], %391 {strides = array<i32>} : memref<16x32xf32, #tpu.memory_space<vmem>>, vector<2x32xf32>,
    %c0_136 = arith.constant 0 : index
    %c0_137 = arith.constant 0 : index
    %c0_138 = arith.constant 0 : index
    %394 = vector.load %arg16[%c0_136, %c0_137, %c0_138] : memref<3x2x32xf32, #tpu.memory_space<vmem>>, vector<1x2x32xf32>
    %395 = vector.shape_cast %394 : vector<1x2x32xf32> to vector<2x32xf32>
    %396 = vector.shape_cast %367 : vector<2x32xf32> to vector<1x2x32xf32>
    tpu.vector_store %arg16[%c0_136, %c0_137, %c0_138], %396 {strides = array<i32>} : memref<3x2x32xf32, #tpu.memory_space<vmem>>, vector<1x2x32xf32>,
    %c0_139 = arith.constant 0 : index
    %c0_140 = arith.constant 0 : index
    %c0_141 = arith.constant 0 : index
    %397 = vector.load %arg17[%c0_139, %c0_140, %c0_141] : memref<3x2x32xf32, #tpu.memory_space<vmem>>, vector<1x2x32xf32>
    %398 = vector.shape_cast %397 : vector<1x2x32xf32> to vector<2x32xf32>
    %399 = vector.shape_cast %364 : vector<2x32xf32> to vector<1x2x32xf32>
    tpu.vector_store %arg17[%c0_139, %c0_140, %c0_141], %399 {strides = array<i32>} : memref<3x2x32xf32, #tpu.memory_space<vmem>>, vector<1x2x32xf32>,
    %c0_142 = arith.constant 0 : index
    %c0_143 = arith.constant 0 : index
    %c0_144 = arith.constant 0 : index
    %400 = vector.load %arg18[%c0_142, %c0_143, %c0_144] : memref<3x2x32xf32, #tpu.memory_space<vmem>>, vector<1x2x32xf32>
    %401 = vector.shape_cast %400 : vector<1x2x32xf32> to vector<2x32xf32>
    %402 = vector.shape_cast %391 : vector<2x32xf32> to vector<1x2x32xf32>
    tpu.vector_store %arg18[%c0_142, %c0_143, %c0_144], %402 {strides = array<i32>} : memref<3x2x32xf32, #tpu.memory_space<vmem>>, vector<1x2x32xf32>,
    %c1 = arith.constant 1 : index
    %c0_145 = arith.constant 0 : index
    %c0_146 = arith.constant 0 : index
    %403 = vector.load %arg2[%c1, %c0_145, %c0_146] : memref<3x32x128xf32, #tpu.memory_space<vmem>>, vector<1x32x128xf32>
    %404 = vector.shape_cast %403 : vector<1x32x128xf32> to vector<32x128xf32>
    %c1_147 = arith.constant 1 : index
    %c0_148 = arith.constant 0 : index
    %c0_149 = arith.constant 0 : index
    %405 = vector.load %arg6[%c1_147, %c0_148, %c0_149] : memref<3x32x96xf32, #tpu.memory_space<vmem>>, vector<1x32x96xf32>
    %406 = vector.shape_cast %405 : vector<1x32x96xf32> to vector<32x96xf32>
    %c1_150 = arith.constant 1 : index
    %c0_151 = arith.constant 0 : index
    %c0_152 = arith.constant 0 : index
    %407 = vector.load %arg3[%c1_150, %c0_151, %c0_152] : memref<3x1x128xf32, #tpu.memory_space<vmem>>, vector<1x1x128xf32>
    %408 = vector.shape_cast %407 : vector<1x1x128xf32> to vector<1x128xf32>
    %c1_153 = arith.constant 1 : index
    %c0_154 = arith.constant 0 : index
    %c0_155 = arith.constant 0 : index
    %409 = vector.load %arg4[%c1_153, %c0_154, %c0_155] : memref<3x1x128xf32, #tpu.memory_space<vmem>>, vector<1x1x128xf32>
    %410 = vector.shape_cast %409 : vector<1x1x128xf32> to vector<1x128xf32>
    %411 = arith.addf %408, %410 : vector<1x128xf32>
    %c1_156 = arith.constant 1 : index
    %c0_157 = arith.constant 0 : index
    %c0_158 = arith.constant 0 : index
    %412 = vector.load %arg8[%c1_156, %c0_157, %c0_158] : memref<3x1x96xf32, #tpu.memory_space<vmem>>, vector<1x1x96xf32>
    %413 = vector.shape_cast %412 : vector<1x1x96xf32> to vector<1x96xf32>
    %414 = vector.shape_cast %413 : vector<1x96xf32> to vector<1x96xf32>
    %415 = vector.broadcast %414 : vector<1x96xf32> to vector<2x96xf32>
    %c0_159 = arith.constant 0 : index
    %c0_160 = arith.constant 0 : index
    %416 = vector.load %arg21[%c0_159, %c0_160] : memref<16x32xf32, #tpu.memory_space<vmem>>, vector<16x32xf32>
    %c0_161 = arith.constant 0 : index
    %c0_162 = arith.constant 0 : index
    %417 = vector.load %arg22[%c0_161, %c0_162] : memref<16x32xf32, #tpu.memory_space<vmem>>, vector<16x32xf32>
    %c1_163 = arith.constant 1 : index
    %c0_164 = arith.constant 0 : index
    %c0_165 = arith.constant 0 : index
    %418 = vector.load %arg1[%c1_163, %c0_164, %c0_165] : memref<3x32x128xf32, #tpu.memory_space<vmem>>, vector<1x32x128xf32>
    %419 = vector.shape_cast %418 : vector<1x32x128xf32> to vector<32x128xf32>
    %cst_166 = arith.constant dense<0.000000e+00> : vector<16x128xf32>
    %420 = tpu.matmul %416, %419, %cst_166 {dimension_numbers = #tpu.dot_dimension_numbers<[1], [0], [0], [1], [0, 0, 1, 1], [], []>} : vector<16x32xf32>, vector<32x128xf32>, vector<16x128xf32> -> vector<16x128xf32>
    %421 = vector.broadcast %411 : vector<1x128xf32> to vector<16x128xf32>
    %422 = arith.addf %420, %421 : vector<16x128xf32>
    %c0_167 = arith.constant 0 : index
    %c0_168 = arith.constant 0 : index
    %423 = vector.load %arg19[%c0_167, %c0_168] : memref<16x128xf32, #tpu.memory_space<vmem>>, vector<16x128xf32>
    tpu.vector_store %arg19[%c0_167, %c0_168], %422 {strides = array<i32>} : memref<16x128xf32, #tpu.memory_space<vmem>>, vector<16x128xf32>,
    %c1_169 = arith.constant 1 : index
    %c0_170 = arith.constant 0 : index
    %c0_171 = arith.constant 0 : index
    %424 = vector.load %arg5[%c1_169, %c0_170, %c0_171] : memref<3x32x96xf32, #tpu.memory_space<vmem>>, vector<1x32x96xf32>
    %425 = vector.shape_cast %424 : vector<1x32x96xf32> to vector<32x96xf32>
    %cst_172 = arith.constant dense<0.000000e+00> : vector<16x96xf32>
    %426 = tpu.matmul %417, %425, %cst_172 {dimension_numbers = #tpu.dot_dimension_numbers<[1], [0], [0], [1], [0, 0, 1, 1], [], []>} : vector<16x32xf32>, vector<32x96xf32>, vector<16x96xf32> -> vector<16x96xf32>
    %c1_173 = arith.constant 1 : index
    %c0_174 = arith.constant 0 : index
    %c0_175 = arith.constant 0 : index
    %427 = vector.load %arg7[%c1_173, %c0_174, %c0_175] : memref<3x1x96xf32, #tpu.memory_space<vmem>>, vector<1x1x96xf32>
    %428 = vector.shape_cast %427 : vector<1x1x96xf32> to vector<1x96xf32>
    %429 = vector.broadcast %428 : vector<1x96xf32> to vector<16x96xf32>
    %430 = arith.addf %426, %429 : vector<16x96xf32>
    %c0_176 = arith.constant 0 : index
    %c0_177 = arith.constant 0 : index
    %431 = vector.load %arg20[%c0_176, %c0_177] : memref<16x96xf32, #tpu.memory_space<vmem>>, vector<16x96xf32>
    tpu.vector_store %arg20[%c0_176, %c0_177], %430 {strides = array<i32>} : memref<16x96xf32, #tpu.memory_space<vmem>>, vector<16x96xf32>,
    %c1_178 = arith.constant 1 : index
    %c0_179 = arith.constant 0 : index
    %c0_180 = arith.constant 0 : index
    %432 = vector.load %arg9[%c1_178, %c0_179, %c0_180] : memref<3x2x32xf32, #tpu.memory_space<vmem>>, vector<1x2x32xf32>
    %433 = vector.shape_cast %432 : vector<1x2x32xf32> to vector<2x32xf32>
    %c1_181 = arith.constant 1 : index
    %c0_182 = arith.constant 0 : index
    %c0_183 = arith.constant 0 : index
    %434 = vector.load %arg10[%c1_181, %c0_182, %c0_183] : memref<3x2x32xf32, #tpu.memory_space<vmem>>, vector<1x2x32xf32>
    %435 = vector.shape_cast %434 : vector<1x2x32xf32> to vector<2x32xf32>
    %c1_184 = arith.constant 1 : index
    %c0_185 = arith.constant 0 : index
    %c0_186 = arith.constant 0 : index
    %436 = vector.load %arg11[%c1_184, %c0_185, %c0_186] : memref<3x2x32xf32, #tpu.memory_space<vmem>>, vector<1x2x32xf32>
    %437 = vector.shape_cast %436 : vector<1x2x32xf32> to vector<2x32xf32>
    %c0_187 = arith.constant 0 : index
    %c0_188 = arith.constant 0 : index
    %438 = vector.load %arg19[%c0_187, %c0_188] : memref<16x128xf32, #tpu.memory_space<vmem>>, vector<2x128xf32>
    %cst_189 = arith.constant dense<0.000000e+00> : vector<2x128xf32>
    %439 = tpu.matmul %433, %404, %cst_189 {dimension_numbers = #tpu.dot_dimension_numbers<[1], [0], [0], [1], [0, 0, 1, 1], [], []>} : vector<2x32xf32>, vector<32x128xf32>, vector<2x128xf32> -> vector<2x128xf32>
    %440 = arith.addf %438, %439 : vector<2x128xf32>
    %441 = vector.extract_strided_slice %440 {offsets = [0, 0], sizes = [2, 96], strides = [1, 1]} : vector<2x128xf32> to vector<2x96xf32>
    %442 = arith.negf %441 : vector<2x96xf32>
    %443 = math.exp %442 : vector<2x96xf32>
    %cst_190 = arith.constant 1.000000e+00 : f32
    %444 = vector.broadcast %cst_190 : f32 to vector<2x96xf32>
    %445 = arith.addf %444, %443 : vector<2x96xf32>
    %446 = arith.divf %444, %445 : vector<2x96xf32>
    %447 = vector.extract_strided_slice %440 {offsets = [0, 96], sizes = [2, 32], strides = [1, 1]} : vector<2x128xf32> to vector<2x32xf32>
    %448 = math.tanh %447 : vector<2x32xf32>
    %449 = vector.extract_strided_slice %446 {offsets = [0, 32], sizes = [2, 32], strides = [1, 1]} : vector<2x96xf32> to vector<2x32xf32>
    %450 = arith.mulf %449, %435 : vector<2x32xf32>
    %451 = vector.extract_strided_slice %446 {offsets = [0, 0], sizes = [2, 32], strides = [1, 1]} : vector<2x96xf32> to vector<2x32xf32>
    %452 = arith.mulf %451, %448 : vector<2x32xf32>
    %453 = arith.addf %450, %452 : vector<2x32xf32>
    %454 = vector.extract_strided_slice %446 {offsets = [0, 64], sizes = [2, 32], strides = [1, 1]} : vector<2x96xf32> to vector<2x32xf32>
    %455 = math.tanh %453 : vector<2x32xf32>
    %456 = arith.mulf %454, %455 : vector<2x32xf32>
    %cst_191 = arith.constant dense<0.000000e+00> : vector<2x96xf32>
    %457 = tpu.matmul %437, %406, %cst_191 {dimension_numbers = #tpu.dot_dimension_numbers<[1], [0], [0], [1], [0, 0, 1, 1], [], []>} : vector<2x32xf32>, vector<32x96xf32>, vector<2x96xf32> -> vector<2x96xf32>
    %458 = arith.addf %457, %415 : vector<2x96xf32>
    %c0_192 = arith.constant 0 : index
    %c0_193 = arith.constant 0 : index
    %459 = vector.load %arg20[%c0_192, %c0_193] : memref<16x96xf32, #tpu.memory_space<vmem>>, vector<2x96xf32>
    %460 = vector.extract_strided_slice %459 {offsets = [0, 0], sizes = [2, 64], strides = [1, 1]} : vector<2x96xf32> to vector<2x64xf32>
    %461 = vector.extract_strided_slice %458 {offsets = [0, 0], sizes = [2, 64], strides = [1, 1]} : vector<2x96xf32> to vector<2x64xf32>
    %462 = arith.addf %460, %461 : vector<2x64xf32>
    %463 = arith.negf %462 : vector<2x64xf32>
    %464 = math.exp %463 : vector<2x64xf32>
    %cst_194 = arith.constant 1.000000e+00 : f32
    %465 = vector.broadcast %cst_194 : f32 to vector<2x64xf32>
    %466 = arith.addf %465, %464 : vector<2x64xf32>
    %467 = arith.divf %465, %466 : vector<2x64xf32>
    %468 = vector.extract_strided_slice %459 {offsets = [0, 64], sizes = [2, 32], strides = [1, 1]} : vector<2x96xf32> to vector<2x32xf32>
    %469 = vector.extract_strided_slice %467 {offsets = [0, 0], sizes = [2, 32], strides = [1, 1]} : vector<2x64xf32> to vector<2x32xf32>
    %470 = vector.extract_strided_slice %458 {offsets = [0, 64], sizes = [2, 32], strides = [1, 1]} : vector<2x96xf32> to vector<2x32xf32>
    %471 = arith.mulf %469, %470 : vector<2x32xf32>
    %472 = arith.addf %468, %471 : vector<2x32xf32>
    %473 = math.tanh %472 : vector<2x32xf32>
    %474 = vector.extract_strided_slice %467 {offsets = [0, 32], sizes = [2, 32], strides = [1, 1]} : vector<2x64xf32> to vector<2x32xf32>
    %cst_195 = arith.constant 1.000000e+00 : f32
    %475 = vector.broadcast %cst_195 : f32 to vector<2x32xf32>
    %476 = arith.subf %475, %474 : vector<2x32xf32>
    %477 = arith.mulf %476, %473 : vector<2x32xf32>
    %478 = vector.extract_strided_slice %467 {offsets = [0, 32], sizes = [2, 32], strides = [1, 1]} : vector<2x64xf32> to vector<2x32xf32>
    %479 = arith.mulf %478, %437 : vector<2x32xf32>
    %480 = arith.addf %477, %479 : vector<2x32xf32>
    %c0_196 = arith.constant 0 : index
    %c0_197 = arith.constant 0 : index
    %481 = vector.load %arg21[%c0_196, %c0_197] : memref<16x32xf32, #tpu.memory_space<vmem>>, vector<2x32xf32>
    tpu.vector_store %arg21[%c0_196, %c0_197], %456 {strides = array<i32>} : memref<16x32xf32, #tpu.memory_space<vmem>>, vector<2x32xf32>,
    %c0_198 = arith.constant 0 : index
    %c0_199 = arith.constant 0 : index
    %482 = vector.load %arg22[%c0_198, %c0_199] : memref<16x32xf32, #tpu.memory_space<vmem>>, vector<2x32xf32>
    tpu.vector_store %arg22[%c0_198, %c0_199], %480 {strides = array<i32>} : memref<16x32xf32, #tpu.memory_space<vmem>>, vector<2x32xf32>,
    %c2_200 = arith.constant 2 : index
    %c0_201 = arith.constant 0 : index
    %483 = vector.load %arg19[%c2_200, %c0_201] : memref<16x128xf32, #tpu.memory_space<vmem>>, vector<2x128xf32>
    %cst_202 = arith.constant dense<0.000000e+00> : vector<2x128xf32>
    %484 = tpu.matmul %456, %404, %cst_202 {dimension_numbers = #tpu.dot_dimension_numbers<[1], [0], [0], [1], [0, 0, 1, 1], [], []>} : vector<2x32xf32>, vector<32x128xf32>, vector<2x128xf32> -> vector<2x128xf32>
    %485 = arith.addf %483, %484 : vector<2x128xf32>
    %486 = vector.extract_strided_slice %485 {offsets = [0, 0], sizes = [2, 96], strides = [1, 1]} : vector<2x128xf32> to vector<2x96xf32>
    %487 = arith.negf %486 : vector<2x96xf32>
    %488 = math.exp %487 : vector<2x96xf32>
    %cst_203 = arith.constant 1.000000e+00 : f32
    %489 = vector.broadcast %cst_203 : f32 to vector<2x96xf32>
    %490 = arith.addf %489, %488 : vector<2x96xf32>
    %491 = arith.divf %489, %490 : vector<2x96xf32>
    %492 = vector.extract_strided_slice %485 {offsets = [0, 96], sizes = [2, 32], strides = [1, 1]} : vector<2x128xf32> to vector<2x32xf32>
    %493 = math.tanh %492 : vector<2x32xf32>
    %494 = vector.extract_strided_slice %491 {offsets = [0, 32], sizes = [2, 32], strides = [1, 1]} : vector<2x96xf32> to vector<2x32xf32>
    %495 = arith.mulf %494, %453 : vector<2x32xf32>
    %496 = vector.extract_strided_slice %491 {offsets = [0, 0], sizes = [2, 32], strides = [1, 1]} : vector<2x96xf32> to vector<2x32xf32>
    %497 = arith.mulf %496, %493 : vector<2x32xf32>
    %498 = arith.addf %495, %497 : vector<2x32xf32>
    %499 = vector.extract_strided_slice %491 {offsets = [0, 64], sizes = [2, 32], strides = [1, 1]} : vector<2x96xf32> to vector<2x32xf32>
    %500 = math.tanh %498 : vector<2x32xf32>
    %501 = arith.mulf %499, %500 : vector<2x32xf32>
    %cst_204 = arith.constant dense<0.000000e+00> : vector<2x96xf32>
    %502 = tpu.matmul %480, %406, %cst_204 {dimension_numbers = #tpu.dot_dimension_numbers<[1], [0], [0], [1], [0, 0, 1, 1], [], []>} : vector<2x32xf32>, vector<32x96xf32>, vector<2x96xf32> -> vector<2x96xf32>
    %503 = arith.addf %502, %415 : vector<2x96xf32>
    %c2_205 = arith.constant 2 : index
    %c0_206 = arith.constant 0 : index
    %504 = vector.load %arg20[%c2_205, %c0_206] : memref<16x96xf32, #tpu.memory_space<vmem>>, vector<2x96xf32>
    %505 = vector.extract_strided_slice %504 {offsets = [0, 0], sizes = [2, 64], strides = [1, 1]} : vector<2x96xf32> to vector<2x64xf32>
    %506 = vector.extract_strided_slice %503 {offsets = [0, 0], sizes = [2, 64], strides = [1, 1]} : vector<2x96xf32> to vector<2x64xf32>
    %507 = arith.addf %505, %506 : vector<2x64xf32>
    %508 = arith.negf %507 : vector<2x64xf32>
    %509 = math.exp %508 : vector<2x64xf32>
    %cst_207 = arith.constant 1.000000e+00 : f32
    %510 = vector.broadcast %cst_207 : f32 to vector<2x64xf32>
    %511 = arith.addf %510, %509 : vector<2x64xf32>
    %512 = arith.divf %510, %511 : vector<2x64xf32>
    %513 = vector.extract_strided_slice %504 {offsets = [0, 64], sizes = [2, 32], strides = [1, 1]} : vector<2x96xf32> to vector<2x32xf32>
    %514 = vector.extract_strided_slice %512 {offsets = [0, 0], sizes = [2, 32], strides = [1, 1]} : vector<2x64xf32> to vector<2x32xf32>
    %515 = vector.extract_strided_slice %503 {offsets = [0, 64], sizes = [2, 32], strides = [1, 1]} : vector<2x96xf32> to vector<2x32xf32>
    %516 = arith.mulf %514, %515 : vector<2x32xf32>
    %517 = arith.addf %513, %516 : vector<2x32xf32>
    %518 = math.tanh %517 : vector<2x32xf32>
    %519 = vector.extract_strided_slice %512 {offsets = [0, 32], sizes = [2, 32], strides = [1, 1]} : vector<2x64xf32> to vector<2x32xf32>
    %cst_208 = arith.constant 1.000000e+00 : f32
    %520 = vector.broadcast %cst_208 : f32 to vector<2x32xf32>
    %521 = arith.subf %520, %519 : vector<2x32xf32>
    %522 = arith.mulf %521, %518 : vector<2x32xf32>
    %523 = vector.extract_strided_slice %512 {offsets = [0, 32], sizes = [2, 32], strides = [1, 1]} : vector<2x64xf32> to vector<2x32xf32>
    %524 = arith.mulf %523, %480 : vector<2x32xf32>
    %525 = arith.addf %522, %524 : vector<2x32xf32>
    %c2_209 = arith.constant 2 : index
    %c0_210 = arith.constant 0 : index
    %526 = vector.load %arg21[%c2_209, %c0_210] : memref<16x32xf32, #tpu.memory_space<vmem>>, vector<2x32xf32>
    tpu.vector_store %arg21[%c2_209, %c0_210], %501 {strides = array<i32>} : memref<16x32xf32, #tpu.memory_space<vmem>>, vector<2x32xf32>,
    %c2_211 = arith.constant 2 : index
    %c0_212 = arith.constant 0 : index
    %527 = vector.load %arg22[%c2_211, %c0_212] : memref<16x32xf32, #tpu.memory_space<vmem>>, vector<2x32xf32>
    tpu.vector_store %arg22[%c2_211, %c0_212], %525 {strides = array<i32>} : memref<16x32xf32, #tpu.memory_space<vmem>>, vector<2x32xf32>,
    %c4_213 = arith.constant 4 : index
    %c0_214 = arith.constant 0 : index
    %528 = vector.load %arg19[%c4_213, %c0_214] : memref<16x128xf32, #tpu.memory_space<vmem>>, vector<2x128xf32>
    %cst_215 = arith.constant dense<0.000000e+00> : vector<2x128xf32>
    %529 = tpu.matmul %501, %404, %cst_215 {dimension_numbers = #tpu.dot_dimension_numbers<[1], [0], [0], [1], [0, 0, 1, 1], [], []>} : vector<2x32xf32>, vector<32x128xf32>, vector<2x128xf32> -> vector<2x128xf32>
    %530 = arith.addf %528, %529 : vector<2x128xf32>
    %531 = vector.extract_strided_slice %530 {offsets = [0, 0], sizes = [2, 96], strides = [1, 1]} : vector<2x128xf32> to vector<2x96xf32>
    %532 = arith.negf %531 : vector<2x96xf32>
    %533 = math.exp %532 : vector<2x96xf32>
    %cst_216 = arith.constant 1.000000e+00 : f32
    %534 = vector.broadcast %cst_216 : f32 to vector<2x96xf32>
    %535 = arith.addf %534, %533 : vector<2x96xf32>
    %536 = arith.divf %534, %535 : vector<2x96xf32>
    %537 = vector.extract_strided_slice %530 {offsets = [0, 96], sizes = [2, 32], strides = [1, 1]} : vector<2x128xf32> to vector<2x32xf32>
    %538 = math.tanh %537 : vector<2x32xf32>
    %539 = vector.extract_strided_slice %536 {offsets = [0, 32], sizes = [2, 32], strides = [1, 1]} : vector<2x96xf32> to vector<2x32xf32>
    %540 = arith.mulf %539, %498 : vector<2x32xf32>
    %541 = vector.extract_strided_slice %536 {offsets = [0, 0], sizes = [2, 32], strides = [1, 1]} : vector<2x96xf32> to vector<2x32xf32>
    %542 = arith.mulf %541, %538 : vector<2x32xf32>
    %543 = arith.addf %540, %542 : vector<2x32xf32>
    %544 = vector.extract_strided_slice %536 {offsets = [0, 64], sizes = [2, 32], strides = [1, 1]} : vector<2x96xf32> to vector<2x32xf32>
    %545 = math.tanh %543 : vector<2x32xf32>
    %546 = arith.mulf %544, %545 : vector<2x32xf32>
    %cst_217 = arith.constant dense<0.000000e+00> : vector<2x96xf32>
    %547 = tpu.matmul %525, %406, %cst_217 {dimension_numbers = #tpu.dot_dimension_numbers<[1], [0], [0], [1], [0, 0, 1, 1], [], []>} : vector<2x32xf32>, vector<32x96xf32>, vector<2x96xf32> -> vector<2x96xf32>
    %548 = arith.addf %547, %415 : vector<2x96xf32>
    %c4_218 = arith.constant 4 : index
    %c0_219 = arith.constant 0 : index
    %549 = vector.load %arg20[%c4_218, %c0_219] : memref<16x96xf32, #tpu.memory_space<vmem>>, vector<2x96xf32>
    %550 = vector.extract_strided_slice %549 {offsets = [0, 0], sizes = [2, 64], strides = [1, 1]} : vector<2x96xf32> to vector<2x64xf32>
    %551 = vector.extract_strided_slice %548 {offsets = [0, 0], sizes = [2, 64], strides = [1, 1]} : vector<2x96xf32> to vector<2x64xf32>
    %552 = arith.addf %550, %551 : vector<2x64xf32>
    %553 = arith.negf %552 : vector<2x64xf32>
    %554 = math.exp %553 : vector<2x64xf32>
    %cst_220 = arith.constant 1.000000e+00 : f32
    %555 = vector.broadcast %cst_220 : f32 to vector<2x64xf32>
    %556 = arith.addf %555, %554 : vector<2x64xf32>
    %557 = arith.divf %555, %556 : vector<2x64xf32>
    %558 = vector.extract_strided_slice %549 {offsets = [0, 64], sizes = [2, 32], strides = [1, 1]} : vector<2x96xf32> to vector<2x32xf32>
    %559 = vector.extract_strided_slice %557 {offsets = [0, 0], sizes = [2, 32], strides = [1, 1]} : vector<2x64xf32> to vector<2x32xf32>
    %560 = vector.extract_strided_slice %548 {offsets = [0, 64], sizes = [2, 32], strides = [1, 1]} : vector<2x96xf32> to vector<2x32xf32>
    %561 = arith.mulf %559, %560 : vector<2x32xf32>
    %562 = arith.addf %558, %561 : vector<2x32xf32>
    %563 = math.tanh %562 : vector<2x32xf32>
    %564 = vector.extract_strided_slice %557 {offsets = [0, 32], sizes = [2, 32], strides = [1, 1]} : vector<2x64xf32> to vector<2x32xf32>
    %cst_221 = arith.constant 1.000000e+00 : f32
    %565 = vector.broadcast %cst_221 : f32 to vector<2x32xf32>
    %566 = arith.subf %565, %564 : vector<2x32xf32>
    %567 = arith.mulf %566, %563 : vector<2x32xf32>
    %568 = vector.extract_strided_slice %557 {offsets = [0, 32], sizes = [2, 32], strides = [1, 1]} : vector<2x64xf32> to vector<2x32xf32>
    %569 = arith.mulf %568, %525 : vector<2x32xf32>
    %570 = arith.addf %567, %569 : vector<2x32xf32>
    %c4_222 = arith.constant 4 : index
    %c0_223 = arith.constant 0 : index
    %571 = vector.load %arg21[%c4_222, %c0_223] : memref<16x32xf32, #tpu.memory_space<vmem>>, vector<2x32xf32>
    tpu.vector_store %arg21[%c4_222, %c0_223], %546 {strides = array<i32>} : memref<16x32xf32, #tpu.memory_space<vmem>>, vector<2x32xf32>,
    %c4_224 = arith.constant 4 : index
    %c0_225 = arith.constant 0 : index
    %572 = vector.load %arg22[%c4_224, %c0_225] : memref<16x32xf32, #tpu.memory_space<vmem>>, vector<2x32xf32>
    tpu.vector_store %arg22[%c4_224, %c0_225], %570 {strides = array<i32>} : memref<16x32xf32, #tpu.memory_space<vmem>>, vector<2x32xf32>,
    %c6_226 = arith.constant 6 : index
    %c0_227 = arith.constant 0 : index
    %573 = vector.load %arg19[%c6_226, %c0_227] : memref<16x128xf32, #tpu.memory_space<vmem>>, vector<2x128xf32>
    %cst_228 = arith.constant dense<0.000000e+00> : vector<2x128xf32>
    %574 = tpu.matmul %546, %404, %cst_228 {dimension_numbers = #tpu.dot_dimension_numbers<[1], [0], [0], [1], [0, 0, 1, 1], [], []>} : vector<2x32xf32>, vector<32x128xf32>, vector<2x128xf32> -> vector<2x128xf32>
    %575 = arith.addf %573, %574 : vector<2x128xf32>
    %576 = vector.extract_strided_slice %575 {offsets = [0, 0], sizes = [2, 96], strides = [1, 1]} : vector<2x128xf32> to vector<2x96xf32>
    %577 = arith.negf %576 : vector<2x96xf32>
    %578 = math.exp %577 : vector<2x96xf32>
    %cst_229 = arith.constant 1.000000e+00 : f32
    %579 = vector.broadcast %cst_229 : f32 to vector<2x96xf32>
    %580 = arith.addf %579, %578 : vector<2x96xf32>
    %581 = arith.divf %579, %580 : vector<2x96xf32>
    %582 = vector.extract_strided_slice %575 {offsets = [0, 96], sizes = [2, 32], strides = [1, 1]} : vector<2x128xf32> to vector<2x32xf32>
    %583 = math.tanh %582 : vector<2x32xf32>
    %584 = vector.extract_strided_slice %581 {offsets = [0, 32], sizes = [2, 32], strides = [1, 1]} : vector<2x96xf32> to vector<2x32xf32>
    %585 = arith.mulf %584, %543 : vector<2x32xf32>
    %586 = vector.extract_strided_slice %581 {offsets = [0, 0], sizes = [2, 32], strides = [1, 1]} : vector<2x96xf32> to vector<2x32xf32>
    %587 = arith.mulf %586, %583 : vector<2x32xf32>
    %588 = arith.addf %585, %587 : vector<2x32xf32>
    %589 = vector.extract_strided_slice %581 {offsets = [0, 64], sizes = [2, 32], strides = [1, 1]} : vector<2x96xf32> to vector<2x32xf32>
    %590 = math.tanh %588 : vector<2x32xf32>
    %591 = arith.mulf %589, %590 : vector<2x32xf32>
    %cst_230 = arith.constant dense<0.000000e+00> : vector<2x96xf32>
    %592 = tpu.matmul %570, %406, %cst_230 {dimension_numbers = #tpu.dot_dimension_numbers<[1], [0], [0], [1], [0, 0, 1, 1], [], []>} : vector<2x32xf32>, vector<32x96xf32>, vector<2x96xf32> -> vector<2x96xf32>
    %593 = arith.addf %592, %415 : vector<2x96xf32>
    %c6_231 = arith.constant 6 : index
    %c0_232 = arith.constant 0 : index
    %594 = vector.load %arg20[%c6_231, %c0_232] : memref<16x96xf32, #tpu.memory_space<vmem>>, vector<2x96xf32>
    %595 = vector.extract_strided_slice %594 {offsets = [0, 0], sizes = [2, 64], strides = [1, 1]} : vector<2x96xf32> to vector<2x64xf32>
    %596 = vector.extract_strided_slice %593 {offsets = [0, 0], sizes = [2, 64], strides = [1, 1]} : vector<2x96xf32> to vector<2x64xf32>
    %597 = arith.addf %595, %596 : vector<2x64xf32>
    %598 = arith.negf %597 : vector<2x64xf32>
    %599 = math.exp %598 : vector<2x64xf32>
    %cst_233 = arith.constant 1.000000e+00 : f32
    %600 = vector.broadcast %cst_233 : f32 to vector<2x64xf32>
    %601 = arith.addf %600, %599 : vector<2x64xf32>
    %602 = arith.divf %600, %601 : vector<2x64xf32>
    %603 = vector.extract_strided_slice %594 {offsets = [0, 64], sizes = [2, 32], strides = [1, 1]} : vector<2x96xf32> to vector<2x32xf32>
    %604 = vector.extract_strided_slice %602 {offsets = [0, 0], sizes = [2, 32], strides = [1, 1]} : vector<2x64xf32> to vector<2x32xf32>
    %605 = vector.extract_strided_slice %593 {offsets = [0, 64], sizes = [2, 32], strides = [1, 1]} : vector<2x96xf32> to vector<2x32xf32>
    %606 = arith.mulf %604, %605 : vector<2x32xf32>
    %607 = arith.addf %603, %606 : vector<2x32xf32>
    %608 = math.tanh %607 : vector<2x32xf32>
    %609 = vector.extract_strided_slice %602 {offsets = [0, 32], sizes = [2, 32], strides = [1, 1]} : vector<2x64xf32> to vector<2x32xf32>
    %cst_234 = arith.constant 1.000000e+00 : f32
    %610 = vector.broadcast %cst_234 : f32 to vector<2x32xf32>
    %611 = arith.subf %610, %609 : vector<2x32xf32>
    %612 = arith.mulf %611, %608 : vector<2x32xf32>
    %613 = vector.extract_strided_slice %602 {offsets = [0, 32], sizes = [2, 32], strides = [1, 1]} : vector<2x64xf32> to vector<2x32xf32>
    %614 = arith.mulf %613, %570 : vector<2x32xf32>
    %615 = arith.addf %612, %614 : vector<2x32xf32>
    %c6_235 = arith.constant 6 : index
    %c0_236 = arith.constant 0 : index
    %616 = vector.load %arg21[%c6_235, %c0_236] : memref<16x32xf32, #tpu.memory_space<vmem>>, vector<2x32xf32>
    tpu.vector_store %arg21[%c6_235, %c0_236], %591 {strides = array<i32>} : memref<16x32xf32, #tpu.memory_space<vmem>>, vector<2x32xf32>,
    %c6_237 = arith.constant 6 : index
    %c0_238 = arith.constant 0 : index
    %617 = vector.load %arg22[%c6_237, %c0_238] : memref<16x32xf32, #tpu.memory_space<vmem>>, vector<2x32xf32>
    tpu.vector_store %arg22[%c6_237, %c0_238], %615 {strides = array<i32>} : memref<16x32xf32, #tpu.memory_space<vmem>>, vector<2x32xf32>,
    %c8_239 = arith.constant 8 : index
    %c0_240 = arith.constant 0 : index
    %618 = vector.load %arg19[%c8_239, %c0_240] : memref<16x128xf32, #tpu.memory_space<vmem>>, vector<2x128xf32>
    %cst_241 = arith.constant dense<0.000000e+00> : vector<2x128xf32>
    %619 = tpu.matmul %591, %404, %cst_241 {dimension_numbers = #tpu.dot_dimension_numbers<[1], [0], [0], [1], [0, 0, 1, 1], [], []>} : vector<2x32xf32>, vector<32x128xf32>, vector<2x128xf32> -> vector<2x128xf32>
    %620 = arith.addf %618, %619 : vector<2x128xf32>
    %621 = vector.extract_strided_slice %620 {offsets = [0, 0], sizes = [2, 96], strides = [1, 1]} : vector<2x128xf32> to vector<2x96xf32>
    %622 = arith.negf %621 : vector<2x96xf32>
    %623 = math.exp %622 : vector<2x96xf32>
    %cst_242 = arith.constant 1.000000e+00 : f32
    %624 = vector.broadcast %cst_242 : f32 to vector<2x96xf32>
    %625 = arith.addf %624, %623 : vector<2x96xf32>
    %626 = arith.divf %624, %625 : vector<2x96xf32>
    %627 = vector.extract_strided_slice %620 {offsets = [0, 96], sizes = [2, 32], strides = [1, 1]} : vector<2x128xf32> to vector<2x32xf32>
    %628 = math.tanh %627 : vector<2x32xf32>
    %629 = vector.extract_strided_slice %626 {offsets = [0, 32], sizes = [2, 32], strides = [1, 1]} : vector<2x96xf32> to vector<2x32xf32>
    %630 = arith.mulf %629, %588 : vector<2x32xf32>
    %631 = vector.extract_strided_slice %626 {offsets = [0, 0], sizes = [2, 32], strides = [1, 1]} : vector<2x96xf32> to vector<2x32xf32>
    %632 = arith.mulf %631, %628 : vector<2x32xf32>
    %633 = arith.addf %630, %632 : vector<2x32xf32>
    %634 = vector.extract_strided_slice %626 {offsets = [0, 64], sizes = [2, 32], strides = [1, 1]} : vector<2x96xf32> to vector<2x32xf32>
    %635 = math.tanh %633 : vector<2x32xf32>
    %636 = arith.mulf %634, %635 : vector<2x32xf32>
    %cst_243 = arith.constant dense<0.000000e+00> : vector<2x96xf32>
    %637 = tpu.matmul %615, %406, %cst_243 {dimension_numbers = #tpu.dot_dimension_numbers<[1], [0], [0], [1], [0, 0, 1, 1], [], []>} : vector<2x32xf32>, vector<32x96xf32>, vector<2x96xf32> -> vector<2x96xf32>
    %638 = arith.addf %637, %415 : vector<2x96xf32>
    %c8_244 = arith.constant 8 : index
    %c0_245 = arith.constant 0 : index
    %639 = vector.load %arg20[%c8_244, %c0_245] : memref<16x96xf32, #tpu.memory_space<vmem>>, vector<2x96xf32>
    %640 = vector.extract_strided_slice %639 {offsets = [0, 0], sizes = [2, 64], strides = [1, 1]} : vector<2x96xf32> to vector<2x64xf32>
    %641 = vector.extract_strided_slice %638 {offsets = [0, 0], sizes = [2, 64], strides = [1, 1]} : vector<2x96xf32> to vector<2x64xf32>
    %642 = arith.addf %640, %641 : vector<2x64xf32>
    %643 = arith.negf %642 : vector<2x64xf32>
    %644 = math.exp %643 : vector<2x64xf32>
    %cst_246 = arith.constant 1.000000e+00 : f32
    %645 = vector.broadcast %cst_246 : f32 to vector<2x64xf32>
    %646 = arith.addf %645, %644 : vector<2x64xf32>
    %647 = arith.divf %645, %646 : vector<2x64xf32>
    %648 = vector.extract_strided_slice %639 {offsets = [0, 64], sizes = [2, 32], strides = [1, 1]} : vector<2x96xf32> to vector<2x32xf32>
    %649 = vector.extract_strided_slice %647 {offsets = [0, 0], sizes = [2, 32], strides = [1, 1]} : vector<2x64xf32> to vector<2x32xf32>
    %650 = vector.extract_strided_slice %638 {offsets = [0, 64], sizes = [2, 32], strides = [1, 1]} : vector<2x96xf32> to vector<2x32xf32>
    %651 = arith.mulf %649, %650 : vector<2x32xf32>
    %652 = arith.addf %648, %651 : vector<2x32xf32>
    %653 = math.tanh %652 : vector<2x32xf32>
    %654 = vector.extract_strided_slice %647 {offsets = [0, 32], sizes = [2, 32], strides = [1, 1]} : vector<2x64xf32> to vector<2x32xf32>
    %cst_247 = arith.constant 1.000000e+00 : f32
    %655 = vector.broadcast %cst_247 : f32 to vector<2x32xf32>
    %656 = arith.subf %655, %654 : vector<2x32xf32>
    %657 = arith.mulf %656, %653 : vector<2x32xf32>
    %658 = vector.extract_strided_slice %647 {offsets = [0, 32], sizes = [2, 32], strides = [1, 1]} : vector<2x64xf32> to vector<2x32xf32>
    %659 = arith.mulf %658, %615 : vector<2x32xf32>
    %660 = arith.addf %657, %659 : vector<2x32xf32>
    %c8_248 = arith.constant 8 : index
    %c0_249 = arith.constant 0 : index
    %661 = vector.load %arg21[%c8_248, %c0_249] : memref<16x32xf32, #tpu.memory_space<vmem>>, vector<2x32xf32>
    tpu.vector_store %arg21[%c8_248, %c0_249], %636 {strides = array<i32>} : memref<16x32xf32, #tpu.memory_space<vmem>>, vector<2x32xf32>,
    %c8_250 = arith.constant 8 : index
    %c0_251 = arith.constant 0 : index
    %662 = vector.load %arg22[%c8_250, %c0_251] : memref<16x32xf32, #tpu.memory_space<vmem>>, vector<2x32xf32>
    tpu.vector_store %arg22[%c8_250, %c0_251], %660 {strides = array<i32>} : memref<16x32xf32, #tpu.memory_space<vmem>>, vector<2x32xf32>,
    %c10_252 = arith.constant 10 : index
    %c0_253 = arith.constant 0 : index
    %663 = vector.load %arg19[%c10_252, %c0_253] : memref<16x128xf32, #tpu.memory_space<vmem>>, vector<2x128xf32>
    %cst_254 = arith.constant dense<0.000000e+00> : vector<2x128xf32>
    %664 = tpu.matmul %636, %404, %cst_254 {dimension_numbers = #tpu.dot_dimension_numbers<[1], [0], [0], [1], [0, 0, 1, 1], [], []>} : vector<2x32xf32>, vector<32x128xf32>, vector<2x128xf32> -> vector<2x128xf32>
    %665 = arith.addf %663, %664 : vector<2x128xf32>
    %666 = vector.extract_strided_slice %665 {offsets = [0, 0], sizes = [2, 96], strides = [1, 1]} : vector<2x128xf32> to vector<2x96xf32>
    %667 = arith.negf %666 : vector<2x96xf32>
    %668 = math.exp %667 : vector<2x96xf32>
    %cst_255 = arith.constant 1.000000e+00 : f32
    %669 = vector.broadcast %cst_255 : f32 to vector<2x96xf32>
    %670 = arith.addf %669, %668 : vector<2x96xf32>
    %671 = arith.divf %669, %670 : vector<2x96xf32>
    %672 = vector.extract_strided_slice %665 {offsets = [0, 96], sizes = [2, 32], strides = [1, 1]} : vector<2x128xf32> to vector<2x32xf32>
    %673 = math.tanh %672 : vector<2x32xf32>
    %674 = vector.extract_strided_slice %671 {offsets = [0, 32], sizes = [2, 32], strides = [1, 1]} : vector<2x96xf32> to vector<2x32xf32>
    %675 = arith.mulf %674, %633 : vector<2x32xf32>
    %676 = vector.extract_strided_slice %671 {offsets = [0, 0], sizes = [2, 32], strides = [1, 1]} : vector<2x96xf32> to vector<2x32xf32>
    %677 = arith.mulf %676, %673 : vector<2x32xf32>
    %678 = arith.addf %675, %677 : vector<2x32xf32>
    %679 = vector.extract_strided_slice %671 {offsets = [0, 64], sizes = [2, 32], strides = [1, 1]} : vector<2x96xf32> to vector<2x32xf32>
    %680 = math.tanh %678 : vector<2x32xf32>
    %681 = arith.mulf %679, %680 : vector<2x32xf32>
    %cst_256 = arith.constant dense<0.000000e+00> : vector<2x96xf32>
    %682 = tpu.matmul %660, %406, %cst_256 {dimension_numbers = #tpu.dot_dimension_numbers<[1], [0], [0], [1], [0, 0, 1, 1], [], []>} : vector<2x32xf32>, vector<32x96xf32>, vector<2x96xf32> -> vector<2x96xf32>
    %683 = arith.addf %682, %415 : vector<2x96xf32>
    %c10_257 = arith.constant 10 : index
    %c0_258 = arith.constant 0 : index
    %684 = vector.load %arg20[%c10_257, %c0_258] : memref<16x96xf32, #tpu.memory_space<vmem>>, vector<2x96xf32>
    %685 = vector.extract_strided_slice %684 {offsets = [0, 0], sizes = [2, 64], strides = [1, 1]} : vector<2x96xf32> to vector<2x64xf32>
    %686 = vector.extract_strided_slice %683 {offsets = [0, 0], sizes = [2, 64], strides = [1, 1]} : vector<2x96xf32> to vector<2x64xf32>
    %687 = arith.addf %685, %686 : vector<2x64xf32>
    %688 = arith.negf %687 : vector<2x64xf32>
    %689 = math.exp %688 : vector<2x64xf32>
    %cst_259 = arith.constant 1.000000e+00 : f32
    %690 = vector.broadcast %cst_259 : f32 to vector<2x64xf32>
    %691 = arith.addf %690, %689 : vector<2x64xf32>
    %692 = arith.divf %690, %691 : vector<2x64xf32>
    %693 = vector.extract_strided_slice %684 {offsets = [0, 64], sizes = [2, 32], strides = [1, 1]} : vector<2x96xf32> to vector<2x32xf32>
    %694 = vector.extract_strided_slice %692 {offsets = [0, 0], sizes = [2, 32], strides = [1, 1]} : vector<2x64xf32> to vector<2x32xf32>
    %695 = vector.extract_strided_slice %683 {offsets = [0, 64], sizes = [2, 32], strides = [1, 1]} : vector<2x96xf32> to vector<2x32xf32>
    %696 = arith.mulf %694, %695 : vector<2x32xf32>
    %697 = arith.addf %693, %696 : vector<2x32xf32>
    %698 = math.tanh %697 : vector<2x32xf32>
    %699 = vector.extract_strided_slice %692 {offsets = [0, 32], sizes = [2, 32], strides = [1, 1]} : vector<2x64xf32> to vector<2x32xf32>
    %cst_260 = arith.constant 1.000000e+00 : f32
    %700 = vector.broadcast %cst_260 : f32 to vector<2x32xf32>
    %701 = arith.subf %700, %699 : vector<2x32xf32>
    %702 = arith.mulf %701, %698 : vector<2x32xf32>
    %703 = vector.extract_strided_slice %692 {offsets = [0, 32], sizes = [2, 32], strides = [1, 1]} : vector<2x64xf32> to vector<2x32xf32>
    %704 = arith.mulf %703, %660 : vector<2x32xf32>
    %705 = arith.addf %702, %704 : vector<2x32xf32>
    %c10_261 = arith.constant 10 : index
    %c0_262 = arith.constant 0 : index
    %706 = vector.load %arg21[%c10_261, %c0_262] : memref<16x32xf32, #tpu.memory_space<vmem>>, vector<2x32xf32>
    tpu.vector_store %arg21[%c10_261, %c0_262], %681 {strides = array<i32>} : memref<16x32xf32, #tpu.memory_space<vmem>>, vector<2x32xf32>,
    %c10_263 = arith.constant 10 : index
    %c0_264 = arith.constant 0 : index
    %707 = vector.load %arg22[%c10_263, %c0_264] : memref<16x32xf32, #tpu.memory_space<vmem>>, vector<2x32xf32>
    tpu.vector_store %arg22[%c10_263, %c0_264], %705 {strides = array<i32>} : memref<16x32xf32, #tpu.memory_space<vmem>>, vector<2x32xf32>,
    %c12_265 = arith.constant 12 : index
    %c0_266 = arith.constant 0 : index
    %708 = vector.load %arg19[%c12_265, %c0_266] : memref<16x128xf32, #tpu.memory_space<vmem>>, vector<2x128xf32>
    %cst_267 = arith.constant dense<0.000000e+00> : vector<2x128xf32>
    %709 = tpu.matmul %681, %404, %cst_267 {dimension_numbers = #tpu.dot_dimension_numbers<[1], [0], [0], [1], [0, 0, 1, 1], [], []>} : vector<2x32xf32>, vector<32x128xf32>, vector<2x128xf32> -> vector<2x128xf32>
    %710 = arith.addf %708, %709 : vector<2x128xf32>
    %711 = vector.extract_strided_slice %710 {offsets = [0, 0], sizes = [2, 96], strides = [1, 1]} : vector<2x128xf32> to vector<2x96xf32>
    %712 = arith.negf %711 : vector<2x96xf32>
    %713 = math.exp %712 : vector<2x96xf32>
    %cst_268 = arith.constant 1.000000e+00 : f32
    %714 = vector.broadcast %cst_268 : f32 to vector<2x96xf32>
    %715 = arith.addf %714, %713 : vector<2x96xf32>
    %716 = arith.divf %714, %715 : vector<2x96xf32>
    %717 = vector.extract_strided_slice %710 {offsets = [0, 96], sizes = [2, 32], strides = [1, 1]} : vector<2x128xf32> to vector<2x32xf32>
    %718 = math.tanh %717 : vector<2x32xf32>
    %719 = vector.extract_strided_slice %716 {offsets = [0, 32], sizes = [2, 32], strides = [1, 1]} : vector<2x96xf32> to vector<2x32xf32>
    %720 = arith.mulf %719, %678 : vector<2x32xf32>
    %721 = vector.extract_strided_slice %716 {offsets = [0, 0], sizes = [2, 32], strides = [1, 1]} : vector<2x96xf32> to vector<2x32xf32>
    %722 = arith.mulf %721, %718 : vector<2x32xf32>
    %723 = arith.addf %720, %722 : vector<2x32xf32>
    %724 = vector.extract_strided_slice %716 {offsets = [0, 64], sizes = [2, 32], strides = [1, 1]} : vector<2x96xf32> to vector<2x32xf32>
    %725 = math.tanh %723 : vector<2x32xf32>
    %726 = arith.mulf %724, %725 : vector<2x32xf32>
    %cst_269 = arith.constant dense<0.000000e+00> : vector<2x96xf32>
    %727 = tpu.matmul %705, %406, %cst_269 {dimension_numbers = #tpu.dot_dimension_numbers<[1], [0], [0], [1], [0, 0, 1, 1], [], []>} : vector<2x32xf32>, vector<32x96xf32>, vector<2x96xf32> -> vector<2x96xf32>
    %728 = arith.addf %727, %415 : vector<2x96xf32>
    %c12_270 = arith.constant 12 : index
    %c0_271 = arith.constant 0 : index
    %729 = vector.load %arg20[%c12_270, %c0_271] : memref<16x96xf32, #tpu.memory_space<vmem>>, vector<2x96xf32>
    %730 = vector.extract_strided_slice %729 {offsets = [0, 0], sizes = [2, 64], strides = [1, 1]} : vector<2x96xf32> to vector<2x64xf32>
    %731 = vector.extract_strided_slice %728 {offsets = [0, 0], sizes = [2, 64], strides = [1, 1]} : vector<2x96xf32> to vector<2x64xf32>
    %732 = arith.addf %730, %731 : vector<2x64xf32>
    %733 = arith.negf %732 : vector<2x64xf32>
    %734 = math.exp %733 : vector<2x64xf32>
    %cst_272 = arith.constant 1.000000e+00 : f32
    %735 = vector.broadcast %cst_272 : f32 to vector<2x64xf32>
    %736 = arith.addf %735, %734 : vector<2x64xf32>
    %737 = arith.divf %735, %736 : vector<2x64xf32>
    %738 = vector.extract_strided_slice %729 {offsets = [0, 64], sizes = [2, 32], strides = [1, 1]} : vector<2x96xf32> to vector<2x32xf32>
    %739 = vector.extract_strided_slice %737 {offsets = [0, 0], sizes = [2, 32], strides = [1, 1]} : vector<2x64xf32> to vector<2x32xf32>
    %740 = vector.extract_strided_slice %728 {offsets = [0, 64], sizes = [2, 32], strides = [1, 1]} : vector<2x96xf32> to vector<2x32xf32>
    %741 = arith.mulf %739, %740 : vector<2x32xf32>
    %742 = arith.addf %738, %741 : vector<2x32xf32>
    %743 = math.tanh %742 : vector<2x32xf32>
    %744 = vector.extract_strided_slice %737 {offsets = [0, 32], sizes = [2, 32], strides = [1, 1]} : vector<2x64xf32> to vector<2x32xf32>
    %cst_273 = arith.constant 1.000000e+00 : f32
    %745 = vector.broadcast %cst_273 : f32 to vector<2x32xf32>
    %746 = arith.subf %745, %744 : vector<2x32xf32>
    %747 = arith.mulf %746, %743 : vector<2x32xf32>
    %748 = vector.extract_strided_slice %737 {offsets = [0, 32], sizes = [2, 32], strides = [1, 1]} : vector<2x64xf32> to vector<2x32xf32>
    %749 = arith.mulf %748, %705 : vector<2x32xf32>
    %750 = arith.addf %747, %749 : vector<2x32xf32>
    %c12_274 = arith.constant 12 : index
    %c0_275 = arith.constant 0 : index
    %751 = vector.load %arg21[%c12_274, %c0_275] : memref<16x32xf32, #tpu.memory_space<vmem>>, vector<2x32xf32>
    tpu.vector_store %arg21[%c12_274, %c0_275], %726 {strides = array<i32>} : memref<16x32xf32, #tpu.memory_space<vmem>>, vector<2x32xf32>,
    %c12_276 = arith.constant 12 : index
    %c0_277 = arith.constant 0 : index
    %752 = vector.load %arg22[%c12_276, %c0_277] : memref<16x32xf32, #tpu.memory_space<vmem>>, vector<2x32xf32>
    tpu.vector_store %arg22[%c12_276, %c0_277], %750 {strides = array<i32>} : memref<16x32xf32, #tpu.memory_space<vmem>>, vector<2x32xf32>,
    %c14_278 = arith.constant 14 : index
    %c0_279 = arith.constant 0 : index
    %753 = vector.load %arg19[%c14_278, %c0_279] : memref<16x128xf32, #tpu.memory_space<vmem>>, vector<2x128xf32>
    %cst_280 = arith.constant dense<0.000000e+00> : vector<2x128xf32>
    %754 = tpu.matmul %726, %404, %cst_280 {dimension_numbers = #tpu.dot_dimension_numbers<[1], [0], [0], [1], [0, 0, 1, 1], [], []>} : vector<2x32xf32>, vector<32x128xf32>, vector<2x128xf32> -> vector<2x128xf32>
    %755 = arith.addf %753, %754 : vector<2x128xf32>
    %756 = vector.extract_strided_slice %755 {offsets = [0, 0], sizes = [2, 96], strides = [1, 1]} : vector<2x128xf32> to vector<2x96xf32>
    %757 = arith.negf %756 : vector<2x96xf32>
    %758 = math.exp %757 : vector<2x96xf32>
    %cst_281 = arith.constant 1.000000e+00 : f32
    %759 = vector.broadcast %cst_281 : f32 to vector<2x96xf32>
    %760 = arith.addf %759, %758 : vector<2x96xf32>
    %761 = arith.divf %759, %760 : vector<2x96xf32>
    %762 = vector.extract_strided_slice %755 {offsets = [0, 96], sizes = [2, 32], strides = [1, 1]} : vector<2x128xf32> to vector<2x32xf32>
    %763 = math.tanh %762 : vector<2x32xf32>
    %764 = vector.extract_strided_slice %761 {offsets = [0, 32], sizes = [2, 32], strides = [1, 1]} : vector<2x96xf32> to vector<2x32xf32>
    %765 = arith.mulf %764, %723 : vector<2x32xf32>
    %766 = vector.extract_strided_slice %761 {offsets = [0, 0], sizes = [2, 32], strides = [1, 1]} : vector<2x96xf32> to vector<2x32xf32>
    %767 = arith.mulf %766, %763 : vector<2x32xf32>
    %768 = arith.addf %765, %767 : vector<2x32xf32>
    %769 = vector.extract_strided_slice %761 {offsets = [0, 64], sizes = [2, 32], strides = [1, 1]} : vector<2x96xf32> to vector<2x32xf32>
    %770 = math.tanh %768 : vector<2x32xf32>
    %771 = arith.mulf %769, %770 : vector<2x32xf32>
    %cst_282 = arith.constant dense<0.000000e+00> : vector<2x96xf32>
    %772 = tpu.matmul %750, %406, %cst_282 {dimension_numbers = #tpu.dot_dimension_numbers<[1], [0], [0], [1], [0, 0, 1, 1], [], []>} : vector<2x32xf32>, vector<32x96xf32>, vector<2x96xf32> -> vector<2x96xf32>
    %773 = arith.addf %772, %415 : vector<2x96xf32>
    %c14_283 = arith.constant 14 : index
    %c0_284 = arith.constant 0 : index
    %774 = vector.load %arg20[%c14_283, %c0_284] : memref<16x96xf32, #tpu.memory_space<vmem>>, vector<2x96xf32>
    %775 = vector.extract_strided_slice %774 {offsets = [0, 0], sizes = [2, 64], strides = [1, 1]} : vector<2x96xf32> to vector<2x64xf32>
    %776 = vector.extract_strided_slice %773 {offsets = [0, 0], sizes = [2, 64], strides = [1, 1]} : vector<2x96xf32> to vector<2x64xf32>
    %777 = arith.addf %775, %776 : vector<2x64xf32>
    %778 = arith.negf %777 : vector<2x64xf32>
    %779 = math.exp %778 : vector<2x64xf32>
    %cst_285 = arith.constant 1.000000e+00 : f32
    %780 = vector.broadcast %cst_285 : f32 to vector<2x64xf32>
    %781 = arith.addf %780, %779 : vector<2x64xf32>
    %782 = arith.divf %780, %781 : vector<2x64xf32>
    %783 = vector.extract_strided_slice %774 {offsets = [0, 64], sizes = [2, 32], strides = [1, 1]} : vector<2x96xf32> to vector<2x32xf32>
    %784 = vector.extract_strided_slice %782 {offsets = [0, 0], sizes = [2, 32], strides = [1, 1]} : vector<2x64xf32> to vector<2x32xf32>
    %785 = vector.extract_strided_slice %773 {offsets = [0, 64], sizes = [2, 32], strides = [1, 1]} : vector<2x96xf32> to vector<2x32xf32>
    %786 = arith.mulf %784, %785 : vector<2x32xf32>
    %787 = arith.addf %783, %786 : vector<2x32xf32>
    %788 = math.tanh %787 : vector<2x32xf32>
    %789 = vector.extract_strided_slice %782 {offsets = [0, 32], sizes = [2, 32], strides = [1, 1]} : vector<2x64xf32> to vector<2x32xf32>
    %cst_286 = arith.constant 1.000000e+00 : f32
    %790 = vector.broadcast %cst_286 : f32 to vector<2x32xf32>
    %791 = arith.subf %790, %789 : vector<2x32xf32>
    %792 = arith.mulf %791, %788 : vector<2x32xf32>
    %793 = vector.extract_strided_slice %782 {offsets = [0, 32], sizes = [2, 32], strides = [1, 1]} : vector<2x64xf32> to vector<2x32xf32>
    %794 = arith.mulf %793, %750 : vector<2x32xf32>
    %795 = arith.addf %792, %794 : vector<2x32xf32>
    %c14_287 = arith.constant 14 : index
    %c0_288 = arith.constant 0 : index
    %796 = vector.load %arg21[%c14_287, %c0_288] : memref<16x32xf32, #tpu.memory_space<vmem>>, vector<2x32xf32>
    tpu.vector_store %arg21[%c14_287, %c0_288], %771 {strides = array<i32>} : memref<16x32xf32, #tpu.memory_space<vmem>>, vector<2x32xf32>,
    %c14_289 = arith.constant 14 : index
    %c0_290 = arith.constant 0 : index
    %797 = vector.load %arg22[%c14_289, %c0_290] : memref<16x32xf32, #tpu.memory_space<vmem>>, vector<2x32xf32>
    tpu.vector_store %arg22[%c14_289, %c0_290], %795 {strides = array<i32>} : memref<16x32xf32, #tpu.memory_space<vmem>>, vector<2x32xf32>,
    %c1_291 = arith.constant 1 : index
    %c0_292 = arith.constant 0 : index
    %c0_293 = arith.constant 0 : index
    %798 = vector.load %arg16[%c1_291, %c0_292, %c0_293] : memref<3x2x32xf32, #tpu.memory_space<vmem>>, vector<1x2x32xf32>
    %799 = vector.shape_cast %798 : vector<1x2x32xf32> to vector<2x32xf32>
    %800 = vector.shape_cast %771 : vector<2x32xf32> to vector<1x2x32xf32>
    tpu.vector_store %arg16[%c1_291, %c0_292, %c0_293], %800 {strides = array<i32>} : memref<3x2x32xf32, #tpu.memory_space<vmem>>, vector<1x2x32xf32>,
    %c1_294 = arith.constant 1 : index
    %c0_295 = arith.constant 0 : index
    %c0_296 = arith.constant 0 : index
    %801 = vector.load %arg17[%c1_294, %c0_295, %c0_296] : memref<3x2x32xf32, #tpu.memory_space<vmem>>, vector<1x2x32xf32>
    %802 = vector.shape_cast %801 : vector<1x2x32xf32> to vector<2x32xf32>
    %803 = vector.shape_cast %768 : vector<2x32xf32> to vector<1x2x32xf32>
    tpu.vector_store %arg17[%c1_294, %c0_295, %c0_296], %803 {strides = array<i32>} : memref<3x2x32xf32, #tpu.memory_space<vmem>>, vector<1x2x32xf32>,
    %c1_297 = arith.constant 1 : index
    %c0_298 = arith.constant 0 : index
    %c0_299 = arith.constant 0 : index
    %804 = vector.load %arg18[%c1_297, %c0_298, %c0_299] : memref<3x2x32xf32, #tpu.memory_space<vmem>>, vector<1x2x32xf32>
    %805 = vector.shape_cast %804 : vector<1x2x32xf32> to vector<2x32xf32>
    %806 = vector.shape_cast %795 : vector<2x32xf32> to vector<1x2x32xf32>
    tpu.vector_store %arg18[%c1_297, %c0_298, %c0_299], %806 {strides = array<i32>} : memref<3x2x32xf32, #tpu.memory_space<vmem>>, vector<1x2x32xf32>,
    %c2_300 = arith.constant 2 : index
    %c0_301 = arith.constant 0 : index
    %c0_302 = arith.constant 0 : index
    %807 = vector.load %arg2[%c2_300, %c0_301, %c0_302] : memref<3x32x128xf32, #tpu.memory_space<vmem>>, vector<1x32x128xf32>
    %808 = vector.shape_cast %807 : vector<1x32x128xf32> to vector<32x128xf32>
    %c2_303 = arith.constant 2 : index
    %c0_304 = arith.constant 0 : index
    %c0_305 = arith.constant 0 : index
    %809 = vector.load %arg6[%c2_303, %c0_304, %c0_305] : memref<3x32x96xf32, #tpu.memory_space<vmem>>, vector<1x32x96xf32>
    %810 = vector.shape_cast %809 : vector<1x32x96xf32> to vector<32x96xf32>
    %c2_306 = arith.constant 2 : index
    %c0_307 = arith.constant 0 : index
    %c0_308 = arith.constant 0 : index
    %811 = vector.load %arg3[%c2_306, %c0_307, %c0_308] : memref<3x1x128xf32, #tpu.memory_space<vmem>>, vector<1x1x128xf32>
    %812 = vector.shape_cast %811 : vector<1x1x128xf32> to vector<1x128xf32>
    %c2_309 = arith.constant 2 : index
    %c0_310 = arith.constant 0 : index
    %c0_311 = arith.constant 0 : index
    %813 = vector.load %arg4[%c2_309, %c0_310, %c0_311] : memref<3x1x128xf32, #tpu.memory_space<vmem>>, vector<1x1x128xf32>
    %814 = vector.shape_cast %813 : vector<1x1x128xf32> to vector<1x128xf32>
    %815 = arith.addf %812, %814 : vector<1x128xf32>
    %c2_312 = arith.constant 2 : index
    %c0_313 = arith.constant 0 : index
    %c0_314 = arith.constant 0 : index
    %816 = vector.load %arg8[%c2_312, %c0_313, %c0_314] : memref<3x1x96xf32, #tpu.memory_space<vmem>>, vector<1x1x96xf32>
    %817 = vector.shape_cast %816 : vector<1x1x96xf32> to vector<1x96xf32>
    %818 = vector.shape_cast %817 : vector<1x96xf32> to vector<1x96xf32>
    %819 = vector.broadcast %818 : vector<1x96xf32> to vector<2x96xf32>
    %c0_315 = arith.constant 0 : index
    %c0_316 = arith.constant 0 : index
    %820 = vector.load %arg21[%c0_315, %c0_316] : memref<16x32xf32, #tpu.memory_space<vmem>>, vector<16x32xf32>
    %c0_317 = arith.constant 0 : index
    %c0_318 = arith.constant 0 : index
    %821 = vector.load %arg22[%c0_317, %c0_318] : memref<16x32xf32, #tpu.memory_space<vmem>>, vector<16x32xf32>
    %c2_319 = arith.constant 2 : index
    %c0_320 = arith.constant 0 : index
    %c0_321 = arith.constant 0 : index
    %822 = vector.load %arg1[%c2_319, %c0_320, %c0_321] : memref<3x32x128xf32, #tpu.memory_space<vmem>>, vector<1x32x128xf32>
    %823 = vector.shape_cast %822 : vector<1x32x128xf32> to vector<32x128xf32>
    %cst_322 = arith.constant dense<0.000000e+00> : vector<16x128xf32>
    %824 = tpu.matmul %820, %823, %cst_322 {dimension_numbers = #tpu.dot_dimension_numbers<[1], [0], [0], [1], [0, 0, 1, 1], [], []>} : vector<16x32xf32>, vector<32x128xf32>, vector<16x128xf32> -> vector<16x128xf32>
    %825 = vector.broadcast %815 : vector<1x128xf32> to vector<16x128xf32>
    %826 = arith.addf %824, %825 : vector<16x128xf32>
    %c0_323 = arith.constant 0 : index
    %c0_324 = arith.constant 0 : index
    %827 = vector.load %arg19[%c0_323, %c0_324] : memref<16x128xf32, #tpu.memory_space<vmem>>, vector<16x128xf32>
    tpu.vector_store %arg19[%c0_323, %c0_324], %826 {strides = array<i32>} : memref<16x128xf32, #tpu.memory_space<vmem>>, vector<16x128xf32>,
    %c2_325 = arith.constant 2 : index
    %c0_326 = arith.constant 0 : index
    %c0_327 = arith.constant 0 : index
    %828 = vector.load %arg5[%c2_325, %c0_326, %c0_327] : memref<3x32x96xf32, #tpu.memory_space<vmem>>, vector<1x32x96xf32>
    %829 = vector.shape_cast %828 : vector<1x32x96xf32> to vector<32x96xf32>
    %cst_328 = arith.constant dense<0.000000e+00> : vector<16x96xf32>
    %830 = tpu.matmul %821, %829, %cst_328 {dimension_numbers = #tpu.dot_dimension_numbers<[1], [0], [0], [1], [0, 0, 1, 1], [], []>} : vector<16x32xf32>, vector<32x96xf32>, vector<16x96xf32> -> vector<16x96xf32>
    %c2_329 = arith.constant 2 : index
    %c0_330 = arith.constant 0 : index
    %c0_331 = arith.constant 0 : index
    %831 = vector.load %arg7[%c2_329, %c0_330, %c0_331] : memref<3x1x96xf32, #tpu.memory_space<vmem>>, vector<1x1x96xf32>
    %832 = vector.shape_cast %831 : vector<1x1x96xf32> to vector<1x96xf32>
    %833 = vector.broadcast %832 : vector<1x96xf32> to vector<16x96xf32>
    %834 = arith.addf %830, %833 : vector<16x96xf32>
    %c0_332 = arith.constant 0 : index
    %c0_333 = arith.constant 0 : index
    %835 = vector.load %arg20[%c0_332, %c0_333] : memref<16x96xf32, #tpu.memory_space<vmem>>, vector<16x96xf32>
    tpu.vector_store %arg20[%c0_332, %c0_333], %834 {strides = array<i32>} : memref<16x96xf32, #tpu.memory_space<vmem>>, vector<16x96xf32>,
    %c2_334 = arith.constant 2 : index
    %c0_335 = arith.constant 0 : index
    %c0_336 = arith.constant 0 : index
    %836 = vector.load %arg9[%c2_334, %c0_335, %c0_336] : memref<3x2x32xf32, #tpu.memory_space<vmem>>, vector<1x2x32xf32>
    %837 = vector.shape_cast %836 : vector<1x2x32xf32> to vector<2x32xf32>
    %c2_337 = arith.constant 2 : index
    %c0_338 = arith.constant 0 : index
    %c0_339 = arith.constant 0 : index
    %838 = vector.load %arg10[%c2_337, %c0_338, %c0_339] : memref<3x2x32xf32, #tpu.memory_space<vmem>>, vector<1x2x32xf32>
    %839 = vector.shape_cast %838 : vector<1x2x32xf32> to vector<2x32xf32>
    %c2_340 = arith.constant 2 : index
    %c0_341 = arith.constant 0 : index
    %c0_342 = arith.constant 0 : index
    %840 = vector.load %arg11[%c2_340, %c0_341, %c0_342] : memref<3x2x32xf32, #tpu.memory_space<vmem>>, vector<1x2x32xf32>
    %841 = vector.shape_cast %840 : vector<1x2x32xf32> to vector<2x32xf32>
    %c0_343 = arith.constant 0 : index
    %c0_344 = arith.constant 0 : index
    %842 = vector.load %arg19[%c0_343, %c0_344] : memref<16x128xf32, #tpu.memory_space<vmem>>, vector<2x128xf32>
    %cst_345 = arith.constant dense<0.000000e+00> : vector<2x128xf32>
    %843 = tpu.matmul %837, %808, %cst_345 {dimension_numbers = #tpu.dot_dimension_numbers<[1], [0], [0], [1], [0, 0, 1, 1], [], []>} : vector<2x32xf32>, vector<32x128xf32>, vector<2x128xf32> -> vector<2x128xf32>
    %844 = arith.addf %842, %843 : vector<2x128xf32>
    %845 = vector.extract_strided_slice %844 {offsets = [0, 0], sizes = [2, 96], strides = [1, 1]} : vector<2x128xf32> to vector<2x96xf32>
    %846 = arith.negf %845 : vector<2x96xf32>
    %847 = math.exp %846 : vector<2x96xf32>
    %cst_346 = arith.constant 1.000000e+00 : f32
    %848 = vector.broadcast %cst_346 : f32 to vector<2x96xf32>
    %849 = arith.addf %848, %847 : vector<2x96xf32>
    %850 = arith.divf %848, %849 : vector<2x96xf32>
    %851 = vector.extract_strided_slice %844 {offsets = [0, 96], sizes = [2, 32], strides = [1, 1]} : vector<2x128xf32> to vector<2x32xf32>
    %852 = math.tanh %851 : vector<2x32xf32>
    %853 = vector.extract_strided_slice %850 {offsets = [0, 32], sizes = [2, 32], strides = [1, 1]} : vector<2x96xf32> to vector<2x32xf32>
    %854 = arith.mulf %853, %839 : vector<2x32xf32>
    %855 = vector.extract_strided_slice %850 {offsets = [0, 0], sizes = [2, 32], strides = [1, 1]} : vector<2x96xf32> to vector<2x32xf32>
    %856 = arith.mulf %855, %852 : vector<2x32xf32>
    %857 = arith.addf %854, %856 : vector<2x32xf32>
    %858 = vector.extract_strided_slice %850 {offsets = [0, 64], sizes = [2, 32], strides = [1, 1]} : vector<2x96xf32> to vector<2x32xf32>
    %859 = math.tanh %857 : vector<2x32xf32>
    %860 = arith.mulf %858, %859 : vector<2x32xf32>
    %cst_347 = arith.constant dense<0.000000e+00> : vector<2x96xf32>
    %861 = tpu.matmul %841, %810, %cst_347 {dimension_numbers = #tpu.dot_dimension_numbers<[1], [0], [0], [1], [0, 0, 1, 1], [], []>} : vector<2x32xf32>, vector<32x96xf32>, vector<2x96xf32> -> vector<2x96xf32>
    %862 = arith.addf %861, %819 : vector<2x96xf32>
    %c0_348 = arith.constant 0 : index
    %c0_349 = arith.constant 0 : index
    %863 = vector.load %arg20[%c0_348, %c0_349] : memref<16x96xf32, #tpu.memory_space<vmem>>, vector<2x96xf32>
    %864 = vector.extract_strided_slice %863 {offsets = [0, 0], sizes = [2, 64], strides = [1, 1]} : vector<2x96xf32> to vector<2x64xf32>
    %865 = vector.extract_strided_slice %862 {offsets = [0, 0], sizes = [2, 64], strides = [1, 1]} : vector<2x96xf32> to vector<2x64xf32>
    %866 = arith.addf %864, %865 : vector<2x64xf32>
    %867 = arith.negf %866 : vector<2x64xf32>
    %868 = math.exp %867 : vector<2x64xf32>
    %cst_350 = arith.constant 1.000000e+00 : f32
    %869 = vector.broadcast %cst_350 : f32 to vector<2x64xf32>
    %870 = arith.addf %869, %868 : vector<2x64xf32>
    %871 = arith.divf %869, %870 : vector<2x64xf32>
    %872 = vector.extract_strided_slice %863 {offsets = [0, 64], sizes = [2, 32], strides = [1, 1]} : vector<2x96xf32> to vector<2x32xf32>
    %873 = vector.extract_strided_slice %871 {offsets = [0, 0], sizes = [2, 32], strides = [1, 1]} : vector<2x64xf32> to vector<2x32xf32>
    %874 = vector.extract_strided_slice %862 {offsets = [0, 64], sizes = [2, 32], strides = [1, 1]} : vector<2x96xf32> to vector<2x32xf32>
    %875 = arith.mulf %873, %874 : vector<2x32xf32>
    %876 = arith.addf %872, %875 : vector<2x32xf32>
    %877 = math.tanh %876 : vector<2x32xf32>
    %878 = vector.extract_strided_slice %871 {offsets = [0, 32], sizes = [2, 32], strides = [1, 1]} : vector<2x64xf32> to vector<2x32xf32>
    %cst_351 = arith.constant 1.000000e+00 : f32
    %879 = vector.broadcast %cst_351 : f32 to vector<2x32xf32>
    %880 = arith.subf %879, %878 : vector<2x32xf32>
    %881 = arith.mulf %880, %877 : vector<2x32xf32>
    %882 = vector.extract_strided_slice %871 {offsets = [0, 32], sizes = [2, 32], strides = [1, 1]} : vector<2x64xf32> to vector<2x32xf32>
    %883 = arith.mulf %882, %841 : vector<2x32xf32>
    %884 = arith.addf %881, %883 : vector<2x32xf32>
    %c0_352 = arith.constant 0 : index
    %c0_353 = arith.constant 0 : index
    %885 = vector.load %arg23[%c0_352, %c0_353] : memref<2x256xf32, #tpu.memory_space<vmem>>, vector<2x32xf32>
    tpu.vector_store %arg23[%c0_352, %c0_353], %860 {strides = array<i32>} : memref<2x256xf32, #tpu.memory_space<vmem>>, vector<2x32xf32>,
    %c0_354 = arith.constant 0 : index
    %c0_355 = arith.constant 0 : index
    %886 = vector.load %arg24[%c0_354, %c0_355] : memref<2x256xf32, #tpu.memory_space<vmem>>, vector<2x32xf32>
    tpu.vector_store %arg24[%c0_354, %c0_355], %884 {strides = array<i32>} : memref<2x256xf32, #tpu.memory_space<vmem>>, vector<2x32xf32>,
    %c2_356 = arith.constant 2 : index
    %c0_357 = arith.constant 0 : index
    %887 = vector.load %arg19[%c2_356, %c0_357] : memref<16x128xf32, #tpu.memory_space<vmem>>, vector<2x128xf32>
    %cst_358 = arith.constant dense<0.000000e+00> : vector<2x128xf32>
    %888 = tpu.matmul %860, %808, %cst_358 {dimension_numbers = #tpu.dot_dimension_numbers<[1], [0], [0], [1], [0, 0, 1, 1], [], []>} : vector<2x32xf32>, vector<32x128xf32>, vector<2x128xf32> -> vector<2x128xf32>
    %889 = arith.addf %887, %888 : vector<2x128xf32>
    %890 = vector.extract_strided_slice %889 {offsets = [0, 0], sizes = [2, 96], strides = [1, 1]} : vector<2x128xf32> to vector<2x96xf32>
    %891 = arith.negf %890 : vector<2x96xf32>
    %892 = math.exp %891 : vector<2x96xf32>
    %cst_359 = arith.constant 1.000000e+00 : f32
    %893 = vector.broadcast %cst_359 : f32 to vector<2x96xf32>
    %894 = arith.addf %893, %892 : vector<2x96xf32>
    %895 = arith.divf %893, %894 : vector<2x96xf32>
    %896 = vector.extract_strided_slice %889 {offsets = [0, 96], sizes = [2, 32], strides = [1, 1]} : vector<2x128xf32> to vector<2x32xf32>
    %897 = math.tanh %896 : vector<2x32xf32>
    %898 = vector.extract_strided_slice %895 {offsets = [0, 32], sizes = [2, 32], strides = [1, 1]} : vector<2x96xf32> to vector<2x32xf32>
    %899 = arith.mulf %898, %857 : vector<2x32xf32>
    %900 = vector.extract_strided_slice %895 {offsets = [0, 0], sizes = [2, 32], strides = [1, 1]} : vector<2x96xf32> to vector<2x32xf32>
    %901 = arith.mulf %900, %897 : vector<2x32xf32>
    %902 = arith.addf %899, %901 : vector<2x32xf32>
    %903 = vector.extract_strided_slice %895 {offsets = [0, 64], sizes = [2, 32], strides = [1, 1]} : vector<2x96xf32> to vector<2x32xf32>
    %904 = math.tanh %902 : vector<2x32xf32>
    %905 = arith.mulf %903, %904 : vector<2x32xf32>
    %cst_360 = arith.constant dense<0.000000e+00> : vector<2x96xf32>
    %906 = tpu.matmul %884, %810, %cst_360 {dimension_numbers = #tpu.dot_dimension_numbers<[1], [0], [0], [1], [0, 0, 1, 1], [], []>} : vector<2x32xf32>, vector<32x96xf32>, vector<2x96xf32> -> vector<2x96xf32>
    %907 = arith.addf %906, %819 : vector<2x96xf32>
    %c2_361 = arith.constant 2 : index
    %c0_362 = arith.constant 0 : index
    %908 = vector.load %arg20[%c2_361, %c0_362] : memref<16x96xf32, #tpu.memory_space<vmem>>, vector<2x96xf32>
    %909 = vector.extract_strided_slice %908 {offsets = [0, 0], sizes = [2, 64], strides = [1, 1]} : vector<2x96xf32> to vector<2x64xf32>
    %910 = vector.extract_strided_slice %907 {offsets = [0, 0], sizes = [2, 64], strides = [1, 1]} : vector<2x96xf32> to vector<2x64xf32>
    %911 = arith.addf %909, %910 : vector<2x64xf32>
    %912 = arith.negf %911 : vector<2x64xf32>
    %913 = math.exp %912 : vector<2x64xf32>
    %cst_363 = arith.constant 1.000000e+00 : f32
    %914 = vector.broadcast %cst_363 : f32 to vector<2x64xf32>
    %915 = arith.addf %914, %913 : vector<2x64xf32>
    %916 = arith.divf %914, %915 : vector<2x64xf32>
    %917 = vector.extract_strided_slice %908 {offsets = [0, 64], sizes = [2, 32], strides = [1, 1]} : vector<2x96xf32> to vector<2x32xf32>
    %918 = vector.extract_strided_slice %916 {offsets = [0, 0], sizes = [2, 32], strides = [1, 1]} : vector<2x64xf32> to vector<2x32xf32>
    %919 = vector.extract_strided_slice %907 {offsets = [0, 64], sizes = [2, 32], strides = [1, 1]} : vector<2x96xf32> to vector<2x32xf32>
    %920 = arith.mulf %918, %919 : vector<2x32xf32>
    %921 = arith.addf %917, %920 : vector<2x32xf32>
    %922 = math.tanh %921 : vector<2x32xf32>
    %923 = vector.extract_strided_slice %916 {offsets = [0, 32], sizes = [2, 32], strides = [1, 1]} : vector<2x64xf32> to vector<2x32xf32>
    %cst_364 = arith.constant 1.000000e+00 : f32
    %924 = vector.broadcast %cst_364 : f32 to vector<2x32xf32>
    %925 = arith.subf %924, %923 : vector<2x32xf32>
    %926 = arith.mulf %925, %922 : vector<2x32xf32>
    %927 = vector.extract_strided_slice %916 {offsets = [0, 32], sizes = [2, 32], strides = [1, 1]} : vector<2x64xf32> to vector<2x32xf32>
    %928 = arith.mulf %927, %884 : vector<2x32xf32>
    %929 = arith.addf %926, %928 : vector<2x32xf32>
    %c0_365 = arith.constant 0 : index
    %c32 = arith.constant 32 : index
    %930 = vector.load %arg23[%c0_365, %c32] : memref<2x256xf32, #tpu.memory_space<vmem>>, vector<2x32xf32>
    tpu.vector_store %arg23[%c0_365, %c32], %905 {strides = array<i32>} : memref<2x256xf32, #tpu.memory_space<vmem>>, vector<2x32xf32>,
    %c0_366 = arith.constant 0 : index
    %c32_367 = arith.constant 32 : index
    %931 = vector.load %arg24[%c0_366, %c32_367] : memref<2x256xf32, #tpu.memory_space<vmem>>, vector<2x32xf32>
    tpu.vector_store %arg24[%c0_366, %c32_367], %929 {strides = array<i32>} : memref<2x256xf32, #tpu.memory_space<vmem>>, vector<2x32xf32>,
    %c4_368 = arith.constant 4 : index
    %c0_369 = arith.constant 0 : index
    %932 = vector.load %arg19[%c4_368, %c0_369] : memref<16x128xf32, #tpu.memory_space<vmem>>, vector<2x128xf32>
    %cst_370 = arith.constant dense<0.000000e+00> : vector<2x128xf32>
    %933 = tpu.matmul %905, %808, %cst_370 {dimension_numbers = #tpu.dot_dimension_numbers<[1], [0], [0], [1], [0, 0, 1, 1], [], []>} : vector<2x32xf32>, vector<32x128xf32>, vector<2x128xf32> -> vector<2x128xf32>
    %934 = arith.addf %932, %933 : vector<2x128xf32>
    %935 = vector.extract_strided_slice %934 {offsets = [0, 0], sizes = [2, 96], strides = [1, 1]} : vector<2x128xf32> to vector<2x96xf32>
    %936 = arith.negf %935 : vector<2x96xf32>
    %937 = math.exp %936 : vector<2x96xf32>
    %cst_371 = arith.constant 1.000000e+00 : f32
    %938 = vector.broadcast %cst_371 : f32 to vector<2x96xf32>
    %939 = arith.addf %938, %937 : vector<2x96xf32>
    %940 = arith.divf %938, %939 : vector<2x96xf32>
    %941 = vector.extract_strided_slice %934 {offsets = [0, 96], sizes = [2, 32], strides = [1, 1]} : vector<2x128xf32> to vector<2x32xf32>
    %942 = math.tanh %941 : vector<2x32xf32>
    %943 = vector.extract_strided_slice %940 {offsets = [0, 32], sizes = [2, 32], strides = [1, 1]} : vector<2x96xf32> to vector<2x32xf32>
    %944 = arith.mulf %943, %902 : vector<2x32xf32>
    %945 = vector.extract_strided_slice %940 {offsets = [0, 0], sizes = [2, 32], strides = [1, 1]} : vector<2x96xf32> to vector<2x32xf32>
    %946 = arith.mulf %945, %942 : vector<2x32xf32>
    %947 = arith.addf %944, %946 : vector<2x32xf32>
    %948 = vector.extract_strided_slice %940 {offsets = [0, 64], sizes = [2, 32], strides = [1, 1]} : vector<2x96xf32> to vector<2x32xf32>
    %949 = math.tanh %947 : vector<2x32xf32>
    %950 = arith.mulf %948, %949 : vector<2x32xf32>
    %cst_372 = arith.constant dense<0.000000e+00> : vector<2x96xf32>
    %951 = tpu.matmul %929, %810, %cst_372 {dimension_numbers = #tpu.dot_dimension_numbers<[1], [0], [0], [1], [0, 0, 1, 1], [], []>} : vector<2x32xf32>, vector<32x96xf32>, vector<2x96xf32> -> vector<2x96xf32>
    %952 = arith.addf %951, %819 : vector<2x96xf32>
    %c4_373 = arith.constant 4 : index
    %c0_374 = arith.constant 0 : index
    %953 = vector.load %arg20[%c4_373, %c0_374] : memref<16x96xf32, #tpu.memory_space<vmem>>, vector<2x96xf32>
    %954 = vector.extract_strided_slice %953 {offsets = [0, 0], sizes = [2, 64], strides = [1, 1]} : vector<2x96xf32> to vector<2x64xf32>
    %955 = vector.extract_strided_slice %952 {offsets = [0, 0], sizes = [2, 64], strides = [1, 1]} : vector<2x96xf32> to vector<2x64xf32>
    %956 = arith.addf %954, %955 : vector<2x64xf32>
    %957 = arith.negf %956 : vector<2x64xf32>
    %958 = math.exp %957 : vector<2x64xf32>
    %cst_375 = arith.constant 1.000000e+00 : f32
    %959 = vector.broadcast %cst_375 : f32 to vector<2x64xf32>
    %960 = arith.addf %959, %958 : vector<2x64xf32>
    %961 = arith.divf %959, %960 : vector<2x64xf32>
    %962 = vector.extract_strided_slice %953 {offsets = [0, 64], sizes = [2, 32], strides = [1, 1]} : vector<2x96xf32> to vector<2x32xf32>
    %963 = vector.extract_strided_slice %961 {offsets = [0, 0], sizes = [2, 32], strides = [1, 1]} : vector<2x64xf32> to vector<2x32xf32>
    %964 = vector.extract_strided_slice %952 {offsets = [0, 64], sizes = [2, 32], strides = [1, 1]} : vector<2x96xf32> to vector<2x32xf32>
    %965 = arith.mulf %963, %964 : vector<2x32xf32>
    %966 = arith.addf %962, %965 : vector<2x32xf32>
    %967 = math.tanh %966 : vector<2x32xf32>
    %968 = vector.extract_strided_slice %961 {offsets = [0, 32], sizes = [2, 32], strides = [1, 1]} : vector<2x64xf32> to vector<2x32xf32>
    %cst_376 = arith.constant 1.000000e+00 : f32
    %969 = vector.broadcast %cst_376 : f32 to vector<2x32xf32>
    %970 = arith.subf %969, %968 : vector<2x32xf32>
    %971 = arith.mulf %970, %967 : vector<2x32xf32>
    %972 = vector.extract_strided_slice %961 {offsets = [0, 32], sizes = [2, 32], strides = [1, 1]} : vector<2x64xf32> to vector<2x32xf32>
    %973 = arith.mulf %972, %929 : vector<2x32xf32>
    %974 = arith.addf %971, %973 : vector<2x32xf32>
    %c0_377 = arith.constant 0 : index
    %c64 = arith.constant 64 : index
    %975 = vector.load %arg23[%c0_377, %c64] : memref<2x256xf32, #tpu.memory_space<vmem>>, vector<2x32xf32>
    tpu.vector_store %arg23[%c0_377, %c64], %950 {strides = array<i32>} : memref<2x256xf32, #tpu.memory_space<vmem>>, vector<2x32xf32>,
    %c0_378 = arith.constant 0 : index
    %c64_379 = arith.constant 64 : index
    %976 = vector.load %arg24[%c0_378, %c64_379] : memref<2x256xf32, #tpu.memory_space<vmem>>, vector<2x32xf32>
    tpu.vector_store %arg24[%c0_378, %c64_379], %974 {strides = array<i32>} : memref<2x256xf32, #tpu.memory_space<vmem>>, vector<2x32xf32>,
    %c6_380 = arith.constant 6 : index
    %c0_381 = arith.constant 0 : index
    %977 = vector.load %arg19[%c6_380, %c0_381] : memref<16x128xf32, #tpu.memory_space<vmem>>, vector<2x128xf32>
    %cst_382 = arith.constant dense<0.000000e+00> : vector<2x128xf32>
    %978 = tpu.matmul %950, %808, %cst_382 {dimension_numbers = #tpu.dot_dimension_numbers<[1], [0], [0], [1], [0, 0, 1, 1], [], []>} : vector<2x32xf32>, vector<32x128xf32>, vector<2x128xf32> -> vector<2x128xf32>
    %979 = arith.addf %977, %978 : vector<2x128xf32>
    %980 = vector.extract_strided_slice %979 {offsets = [0, 0], sizes = [2, 96], strides = [1, 1]} : vector<2x128xf32> to vector<2x96xf32>
    %981 = arith.negf %980 : vector<2x96xf32>
    %982 = math.exp %981 : vector<2x96xf32>
    %cst_383 = arith.constant 1.000000e+00 : f32
    %983 = vector.broadcast %cst_383 : f32 to vector<2x96xf32>
    %984 = arith.addf %983, %982 : vector<2x96xf32>
    %985 = arith.divf %983, %984 : vector<2x96xf32>
    %986 = vector.extract_strided_slice %979 {offsets = [0, 96], sizes = [2, 32], strides = [1, 1]} : vector<2x128xf32> to vector<2x32xf32>
    %987 = math.tanh %986 : vector<2x32xf32>
    %988 = vector.extract_strided_slice %985 {offsets = [0, 32], sizes = [2, 32], strides = [1, 1]} : vector<2x96xf32> to vector<2x32xf32>
    %989 = arith.mulf %988, %947 : vector<2x32xf32>
    %990 = vector.extract_strided_slice %985 {offsets = [0, 0], sizes = [2, 32], strides = [1, 1]} : vector<2x96xf32> to vector<2x32xf32>
    %991 = arith.mulf %990, %987 : vector<2x32xf32>
    %992 = arith.addf %989, %991 : vector<2x32xf32>
    %993 = vector.extract_strided_slice %985 {offsets = [0, 64], sizes = [2, 32], strides = [1, 1]} : vector<2x96xf32> to vector<2x32xf32>
    %994 = math.tanh %992 : vector<2x32xf32>
    %995 = arith.mulf %993, %994 : vector<2x32xf32>
    %cst_384 = arith.constant dense<0.000000e+00> : vector<2x96xf32>
    %996 = tpu.matmul %974, %810, %cst_384 {dimension_numbers = #tpu.dot_dimension_numbers<[1], [0], [0], [1], [0, 0, 1, 1], [], []>} : vector<2x32xf32>, vector<32x96xf32>, vector<2x96xf32> -> vector<2x96xf32>
    %997 = arith.addf %996, %819 : vector<2x96xf32>
    %c6_385 = arith.constant 6 : index
    %c0_386 = arith.constant 0 : index
    %998 = vector.load %arg20[%c6_385, %c0_386] : memref<16x96xf32, #tpu.memory_space<vmem>>, vector<2x96xf32>
    %999 = vector.extract_strided_slice %998 {offsets = [0, 0], sizes = [2, 64], strides = [1, 1]} : vector<2x96xf32> to vector<2x64xf32>
    %1000 = vector.extract_strided_slice %997 {offsets = [0, 0], sizes = [2, 64], strides = [1, 1]} : vector<2x96xf32> to vector<2x64xf32>
    %1001 = arith.addf %999, %1000 : vector<2x64xf32>
    %1002 = arith.negf %1001 : vector<2x64xf32>
    %1003 = math.exp %1002 : vector<2x64xf32>
    %cst_387 = arith.constant 1.000000e+00 : f32
    %1004 = vector.broadcast %cst_387 : f32 to vector<2x64xf32>
    %1005 = arith.addf %1004, %1003 : vector<2x64xf32>
    %1006 = arith.divf %1004, %1005 : vector<2x64xf32>
    %1007 = vector.extract_strided_slice %998 {offsets = [0, 64], sizes = [2, 32], strides = [1, 1]} : vector<2x96xf32> to vector<2x32xf32>
    %1008 = vector.extract_strided_slice %1006 {offsets = [0, 0], sizes = [2, 32], strides = [1, 1]} : vector<2x64xf32> to vector<2x32xf32>
    %1009 = vector.extract_strided_slice %997 {offsets = [0, 64], sizes = [2, 32], strides = [1, 1]} : vector<2x96xf32> to vector<2x32xf32>
    %1010 = arith.mulf %1008, %1009 : vector<2x32xf32>
    %1011 = arith.addf %1007, %1010 : vector<2x32xf32>
    %1012 = math.tanh %1011 : vector<2x32xf32>
    %1013 = vector.extract_strided_slice %1006 {offsets = [0, 32], sizes = [2, 32], strides = [1, 1]} : vector<2x64xf32> to vector<2x32xf32>
    %cst_388 = arith.constant 1.000000e+00 : f32
    %1014 = vector.broadcast %cst_388 : f32 to vector<2x32xf32>
    %1015 = arith.subf %1014, %1013 : vector<2x32xf32>
    %1016 = arith.mulf %1015, %1012 : vector<2x32xf32>
    %1017 = vector.extract_strided_slice %1006 {offsets = [0, 32], sizes = [2, 32], strides = [1, 1]} : vector<2x64xf32> to vector<2x32xf32>
    %1018 = arith.mulf %1017, %974 : vector<2x32xf32>
    %1019 = arith.addf %1016, %1018 : vector<2x32xf32>
    %c0_389 = arith.constant 0 : index
    %c96 = arith.constant 96 : index
    %1020 = vector.load %arg23[%c0_389, %c96] : memref<2x256xf32, #tpu.memory_space<vmem>>, vector<2x32xf32>
    tpu.vector_store %arg23[%c0_389, %c96], %995 {strides = array<i32>} : memref<2x256xf32, #tpu.memory_space<vmem>>, vector<2x32xf32>,
    %c0_390 = arith.constant 0 : index
    %c96_391 = arith.constant 96 : index
    %1021 = vector.load %arg24[%c0_390, %c96_391] : memref<2x256xf32, #tpu.memory_space<vmem>>, vector<2x32xf32>
    tpu.vector_store %arg24[%c0_390, %c96_391], %1019 {strides = array<i32>} : memref<2x256xf32, #tpu.memory_space<vmem>>, vector<2x32xf32>,
    %c8_392 = arith.constant 8 : index
    %c0_393 = arith.constant 0 : index
    %1022 = vector.load %arg19[%c8_392, %c0_393] : memref<16x128xf32, #tpu.memory_space<vmem>>, vector<2x128xf32>
    %cst_394 = arith.constant dense<0.000000e+00> : vector<2x128xf32>
    %1023 = tpu.matmul %995, %808, %cst_394 {dimension_numbers = #tpu.dot_dimension_numbers<[1], [0], [0], [1], [0, 0, 1, 1], [], []>} : vector<2x32xf32>, vector<32x128xf32>, vector<2x128xf32> -> vector<2x128xf32>
    %1024 = arith.addf %1022, %1023 : vector<2x128xf32>
    %1025 = vector.extract_strided_slice %1024 {offsets = [0, 0], sizes = [2, 96], strides = [1, 1]} : vector<2x128xf32> to vector<2x96xf32>
    %1026 = arith.negf %1025 : vector<2x96xf32>
    %1027 = math.exp %1026 : vector<2x96xf32>
    %cst_395 = arith.constant 1.000000e+00 : f32
    %1028 = vector.broadcast %cst_395 : f32 to vector<2x96xf32>
    %1029 = arith.addf %1028, %1027 : vector<2x96xf32>
    %1030 = arith.divf %1028, %1029 : vector<2x96xf32>
    %1031 = vector.extract_strided_slice %1024 {offsets = [0, 96], sizes = [2, 32], strides = [1, 1]} : vector<2x128xf32> to vector<2x32xf32>
    %1032 = math.tanh %1031 : vector<2x32xf32>
    %1033 = vector.extract_strided_slice %1030 {offsets = [0, 32], sizes = [2, 32], strides = [1, 1]} : vector<2x96xf32> to vector<2x32xf32>
    %1034 = arith.mulf %1033, %992 : vector<2x32xf32>
    %1035 = vector.extract_strided_slice %1030 {offsets = [0, 0], sizes = [2, 32], strides = [1, 1]} : vector<2x96xf32> to vector<2x32xf32>
    %1036 = arith.mulf %1035, %1032 : vector<2x32xf32>
    %1037 = arith.addf %1034, %1036 : vector<2x32xf32>
    %1038 = vector.extract_strided_slice %1030 {offsets = [0, 64], sizes = [2, 32], strides = [1, 1]} : vector<2x96xf32> to vector<2x32xf32>
    %1039 = math.tanh %1037 : vector<2x32xf32>
    %1040 = arith.mulf %1038, %1039 : vector<2x32xf32>
    %cst_396 = arith.constant dense<0.000000e+00> : vector<2x96xf32>
    %1041 = tpu.matmul %1019, %810, %cst_396 {dimension_numbers = #tpu.dot_dimension_numbers<[1], [0], [0], [1], [0, 0, 1, 1], [], []>} : vector<2x32xf32>, vector<32x96xf32>, vector<2x96xf32> -> vector<2x96xf32>
    %1042 = arith.addf %1041, %819 : vector<2x96xf32>
    %c8_397 = arith.constant 8 : index
    %c0_398 = arith.constant 0 : index
    %1043 = vector.load %arg20[%c8_397, %c0_398] : memref<16x96xf32, #tpu.memory_space<vmem>>, vector<2x96xf32>
    %1044 = vector.extract_strided_slice %1043 {offsets = [0, 0], sizes = [2, 64], strides = [1, 1]} : vector<2x96xf32> to vector<2x64xf32>
    %1045 = vector.extract_strided_slice %1042 {offsets = [0, 0], sizes = [2, 64], strides = [1, 1]} : vector<2x96xf32> to vector<2x64xf32>
    %1046 = arith.addf %1044, %1045 : vector<2x64xf32>
    %1047 = arith.negf %1046 : vector<2x64xf32>
    %1048 = math.exp %1047 : vector<2x64xf32>
    %cst_399 = arith.constant 1.000000e+00 : f32
    %1049 = vector.broadcast %cst_399 : f32 to vector<2x64xf32>
    %1050 = arith.addf %1049, %1048 : vector<2x64xf32>
    %1051 = arith.divf %1049, %1050 : vector<2x64xf32>
    %1052 = vector.extract_strided_slice %1043 {offsets = [0, 64], sizes = [2, 32], strides = [1, 1]} : vector<2x96xf32> to vector<2x32xf32>
    %1053 = vector.extract_strided_slice %1051 {offsets = [0, 0], sizes = [2, 32], strides = [1, 1]} : vector<2x64xf32> to vector<2x32xf32>
    %1054 = vector.extract_strided_slice %1042 {offsets = [0, 64], sizes = [2, 32], strides = [1, 1]} : vector<2x96xf32> to vector<2x32xf32>
    %1055 = arith.mulf %1053, %1054 : vector<2x32xf32>
    %1056 = arith.addf %1052, %1055 : vector<2x32xf32>
    %1057 = math.tanh %1056 : vector<2x32xf32>
    %1058 = vector.extract_strided_slice %1051 {offsets = [0, 32], sizes = [2, 32], strides = [1, 1]} : vector<2x64xf32> to vector<2x32xf32>
    %cst_400 = arith.constant 1.000000e+00 : f32
    %1059 = vector.broadcast %cst_400 : f32 to vector<2x32xf32>
    %1060 = arith.subf %1059, %1058 : vector<2x32xf32>
    %1061 = arith.mulf %1060, %1057 : vector<2x32xf32>
    %1062 = vector.extract_strided_slice %1051 {offsets = [0, 32], sizes = [2, 32], strides = [1, 1]} : vector<2x64xf32> to vector<2x32xf32>
    %1063 = arith.mulf %1062, %1019 : vector<2x32xf32>
    %1064 = arith.addf %1061, %1063 : vector<2x32xf32>
    %c0_401 = arith.constant 0 : index
    %c128 = arith.constant 128 : index
    %1065 = vector.load %arg23[%c0_401, %c128] : memref<2x256xf32, #tpu.memory_space<vmem>>, vector<2x32xf32>
    tpu.vector_store %arg23[%c0_401, %c128], %1040 {strides = array<i32>} : memref<2x256xf32, #tpu.memory_space<vmem>>, vector<2x32xf32>,
    %c0_402 = arith.constant 0 : index
    %c128_403 = arith.constant 128 : index
    %1066 = vector.load %arg24[%c0_402, %c128_403] : memref<2x256xf32, #tpu.memory_space<vmem>>, vector<2x32xf32>
    tpu.vector_store %arg24[%c0_402, %c128_403], %1064 {strides = array<i32>} : memref<2x256xf32, #tpu.memory_space<vmem>>, vector<2x32xf32>,
    %c10_404 = arith.constant 10 : index
    %c0_405 = arith.constant 0 : index
    %1067 = vector.load %arg19[%c10_404, %c0_405] : memref<16x128xf32, #tpu.memory_space<vmem>>, vector<2x128xf32>
    %cst_406 = arith.constant dense<0.000000e+00> : vector<2x128xf32>
    %1068 = tpu.matmul %1040, %808, %cst_406 {dimension_numbers = #tpu.dot_dimension_numbers<[1], [0], [0], [1], [0, 0, 1, 1], [], []>} : vector<2x32xf32>, vector<32x128xf32>, vector<2x128xf32> -> vector<2x128xf32>
    %1069 = arith.addf %1067, %1068 : vector<2x128xf32>
    %1070 = vector.extract_strided_slice %1069 {offsets = [0, 0], sizes = [2, 96], strides = [1, 1]} : vector<2x128xf32> to vector<2x96xf32>
    %1071 = arith.negf %1070 : vector<2x96xf32>
    %1072 = math.exp %1071 : vector<2x96xf32>
    %cst_407 = arith.constant 1.000000e+00 : f32
    %1073 = vector.broadcast %cst_407 : f32 to vector<2x96xf32>
    %1074 = arith.addf %1073, %1072 : vector<2x96xf32>
    %1075 = arith.divf %1073, %1074 : vector<2x96xf32>
    %1076 = vector.extract_strided_slice %1069 {offsets = [0, 96], sizes = [2, 32], strides = [1, 1]} : vector<2x128xf32> to vector<2x32xf32>
    %1077 = math.tanh %1076 : vector<2x32xf32>
    %1078 = vector.extract_strided_slice %1075 {offsets = [0, 32], sizes = [2, 32], strides = [1, 1]} : vector<2x96xf32> to vector<2x32xf32>
    %1079 = arith.mulf %1078, %1037 : vector<2x32xf32>
    %1080 = vector.extract_strided_slice %1075 {offsets = [0, 0], sizes = [2, 32], strides = [1, 1]} : vector<2x96xf32> to vector<2x32xf32>
    %1081 = arith.mulf %1080, %1077 : vector<2x32xf32>
    %1082 = arith.addf %1079, %1081 : vector<2x32xf32>
    %1083 = vector.extract_strided_slice %1075 {offsets = [0, 64], sizes = [2, 32], strides = [1, 1]} : vector<2x96xf32> to vector<2x32xf32>
    %1084 = math.tanh %1082 : vector<2x32xf32>
    %1085 = arith.mulf %1083, %1084 : vector<2x32xf32>
    %cst_408 = arith.constant dense<0.000000e+00> : vector<2x96xf32>
    %1086 = tpu.matmul %1064, %810, %cst_408 {dimension_numbers = #tpu.dot_dimension_numbers<[1], [0], [0], [1], [0, 0, 1, 1], [], []>} : vector<2x32xf32>, vector<32x96xf32>, vector<2x96xf32> -> vector<2x96xf32>
    %1087 = arith.addf %1086, %819 : vector<2x96xf32>
    %c10_409 = arith.constant 10 : index
    %c0_410 = arith.constant 0 : index
    %1088 = vector.load %arg20[%c10_409, %c0_410] : memref<16x96xf32, #tpu.memory_space<vmem>>, vector<2x96xf32>
    %1089 = vector.extract_strided_slice %1088 {offsets = [0, 0], sizes = [2, 64], strides = [1, 1]} : vector<2x96xf32> to vector<2x64xf32>
    %1090 = vector.extract_strided_slice %1087 {offsets = [0, 0], sizes = [2, 64], strides = [1, 1]} : vector<2x96xf32> to vector<2x64xf32>
    %1091 = arith.addf %1089, %1090 : vector<2x64xf32>
    %1092 = arith.negf %1091 : vector<2x64xf32>
    %1093 = math.exp %1092 : vector<2x64xf32>
    %cst_411 = arith.constant 1.000000e+00 : f32
    %1094 = vector.broadcast %cst_411 : f32 to vector<2x64xf32>
    %1095 = arith.addf %1094, %1093 : vector<2x64xf32>
    %1096 = arith.divf %1094, %1095 : vector<2x64xf32>
    %1097 = vector.extract_strided_slice %1088 {offsets = [0, 64], sizes = [2, 32], strides = [1, 1]} : vector<2x96xf32> to vector<2x32xf32>
    %1098 = vector.extract_strided_slice %1096 {offsets = [0, 0], sizes = [2, 32], strides = [1, 1]} : vector<2x64xf32> to vector<2x32xf32>
    %1099 = vector.extract_strided_slice %1087 {offsets = [0, 64], sizes = [2, 32], strides = [1, 1]} : vector<2x96xf32> to vector<2x32xf32>
    %1100 = arith.mulf %1098, %1099 : vector<2x32xf32>
    %1101 = arith.addf %1097, %1100 : vector<2x32xf32>
    %1102 = math.tanh %1101 : vector<2x32xf32>
    %1103 = vector.extract_strided_slice %1096 {offsets = [0, 32], sizes = [2, 32], strides = [1, 1]} : vector<2x64xf32> to vector<2x32xf32>
    %cst_412 = arith.constant 1.000000e+00 : f32
    %1104 = vector.broadcast %cst_412 : f32 to vector<2x32xf32>
    %1105 = arith.subf %1104, %1103 : vector<2x32xf32>
    %1106 = arith.mulf %1105, %1102 : vector<2x32xf32>
    %1107 = vector.extract_strided_slice %1096 {offsets = [0, 32], sizes = [2, 32], strides = [1, 1]} : vector<2x64xf32> to vector<2x32xf32>
    %1108 = arith.mulf %1107, %1064 : vector<2x32xf32>
    %1109 = arith.addf %1106, %1108 : vector<2x32xf32>
    %c0_413 = arith.constant 0 : index
    %c160 = arith.constant 160 : index
    %1110 = vector.load %arg23[%c0_413, %c160] : memref<2x256xf32, #tpu.memory_space<vmem>>, vector<2x32xf32>
    tpu.vector_store %arg23[%c0_413, %c160], %1085 {strides = array<i32>} : memref<2x256xf32, #tpu.memory_space<vmem>>, vector<2x32xf32>,
    %c0_414 = arith.constant 0 : index
    %c160_415 = arith.constant 160 : index
    %1111 = vector.load %arg24[%c0_414, %c160_415] : memref<2x256xf32, #tpu.memory_space<vmem>>, vector<2x32xf32>
    tpu.vector_store %arg24[%c0_414, %c160_415], %1109 {strides = array<i32>} : memref<2x256xf32, #tpu.memory_space<vmem>>, vector<2x32xf32>,
    %c12_416 = arith.constant 12 : index
    %c0_417 = arith.constant 0 : index
    %1112 = vector.load %arg19[%c12_416, %c0_417] : memref<16x128xf32, #tpu.memory_space<vmem>>, vector<2x128xf32>
    %cst_418 = arith.constant dense<0.000000e+00> : vector<2x128xf32>
    %1113 = tpu.matmul %1085, %808, %cst_418 {dimension_numbers = #tpu.dot_dimension_numbers<[1], [0], [0], [1], [0, 0, 1, 1], [], []>} : vector<2x32xf32>, vector<32x128xf32>, vector<2x128xf32> -> vector<2x128xf32>
    %1114 = arith.addf %1112, %1113 : vector<2x128xf32>
    %1115 = vector.extract_strided_slice %1114 {offsets = [0, 0], sizes = [2, 96], strides = [1, 1]} : vector<2x128xf32> to vector<2x96xf32>
    %1116 = arith.negf %1115 : vector<2x96xf32>
    %1117 = math.exp %1116 : vector<2x96xf32>
    %cst_419 = arith.constant 1.000000e+00 : f32
    %1118 = vector.broadcast %cst_419 : f32 to vector<2x96xf32>
    %1119 = arith.addf %1118, %1117 : vector<2x96xf32>
    %1120 = arith.divf %1118, %1119 : vector<2x96xf32>
    %1121 = vector.extract_strided_slice %1114 {offsets = [0, 96], sizes = [2, 32], strides = [1, 1]} : vector<2x128xf32> to vector<2x32xf32>
    %1122 = math.tanh %1121 : vector<2x32xf32>
    %1123 = vector.extract_strided_slice %1120 {offsets = [0, 32], sizes = [2, 32], strides = [1, 1]} : vector<2x96xf32> to vector<2x32xf32>
    %1124 = arith.mulf %1123, %1082 : vector<2x32xf32>
    %1125 = vector.extract_strided_slice %1120 {offsets = [0, 0], sizes = [2, 32], strides = [1, 1]} : vector<2x96xf32> to vector<2x32xf32>
    %1126 = arith.mulf %1125, %1122 : vector<2x32xf32>
    %1127 = arith.addf %1124, %1126 : vector<2x32xf32>
    %1128 = vector.extract_strided_slice %1120 {offsets = [0, 64], sizes = [2, 32], strides = [1, 1]} : vector<2x96xf32> to vector<2x32xf32>
    %1129 = math.tanh %1127 : vector<2x32xf32>
    %1130 = arith.mulf %1128, %1129 : vector<2x32xf32>
    %cst_420 = arith.constant dense<0.000000e+00> : vector<2x96xf32>
    %1131 = tpu.matmul %1109, %810, %cst_420 {dimension_numbers = #tpu.dot_dimension_numbers<[1], [0], [0], [1], [0, 0, 1, 1], [], []>} : vector<2x32xf32>, vector<32x96xf32>, vector<2x96xf32> -> vector<2x96xf32>
    %1132 = arith.addf %1131, %819 : vector<2x96xf32>
    %c12_421 = arith.constant 12 : index
    %c0_422 = arith.constant 0 : index
    %1133 = vector.load %arg20[%c12_421, %c0_422] : memref<16x96xf32, #tpu.memory_space<vmem>>, vector<2x96xf32>
    %1134 = vector.extract_strided_slice %1133 {offsets = [0, 0], sizes = [2, 64], strides = [1, 1]} : vector<2x96xf32> to vector<2x64xf32>
    %1135 = vector.extract_strided_slice %1132 {offsets = [0, 0], sizes = [2, 64], strides = [1, 1]} : vector<2x96xf32> to vector<2x64xf32>
    %1136 = arith.addf %1134, %1135 : vector<2x64xf32>
    %1137 = arith.negf %1136 : vector<2x64xf32>
    %1138 = math.exp %1137 : vector<2x64xf32>
    %cst_423 = arith.constant 1.000000e+00 : f32
    %1139 = vector.broadcast %cst_423 : f32 to vector<2x64xf32>
    %1140 = arith.addf %1139, %1138 : vector<2x64xf32>
    %1141 = arith.divf %1139, %1140 : vector<2x64xf32>
    %1142 = vector.extract_strided_slice %1133 {offsets = [0, 64], sizes = [2, 32], strides = [1, 1]} : vector<2x96xf32> to vector<2x32xf32>
    %1143 = vector.extract_strided_slice %1141 {offsets = [0, 0], sizes = [2, 32], strides = [1, 1]} : vector<2x64xf32> to vector<2x32xf32>
    %1144 = vector.extract_strided_slice %1132 {offsets = [0, 64], sizes = [2, 32], strides = [1, 1]} : vector<2x96xf32> to vector<2x32xf32>
    %1145 = arith.mulf %1143, %1144 : vector<2x32xf32>
    %1146 = arith.addf %1142, %1145 : vector<2x32xf32>
    %1147 = math.tanh %1146 : vector<2x32xf32>
    %1148 = vector.extract_strided_slice %1141 {offsets = [0, 32], sizes = [2, 32], strides = [1, 1]} : vector<2x64xf32> to vector<2x32xf32>
    %cst_424 = arith.constant 1.000000e+00 : f32
    %1149 = vector.broadcast %cst_424 : f32 to vector<2x32xf32>
    %1150 = arith.subf %1149, %1148 : vector<2x32xf32>
    %1151 = arith.mulf %1150, %1147 : vector<2x32xf32>
    %1152 = vector.extract_strided_slice %1141 {offsets = [0, 32], sizes = [2, 32], strides = [1, 1]} : vector<2x64xf32> to vector<2x32xf32>
    %1153 = arith.mulf %1152, %1109 : vector<2x32xf32>
    %1154 = arith.addf %1151, %1153 : vector<2x32xf32>
    %c0_425 = arith.constant 0 : index
    %c192 = arith.constant 192 : index
    %1155 = vector.load %arg23[%c0_425, %c192] : memref<2x256xf32, #tpu.memory_space<vmem>>, vector<2x32xf32>
    tpu.vector_store %arg23[%c0_425, %c192], %1130 {strides = array<i32>} : memref<2x256xf32, #tpu.memory_space<vmem>>, vector<2x32xf32>,
    %c0_426 = arith.constant 0 : index
    %c192_427 = arith.constant 192 : index
    %1156 = vector.load %arg24[%c0_426, %c192_427] : memref<2x256xf32, #tpu.memory_space<vmem>>, vector<2x32xf32>
    tpu.vector_store %arg24[%c0_426, %c192_427], %1154 {strides = array<i32>} : memref<2x256xf32, #tpu.memory_space<vmem>>, vector<2x32xf32>,
    %c14_428 = arith.constant 14 : index
    %c0_429 = arith.constant 0 : index
    %1157 = vector.load %arg19[%c14_428, %c0_429] : memref<16x128xf32, #tpu.memory_space<vmem>>, vector<2x128xf32>
    %cst_430 = arith.constant dense<0.000000e+00> : vector<2x128xf32>
    %1158 = tpu.matmul %1130, %808, %cst_430 {dimension_numbers = #tpu.dot_dimension_numbers<[1], [0], [0], [1], [0, 0, 1, 1], [], []>} : vector<2x32xf32>, vector<32x128xf32>, vector<2x128xf32> -> vector<2x128xf32>
    %1159 = arith.addf %1157, %1158 : vector<2x128xf32>
    %1160 = vector.extract_strided_slice %1159 {offsets = [0, 0], sizes = [2, 96], strides = [1, 1]} : vector<2x128xf32> to vector<2x96xf32>
    %1161 = arith.negf %1160 : vector<2x96xf32>
    %1162 = math.exp %1161 : vector<2x96xf32>
    %cst_431 = arith.constant 1.000000e+00 : f32
    %1163 = vector.broadcast %cst_431 : f32 to vector<2x96xf32>
    %1164 = arith.addf %1163, %1162 : vector<2x96xf32>
    %1165 = arith.divf %1163, %1164 : vector<2x96xf32>
    %1166 = vector.extract_strided_slice %1159 {offsets = [0, 96], sizes = [2, 32], strides = [1, 1]} : vector<2x128xf32> to vector<2x32xf32>
    %1167 = math.tanh %1166 : vector<2x32xf32>
    %1168 = vector.extract_strided_slice %1165 {offsets = [0, 32], sizes = [2, 32], strides = [1, 1]} : vector<2x96xf32> to vector<2x32xf32>
    %1169 = arith.mulf %1168, %1127 : vector<2x32xf32>
    %1170 = vector.extract_strided_slice %1165 {offsets = [0, 0], sizes = [2, 32], strides = [1, 1]} : vector<2x96xf32> to vector<2x32xf32>
    %1171 = arith.mulf %1170, %1167 : vector<2x32xf32>
    %1172 = arith.addf %1169, %1171 : vector<2x32xf32>
    %1173 = vector.extract_strided_slice %1165 {offsets = [0, 64], sizes = [2, 32], strides = [1, 1]} : vector<2x96xf32> to vector<2x32xf32>
    %1174 = math.tanh %1172 : vector<2x32xf32>
    %1175 = arith.mulf %1173, %1174 : vector<2x32xf32>
    %cst_432 = arith.constant dense<0.000000e+00> : vector<2x96xf32>
    %1176 = tpu.matmul %1154, %810, %cst_432 {dimension_numbers = #tpu.dot_dimension_numbers<[1], [0], [0], [1], [0, 0, 1, 1], [], []>} : vector<2x32xf32>, vector<32x96xf32>, vector<2x96xf32> -> vector<2x96xf32>
    %1177 = arith.addf %1176, %819 : vector<2x96xf32>
    %c14_433 = arith.constant 14 : index
    %c0_434 = arith.constant 0 : index
    %1178 = vector.load %arg20[%c14_433, %c0_434] : memref<16x96xf32, #tpu.memory_space<vmem>>, vector<2x96xf32>
    %1179 = vector.extract_strided_slice %1178 {offsets = [0, 0], sizes = [2, 64], strides = [1, 1]} : vector<2x96xf32> to vector<2x64xf32>
    %1180 = vector.extract_strided_slice %1177 {offsets = [0, 0], sizes = [2, 64], strides = [1, 1]} : vector<2x96xf32> to vector<2x64xf32>
    %1181 = arith.addf %1179, %1180 : vector<2x64xf32>
    %1182 = arith.negf %1181 : vector<2x64xf32>
    %1183 = math.exp %1182 : vector<2x64xf32>
    %cst_435 = arith.constant 1.000000e+00 : f32
    %1184 = vector.broadcast %cst_435 : f32 to vector<2x64xf32>
    %1185 = arith.addf %1184, %1183 : vector<2x64xf32>
    %1186 = arith.divf %1184, %1185 : vector<2x64xf32>
    %1187 = vector.extract_strided_slice %1178 {offsets = [0, 64], sizes = [2, 32], strides = [1, 1]} : vector<2x96xf32> to vector<2x32xf32>
    %1188 = vector.extract_strided_slice %1186 {offsets = [0, 0], sizes = [2, 32], strides = [1, 1]} : vector<2x64xf32> to vector<2x32xf32>
    %1189 = vector.extract_strided_slice %1177 {offsets = [0, 64], sizes = [2, 32], strides = [1, 1]} : vector<2x96xf32> to vector<2x32xf32>
    %1190 = arith.mulf %1188, %1189 : vector<2x32xf32>
    %1191 = arith.addf %1187, %1190 : vector<2x32xf32>
    %1192 = math.tanh %1191 : vector<2x32xf32>
    %1193 = vector.extract_strided_slice %1186 {offsets = [0, 32], sizes = [2, 32], strides = [1, 1]} : vector<2x64xf32> to vector<2x32xf32>
    %cst_436 = arith.constant 1.000000e+00 : f32
    %1194 = vector.broadcast %cst_436 : f32 to vector<2x32xf32>
    %1195 = arith.subf %1194, %1193 : vector<2x32xf32>
    %1196 = arith.mulf %1195, %1192 : vector<2x32xf32>
    %1197 = vector.extract_strided_slice %1186 {offsets = [0, 32], sizes = [2, 32], strides = [1, 1]} : vector<2x64xf32> to vector<2x32xf32>
    %1198 = arith.mulf %1197, %1154 : vector<2x32xf32>
    %1199 = arith.addf %1196, %1198 : vector<2x32xf32>
    %c0_437 = arith.constant 0 : index
    %c224 = arith.constant 224 : index
    %1200 = vector.load %arg23[%c0_437, %c224] : memref<2x256xf32, #tpu.memory_space<vmem>>, vector<2x32xf32>
    tpu.vector_store %arg23[%c0_437, %c224], %1175 {strides = array<i32>} : memref<2x256xf32, #tpu.memory_space<vmem>>, vector<2x32xf32>,
    %c0_438 = arith.constant 0 : index
    %c224_439 = arith.constant 224 : index
    %1201 = vector.load %arg24[%c0_438, %c224_439] : memref<2x256xf32, #tpu.memory_space<vmem>>, vector<2x32xf32>
    tpu.vector_store %arg24[%c0_438, %c224_439], %1199 {strides = array<i32>} : memref<2x256xf32, #tpu.memory_space<vmem>>, vector<2x32xf32>,
    %c2_440 = arith.constant 2 : index
    %c0_441 = arith.constant 0 : index
    %c0_442 = arith.constant 0 : index
    %1202 = vector.load %arg16[%c2_440, %c0_441, %c0_442] : memref<3x2x32xf32, #tpu.memory_space<vmem>>, vector<1x2x32xf32>
    %1203 = vector.shape_cast %1202 : vector<1x2x32xf32> to vector<2x32xf32>
    %1204 = vector.shape_cast %1175 : vector<2x32xf32> to vector<1x2x32xf32>
    tpu.vector_store %arg16[%c2_440, %c0_441, %c0_442], %1204 {strides = array<i32>} : memref<3x2x32xf32, #tpu.memory_space<vmem>>, vector<1x2x32xf32>,
    %c2_443 = arith.constant 2 : index
    %c0_444 = arith.constant 0 : index
    %c0_445 = arith.constant 0 : index
    %1205 = vector.load %arg17[%c2_443, %c0_444, %c0_445] : memref<3x2x32xf32, #tpu.memory_space<vmem>>, vector<1x2x32xf32>
    %1206 = vector.shape_cast %1205 : vector<1x2x32xf32> to vector<2x32xf32>
    %1207 = vector.shape_cast %1172 : vector<2x32xf32> to vector<1x2x32xf32>
    tpu.vector_store %arg17[%c2_443, %c0_444, %c0_445], %1207 {strides = array<i32>} : memref<3x2x32xf32, #tpu.memory_space<vmem>>, vector<1x2x32xf32>,
    %c2_446 = arith.constant 2 : index
    %c0_447 = arith.constant 0 : index
    %c0_448 = arith.constant 0 : index
    %1208 = vector.load %arg18[%c2_446, %c0_447, %c0_448] : memref<3x2x32xf32, #tpu.memory_space<vmem>>, vector<1x2x32xf32>
    %1209 = vector.shape_cast %1208 : vector<1x2x32xf32> to vector<2x32xf32>
    %1210 = vector.shape_cast %1199 : vector<2x32xf32> to vector<1x2x32xf32>
    tpu.vector_store %arg18[%c2_446, %c0_447, %c0_448], %1210 {strides = array<i32>} : memref<3x2x32xf32, #tpu.memory_space<vmem>>, vector<1x2x32xf32>,
    %c0_449 = arith.constant 0 : index
    %c0_450 = arith.constant 0 : index
    %1211 = vector.load %arg23[%c0_449, %c0_450] : memref<2x256xf32, #tpu.memory_space<vmem>>, vector<2x256xf32>
    %c0_451 = arith.constant 0 : index
    %c0_452 = arith.constant 0 : index
    %1212 = vector.load %arg12[%c0_451, %c0_452] : memref<256x8xf32, #tpu.memory_space<vmem>>, vector<256x8xf32>
    %cst_453 = arith.constant dense<0.000000e+00> : vector<2x8xf32>
    %1213 = tpu.matmul %1211, %1212, %cst_453 {dimension_numbers = #tpu.dot_dimension_numbers<[1], [0], [0], [1], [0, 0, 1, 1], [], []>} : vector<2x256xf32>, vector<256x8xf32>, vector<2x8xf32> -> vector<2x8xf32>
    %c0_454 = arith.constant 0 : index
    %c0_455 = arith.constant 0 : index
    %1214 = vector.load %arg24[%c0_454, %c0_455] : memref<2x256xf32, #tpu.memory_space<vmem>>, vector<2x256xf32>
    %c0_456 = arith.constant 0 : index
    %c0_457 = arith.constant 0 : index
    %1215 = vector.load %arg13[%c0_456, %c0_457] : memref<256x8xf32, #tpu.memory_space<vmem>>, vector<256x8xf32>
    %cst_458 = arith.constant dense<0.000000e+00> : vector<2x8xf32>
    %1216 = tpu.matmul %1214, %1215, %cst_458 {dimension_numbers = #tpu.dot_dimension_numbers<[1], [0], [0], [1], [0, 0, 1, 1], [], []>} : vector<2x256xf32>, vector<256x8xf32>, vector<2x8xf32> -> vector<2x8xf32>
    %1217 = arith.addf %1213, %1216 : vector<2x8xf32>
    %c0_459 = arith.constant 0 : index
    %c0_460 = arith.constant 0 : index
    %1218 = vector.load %arg14[%c0_459, %c0_460] : memref<1x8xf32, #tpu.memory_space<vmem>>, vector<1x8xf32>
    %1219 = vector.broadcast %1218 : vector<1x8xf32> to vector<2x8xf32>
    %1220 = arith.addf %1217, %1219 : vector<2x8xf32>
    %1221 = arith.negf %1220 : vector<2x8xf32>
    %1222 = math.exp %1221 : vector<2x8xf32>
    %cst_461 = arith.constant 1.000000e+00 : f32
    %1223 = vector.broadcast %cst_461 : f32 to vector<2x8xf32>
    %1224 = arith.addf %1223, %1222 : vector<2x8xf32>
    %1225 = arith.divf %1223, %1224 : vector<2x8xf32>
    %c0_462 = arith.constant 0 : index
    %c0_463 = arith.constant 0 : index
    %1226 = vector.load %arg15[%c0_462, %c0_463] : memref<2x8xf32, #tpu.memory_space<vmem>>, vector<2x8xf32>
    tpu.vector_store %arg15[%c0_462, %c0_463], %1225 {strides = array<i32>} : memref<2x8xf32, #tpu.memory_space<vmem>>, vector<2x8xf32>,
    return
  }
}

</mosaic_0001>

<bundles_post_ra>
// kernel: sentiment_rnn_forward.1
= control target key start
LH: loop header
LB: loop body
LE: loop exit
PB: predicated region body
PF: predicated region fallthrough
CT: control target
= control target key end

     0   :  { %s5891_s0 = inlined_call_operand.vmem [shape: f32[16,32], index: 0, kind: input, shape index: {}]   ;;  %s5892_s1 = inlined_call_operand.vmem [shape: f32[3,32,128], index: 1, kind: input, shape index: {}]   ;;  %s5893_s2 = inlined_call_operand.vmem [shape: f32[3,32,128], index: 2, kind: input, shape index: {}]   ;;  %s5894_s3 = inlined_call_operand.vmem [shape: f32[3,1,128], index: 3, kind: input, shape index: {}]   ;;  %s5895_s4 = inlined_call_operand.vmem [shape: f32[3,1,128], index: 4, kind: input, shape index: {}]   ;;  %s5896_s5 = inlined_call_operand.vmem [shape: f32[3,32,96], index: 5, kind: input, shape index: {}]   ;;  %s5897_s6 = inlined_call_operand.vmem [shape: f32[3,32,96], index: 6, kind: input, shape index: {}]   ;;  %s5898_s7 = inlined_call_operand.vmem [shape: f32[3,1,96], index: 7, kind: input, shape index: {}]   ;;  %s5899_s8 = inlined_call_operand.vmem [shape: f32[3,1,96], index: 8, kind: input, shape index: {}]   ;;  %s5900_s9 = inlined_call_operand.vmem [shape: f32[3,2,32], index: 9, kind: input, shape index: {}]   ;;  %s5901_s10 = inlined_call_operand.vmem [shape: f32[3,2,32], index: 10, kind: input, shape index: {}]   ;;  %s5902_s11 = inlined_call_operand.vmem [shape: f32[3,2,32], index: 11, kind: input, shape index: {}]   ;;  %s5903_s12 = inlined_call_operand.vmem [shape: f32[256,8], index: 12, kind: input, shape index: {}]   ;;  %s5904_s13 = inlined_call_operand.vmem [shape: f32[256,8], index: 13, kind: input, shape index: {}]   ;;  %s5905_s14 = inlined_call_operand.vmem [shape: f32[1,8], index: 14, kind: input, shape index: {}]   ;;  %s5906_s15 = inlined_call_operand.vmem [shape: f32[2,8], index: 15, kind: output, shape index: {0}]   ;;  %s5907_s16 = inlined_call_operand.hbm [shape: f32[3,2,32], index: 16, kind: output, shape index: {1}]   ;;  %s5908_s17 = inlined_call_operand.hbm [shape: f32[3,2,32], index: 17, kind: output, shape index: {2}]   ;;  %s5909_s18 = inlined_call_operand.hbm [shape: f32[3,2,32], index: 18, kind: output, shape index: {3}]  }
   0x1   :  { %5913 = sst [smem:[#allocation15_spill]] %s5891_s0 }
   0x2   :  { %5914 = sst [smem:[#allocation16_spill]] %s5892_s1 }
   0x3   :  { %5915 = sst [smem:[#allocation17_spill]] %s5893_s2 }
   0x4   :  { %24 = vsyncpa [#allocation9], 0  ;;  %s5916_s29 = sld [smem:[#allocation16_spill]]  ;;  %v4592_v6 = vld [vmem:[%s5897_s6 + $0x18] sm:$0xff]  ;;  %v4597_v7 = vld [vmem:[%s5897_s6 + $0x10] sm:$0xff]  ;;  %vm80_vm0 = vcmask 261120  }
   0x5   :  { %s5917_s20 = sld [smem:[#allocation17_spill]]  ;;  %230 = vmatpush.msra.mxu3 %v4592_v6  ;;  %v146_v11 = vld [vmem:[%s5900_s9] sm:$0x3]  ;;  %v115_v12 = vld [vmem:[%s5896_s5 + $0x18] sm:$0xff]  ;;  %v4623_v13 = vld [vmem:[%s5897_s6 + $0x8] sm:$0xff] }
   0x6   :  { %s5918_s22 = sld [smem:[#allocation15_spill]]  ;;  %v4628_v14 = vld [vmem:[%s5897_s6] sm:$0xff]  ;;  %v114_v15 = vld [vmem:[%s5896_s5 + $0x10] sm:$0xff]  ;;  %132 = vmatpush.msra.mxu1 %v115_v12  ;;  %v113_v17 = vld [vmem:[%s5896_s5 + $0x8] sm:$0xff] }
   0x7   :  { %231 = vmatpush.msra.mxu3 %v4597_v7  ;;  %v4636_v16 = vld [vmem:[%s5902_s11] sm:$0x3] }
   0x9   :  { %232 = vmatpush.msra.mxu3 %v4623_v13 }
   0xa   :  { %v76_v0 = vld [vmem:[%s5916_s29 + $0x18] sm:$0xff]  ;;  %v75_v1 = vld [vmem:[%s5916_s29 + $0x10] sm:$0xff]  ;;  %v74_v4 = vld [vmem:[%s5916_s29 + $0x8] sm:$0xff] }
   0xb   :  { %99 = vmatpush.msra.mxu0 %v76_v0  ;;  %v4573_v2 = vld [vmem:[%s5917_s20 + $0x18] sm:$0xff]  ;;  %v4578_v3 = vld [vmem:[%s5917_s20 + $0x10] sm:$0xff]  ;;  %v4587_v5 = vld [vmem:[%s5917_s20 + $0x8] sm:$0xff] }
   0xc   :  { %165 = vmatpush.msra.mxu2 %v4573_v2  ;;  %v73_v8 = vld [vmem:[%s5916_s29] sm:$0xff] }
   0xd   :  { %100 = vmatpush.msra.mxu0 %v75_v1  ;;  %v56_v9 = vld [vmem:[%s5918_s22] sm:$0xff] }
   0xe   :  { %166 = vmatpush.msra.mxu2 %v4578_v3  ;;  %v4610_v10 = vld [vmem:[%s5917_s20] sm:$0xff] }
   0xf   :  { %101 = vmatpush.msra.mxu0 %v74_v4 }
  0x10   :  { %167 = vmatpush.msra.mxu2 %v4587_v5 }
  0x11   :  { %102 = vmatpush.msra.mxu0 %v73_v8 }
  0x12   :  { %3874 = vmatmul.msk.f32.vlgmr.msra.gmra.mxu0 %vm80_vm0, %v56_v9  ;;  %168 = vmatpush.msra.mxu2 %v4610_v10 }
  0x13   :  { %3878 = vmatmul.msk.f32.vlgmr.msra.gmra.mxu2 %vm80_vm0, %v146_v11 }
  0x14   :  { %25 = vsyncpa [#allocation11], 0  ;;  %133 = vmatpush.msra.mxu1 %v114_v15  ;;  %307 = vmatpush.msrb.mxu2 %v4573_v2  ;;  %v112_v18 = vld [vmem:[%s5896_s5] sm:$0xff]  ;;  %vm143_vm1 = vcmask 785408   ;;  %s4462_s24 = smov 64   ;;  %s4463_s25 = smov 32  }
  0x15   :  { %233 = vmatpush.msra.mxu3 %v4628_v14  ;;  %440 = vmatpush.msrb.mxu0 %v4573_v2  ;;  %v66_v19 = vld [vmem:[%s5894_s3] sm:$0x1]  ;;  %s4464_s28 = smov 96   ;;  %vm285_vm10 = vcmask 254976   ;;  %s3838_s30 = sshll.u32 %s5908_s17, 4  ;;  %s3839_s30 = int_to_ptr.hbm [resolvable:$true] %s3838_s30 }
  0x16   :  { %3880 = vmatmul.msk.f32.vlgmr.msra.gmra.mxu3 %vm80_vm0, %v4636_v16  ;;  %134 = vmatpush.msra.mxu1 %v113_v17  ;;  %v67_v20 = vld [vmem:[%s5895_s4] sm:$0x1]  ;;  %s4467_s0 = smov [#allocation8]   ;;  %s3851_s17 = sshll.u32 %s5909_s18, 4  ;;  %s3852_s17 = int_to_ptr.hbm [resolvable:$true] %s3851_s17 }
  0x17   :  { %308 = vmatpush.msrb.mxu2 %v4578_v3  ;;  %367 = vmatpush.msrb.mxu3 %v4592_v6  ;;  %v4690_v21 = vadd.f32 %v67_v20, %v66_v19  ;;  %v4698_v25 = vld [vmem:[%s5898_s7] ss:$0 sm:$0xff]  ;;  %s4468_s1 = smov [#allocation12]  }
  0x18   :  { %135 = vmatpush.msra.mxu1 %v112_v18  ;;  %441 = vmatpush.msrb.mxu0 %v4578_v3  ;;  %v4703_v26 = vld [vmem:[%s5899_s8] ss:$0 sm:$0xff]  ;;  %s3849_s21 = sshll.u32 %s4468_s1, 4  ;;  %s3850_s21 = int_to_ptr.vmem [resolvable:$true] %s3849_s21 }
  0x19   :  { %3876 = vmatmul.msk.f32.vlgmr.msra.gmra.mxu1 %vm80_vm0, %v56_v9  ;;  %309 = vmatpush.msrb.mxu2 %v4587_v5  ;;  %v78_v22 = vperm.slane %v4690_v21, 0  ;;  %v147_v35 = vld [vmem:[%s5901_s10] sm:$0x3] }
  0x1a   :  { %368 = vmatpush.msrb.mxu3 %v4597_v7  ;;  %442 = vmatpush.msrb.mxu0 %v4587_v5 }
  0x1b   :  { %310 = vmatpush.msrb.mxu2 %v4610_v10  ;;  %500 = vmatpush.msrb.mxu1 %v4592_v6 }
  0x1c   :  { %369 = vmatpush.msrb.mxu3 %v4623_v13  ;;  %443 = vmatpush.msrb.mxu0 %v4610_v10 }
  0x1d   :  { %501 = vmatpush.msrb.mxu1 %v4597_v7  ;;  %573 = vmatpush.msra.mxu2 %v4573_v2 }
  0x1e   :  { %370 = vmatpush.msrb.mxu3 %v4628_v14  ;;  %706 = vmatpush.msra.mxu0 %v4573_v2 }
  0x1f   :  { %502 = vmatpush.msrb.mxu1 %v4623_v13  ;;  %574 = vmatpush.msra.mxu2 %v4578_v3 }
  0x20   :  { %633 = vmatpush.msra.mxu3 %v4592_v6  ;;  %707 = vmatpush.msra.mxu0 %v4578_v3 }
  0x21   :  { %503 = vmatpush.msrb.mxu1 %v4628_v14  ;;  %575 = vmatpush.msra.mxu2 %v4587_v5 }
  0x22   :  { %634 = vmatpush.msra.mxu3 %v4597_v7  ;;  %708 = vmatpush.msra.mxu0 %v4587_v5 }
  0x23   :  { %576 = vmatpush.msra.mxu2 %v4610_v10  ;;  %766 = vmatpush.msra.mxu1 %v4592_v6 }
  0x24   :  { %635 = vmatpush.msra.mxu3 %v4623_v13  ;;  %709 = vmatpush.msra.mxu0 %v4610_v10 }
  0x25   :  { %767 = vmatpush.msra.mxu1 %v4597_v7 }
  0x26   :  { %636 = vmatpush.msra.mxu3 %v4628_v14 }
  0x27   :  { %768 = vmatpush.msra.mxu1 %v4623_v13 }
  0x29   :  { %769 = vmatpush.msra.mxu1 %v4628_v14 }
  0x8f   :  { %v104_v23 = vpop.f32.mrf.mxu0 }
  0x90   :  { %v105_v24 = vadd.f32 %v104_v23, %v78_v22 }
  0x92   :  { %110 = vst [vmem:[#allocation2] sm:$0xff] %v105_v24 }
  0x96   :  { %v137_v27 = vpop.f32.mrf.mxu1  ;;  %v170_v28 = vpop.f32.mrf.mxu2 }
  0x97   :  { %v138_v29 = vadd.f32 %v4698_v25, %v137_v27 }
  0x99   :  { %v149_v30 = vld [vmem:[#allocation2] sm:$0x3]  ;;  %v235_v31 = vpop.f32.mrf.mxu3  ;;  %144 = vst.msk [vmem:[#allocation3] sm:$0xff] %vm143_vm1, %v138_v29 }
  0x9a   :  { %v173_v32 = vadd.f32 %v170_v28, %v149_v30  ;;  %v236_v33 = vadd.f32 %v4703_v26, %v235_v31 }
  0x9c   :  { %4043 = vtanh.f32 %v173_v32  ;;  %260 = vrot.lane.b32.xlu2 %v236_v33, %s4462_s24  ;;  %v3879_v42 = vmul.f32 -1.442695, %v173_v32 }
  0xa0   :  { %v238_v36 = vld [vmem:[#allocation3] sm:$0x3] }
  0xa1   :  { %v239_v37 = vadd.f32 %v238_v36, %v236_v33 }
  0xa2   :  { %v4044_v34 = vpop.eup %4043 }
  0xa3   :  { %200 = vrot.lane.b32.xlu0 %v4044_v34, %s4463_s25  ;;  %v3881_v38 = vmul.f32 -1.442695, %v239_v37  ;;  %v292_v34 = vld [vmem:[#allocation2 + $0x2] sm:$0x3] }
  0xa5   :  { %4045 = vpow2.f32 %v3881_v38 }
  0xab   :  { %195 = vrot.lane.b32.xlu0 %v147_v35, %s4463_s25  ;;  %v4046_v39 = vpop.eup %4045 }
  0xac   :  { %v243_v40 = vadd.f32 1.0, %v4046_v39 }
  0xae   :  { %4047 = vrcp.f32 %v243_v40  ;;  %vm249_vm2 = vweird.f32 %v243_v40  ;;  %v255_v46 = vand.u32 2147483648, %v243_v40  ;;  %v253_v47 = vand.u32 2147483647, %v243_v40 }
  0xaf   :  { %4049 = vpow2.f32 %v3879_v42 }
  0xb0   :  { %v256_v49 = vor.u32 1.1754944e-38, %v255_v46  ;;  %vm254_vm5 = vcmp.eq.f32.partialorder %v253_v47, 8.507059e+37 }
  0xb4   :  { %v4048_v41 = vpop.eup %4047 }
  0xb5   :  { %v245_v43 = vmul.f32 %v4048_v41, %v243_v40  ;;  %vm250_vm3 = vweird.f32 %v4048_v41  ;;  %v4050_v51 = vpop.eup %4049 }
  0xb6   :  { %vm251_vm4 = vmor %vm249_vm2, %vm250_vm3  ;;  %v177_v53 = vadd.f32 1.0, %v4050_v51 }
  0xb7   :  { %v246_v44 = vsub.f32 1.0, %v245_v43 }
  0xb8   :  { %4051 = vrcp.f32 %v177_v53  ;;  %v189_v61 = vand.u32 2147483648, %v177_v53  ;;  %vm183_vm7 = vweird.f32 %v177_v53  ;;  %v187_v62 = vand.u32 2147483647, %v177_v53 }
  0xb9   :  { %v247_v45 = vmul.f32 %v4048_v41, %v246_v44 }
  0xba   :  { %v190_v0 = vor.u32 1.1754944e-38, %v189_v61  ;;  %vm188_vm9 = vcmp.eq.f32.partialorder %v187_v62, 8.507059e+37 }
  0xbb   :  { %v248_v48 = vadd.f32 %v4048_v41, %v247_v45 }
  0xbd   :  { %v252_v50 = vsel %vm251_vm4, %v4048_v41, %v248_v48 }
  0xbe   :  { %v257_v52 = vsel %vm254_vm5, %v256_v49, %v252_v50  ;;  %v4052_v56 = vpop.eup %4051 }
  0xbf   :  { %v179_v57 = vmul.f32 %v4052_v56, %v177_v53  ;;  %vm184_vm6 = vweird.f32 %v4052_v56  ;;  %v270_v29 = vsub.f32 1.0, %v257_v52 }
  0xc0   :  { %vm185_vm8 = vmor %vm183_vm7, %vm184_vm6 }
  0xc1   :  { %v180_v58 = vsub.f32 1.0, %v179_v57 }
  0xc3   :  { %v181_v59 = vmul.f32 %v4052_v56, %v180_v58 }
  0xc5   :  { %v182_v60 = vadd.f32 %v4052_v56, %v181_v59 }
  0xc7   :  { %v186_v63 = vsel %vm185_vm8, %v4052_v56, %v182_v60 }
  0xc8   :  { %v191_v4 = vsel %vm188_vm9, %v190_v0, %v186_v63 }
  0xf6   :  { %v261_v54 = vpop.permute.xlu2 %260 }
  0xf7   :  { %v263_v55 = vmul.f32 %v261_v54, %v257_v52 }
  0xf9   :  { %265 = vrot.lane.b32.xlu0 %v263_v55, %s4462_s24  ;;  %v375_v55 = vld [vmem:[#allocation3 + $0x2] sm:$0x3] }
 0x115   :  { %v201_v1 = vpop.permute.xlu0 %200 }
 0x116   :  { %v203_v8 = vmul.f32 %v201_v1, %v191_v4 }
 0x118   :  { %205 = vrot.lane.b32.xlu1 %v203_v8, %s4463_s25 }
 0x11d   :  { %v196_v9 = vpop.permute.xlu0 %195 }
 0x11e   :  { %v198_v11 = vmul.f32 %v196_v9, %v191_v4 }
 0x16b   :  { %v266_v17 = vpop.permute.xlu0 %265 }
 0x16c   :  { %v268_v18 = vadd.f32 %v266_v17, %v238_v36 }
 0x18a   :  { %v206_v12 = vpop.permute.xlu1 %205 }
 0x18b   :  { %v4716_v15 = vadd.f32 %v206_v12, %v198_v11 }
 0x18d   :  { %4053 = vtanh.f32 %v4716_v15 }
 0x18e   :  { %4055 = vtanh.f32 %v268_v18 }
 0x193   :  { %v4054_v19 = vpop.eup %4053 }
 0x194   :  { %211 = vrot.lane.b32.xlu1 %v4054_v19, %s4463_s25  ;;  %v4056_v20 = vpop.eup %4055 }
 0x19c   :  { %272 = vrot.lane.b32.xlu1 %v4056_v20, %s4464_s28 }
 0x206   :  { %v212_v23 = vpop.permute.xlu1 %211 }
 0x207   :  { %v214_v24 = vmul.f32 %v212_v23, %v191_v4  ;;  %v57_v23 = vld [vmem:[%s5918_s22 + $0x8] sm:$0xff]  ;;  %s3825_s22 = sshll.u32 %s5907_s16, 4  ;;  %s3826_s22 = int_to_ptr.hbm [resolvable:$true] %s3825_s22 }
 0x208   :  { %3875 = vmatmul.msk.f32.gmra.mxu0 %vm80_vm0, %v57_v23  ;;  %3877 = vmatmul.msk.f32.gmra.mxu1 %vm80_vm0, %v57_v23 }
 0x209   :  { %282 = vrot.lane.b32.xlu2 %v214_v24, %s4462_s24 }
 0x20e   :  { %v273_v28 = vpop.permute.xlu1 %272 }
 0x20f   :  { %v275_v31 = vmul.f32 %v273_v28, %v270_v29 }
 0x211   :  { %276 = vrot.lane.b32.xlu2 %v4636_v16, %s4463_s25 }
 0x263   :  { %v283_v27 = vpop.permute.xlu2 %282 }
 0x264   :  { %286 = vst.msk [vmem:[#allocation4] sm:$0x3] %vm285_vm10, %v283_v27  ;;  %3882 = vmatmul.msk.f32.vlgmr.msrb.gmra.mxu2 %vm80_vm0, %v283_v27 }
 0x265   :  { %839 = vmatpush.msrb.mxu2 %v4573_v2 }
 0x267   :  { %840 = vmatpush.msrb.mxu2 %v4578_v3 }
 0x269   :  { %841 = vmatpush.msrb.mxu2 %v4587_v5 }
 0x26b   :  { %v277_v30 = vpop.permute.xlu2 %276  ;;  %842 = vmatpush.msrb.mxu2 %v4610_v10 }
 0x26c   :  { %v279_v32 = vmul.f32 %v277_v30, %v257_v52 }
 0x26e   :  { %v4730_v16 = vadd.f32 %v279_v32, %v275_v31 }
 0x270   :  { %288 = vrot.lane.b32.xlu0 %v4730_v16, %s4464_s28 }
 0x285   :  { %v107_v32 = vpop.f32.mrf.mxu0 }
 0x2e2   :  { %v289_v33 = vpop.permute.xlu0 %288 }
 0x2e3   :  { %291 = vst.msk [vmem:[#allocation5] sm:$0x3] %vm285_vm10, %v289_v33  ;;  %3884 = vmatmul.msk.f32.vlgmr.msrb.gmra.mxu3 %vm80_vm0, %v289_v33  ;;  %v108_v33 = vadd.f32 %v107_v32, %v78_v22 }
 0x2e4   :  { %899 = vmatpush.msrb.mxu3 %v4592_v6 }
 0x2e5   :  { %111 = vst [vmem:[#allocation2 + $0x8] sm:$0xff] %v108_v33 }
 0x2e6   :  { %900 = vmatpush.msrb.mxu3 %v4597_v7 }
 0x2e7   :  { %v312_v35 = vpop.f32.mrf.mxu2 }
 0x2e8   :  { %v315_v36 = vadd.f32 %v312_v35, %v292_v34  ;;  %901 = vmatpush.msrb.mxu3 %v4623_v13 }
 0x2ea   :  { %4057 = vtanh.f32 %v315_v36  ;;  %902 = vmatpush.msrb.mxu3 %v4628_v14  ;;  %v3883_v38 = vmul.f32 -1.442695, %v315_v36 }
 0x2ec   :  { %4059 = vpow2.f32 %v3883_v38 }
 0x2f0   :  { %v4058_v37 = vpop.eup %4057 }
 0x2f1   :  { %338 = vrot.lane.b32.xlu1 %v4058_v37, %s4463_s25 }
 0x2f2   :  { %v4060_v39 = vpop.eup %4059 }
 0x2f3   :  { %v319_v40 = vadd.f32 1.0, %v4060_v39  ;;  %v425_v39 = vld [vmem:[#allocation2 + $0x4] sm:$0x3] }
 0x2f5   :  { %4061 = vrcp.f32 %v319_v40  ;;  %v331_v46 = vand.u32 2147483648, %v319_v40  ;;  %vm325_vm12 = vweird.f32 %v319_v40  ;;  %v329_v47 = vand.u32 2147483647, %v319_v40 }
 0x2f7   :  { %v332_v49 = vor.u32 1.1754944e-38, %v331_v46  ;;  %vm330_vm14 = vcmp.eq.f32.partialorder %v329_v47, 8.507059e+37 }
 0x2fb   :  { %v4062_v41 = vpop.eup %4061 }
 0x2fc   :  { %v321_v42 = vmul.f32 %v4062_v41, %v319_v40  ;;  %vm326_vm11 = vweird.f32 %v4062_v41 }
 0x2fd   :  { %vm327_vm13 = vmor %vm325_vm12, %vm326_vm11 }
 0x2fe   :  { %v322_v43 = vsub.f32 1.0, %v321_v42 }
 0x300   :  { %v323_v44 = vmul.f32 %v4062_v41, %v322_v43 }
 0x302   :  { %v324_v45 = vadd.f32 %v4062_v41, %v323_v44  ;;  %v140_v44 = vpop.f32.mrf.mxu1 }
 0x304   :  { %v328_v48 = vsel %vm327_vm13, %v4062_v41, %v324_v45  ;;  %v141_v45 = vadd.f32 %v4698_v25, %v140_v44 }
 0x305   :  { %v333_v50 = vsel %vm330_vm14, %v332_v49, %v328_v48 }
 0x306   :  { %v336_v60 = vmul.f32 %v333_v50, %v4716_v15  ;;  %145 = vst.msk [vmem:[#allocation3 + $0x8] sm:$0xff] %vm143_vm1, %v141_v45 }
 0x363   :  { %v339_v51 = vpop.permute.xlu1 %338 }
 0x364   :  { %v341_v52 = vmul.f32 %v339_v51, %v333_v50 }
 0x366   :  { %v372_v53 = vpop.f32.mrf.mxu3  ;;  %343 = vrot.lane.b32.xlu2 %v341_v52, %s4463_s25 }
 0x367   :  { %v373_v54 = vadd.f32 %v4703_v26, %v372_v53 }
 0x369   :  { %397 = vrot.lane.b32.xlu1 %v373_v54, %s4462_s24  ;;  %v376_v56 = vadd.f32 %v375_v55, %v373_v54 }
 0x36b   :  { %v3885_v57 = vmul.f32 -1.442695, %v376_v56 }
 0x36d   :  { %4063 = vpow2.f32 %v3885_v57 }
 0x373   :  { %v4064_v58 = vpop.eup %4063 }
 0x374   :  { %v380_v59 = vadd.f32 1.0, %v4064_v58 }
 0x376   :  { %4065 = vrcp.f32 %v380_v59  ;;  %v392_v11 = vand.u32 2147483648, %v380_v59  ;;  %vm386_vm2 = vweird.f32 %v380_v59  ;;  %v390_v12 = vand.u32 2147483647, %v380_v59 }
 0x378   :  { %v393_v15 = vor.u32 1.1754944e-38, %v392_v11  ;;  %vm391_vm4 = vcmp.eq.f32.partialorder %v390_v12, 8.507059e+37 }
 0x37c   :  { %v4066_v63 = vpop.eup %4065 }
 0x37d   :  { %v382_v0 = vmul.f32 %v4066_v63, %v380_v59  ;;  %vm387_vm15 = vweird.f32 %v4066_v63  ;;  %v508_v59 = vld [vmem:[#allocation3 + $0x4] sm:$0x3] }
 0x37e   :  { %vm388_vm3 = vmor %vm386_vm2, %vm387_vm15 }
 0x37f   :  { %v383_v4 = vsub.f32 1.0, %v382_v0 }
 0x381   :  { %v384_v8 = vmul.f32 %v4066_v63, %v383_v4 }
 0x383   :  { %v385_v9 = vadd.f32 %v4066_v63, %v384_v8 }
 0x385   :  { %v389_v17 = vsel %vm388_vm3, %v4066_v63, %v385_v9 }
 0x386   :  { %v394_v18 = vsel %vm391_vm4, %v393_v15, %v389_v17 }
 0x387   :  { %v407_v34 = vsub.f32 1.0, %v394_v18  ;;  %v413_v36 = vmul.f32 %v394_v18, %v4730_v16 }
 0x3c0   :  { %v344_v61 = vpop.permute.xlu2 %343 }
 0x3c1   :  { %v4745_v62 = vadd.f32 %v344_v61, %v336_v60 }
 0x3c3   :  { %4067 = vtanh.f32 %v4745_v62 }
 0x3c9   :  { %v4068_v1 = vpop.eup %4067 }
 0x3ca   :  { %349 = vrot.lane.b32.xlu0 %v4068_v1, %s4463_s25 }
 0x3db   :  { %v398_v19 = vpop.permute.xlu1 %397 }
 0x3dc   :  { %v400_v20 = vmul.f32 %v398_v19, %v394_v18 }
 0x3de   :  { %402 = vrot.lane.b32.xlu0 %v400_v20, %s4462_s24 }
 0x43c   :  { %v350_v24 = vpop.permute.xlu0 %349 }
 0x43d   :  { %v352_v27 = vmul.f32 %v350_v24, %v333_v50 }
 0x43f   :  { %416 = vrot.lane.b32.xlu2 %v352_v27, %s4462_s24 }
 0x450   :  { %v403_v28 = vpop.permute.xlu0 %402 }
 0x451   :  { %v405_v29 = vadd.f32 %v403_v28, %v375_v55 }
 0x453   :  { %4069 = vtanh.f32 %v405_v29 }
 0x459   :  { %v4070_v30 = vpop.eup %4069 }
 0x45a   :  { %409 = vrot.lane.b32.xlu1 %v4070_v30, %s4464_s28 }
 0x499   :  { %v417_v31 = vpop.permute.xlu2 %416 }
 0x49a   :  { %419 = vst.msk [vmem:[#allocation4 + $0x2] sm:$0x3] %vm285_vm10, %v417_v31  ;;  %3886 = vmatmul.msk.f32.vlgmr.msrb.gmra.mxu0 %vm80_vm0, %v417_v31 }
 0x49b   :  { %972 = vmatpush.msrb.mxu0 %v4573_v2 }
 0x49d   :  { %973 = vmatpush.msrb.mxu0 %v4578_v3 }
 0x49f   :  { %974 = vmatpush.msrb.mxu0 %v4587_v5 }
 0x4a1   :  { %975 = vmatpush.msrb.mxu0 %v4610_v10 }
 0x4cc   :  { %v410_v35 = vpop.permute.xlu1 %409 }
 0x4cd   :  { %v412_v37 = vmul.f32 %v410_v35, %v407_v34 }
 0x4cf   :  { %v4766_v38 = vadd.f32 %v413_v36, %v412_v37 }
 0x4d1   :  { %421 = vrot.lane.b32.xlu2 %v4766_v38, %s4464_s28 }
 0x517   :  { %v445_v40 = vpop.f32.mrf.mxu0 }
 0x518   :  { %v448_v41 = vadd.f32 %v445_v40, %v425_v39 }
 0x51a   :  { %4071 = vtanh.f32 %v448_v41  ;;  %v3887_v22 = vmul.f32 -1.442695, %v448_v41  ;;  %v558_v41 = vld [vmem:[#allocation2 + $0x6] sm:$0x3] }
 0x51c   :  { %4073 = vpow2.f32 %v3887_v22 }
 0x520   :  { %v4072_v42 = vpop.eup %4071 }
 0x521   :  { %471 = vrot.lane.b32.xlu0 %v4072_v42, %s4463_s25 }
 0x522   :  { %v4074_v16 = vpop.eup %4073 }
 0x523   :  { %v452_v43 = vadd.f32 1.0, %v4074_v16 }
 0x525   :  { %4075 = vrcp.f32 %v452_v43  ;;  %v464_v51 = vand.u32 2147483648, %v452_v43  ;;  %vm458_vm6 = vweird.f32 %v452_v43  ;;  %v462_v52 = vand.u32 2147483647, %v452_v43 }
 0x527   :  { %v465_v54 = vor.u32 1.1754944e-38, %v464_v51  ;;  %vm463_vm8 = vcmp.eq.f32.partialorder %v462_v52, 8.507059e+37  ;;  %v641_v51 = vld [vmem:[#allocation3 + $0x6] sm:$0x3] }
 0x52b   :  { %v422_v21 = vpop.permute.xlu2 %421  ;;  %v4076_v46 = vpop.eup %4075 }
 0x52c   :  { %424 = vst.msk [vmem:[#allocation5 + $0x2] sm:$0x3] %vm285_vm10, %v422_v21  ;;  %3888 = vmatmul.msk.f32.vlgmr.msrb.gmra.mxu1 %vm80_vm0, %v422_v21  ;;  %v454_v47 = vmul.f32 %v4076_v46, %v452_v43  ;;  %vm459_vm5 = vweird.f32 %v4076_v46 }
 0x52d   :  { %1032 = vmatpush.msrb.mxu1 %v4592_v6  ;;  %vm460_vm7 = vmor %vm458_vm6, %vm459_vm5 }
 0x52e   :  { %v455_v48 = vsub.f32 1.0, %v454_v47 }
 0x52f   :  { %1033 = vmatpush.msrb.mxu1 %v4597_v7 }
 0x530   :  { %v456_v49 = vmul.f32 %v4076_v46, %v455_v48 }
 0x531   :  { %1034 = vmatpush.msrb.mxu1 %v4623_v13 }
 0x532   :  { %v457_v50 = vadd.f32 %v4076_v46, %v456_v49 }
 0x533   :  { %1035 = vmatpush.msrb.mxu1 %v4628_v14 }
 0x534   :  { %v461_v53 = vsel %vm460_vm7, %v4076_v46, %v457_v50 }
 0x535   :  { %v466_v55 = vsel %vm463_vm8, %v465_v54, %v461_v53 }
 0x536   :  { %v469_v24 = vmul.f32 %v466_v55, %v4745_v62 }
 0x593   :  { %v472_v56 = vpop.permute.xlu0 %471 }
 0x594   :  { %v474_v57 = vmul.f32 %v472_v56, %v466_v55 }
 0x596   :  { %476 = vrot.lane.b32.xlu1 %v474_v57, %s4463_s25 }
 0x5a9   :  { %v505_v25 = vpop.f32.mrf.mxu1 }
 0x5aa   :  { %v506_v58 = vadd.f32 %v4703_v26, %v505_v25 }
 0x5ac   :  { %530 = vrot.lane.b32.xlu2 %v506_v58, %s4462_s24  ;;  %v509_v60 = vadd.f32 %v508_v59, %v506_v58 }
 0x5ae   :  { %v3889_v61 = vmul.f32 -1.442695, %v509_v60 }
 0x5b0   :  { %4077 = vpow2.f32 %v3889_v61 }
 0x5b6   :  { %v4078_v63 = vpop.eup %4077 }
 0x5b7   :  { %v513_v0 = vadd.f32 1.0, %v4078_v63 }
 0x5b9   :  { %4079 = vrcp.f32 %v513_v0  ;;  %v525_v12 = vand.u32 2147483648, %v513_v0  ;;  %vm519_vm11 = vweird.f32 %v513_v0  ;;  %v523_v17 = vand.u32 2147483647, %v513_v0 }
 0x5bb   :  { %v526_v18 = vor.u32 1.1754944e-38, %v525_v12  ;;  %vm524_vm13 = vcmp.eq.f32.partialorder %v523_v17, 8.507059e+37 }
 0x5bf   :  { %v4080_v1 = vpop.eup %4079 }
 0x5c0   :  { %v515_v4 = vmul.f32 %v4080_v1, %v513_v0  ;;  %vm520_vm9 = vweird.f32 %v4080_v1 }
 0x5c1   :  { %vm521_vm12 = vmor %vm519_vm11, %vm520_vm9 }
 0x5c2   :  { %v516_v8 = vsub.f32 1.0, %v515_v4 }
 0x5c4   :  { %v517_v9 = vmul.f32 %v4080_v1, %v516_v8 }
 0x5c6   :  { %v518_v11 = vadd.f32 %v4080_v1, %v517_v9 }
 0x5c8   :  { %v522_v15 = vsel %vm521_vm12, %v4080_v1, %v518_v11 }
 0x5c9   :  { %v527_v20 = vsel %vm524_vm13, %v526_v18, %v522_v15 }
 0x5ca   :  { %v540_v35 = vsub.f32 1.0, %v527_v20  ;;  %v546_v37 = vmul.f32 %v527_v20, %v4766_v38 }
 0x606   :  { %v531_v19 = vpop.permute.xlu2 %530 }
 0x607   :  { %v533_v23 = vmul.f32 %v531_v19, %v527_v20 }
 0x608   :  { %v477_v27 = vpop.permute.xlu1 %476 }
 0x609   :  { %v4783_v28 = vadd.f32 %v477_v27, %v469_v24  ;;  %535 = vrot.lane.b32.xlu1 %v533_v23, %s4462_s24 }
 0x60b   :  { %4081 = vtanh.f32 %v4783_v28 }
 0x611   :  { %v4082_v29 = vpop.eup %4081 }
 0x612   :  { %482 = vrot.lane.b32.xlu0 %v4082_v29, %s4463_s25 }
 0x67b   :  { %v536_v30 = vpop.permute.xlu1 %535 }
 0x67c   :  { %v538_v31 = vadd.f32 %v536_v30, %v508_v59 }
 0x67e   :  { %4083 = vtanh.f32 %v538_v31 }
 0x684   :  { %v4084_v32 = vpop.eup %4083  ;;  %v483_v33 = vpop.permute.xlu0 %482 }
 0x685   :  { %v485_v34 = vmul.f32 %v483_v33, %v466_v55  ;;  %542 = vrot.lane.b32.xlu0 %v4084_v32, %s4464_s28  ;;  %v691_v32 = vld [vmem:[#allocation2 + $0x8] sm:$0x3] }
 0x687   :  { %549 = vrot.lane.b32.xlu2 %v485_v34, %s4462_s24 }
 0x6e1   :  { %v550_v62 = vpop.permute.xlu2 %549 }
 0x6e2   :  { %552 = vst.msk [vmem:[#allocation4 + $0x4] sm:$0x3] %vm285_vm10, %v550_v62  ;;  %3890 = vmatmul.msk.f32.vlgmr.msra.gmra.mxu2 %vm80_vm0, %v550_v62 }
 0x6e3   :  { %1105 = vmatpush.msra.mxu2 %v4573_v2 }
 0x6e5   :  { %1106 = vmatpush.msra.mxu2 %v4578_v3 }
 0x6e7   :  { %1107 = vmatpush.msra.mxu2 %v4587_v5 }
 0x6e9   :  { %1108 = vmatpush.msra.mxu2 %v4610_v10 }
 0x6f7   :  { %v543_v36 = vpop.permute.xlu0 %542 }
 0x6f8   :  { %v545_v39 = vmul.f32 %v543_v36, %v540_v35 }
 0x6fa   :  { %v4797_v40 = vadd.f32 %v546_v37, %v545_v39 }
 0x6fc   :  { %554 = vrot.lane.b32.xlu1 %v4797_v40, %s4464_s28 }
 0x765   :  { %v578_v42 = vpop.f32.mrf.mxu2 }
 0x766   :  { %v581_v21 = vadd.f32 %v578_v42, %v558_v41 }
 0x768   :  { %4085 = vtanh.f32 %v581_v21  ;;  %v3891_v5 = vmul.f32 -1.442695, %v581_v21 }
 0x76a   :  { %4087 = vpow2.f32 %v3891_v5 }
 0x76e   :  { %v4086_v2 = vpop.eup %4085  ;;  %v555_v3 = vpop.permute.xlu1 %554 }
 0x76f   :  { %557 = vst.msk [vmem:[#allocation5 + $0x4] sm:$0x3] %vm285_vm10, %v555_v3  ;;  %604 = vrot.lane.b32.xlu2 %v4086_v2, %s4463_s25  ;;  %3892 = vmatmul.msk.f32.vlgmr.msra.gmra.mxu3 %vm80_vm0, %v555_v3 }
 0x770   :  { %1165 = vmatpush.msra.mxu3 %v4592_v6  ;;  %v4088_v10 = vpop.eup %4087 }
 0x771   :  { %v585_v38 = vadd.f32 1.0, %v4088_v10 }
 0x772   :  { %1166 = vmatpush.msra.mxu3 %v4597_v7 }
 0x773   :  { %4089 = vrcp.f32 %v585_v38  ;;  %v597_v46 = vand.u32 2147483648, %v585_v38  ;;  %vm591_vm15 = vweird.f32 %v585_v38  ;;  %v595_v6 = vand.u32 2147483647, %v585_v38 }
 0x774   :  { %1167 = vmatpush.msra.mxu3 %v4623_v13 }
 0x775   :  { %v598_v47 = vor.u32 1.1754944e-38, %v597_v46  ;;  %vm596_vm3 = vcmp.eq.f32.partialorder %v595_v6, 8.507059e+37 }
 0x776   :  { %1168 = vmatpush.msra.mxu3 %v4628_v14 }
 0x779   :  { %v4090_v22 = vpop.eup %4089 }
 0x77a   :  { %v587_v16 = vmul.f32 %v4090_v22, %v585_v38  ;;  %vm592_vm14 = vweird.f32 %v4090_v22 }
 0x77b   :  { %vm593_vm2 = vmor %vm591_vm15, %vm592_vm14 }
 0x77c   :  { %v588_v43 = vsub.f32 1.0, %v587_v16 }
 0x77e   :  { %v589_v44 = vmul.f32 %v4090_v22, %v588_v43 }
 0x780   :  { %v590_v45 = vadd.f32 %v4090_v22, %v589_v44 }
 0x782   :  { %v594_v7 = vsel %vm593_vm2, %v4090_v22, %v590_v45 }
 0x783   :  { %v599_v14 = vsel %vm596_vm3, %v598_v47, %v594_v7 }
 0x784   :  { %v602_v54 = vmul.f32 %v599_v14, %v4783_v28 }
 0x7c9   :  { %v605_v13 = vpop.permute.xlu2 %604 }
 0x7ca   :  { %v607_v48 = vmul.f32 %v605_v13, %v599_v14  ;;  %v774_v13 = vld [vmem:[#allocation3 + $0x8] sm:$0x3] }
 0x7cc   :  { %609 = vrot.lane.b32.xlu0 %v607_v48, %s4463_s25 }
 0x7f2   :  { %v638_v49 = vpop.f32.mrf.mxu3 }
 0x7f3   :  { %v639_v50 = vadd.f32 %v4703_v26, %v638_v49 }
 0x7f5   :  { %663 = vrot.lane.b32.xlu1 %v639_v50, %s4462_s24  ;;  %v642_v52 = vadd.f32 %v641_v51, %v639_v50 }
 0x7f7   :  { %v3893_v53 = vmul.f32 -1.442695, %v642_v52 }
 0x7f9   :  { %4091 = vpow2.f32 %v3893_v53 }
 0x7ff   :  { %v4092_v57 = vpop.eup %4091 }
 0x800   :  { %v646_v58 = vadd.f32 1.0, %v4092_v57 }
 0x802   :  { %v658_v1 = vand.u32 2147483648, %v646_v58  ;;  %vm652_vm5 = vweird.f32 %v646_v58  ;;  %v656_v4 = vand.u32 2147483647, %v646_v58 }
 0x804   :  { %v659_v9 = vor.u32 1.1754944e-38, %v658_v1  ;;  %vm657_vm7 = vcmp.eq.f32.partialorder %v656_v4, 8.507059e+37 }
 0x83e   :  { %v610_v55 = vpop.permute.xlu0 %609 }
 0x83f   :  { %v4812_v56 = vadd.f32 %v610_v55, %v602_v54 }
 0x841   :  { %4093 = vtanh.f32 %v4812_v56 }
 0x842   :  { %4095 = vrcp.f32 %v646_v58 }
 0x847   :  { %v4094_v25 = vpop.eup %4093 }
 0x848   :  { %615 = vrot.lane.b32.xlu2 %v4094_v25, %s4463_s25  ;;  %v4096_v59 = vpop.eup %4095 }
 0x849   :  { %v648_v60 = vmul.f32 %v4096_v59, %v646_v58  ;;  %vm653_vm4 = vweird.f32 %v4096_v59 }
 0x84a   :  { %vm654_vm6 = vmor %vm652_vm5, %vm653_vm4 }
 0x84b   :  { %v649_v61 = vsub.f32 1.0, %v648_v60 }
 0x84d   :  { %v650_v63 = vmul.f32 %v4096_v59, %v649_v61 }
 0x84f   :  { %v651_v0 = vadd.f32 %v4096_v59, %v650_v63 }
 0x851   :  { %v655_v8 = vsel %vm654_vm6, %v4096_v59, %v651_v0 }
 0x852   :  { %v660_v12 = vsel %vm657_vm7, %v659_v9, %v655_v8 }
 0x853   :  { %v673_v27 = vsub.f32 1.0, %v660_v12  ;;  %v679_v29 = vmul.f32 %v660_v12, %v4797_v40 }
 0x867   :  { %v664_v11 = vpop.permute.xlu1 %663 }
 0x868   :  { %v666_v17 = vmul.f32 %v664_v11, %v660_v12 }
 0x86a   :  { %668 = vrot.lane.b32.xlu0 %v666_v17, %s4462_s24 }
 0x8a2   :  { %v616_v15 = vpop.permute.xlu2 %615 }
 0x8a3   :  { %v618_v18 = vmul.f32 %v616_v15, %v599_v14 }
 0x8a5   :  { %682 = vrot.lane.b32.xlu1 %v618_v18, %s4462_s24 }
 0x8dc   :  { %v669_v19 = vpop.permute.xlu0 %668 }
 0x8dd   :  { %v671_v20 = vadd.f32 %v669_v19, %v641_v51 }
 0x8df   :  { %4097 = vtanh.f32 %v671_v20  ;;  %v824_v20 = vld [vmem:[#allocation2 + $0xa] sm:$0x3] }
 0x8e5   :  { %v4098_v23 = vpop.eup %4097 }
 0x8e6   :  { %675 = vrot.lane.b32.xlu2 %v4098_v23, %s4464_s28 }
 0x917   :  { %v683_v24 = vpop.permute.xlu1 %682 }
 0x918   :  { %685 = vst.msk [vmem:[#allocation4 + $0x6] sm:$0x3] %vm285_vm10, %v683_v24  ;;  %3894 = vmatmul.msk.f32.vlgmr.msra.gmra.mxu0 %vm80_vm0, %v683_v24 }
 0x940   :  { %v676_v28 = vpop.permute.xlu2 %675 }
 0x941   :  { %v678_v30 = vmul.f32 %v676_v28, %v673_v27 }
 0x943   :  { %v4822_v31 = vadd.f32 %v679_v29, %v678_v30 }
 0x945   :  { %687 = vrot.lane.b32.xlu0 %v4822_v31, %s4464_s28 }
 0x995   :  { %v711_v33 = vpop.f32.mrf.mxu0 }
 0x996   :  { %v714_v34 = vadd.f32 %v711_v33, %v691_v32 }
 0x998   :  { %4099 = vtanh.f32 %v714_v34  ;;  %v3895_v36 = vmul.f32 -1.442695, %v714_v34 }
 0x99a   :  { %4101 = vpow2.f32 %v3895_v36 }
 0x99e   :  { %v4100_v62 = vpop.eup %4099 }
 0x99f   :  { %737 = vrot.lane.b32.xlu1 %v4100_v62, %s4463_s25 }
 0x9a0   :  { %v4102_v37 = vpop.eup %4101 }
 0x9a1   :  { %v718_v39 = vadd.f32 1.0, %v4102_v37 }
 0x9a3   :  { %4103 = vrcp.f32 %v718_v39  ;;  %v730_v3 = vand.u32 2147483648, %v718_v39  ;;  %vm724_vm9 = vweird.f32 %v718_v39  ;;  %v728_v5 = vand.u32 2147483647, %v718_v39 }
 0x9a5   :  { %v731_v38 = vor.u32 1.1754944e-38, %v730_v3  ;;  %vm729_vm12 = vcmp.eq.f32.partialorder %v728_v5, 8.507059e+37  ;;  %v907_v3 = vld [vmem:[#allocation3 + $0xa] sm:$0x3] }
 0x9a9   :  { %v4104_v40 = vpop.eup %4103 }
 0x9aa   :  { %v720_v41 = vmul.f32 %v4104_v40, %v718_v39  ;;  %vm725_vm8 = vweird.f32 %v4104_v40 }
 0x9ab   :  { %vm726_vm11 = vmor %vm724_vm9, %vm725_vm8 }
 0x9ac   :  { %v721_v42 = vsub.f32 1.0, %v720_v41 }
 0x9ae   :  { %v722_v21 = vmul.f32 %v4104_v40, %v721_v42 }
 0x9b0   :  { %v723_v2 = vadd.f32 %v4104_v40, %v722_v21 }
 0x9b2   :  { %v727_v10 = vsel %vm726_vm11, %v4104_v40, %v723_v2 }
 0x9b3   :  { %v732_v16 = vsel %vm729_vm12, %v731_v38, %v727_v10 }
 0x9b4   :  { %v735_v46 = vmul.f32 %v732_v16, %v4812_v56 }
 0x9b7   :  { %v688_v35 = vpop.permute.xlu0 %687 }
 0x9b8   :  { %690 = vst.msk [vmem:[#allocation5 + $0x6] sm:$0x3] %vm285_vm10, %v688_v35  ;;  %3896 = vmatmul.msk.f32.vlgmr.msra.gmra.mxu1 %vm80_vm0, %v688_v35 }
 0xa11   :  { %v738_v22 = vpop.permute.xlu1 %737 }
 0xa12   :  { %v740_v43 = vmul.f32 %v738_v22, %v732_v16 }
 0xa14   :  { %742 = vrot.lane.b32.xlu2 %v740_v43, %s4463_s25 }
 0xa35   :  { %v771_v44 = vpop.f32.mrf.mxu1 }
 0xa36   :  { %v772_v45 = vadd.f32 %v4703_v26, %v771_v44 }
 0xa38   :  { %796 = vrot.lane.b32.xlu0 %v772_v45, %s4462_s24  ;;  %v775_v14 = vadd.f32 %v774_v13, %v772_v45 }
 0xa3a   :  { %v3897_v48 = vmul.f32 -1.442695, %v775_v14 }
 0xa6e   :  { %v743_v6 = vpop.permute.xlu2 %742 }
 0xa6f   :  { %v4833_v7 = vadd.f32 %v743_v6, %v735_v46 }
 0xa71   :  { %4105 = vtanh.f32 %v4833_v7 }
 0xa72   :  { %4107 = vpow2.f32 %v3897_v48 }
 0xa77   :  { %v4106_v47 = vpop.eup %4105 }
 0xa78   :  { %748 = vrot.lane.b32.xlu1 %v4106_v47, %s4463_s25  ;;  %v4108_v49 = vpop.eup %4107 }
 0xa79   :  { %v779_v50 = vadd.f32 1.0, %v4108_v49 }
 0xa7b   :  { %4109 = vrcp.f32 %v779_v50  ;;  %v791_v56 = vand.u32 2147483648, %v779_v50  ;;  %vm785_vm14 = vweird.f32 %v779_v50  ;;  %v789_v57 = vand.u32 2147483647, %v779_v50 }
 0xa7d   :  { %v792_v58 = vor.u32 1.1754944e-38, %v791_v56  ;;  %vm790_vm2 = vcmp.eq.f32.partialorder %v789_v57, 8.507059e+37 }
 0xa81   :  { %v4110_v51 = vpop.eup %4109 }
 0xa82   :  { %v781_v52 = vmul.f32 %v4110_v51, %v779_v50  ;;  %vm786_vm13 = vweird.f32 %v4110_v51 }
 0xa83   :  { %vm787_vm15 = vmor %vm785_vm14, %vm786_vm13 }
 0xa84   :  { %v782_v53 = vsub.f32 1.0, %v781_v52 }
 0xa86   :  { %v783_v54 = vmul.f32 %v4110_v51, %v782_v53 }
 0xa88   :  { %v784_v55 = vadd.f32 %v4110_v51, %v783_v54 }
 0xa8a   :  { %v788_v25 = vsel %vm787_vm15, %v4110_v51, %v784_v55 }
 0xa8b   :  { %v793_v60 = vsel %vm790_vm2, %v792_v58, %v788_v25  ;;  %v3923_v58 = vld [vmem:[%s5916_s29 + $0x30] sm:$0xff] }
 0xa8c   :  { %v806_v11 = vsub.f32 1.0, %v793_v60  ;;  %v812_v17 = vmul.f32 %v793_v60, %v4822_v31 }
 0xaaa   :  { %v797_v59 = vpop.permute.xlu0 %796 }
 0xaab   :  { %v799_v61 = vmul.f32 %v797_v59, %v793_v60  ;;  %v3922_v59 = vld [vmem:[%s5916_s29 + $0x28] sm:$0xff]  ;;  %v3921_v60 = vld [vmem:[%s5916_s29 + $0x20] sm:$0xff] }
 0xaad   :  { %801 = vrot.lane.b32.xlu2 %v799_v61, %s4462_s24 }
 0xaea   :  { %v749_v63 = vpop.permute.xlu1 %748 }
 0xaeb   :  { %v751_v0 = vmul.f32 %v749_v63, %v732_v16 }
 0xaed   :  { %815 = vrot.lane.b32.xlu0 %v751_v0, %s4462_s24 }
 0xb07   :  { %v802_v1 = vpop.permute.xlu2 %801 }
 0xb08   :  { %v804_v4 = vadd.f32 %v802_v1, %v774_v13 }
 0xb0a   :  { %4111 = vtanh.f32 %v804_v4 }
 0xb10   :  { %v4112_v8 = vpop.eup %4111 }
 0xb11   :  { %808 = vrot.lane.b32.xlu1 %v4112_v8, %s4464_s28  ;;  %v1250_v8 = vld [vmem:[#allocation4] sm:$0xff] }
 0xb5f   :  { %v816_v9 = vpop.permute.xlu0 %815 }
 0xb60   :  { %818 = vst.msk [vmem:[#allocation4 + $0x8] sm:$0x3] %vm285_vm10, %v816_v9  ;;  %3898 = vmatmul.msk.f32.vlgmr.msrb.gmra.mxu2 %vm80_vm0, %v816_v9 }
 0xb83   :  { %v809_v12 = vpop.permute.xlu1 %808 }
 0xb84   :  { %v811_v15 = vmul.f32 %v809_v12, %v806_v11  ;;  %v3930_v11 = vld [vmem:[%s5896_s5 + $0x38] sm:$0xff]  ;;  %v3929_v12 = vld [vmem:[%s5896_s5 + $0x30] sm:$0xff] }
 0xb85   :  { %1321 = vmatpush.msra.mxu1 %v3930_v11  ;;  %v4934_v11 = vld [vmem:[%s5917_s20 + $0x38] sm:$0xff] }
 0xb86   :  { %v4843_v18 = vadd.f32 %v812_v17, %v811_v15  ;;  %v3928_v17 = vld [vmem:[%s5896_s5 + $0x28] sm:$0xff]  ;;  %v3927_v15 = vld [vmem:[%s5896_s5 + $0x20] sm:$0xff]  ;;  %1356 = vmatpush.msrb.mxu2 %v4934_v11 }
 0xb87   :  { %1322 = vmatpush.msra.mxu1 %v3929_v12  ;;  %v4939_v12 = vld [vmem:[%s5917_s20 + $0x30] sm:$0xff] }
 0xb88   :  { %820 = vrot.lane.b32.xlu2 %v4843_v18, %s4464_s28  ;;  %1357 = vmatpush.msrb.mxu2 %v4939_v12 }
 0xb89   :  { %1323 = vmatpush.msra.mxu1 %v3928_v17  ;;  %v4946_v17 = vld [vmem:[%s5917_s20 + $0x28] sm:$0xff] }
 0xb8a   :  { %1358 = vmatpush.msrb.mxu2 %v4946_v17 }
 0xb8b   :  { %1324 = vmatpush.msra.mxu1 %v3927_v15  ;;  %v4953_v15 = vld [vmem:[%s5917_s20 + $0x20] sm:$0xff] }
 0xb8c   :  { %1359 = vmatpush.msrb.mxu2 %v4953_v15 }
 0xbe2   :  { %v821_v19 = vpop.permute.xlu2 %820 }
 0xbe3   :  { %823 = vst.msk [vmem:[#allocation5 + $0x8] sm:$0x3] %vm285_vm10, %v821_v19  ;;  %v844_v23 = vpop.f32.mrf.mxu2  ;;  %3900 = vmatmul.msk.f32.vlgmr.msrb.gmra.mxu3 %vm80_vm0, %v821_v19  ;;  %v3919_v19 = vld [vmem:[%s5895_s4 + $0x1] sm:$0x1] }
 0xbe4   :  { %v847_v24 = vadd.f32 %v844_v23, %v824_v20  ;;  %v957_v20 = vld [vmem:[#allocation2 + $0xc] sm:$0x3] }
 0xbe6   :  { %4113 = vtanh.f32 %v847_v24  ;;  %v3899_v28 = vmul.f32 -1.442695, %v847_v24 }
 0xbe8   :  { %4115 = vpow2.f32 %v3899_v28 }
 0xbec   :  { %v4114_v27 = vpop.eup %4113 }
 0xbed   :  { %870 = vrot.lane.b32.xlu0 %v4114_v27, %s4463_s25 }
 0xbee   :  { %v4116_v29 = vpop.eup %4115 }
 0xbef   :  { %v851_v30 = vadd.f32 1.0, %v4116_v29 }
 0xbf1   :  { %4117 = vrcp.f32 %v851_v30  ;;  %v863_v35 = vand.u32 2147483648, %v851_v30  ;;  %vm857_vm4 = vweird.f32 %v851_v30  ;;  %v861_v36 = vand.u32 2147483647, %v851_v30 }
 0xbf3   :  { %v864_v39 = vor.u32 1.1754944e-38, %v863_v35  ;;  %vm862_vm6 = vcmp.eq.f32.partialorder %v861_v36, 8.507059e+37 }
 0xbf7   :  { %v4118_v31 = vpop.eup %4117 }
 0xbf8   :  { %v853_v32 = vmul.f32 %v4118_v31, %v851_v30  ;;  %vm858_vm3 = vweird.f32 %v4118_v31 }
 0xbf9   :  { %vm859_vm5 = vmor %vm857_vm4, %vm858_vm3 }
 0xbfa   :  { %v854_v33 = vsub.f32 1.0, %v853_v32 }
 0xbfc   :  { %v855_v34 = vmul.f32 %v4118_v31, %v854_v33 }
 0xbfe   :  { %v856_v62 = vadd.f32 %v4118_v31, %v855_v34 }
 0xc00   :  { %v860_v37 = vsel %vm859_vm5, %v4118_v31, %v856_v62  ;;  %v1252_v31 = vld [vmem:[#allocation5] sm:$0xff] }
 0xc01   :  { %v865_v41 = vsel %vm862_vm6, %v864_v39, %v860_v37 }
 0xc02   :  { %v868_v50 = vmul.f32 %v865_v41, %v4833_v7  ;;  %v3924_v7 = vld [vmem:[%s5916_s29 + $0x38] sm:$0xff] }
 0xc03   :  { %1280 = vmatpush.msra.mxu0 %v3924_v7 }
 0xc05   :  { %1281 = vmatpush.msra.mxu0 %v3923_v58 }
 0xc07   :  { %1282 = vmatpush.msra.mxu0 %v3922_v59 }
 0xc09   :  { %1283 = vmatpush.msra.mxu0 %v3921_v60 }
 0xc5f   :  { %v871_v40 = vpop.permute.xlu0 %870 }
 0xc60   :  { %v873_v42 = vmul.f32 %v871_v40, %v865_v41 }
 0xc62   :  { %875 = vrot.lane.b32.xlu1 %v873_v42, %s4463_s25 }
 0xc66   :  { %v904_v21 = vpop.f32.mrf.mxu3 }
 0xc67   :  { %v905_v2 = vadd.f32 %v4703_v26, %v904_v21 }
 0xc69   :  { %929 = vrot.lane.b32.xlu2 %v905_v2, %s4462_s24  ;;  %v908_v5 = vadd.f32 %v907_v3, %v905_v2 }
 0xc6b   :  { %v3901_v10 = vmul.f32 -1.442695, %v908_v5 }
 0xc6d   :  { %4119 = vpow2.f32 %v3901_v10 }
 0xc73   :  { %v4120_v38 = vpop.eup %4119 }
 0xc74   :  { %v912_v22 = vadd.f32 1.0, %v4120_v38 }
 0xc76   :  { %4121 = vrcp.f32 %v912_v22  ;;  %v924_v6 = vand.u32 2147483648, %v912_v22  ;;  %vm918_vm8 = vweird.f32 %v912_v22  ;;  %v922_v47 = vand.u32 2147483647, %v912_v22 }
 0xc78   :  { %v925_v13 = vor.u32 1.1754944e-38, %v924_v6  ;;  %vm923_vm11 = vcmp.eq.f32.partialorder %v922_v47, 8.507059e+37  ;;  %v1040_v6 = vld [vmem:[#allocation3 + $0xc] sm:$0x3] }
 0xc7c   :  { %v4122_v16 = vpop.eup %4121 }
 0xc7d   :  { %v914_v43 = vmul.f32 %v4122_v16, %v912_v22  ;;  %vm919_vm7 = vweird.f32 %v4122_v16 }
 0xc7e   :  { %vm920_vm9 = vmor %vm918_vm8, %vm919_vm7 }
 0xc7f   :  { %v915_v44 = vsub.f32 1.0, %v914_v43 }
 0xc81   :  { %v916_v45 = vmul.f32 %v4122_v16, %v915_v44  ;;  %v4919_v44 = vld [vmem:[%s5898_s7 + $0x1] ss:$0 sm:$0xff] }
 0xc83   :  { %v917_v46 = vadd.f32 %v4122_v16, %v916_v45 }
 0xc85   :  { %v921_v26 = vsel %vm920_vm9, %v4122_v16, %v917_v46  ;;  %v4912_v16 = vld [vmem:[%s5899_s8] ss:$0 sm:$0xff] }
 0xc86   :  { %v926_v48 = vsel %vm923_vm11, %v925_v13, %v921_v26 }
 0xc87   :  { %v939_v63 = vsub.f32 1.0, %v926_v48  ;;  %v945_v1 = vmul.f32 %v926_v48, %v4843_v18  ;;  %v3918_v18 = vld [vmem:[%s5894_s3 + $0x1] sm:$0x1] }
 0xc88   :  { %v4901_v28 = vadd.f32 %v3919_v19, %v3918_v18  ;;  %v3935_v18 = vld [vmem:[%s5901_s10 + $0x2] sm:$0x3] }
 0xc8a   :  { %v1260_v29 = vperm.slane %v4901_v28, 0 }
 0xcc3   :  { %v930_v14 = vpop.permute.xlu2 %929 }
 0xcc4   :  { %v932_v49 = vmul.f32 %v930_v14, %v926_v48 }
 0xcc6   :  { %934 = vrot.lane.b32.xlu1 %v932_v49, %s4462_s24 }
 0xcd4   :  { %v876_v51 = vpop.permute.xlu1 %875 }
 0xcd5   :  { %v4855_v52 = vadd.f32 %v876_v51, %v868_v50 }
 0xcd7   :  { %4123 = vtanh.f32 %v4855_v52 }
 0xcdd   :  { %v4124_v53 = vpop.eup %4123 }
 0xcde   :  { %881 = vrot.lane.b32.xlu0 %v4124_v53, %s4463_s25 }
 0xd38   :  { %v935_v54 = vpop.permute.xlu1 %934 }
 0xd39   :  { %v937_v55 = vadd.f32 %v935_v54, %v907_v3 }
 0xd3b   :  { %4125 = vtanh.f32 %v937_v55 }
 0xd41   :  { %v4126_v56 = vpop.eup %4125 }
 0xd42   :  { %941 = vrot.lane.b32.xlu0 %v4126_v56, %s4464_s28 }
 0xd50   :  { %v882_v57 = vpop.permute.xlu0 %881 }
 0xd51   :  { %v884_v25 = vmul.f32 %v882_v57, %v865_v41 }
 0xd53   :  { %948 = vrot.lane.b32.xlu2 %v884_v25, %s4462_s24 }
 0xdad   :  { %v949_v61 = vpop.permute.xlu2 %948 }
 0xdae   :  { %951 = vst.msk [vmem:[#allocation4 + $0xa] sm:$0x3] %vm285_vm10, %v949_v61  ;;  %3902 = vmatmul.msk.f32.vlgmr.msrb.gmra.mxu0 %vm80_vm0, %v949_v61 }
 0xdaf   :  { %1630 = vmatpush.msrb.mxu0 %v4934_v11 }
 0xdb1   :  { %1631 = vmatpush.msrb.mxu0 %v4939_v12 }
 0xdb3   :  { %1632 = vmatpush.msrb.mxu0 %v4946_v17 }
 0xdb4   :  { %v942_v0 = vpop.permute.xlu0 %941 }
 0xdb5   :  { %v944_v4 = vmul.f32 %v942_v0, %v939_v63  ;;  %1633 = vmatpush.msrb.mxu0 %v4953_v15 }
 0xdb6   :  { %3925 = vmatmul.msk.f32.vlgmr.msra.gmra.mxu0 %vm80_vm0, %v1250_v8 }
 0xdb7   :  { %v4877_v9 = vadd.f32 %v945_v1, %v944_v4  ;;  %1896 = vmatpush.msra.mxu0 %v4934_v11 }
 0xdb9   :  { %953 = vrot.lane.b32.xlu1 %v4877_v9, %s4464_s28  ;;  %1897 = vmatpush.msra.mxu0 %v4939_v12 }
 0xdbb   :  { %1898 = vmatpush.msra.mxu0 %v4946_v17 }
 0xdbd   :  { %1899 = vmatpush.msra.mxu0 %v4953_v15 }
 0xe2b   :  { %v977_v23 = vpop.f32.mrf.mxu0  ;;  %v954_v24 = vpop.permute.xlu1 %953 }
 0xe2c   :  { %v980_v27 = vadd.f32 %v977_v23, %v957_v20  ;;  %956 = vst.msk [vmem:[#allocation5 + $0xa] sm:$0x3] %vm285_vm10, %v954_v24  ;;  %3904 = vmatmul.msk.f32.vlgmr.msrb.gmra.mxu1 %vm80_vm0, %v954_v24  ;;  %v3934_v20 = vld [vmem:[%s5900_s9 + $0x2] sm:$0x3] }
 0xe2e   :  { %4127 = vtanh.f32 %v980_v27  ;;  %v3903_v34 = vmul.f32 -1.442695, %v980_v27 }
 0xe30   :  { %4129 = vpow2.f32 %v3903_v34  ;;  %v5010_v34 = vld [vmem:[%s5897_s6 + $0x20] sm:$0xff] }
 0xe33   :  { %v1285_v30 = vpop.f32.mrf.mxu0 }
 0xe34   :  { %v4128_v32 = vpop.eup %4127  ;;  %v1286_v33 = vadd.f32 %v1285_v30, %v1260_v29  ;;  %3932 = vmatmul.msk.f32.vlgmr.msra.gmra.mxu1 %vm80_vm0, %v1252_v31 }
 0xe35   :  { %1003 = vrot.lane.b32.xlu2 %v4128_v32, %s4463_s25  ;;  %v4989_v32 = vld [vmem:[%s5897_s6 + $0x38] sm:$0xff] }
 0xe36   :  { %1291 = vst [vmem:[#allocation2] sm:$0xff] %v1286_v33  ;;  %v4130_v62 = vpop.eup %4129  ;;  %1421 = vmatpush.msrb.mxu3 %v4989_v32  ;;  %1690 = vmatpush.msrb.mxu1 %v4989_v32  ;;  %v4996_v33 = vld [vmem:[%s5897_s6 + $0x30] sm:$0xff] }
 0xe37   :  { %v984_v35 = vadd.f32 1.0, %v4130_v62 }
 0xe38   :  { %1422 = vmatpush.msrb.mxu3 %v4996_v33  ;;  %1691 = vmatpush.msrb.mxu1 %v4996_v33 }
 0xe39   :  { %4131 = vrcp.f32 %v984_v35  ;;  %v996_v42 = vand.u32 2147483648, %v984_v35  ;;  %vm990_vm13 = vweird.f32 %v984_v35  ;;  %v994_v21 = vand.u32 2147483647, %v984_v35 }
 0xe3b   :  { %v997_v3 = vor.u32 1.1754944e-38, %v996_v42  ;;  %vm995_vm15 = vcmp.eq.f32.partialorder %v994_v21, 8.507059e+37 }
 0xe3f   :  { %v4132_v36 = vpop.eup %4131 }
 0xe40   :  { %v986_v37 = vmul.f32 %v4132_v36, %v984_v35  ;;  %vm991_vm12 = vweird.f32 %v4132_v36  ;;  %v1340_v35 = vld [vmem:[#allocation2] sm:$0x3] }
 0xe41   :  { %vm992_vm14 = vmor %vm990_vm13, %vm991_vm12 }
 0xe42   :  { %v987_v39 = vsub.f32 1.0, %v986_v37 }
 0xe44   :  { %v988_v40 = vmul.f32 %v4132_v36, %v987_v39 }
 0xe46   :  { %v989_v41 = vadd.f32 %v4132_v36, %v988_v40 }
 0xe48   :  { %v993_v2 = vsel %vm992_vm14, %v4132_v36, %v989_v41  ;;  %v5028_v41 = vld [vmem:[%s5902_s11 + $0x2] sm:$0x3] }
 0xe49   :  { %v998_v10 = vsel %vm995_vm15, %v997_v3, %v993_v2 }
 0xe4a   :  { %v1001_v48 = vmul.f32 %v998_v10, %v4855_v52 }
 0xe8f   :  { %v1004_v5 = vpop.permute.xlu2 %1003 }
 0xe90   :  { %v1006_v38 = vmul.f32 %v1004_v5, %v998_v10 }
 0xe92   :  { %1008 = vrot.lane.b32.xlu0 %v1006_v38, %s4463_s25 }
 0xea9   :  { %v1037_v22 = vpop.f32.mrf.mxu1 }
 0xeaa   :  { %v1038_v43 = vadd.f32 %v4912_v16, %v1037_v22 }
 0xeac   :  { %1062 = vrot.lane.b32.xlu1 %v1038_v43, %s4462_s24  ;;  %v1041_v47 = vadd.f32 %v1040_v6, %v1038_v43 }
 0xeae   :  { %v3905_v26 = vmul.f32 -1.442695, %v1041_v47 }
 0xeb0   :  { %4133 = vpow2.f32 %v3905_v26 }
 0xeb1   :  { %v1326_v45 = vpop.f32.mrf.mxu1 }
 0xeb2   :  { %v1327_v46 = vadd.f32 %v4919_v44, %v1326_v45 }
 0xeb4   :  { %1332 = vst.msk [vmem:[#allocation3] sm:$0xff] %vm143_vm1, %v1327_v46 }
 0xeb6   :  { %v4134_v13 = vpop.eup %4133 }
 0xeb7   :  { %v1045_v14 = vadd.f32 1.0, %v4134_v13 }
 0xeb9   :  { %4135 = vrcp.f32 %v1045_v14  ;;  %v1057_v25 = vand.u32 2147483648, %v1045_v14  ;;  %vm1051_vm3 = vweird.f32 %v1045_v14  ;;  %v1055_v7 = vand.u32 2147483647, %v1045_v14 }
 0xebb   :  { %v1058_v52 = vor.u32 1.1754944e-38, %v1057_v25  ;;  %vm1056_vm5 = vcmp.eq.f32.partialorder %v1055_v7, 8.507059e+37 }
 0xebf   :  { %v4136_v51 = vpop.eup %4135 }
 0xec0   :  { %v1047_v53 = vmul.f32 %v4136_v51, %v1045_v14  ;;  %vm1052_vm2 = vweird.f32 %v4136_v51 }
 0xec1   :  { %vm1053_vm4 = vmor %vm1051_vm3, %vm1052_vm2 }
 0xec2   :  { %v1048_v55 = vsub.f32 1.0, %v1047_v53  ;;  %v1429_v53 = vld [vmem:[#allocation3] sm:$0x3] }
 0xec4   :  { %v1049_v56 = vmul.f32 %v4136_v51, %v1048_v55 }
 0xec6   :  { %v1050_v57 = vadd.f32 %v4136_v51, %v1049_v56 }
 0xec8   :  { %v1054_v58 = vsel %vm1053_vm4, %v4136_v51, %v1050_v57 }
 0xec9   :  { %v1059_v60 = vsel %vm1056_vm5, %v1058_v52, %v1054_v58 }
 0xeca   :  { %v1072_v23 = vsub.f32 1.0, %v1059_v60  ;;  %v1078_v27 = vmul.f32 %v1059_v60, %v4877_v9  ;;  %v5003_v9 = vld [vmem:[%s5897_s6 + $0x28] sm:$0xff] }
 0xecb   :  { %1423 = vmatpush.msrb.mxu3 %v5003_v9  ;;  %1692 = vmatpush.msrb.mxu1 %v5003_v9 }
 0xecd   :  { %1424 = vmatpush.msrb.mxu3 %v5010_v34  ;;  %1693 = vmatpush.msrb.mxu1 %v5010_v34 }
 0xecf   :  { %1956 = vmatpush.msra.mxu1 %v4989_v32 }
 0xed1   :  { %1957 = vmatpush.msra.mxu1 %v4996_v33 }
 0xed3   :  { %1958 = vmatpush.msra.mxu1 %v5003_v9 }
 0xed5   :  { %1959 = vmatpush.msra.mxu1 %v5010_v34 }
 0xf04   :  { %v1009_v49 = vpop.permute.xlu0 %1008 }
 0xf05   :  { %v4924_v50 = vadd.f32 %v1009_v49, %v1001_v48  ;;  %v5042_v48 = vld [vmem:[%s5899_s8 + $0x1] ss:$0 sm:$0xff] }
 0xf07   :  { %4137 = vtanh.f32 %v4924_v50 }
 0xf0d   :  { %v4138_v54 = vpop.eup %4137 }
 0xf0e   :  { %1014 = vrot.lane.b32.xlu2 %v4138_v54, %s4463_s25 }
 0xf1e   :  { %v1063_v59 = vpop.permute.xlu1 %1062 }
 0xf1f   :  { %v1065_v61 = vmul.f32 %v1063_v59, %v1059_v60 }
 0xf21   :  { %1067 = vrot.lane.b32.xlu0 %v1065_v61, %s4462_s24 }
 0xf68   :  { %v1015_v63 = vpop.permute.xlu2 %1014 }
 0xf69   :  { %v1017_v0 = vmul.f32 %v1015_v63, %v998_v10 }
 0xf6b   :  { %1081 = vrot.lane.b32.xlu1 %v1017_v0, %s4462_s24 }
 0xf93   :  { %v1068_v1 = vpop.permute.xlu0 %1067 }
 0xf94   :  { %v1070_v4 = vadd.f32 %v1068_v1, %v1040_v6 }
 0xf96   :  { %4139 = vtanh.f32 %v1070_v4 }
 0xf9c   :  { %v4140_v8 = vpop.eup %4139 }
 0xf9d   :  { %1074 = vrot.lane.b32.xlu2 %v4140_v8, %s4464_s28 }
 0xfa5   :  { %1386 = vrot.lane.b32.xlu2 %v3935_v18, %s4463_s25 }
 0xfdd   :  { %v1082_v19 = vpop.permute.xlu1 %1081 }
 0xfde   :  { %1084 = vst.msk [vmem:[#allocation4 + $0xc] sm:$0x3] %vm285_vm10, %v1082_v19  ;;  %3906 = vmatmul.msk.f32.vlgmr.msra.gmra.mxu2 %vm80_vm0, %v1082_v19 }
 0xfdf   :  { %1497 = vmatpush.msra.mxu2 %v4934_v11 }
 0xfe1   :  { %1498 = vmatpush.msra.mxu2 %v4939_v12 }
 0xfe3   :  { %1499 = vmatpush.msra.mxu2 %v4946_v17 }
 0xfe5   :  { %1500 = vmatpush.msra.mxu2 %v4953_v15 }
 0xfe6   :  { %3937 = vmatmul.msk.f32.vlgmr.msrb.gmra.mxu2 %vm80_vm0, %v3934_v20 }
 0xfe7   :  { %1763 = vmatpush.msrb.mxu2 %v4934_v11 }
 0xfe9   :  { %1764 = vmatpush.msrb.mxu2 %v4939_v12 }
 0xfeb   :  { %1765 = vmatpush.msrb.mxu2 %v4946_v17 }
 0xfed   :  { %1766 = vmatpush.msrb.mxu2 %v4953_v15 }
 0xff7   :  { %v1075_v24 = vpop.permute.xlu2 %1074 }
 0xff8   :  { %v1077_v30 = vmul.f32 %v1075_v24, %v1072_v23 }
 0xffa   :  { %v4982_v31 = vadd.f32 %v1078_v27, %v1077_v30 }
 0xffc   :  { %1086 = vrot.lane.b32.xlu0 %v4982_v31, %s4464_s28 }
 0xfff   :  { %v1387_v25 = vpop.permute.xlu2 %1386 }
0x1061   :  { %v5018_v62 = vpop.f32.mrf.mxu2 }
0x1069   :  { %v1361_v36 = vpop.f32.mrf.mxu2 }
0x106a   :  { %v1364_v37 = vadd.f32 %v1361_v36, %v1340_v35 }
0x106c   :  { %4141 = vtanh.f32 %v1364_v37  ;;  %v3938_v42 = vmul.f32 -1.442695, %v1364_v37  ;;  %v1090_v37 = vld [vmem:[#allocation2 + $0xe] sm:$0x3] }
0x106e   :  { %v1087_v39 = vpop.permute.xlu0 %1086  ;;  %4143 = vpow2.f32 %v3938_v42 }
0x106f   :  { %1089 = vst.msk [vmem:[#allocation5 + $0xc] sm:$0x3] %vm285_vm10, %v1087_v39  ;;  %3908 = vmatmul.msk.f32.vlgmr.msra.gmra.mxu3 %vm80_vm0, %v1087_v39  ;;  %v1113_v39 = vadd.f32 %v5018_v62, %v1090_v37 }
0x1070   :  { %1557 = vmatpush.msra.mxu3 %v4989_v32 }
0x1072   :  { %v4142_v40 = vpop.eup %4141  ;;  %1558 = vmatpush.msra.mxu3 %v4996_v33 }
0x1073   :  { %1391 = vrot.lane.b32.xlu1 %v4142_v40, %s4463_s25 }
0x1074   :  { %1559 = vmatpush.msra.mxu3 %v5003_v9  ;;  %v4144_v21 = vpop.eup %4143 }
0x1075   :  { %v1368_v2 = vadd.f32 1.0, %v4144_v21 }
0x1076   :  { %1560 = vmatpush.msra.mxu3 %v5010_v34 }
0x1077   :  { %3939 = vmatmul.msk.f32.vlgmr.msrb.gmra.mxu3 %vm80_vm0, %v5028_v41  ;;  %4145 = vrcp.f32 %v1368_v2  ;;  %v1380_v43 = vand.u32 2147483648, %v1368_v2  ;;  %vm1374_vm7 = vweird.f32 %v1368_v2  ;;  %v1378_v45 = vand.u32 2147483647, %v1368_v2 }
0x1078   :  { %1823 = vmatpush.msrb.mxu3 %v4989_v32 }
0x1079   :  { %v1381_v6 = vor.u32 1.1754944e-38, %v1380_v43  ;;  %vm1379_vm9 = vcmp.eq.f32.partialorder %v1378_v45, 8.507059e+37 }
0x107a   :  { %1824 = vmatpush.msrb.mxu3 %v4996_v33 }
0x107c   :  { %1825 = vmatpush.msrb.mxu3 %v5003_v9 }
0x107d   :  { %v4146_v3 = vpop.eup %4145 }
0x107e   :  { %1826 = vmatpush.msrb.mxu3 %v5010_v34  ;;  %v1370_v5 = vmul.f32 %v4146_v3, %v1368_v2  ;;  %vm1375_vm6 = vweird.f32 %v4146_v3 }
0x107f   :  { %vm1376_vm8 = vmor %vm1374_vm7, %vm1375_vm6 }
0x1080   :  { %v1371_v10 = vsub.f32 1.0, %v1370_v5 }
0x1082   :  { %v1372_v38 = vmul.f32 %v4146_v3, %v1371_v10 }
0x1084   :  { %v1373_v22 = vadd.f32 %v4146_v3, %v1372_v38 }
0x1086   :  { %v1377_v46 = vsel %vm1376_vm8, %v4146_v3, %v1373_v22 }
0x1087   :  { %v1382_v47 = vsel %vm1379_vm9, %v1381_v6, %v1377_v46 }
0x1088   :  { %v1389_v58 = vmul.f32 %v1387_v25, %v1382_v47 }
0x10e5   :  { %v1392_v26 = vpop.permute.xlu1 %1391 }
0x10e6   :  { %v1394_v13 = vmul.f32 %v1392_v26, %v1382_v47 }
0x10e8   :  { %1396 = vrot.lane.b32.xlu0 %v1394_v13, %s4463_s25 }
0x10f2   :  { %v1170_v14 = vpop.f32.mrf.mxu3 }
0x10f3   :  { %v1171_v21 = vadd.f32 %v4912_v16, %v1170_v14 }
0x10fa   :  { %v1426_v49 = vpop.f32.mrf.mxu3 }
0x10fb   :  { %v1427_v51 = vadd.f32 %v5042_v48, %v1426_v49 }
0x10fd   :  { %1451 = vrot.lane.b32.xlu1 %v1427_v51, %s4462_s24  ;;  %v1430_v54 = vadd.f32 %v1429_v53, %v1427_v51 }
0x10ff   :  { %v3940_v55 = vmul.f32 -1.442695, %v1430_v54 }
0x1101   :  { %4147 = vpow2.f32 %v3940_v55 }
0x1107   :  { %v4148_v56 = vpop.eup %4147 }
0x1108   :  { %v1434_v57 = vadd.f32 1.0, %v4148_v56  ;;  %v1482_v56 = vld [vmem:[#allocation2 + $0x2] sm:$0x3] }
0x110a   :  { %4149 = vrcp.f32 %v1434_v57  ;;  %v1446_v4 = vand.u32 2147483648, %v1434_v57  ;;  %vm1440_vm12 = vweird.f32 %v1434_v57  ;;  %v1444_v8 = vand.u32 2147483647, %v1434_v57 }
0x110c   :  { %v1447_v19 = vor.u32 1.1754944e-38, %v1446_v4  ;;  %vm1445_vm14 = vcmp.eq.f32.partialorder %v1444_v8, 8.507059e+37 }
0x1110   :  { %v4150_v7 = vpop.eup %4149 }
0x1111   :  { %v1436_v60 = vmul.f32 %v4150_v7, %v1434_v57  ;;  %vm1441_vm11 = vweird.f32 %v4150_v7 }
0x1112   :  { %vm1442_vm13 = vmor %vm1440_vm12, %vm1441_vm11 }
0x1113   :  { %v1437_v61 = vsub.f32 1.0, %v1436_v60 }
0x1115   :  { %v1438_v0 = vmul.f32 %v4150_v7, %v1437_v61 }
0x1117   :  { %v1439_v1 = vadd.f32 %v4150_v7, %v1438_v0 }
0x1119   :  { %v1443_v18 = vsel %vm1442_vm13, %v4150_v7, %v1439_v1  ;;  %v5086_v1 = vld [vmem:[#allocation3 + $0xe] sm:$0x3] }
0x111a   :  { %v1448_v23 = vsel %vm1445_vm14, %v1447_v19, %v1443_v18  ;;  %v1174_v4 = vadd.f32 %v5086_v1, %v1171_v21 }
0x111b   :  { %v1461_v22 = vsub.f32 1.0, %v1448_v23 }
0x111c   :  { %v3909_v8 = vmul.f32 -1.442695, %v1174_v4 }
0x115a   :  { %v1397_v52 = vpop.permute.xlu0 %1396 }
0x115b   :  { %v5046_v59 = vadd.f32 %v1397_v52, %v1389_v58 }
0x115d   :  { %4151 = vtanh.f32 %v5046_v59 }
0x1163   :  { %v4152_v63 = vpop.eup %4151 }
0x1164   :  { %1402 = vrot.lane.b32.xlu2 %v4152_v63, %s4463_s25 }
0x116f   :  { %v1452_v20 = vpop.permute.xlu1 %1451 }
0x1170   :  { %v1454_v24 = vmul.f32 %v1452_v20, %v1448_v23 }
0x1172   :  { %1456 = vrot.lane.b32.xlu0 %v1454_v24, %s4462_s24 }
0x117a   :  { %1467 = vrot.lane.b32.xlu0 %v5028_v41, %s4463_s25  ;;  %v3907_v41 = vmul.f32 -1.442695, %v1113_v39 }
0x11be   :  { %v1403_v27 = vpop.permute.xlu2 %1402 }
0x11bf   :  { %v1405_v30 = vmul.f32 %v1403_v27, %v1382_v47 }
0x11c1   :  { %1473 = vrot.lane.b32.xlu1 %v1405_v30, %s4462_s24 }
0x11e4   :  { %v1457_v35 = vpop.permute.xlu0 %1456 }
0x11e5   :  { %v1459_v36 = vadd.f32 %v1457_v35, %v1429_v53 }
0x11e7   :  { %4153 = vtanh.f32 %v1459_v36 }
0x11e8   :  { %4155 = vtanh.f32 %v1113_v39 }
0x11e9   :  { %4157 = vpow2.f32 %v3907_v41 }
0x11ec   :  { %v1468_v38 = vpop.permute.xlu0 %1467 }
0x11ed   :  { %v4154_v40 = vpop.eup %4153  ;;  %v1470_v46 = vmul.f32 %v1468_v38, %v1448_v23 }
0x11ee   :  { %1463 = vrot.lane.b32.xlu2 %v4154_v40, %s4464_s28  ;;  %v4156_v42 = vpop.eup %4155 }
0x11ef   :  { %v4158_v2 = vpop.eup %4157 }
0x11f0   :  { %v1117_v3 = vadd.f32 1.0, %v4158_v2 }
0x11f2   :  { %4159 = vrcp.f32 %v1117_v3  ;;  %v1129_v13 = vand.u32 2147483648, %v1117_v3  ;;  %vm1123_vm2 = vweird.f32 %v1117_v3  ;;  %v1127_v14 = vand.u32 2147483647, %v1117_v3 }
0x11f4   :  { %v1130_v51 = vor.u32 1.1754944e-38, %v1129_v13  ;;  %vm1128_vm4 = vcmp.eq.f32.partialorder %v1127_v14, 8.507059e+37 }
0x11f6   :  { %1136 = vrot.lane.b32.xlu2 %v4156_v42, %s4463_s25 }
0x11f8   :  { %v4160_v16 = vpop.eup %4159 }
0x11f9   :  { %v1119_v62 = vmul.f32 %v4160_v16, %v1117_v3  ;;  %vm1124_vm15 = vweird.f32 %v4160_v16 }
0x11fa   :  { %vm1125_vm3 = vmor %vm1123_vm2, %vm1124_vm15 }
0x11fb   :  { %v1120_v10 = vsub.f32 1.0, %v1119_v62 }
0x11fd   :  { %v1121_v43 = vmul.f32 %v4160_v16, %v1120_v10 }
0x11fe   :  { %1195 = vrot.lane.b32.xlu2 %v1171_v21, %s4462_s24 }
0x11ff   :  { %v1122_v26 = vadd.f32 %v4160_v16, %v1121_v43 }
0x1201   :  { %v1126_v49 = vsel %vm1125_vm3, %v4160_v16, %v1122_v26 }
0x1202   :  { %v5069_v54 = vsel %vm1128_vm4, %v1130_v51, %v1126_v49  ;;  %v1565_v51 = vld [vmem:[#allocation3 + $0x2] sm:$0x3] }
0x1203   :  { %v1134_v52 = vmul.f32 %v5069_v54, %v4924_v50 }
0x1233   :  { %v1474_v5 = vpop.permute.xlu1 %1473 }
0x1234   :  { %1476 = vst.msk [vmem:[#allocation4] sm:$0x3] %vm285_vm10, %v1474_v5  ;;  %3941 = vmatmul.msk.f32.vlgmr.msra.gmra.mxu2 %vm80_vm0, %v1474_v5 }
0x1235   :  { %2029 = vmatpush.msra.mxu2 %v4934_v11 }
0x1237   :  { %2030 = vmatpush.msra.mxu2 %v4939_v12 }
0x1239   :  { %2031 = vmatpush.msra.mxu2 %v4946_v17 }
0x123b   :  { %2032 = vmatpush.msra.mxu2 %v4953_v15 }
0x1248   :  { %v1464_v45 = vpop.permute.xlu2 %1463 }
0x1249   :  { %v1466_v6 = vmul.f32 %v1464_v45, %v1461_v22 }
0x124b   :  { %v5065_v47 = vadd.f32 %v1470_v46, %v1466_v6 }
0x124d   :  { %1478 = vrot.lane.b32.xlu1 %v5065_v47, %s4464_s28 }
0x1250   :  { %v1137_v53 = vpop.permute.xlu2 %1136 }
0x1251   :  { %v1139_v55 = vmul.f32 %v1137_v53, %v5069_v54 }
0x1255   :  { %1141 = vrot.lane.b32.xlu1 %v1139_v55, %s4463_s25 }
0x1258   :  { %v1196_v45 = vpop.permute.xlu2 %1195 }
0x12b7   :  { %v1502_v57 = vpop.f32.mrf.mxu2 }
0x12b8   :  { %v1505_v25 = vadd.f32 %v1502_v57, %v1482_v56 }
0x12ba   :  { %4161 = vtanh.f32 %v1505_v25  ;;  %v3942_v0 = vmul.f32 -1.442695, %v1505_v25 }
0x12bf   :  { %v1479_v7 = vpop.permute.xlu1 %1478 }
0x12c0   :  { %v4162_v58 = vpop.eup %4161  ;;  %1481 = vst.msk [vmem:[#allocation5] sm:$0x3] %vm285_vm10, %v1479_v7  ;;  %3943 = vmatmul.msk.f32.vlgmr.msra.gmra.mxu3 %vm80_vm0, %v1479_v7 }
0x12c1   :  { %1528 = vrot.lane.b32.xlu0 %v4162_v58, %s4463_s25  ;;  %2089 = vmatpush.msra.mxu3 %v4989_v32 }
0x12c3   :  { %2090 = vmatpush.msra.mxu3 %v4996_v33 }
0x12c5   :  { %2091 = vmatpush.msra.mxu3 %v5003_v9 }
0x12c7   :  { %v1142_v60 = vpop.permute.xlu1 %1141  ;;  %2092 = vmatpush.msra.mxu3 %v5010_v34 }
0x12c8   :  { %v5082_v61 = vadd.f32 %v1142_v60, %v1134_v52 }
0x12ca   :  { %4163 = vtanh.f32 %v5082_v61 }
0x12cb   :  { %4165 = vpow2.f32 %v3942_v0 }
0x12cc   :  { %4167 = vpow2.f32 %v3909_v8 }
0x12d0   :  { %v4164_v63 = vpop.eup %4163 }
0x12d1   :  { %1147 = vrot.lane.b32.xlu2 %v4164_v63, %s4463_s25  ;;  %v4166_v18 = vpop.eup %4165 }
0x12d2   :  { %v1509_v50 = vadd.f32 1.0, %v4166_v18  ;;  %v4168_v19 = vpop.eup %4167 }
0x12d3   :  { %v1178_v20 = vadd.f32 1.0, %v4168_v19 }
0x12d4   :  { %4169 = vrcp.f32 %v1509_v50  ;;  %v1521_v40 = vand.u32 2147483648, %v1509_v50  ;;  %vm1515_vm6 = vweird.f32 %v1509_v50  ;;  %v1519_v42 = vand.u32 2147483647, %v1509_v50 }
0x12d5   :  { %4171 = vrcp.f32 %v1178_v20  ;;  %v1190_v10 = vand.u32 2147483648, %v1178_v20  ;;  %vm1184_vm11 = vweird.f32 %v1178_v20  ;;  %v1188_v38 = vand.u32 2147483647, %v1178_v20 }
0x12d6   :  { %v1522_v2 = vor.u32 1.1754944e-38, %v1521_v40  ;;  %vm1520_vm8 = vcmp.eq.f32.partialorder %v1519_v42, 8.507059e+37 }
0x12d7   :  { %v1191_v43 = vor.u32 1.1754944e-38, %v1190_v10  ;;  %vm1189_vm13 = vcmp.eq.f32.partialorder %v1188_v38, 8.507059e+37 }
0x12da   :  { %v4170_v23 = vpop.eup %4169 }
0x12db   :  { %v1511_v24 = vmul.f32 %v4170_v23, %v1509_v50  ;;  %v4172_v30 = vpop.eup %4171  ;;  %vm1516_vm5 = vweird.f32 %v4170_v23 }
0x12dc   :  { %v1180_v35 = vmul.f32 %v4172_v30, %v1178_v20  ;;  %vm1517_vm7 = vmor %vm1515_vm6, %vm1516_vm5  ;;  %vm1185_vm9 = vweird.f32 %v4172_v30 }
0x12dd   :  { %v1512_v27 = vsub.f32 1.0, %v1511_v24  ;;  %vm1186_vm12 = vmor %vm1184_vm11, %vm1185_vm9 }
0x12de   :  { %v1181_v37 = vsub.f32 1.0, %v1180_v35 }
0x12df   :  { %v1513_v36 = vmul.f32 %v4170_v23, %v1512_v27 }
0x12e0   :  { %v1182_v21 = vmul.f32 %v4172_v30, %v1181_v37 }
0x12e1   :  { %v1514_v39 = vadd.f32 %v4170_v23, %v1513_v36 }
0x12e2   :  { %v1183_v16 = vadd.f32 %v4172_v30, %v1182_v21 }
0x12e3   :  { %v1518_v41 = vsel %vm1517_vm7, %v4170_v23, %v1514_v39 }
0x12e4   :  { %v5089_v5 = vsel %vm1520_vm8, %v1522_v2, %v1518_v41  ;;  %v1187_v22 = vsel %vm1186_vm12, %v4172_v30, %v1183_v16 }
0x12e5   :  { %v1192_v46 = vsel %vm1189_vm13, %v1191_v43, %v1187_v22  ;;  %v1526_v58 = vmul.f32 %v5089_v5, %v5046_v59 }
0x12e6   :  { %v1198_v6 = vmul.f32 %v1196_v45, %v1192_v46  ;;  %v1205_v21 = vsub.f32 1.0, %v1192_v46  ;;  %v1211_v2 = vmul.f32 %v1192_v46, %v4982_v31 }
0x132b   :  { %v1148_v26 = vpop.permute.xlu2 %1147 }
0x132c   :  { %v1150_v14 = vmul.f32 %v1148_v26, %v5069_v54 }
0x1333   :  { %v1529_v3 = vpop.permute.xlu0 %1528 }
0x1334   :  { %v1531_v62 = vmul.f32 %v1529_v3, %v5089_v5 }
0x1336   :  { %1533 = vrot.lane.b32.xlu0 %v1531_v62, %s4463_s25 }
0x133e   :  { %1200 = vrot.lane.b32.xlu0 %v1198_v6, %s4462_s24 }
0x1343   :  { %v1562_v13 = vpop.f32.mrf.mxu3 }
0x1344   :  { %v1563_v49 = vadd.f32 %v5042_v48, %v1562_v13 }
0x1346   :  { %1587 = vrot.lane.b32.xlu1 %v1563_v49, %s4462_s24  ;;  %1214 = vrot.lane.b32.xlu0 %v1150_v14, %s4462_s24  ;;  %v1566_v53 = vadd.f32 %v1565_v51, %v1563_v49 }
0x1348   :  { %v3944_v55 = vmul.f32 -1.442695, %v1566_v53 }
0x134a   :  { %4173 = vpow2.f32 %v3944_v55 }
0x1350   :  { %v4174_v56 = vpop.eup %4173 }
0x1351   :  { %v1570_v57 = vadd.f32 1.0, %v4174_v56 }
0x1353   :  { %4175 = vrcp.f32 %v1570_v57  ;;  %v1582_v50 = vand.u32 2147483648, %v1570_v57  ;;  %vm1576_vm15 = vweird.f32 %v1570_v57  ;;  %v1580_v19 = vand.u32 2147483647, %v1570_v57 }
0x1355   :  { %v1583_v20 = vor.u32 1.1754944e-38, %v1582_v50  ;;  %vm1581_vm3 = vcmp.eq.f32.partialorder %v1580_v19, 8.507059e+37  ;;  %v1698_v19 = vld [vmem:[#allocation3 + $0x4] sm:$0x3] }
0x1359   :  { %v4176_v25 = vpop.eup %4175 }
0x135a   :  { %v1572_v7 = vmul.f32 %v4176_v25, %v1570_v57  ;;  %vm1577_vm14 = vweird.f32 %v4176_v25 }
0x135b   :  { %vm1578_vm2 = vmor %vm1576_vm15, %vm1577_vm14 }
0x135c   :  { %v1573_v60 = vsub.f32 1.0, %v1572_v7 }
0x135e   :  { %v1574_v63 = vmul.f32 %v4176_v25, %v1573_v60 }
0x1360   :  { %v1575_v18 = vadd.f32 %v4176_v25, %v1574_v63 }
0x1362   :  { %v1579_v59 = vsel %vm1578_vm2, %v4176_v25, %v1575_v18 }
0x1363   :  { %v1584_v23 = vsel %vm1581_vm3, %v1583_v20, %v1579_v59 }
0x1364   :  { %v1597_v31 = vsub.f32 1.0, %v1584_v23  ;;  %v1603_v22 = vmul.f32 %v1584_v23, %v5065_v47  ;;  %v1615_v47 = vld [vmem:[#allocation2 + $0x4] sm:$0x3] }
0x13a8   :  { %v1534_v52 = vpop.permute.xlu0 %1533 }
0x13a9   :  { %v5100_v54 = vadd.f32 %v1534_v52, %v1526_v58 }
0x13ab   :  { %4177 = vtanh.f32 %v5100_v54 }
0x13b0   :  { %v1201_v0 = vpop.permute.xlu0 %1200 }
0x13b1   :  { %v4178_v4 = vpop.eup %4177  ;;  %v1203_v8 = vadd.f32 %v1201_v0, %v5086_v1 }
0x13b2   :  { %1539 = vrot.lane.b32.xlu1 %v4178_v4, %s4463_s25 }
0x13b3   :  { %4179 = vtanh.f32 %v1203_v8 }
0x13b8   :  { %v1588_v24 = vpop.permute.xlu1 %1587  ;;  %v1215_v27 = vpop.permute.xlu0 %1214 }
0x13b9   :  { %v4180_v30 = vpop.eup %4179  ;;  %v1590_v35 = vmul.f32 %v1588_v24, %v1584_v23  ;;  %1217 = vst.msk [vmem:[#allocation4 + $0xe] sm:$0x3] %vm285_vm10, %v1215_v27 }
0x13ba   :  { %1223 = vst.msk [vmem:[#allocation8] sm:$0x3] %vm285_vm10, %v1215_v27  ;;  %1207 = vrot.lane.b32.xlu1 %v4180_v30, %s4464_s28 }
0x13bb   :  { %1592 = vrot.lane.b32.xlu2 %v1590_v35, %s4462_s24 }
0x13c0   :  { %v1251_v1 = vld [vmem:[#allocation4 + $0x8] sm:$0xff] }
0x13c1   :  { %3926 = vmatmul.msk.f32.gmra.mxu0 %vm80_vm0, %v1251_v1 }
0x1415   :  { %v1593_v36 = vpop.permute.xlu2 %1592 }
0x1416   :  { %v1595_v37 = vadd.f32 %v1593_v36, %v1565_v51 }
0x1418   :  { %4181 = vtanh.f32 %v1595_v37 }
0x141e   :  { %v4182_v39 = vpop.eup %4181 }
0x141f   :  { %1599 = vrot.lane.b32.xlu0 %v4182_v39, %s4464_s28 }
0x1424   :  { %v1540_v40 = vpop.permute.xlu1 %1539 }
0x1425   :  { %v1542_v42 = vmul.f32 %v1540_v40, %v5089_v5 }
0x1427   :  { %1606 = vrot.lane.b32.xlu2 %v1542_v42, %s4462_s24 }
0x142c   :  { %v1208_v41 = vpop.permute.xlu1 %1207 }
0x142d   :  { %v1210_v3 = vmul.f32 %v1208_v41, %v1205_v21 }
0x142f   :  { %v1212_v16 = vadd.f32 %v1211_v2, %v1210_v3 }
0x1431   :  { %1219 = vrot.lane.b32.xlu1 %v1212_v16, %s4464_s28 }
0x143e   :  { %v1288_v62 = vpop.f32.mrf.mxu0 }
0x143f   :  { %v1289_v10 = vadd.f32 %v1288_v62, %v1260_v29 }
0x1441   :  { %1292 = vst [vmem:[#allocation2 + $0x8] sm:$0xff] %v1289_v10 }
0x1481   :  { %v1607_v38 = vpop.permute.xlu2 %1606 }
0x1482   :  { %1609 = vst.msk [vmem:[#allocation4 + $0x2] sm:$0x3] %vm285_vm10, %v1607_v38  ;;  %3945 = vmatmul.msk.f32.vlgmr.msrb.gmra.mxu0 %vm80_vm0, %v1607_v38 }
0x1483   :  { %2162 = vmatpush.msrb.mxu0 %v4934_v11 }
0x1485   :  { %2163 = vmatpush.msrb.mxu0 %v4939_v12 }
0x1487   :  { %2164 = vmatpush.msrb.mxu0 %v4946_v17 }
0x1489   :  { %2165 = vmatpush.msrb.mxu0 %v4953_v15 }
0x1491   :  { %v1600_v5 = vpop.permute.xlu0 %1599 }
0x1492   :  { %v1602_v28 = vmul.f32 %v1600_v5, %v1597_v31 }
0x1494   :  { %v5124_v29 = vadd.f32 %v1603_v22, %v1602_v28 }
0x1496   :  { %1611 = vrot.lane.b32.xlu2 %v5124_v29, %s4464_s28 }
0x14a3   :  { %v1220_v43 = vpop.permute.xlu1 %1219 }
0x14a4   :  { %1222 = vst.msk [vmem:[#allocation5 + $0xe] sm:$0x3] %vm285_vm10, %v1220_v43 }
0x14a5   :  { %1229 = vst.msk [vmem:[#allocation12] sm:$0x3] %vm285_vm10, %v1220_v43 }
0x14ab   :  { %v1253_v45 = vld [vmem:[#allocation5 + $0x8] sm:$0xff] }
0x14ac   :  { %3933 = vmatmul.msk.f32.gmra.mxu1 %vm80_vm0, %v1253_v45 }
0x14f0   :  { %v1612_v46 = vpop.permute.xlu2 %1611 }
0x14f1   :  { %1614 = vst.msk [vmem:[#allocation5 + $0x2] sm:$0x3] %vm285_vm10, %v1612_v46  ;;  %3947 = vmatmul.msk.f32.vlgmr.msrb.gmra.mxu1 %vm80_vm0, %v1612_v46 }
0x14f2   :  { %2222 = vmatpush.msrb.mxu1 %v4989_v32 }
0x14f4   :  { %2223 = vmatpush.msrb.mxu1 %v4996_v33 }
0x14f6   :  { %2224 = vmatpush.msrb.mxu1 %v5003_v9 }
0x14f8   :  { %2225 = vmatpush.msrb.mxu1 %v5010_v34 }
0x14ff   :  { %v1635_v6 = vpop.f32.mrf.mxu0 }
0x1500   :  { %v1638_v26 = vadd.f32 %v1635_v6, %v1615_v47 }
0x1502   :  { %4183 = vtanh.f32 %v1638_v26  ;;  %v3946_v51 = vmul.f32 -1.442695, %v1638_v26 }
0x1504   :  { %4185 = vpow2.f32 %v3946_v51 }
0x1508   :  { %v4184_v13 = vpop.eup %4183 }
0x1509   :  { %1661 = vrot.lane.b32.xlu0 %v4184_v13, %s4463_s25 }
0x150a   :  { %v4186_v53 = vpop.eup %4185 }
0x150b   :  { %v1642_v55 = vadd.f32 1.0, %v4186_v53 }
0x150d   :  { %4187 = vrcp.f32 %v1642_v55  ;;  %v1654_v63 = vand.u32 2147483648, %v1642_v55  ;;  %vm1648_vm5 = vweird.f32 %v1642_v55 }
0x150f   :  { %v1655_v4 = vor.u32 1.1754944e-38, %v1654_v63 }
0x1513   :  { %v4188_v56 = vpop.eup %4187 }
0x1514   :  { %v1644_v57 = vmul.f32 %v4188_v56, %v1642_v55  ;;  %vm1649_vm4 = vweird.f32 %v4188_v56 }
0x1515   :  { %vm1650_vm6 = vmor %vm1648_vm5, %vm1649_vm4 }
0x1516   :  { %v1645_v25 = vsub.f32 1.0, %v1644_v57 }
0x1518   :  { %v1646_v52 = vmul.f32 %v4188_v56, %v1645_v25 }
0x151a   :  { %v1647_v60 = vadd.f32 %v4188_v56, %v1646_v52 }
0x151c   :  { %v1651_v0 = vsel %vm1650_vm6, %v4188_v56, %v1647_v60  ;;  %v1831_v60 = vld [vmem:[#allocation3 + $0x6] sm:$0x3] }
0x1529   :  { %v1329_v14 = vpop.f32.mrf.mxu1 }
0x152a   :  { %v1330_v49 = vadd.f32 %v4919_v44, %v1329_v14  ;;  %v1652_v44 = vand.u32 2147483647, %v1642_v55 }
0x152c   :  { %1333 = vst.msk [vmem:[#allocation3 + $0x8] sm:$0xff] %vm143_vm1, %v1330_v49  ;;  %vm1653_vm7 = vcmp.eq.f32.partialorder %v1652_v44, 8.507059e+37 }
0x152d   :  { %v1656_v18 = vsel %vm1653_vm7, %v1655_v4, %v1651_v0 }
0x152e   :  { %v1659_v3 = vmul.f32 %v1656_v18, %v5100_v54 }
0x156e   :  { %v1695_v7 = vpop.f32.mrf.mxu1 }
0x156f   :  { %v1696_v58 = vadd.f32 %v5042_v48, %v1695_v7 }
0x1571   :  { %1720 = vrot.lane.b32.xlu2 %v1696_v58, %s4462_s24  ;;  %v1699_v59 = vadd.f32 %v1698_v19, %v1696_v58 }
0x1573   :  { %v3948_v20 = vmul.f32 -1.442695, %v1699_v59 }
0x1575   :  { %4189 = vpow2.f32 %v3948_v20 }
0x157b   :  { %v1662_v8 = vpop.permute.xlu0 %1661  ;;  %v4190_v23 = vpop.eup %4189 }
0x157c   :  { %v1664_v50 = vmul.f32 %v1662_v8, %v1656_v18  ;;  %v1703_v24 = vadd.f32 1.0, %v4190_v23 }
0x157e   :  { %1666 = vrot.lane.b32.xlu1 %v1664_v50, %s4463_s25  ;;  %4191 = vrcp.f32 %v1703_v24  ;;  %v1715_v37 = vand.u32 2147483648, %v1703_v24  ;;  %vm1709_vm9 = vweird.f32 %v1703_v24  ;;  %v1713_v39 = vand.u32 2147483647, %v1703_v24 }
0x1580   :  { %v1716_v42 = vor.u32 1.1754944e-38, %v1715_v37  ;;  %vm1714_vm12 = vcmp.eq.f32.partialorder %v1713_v39, 8.507059e+37 }
0x1584   :  { %v4192_v27 = vpop.eup %4191 }
0x1585   :  { %v1705_v30 = vmul.f32 %v4192_v27, %v1703_v24  ;;  %vm1710_vm8 = vweird.f32 %v4192_v27 }
0x1586   :  { %vm1711_vm11 = vmor %vm1709_vm9, %vm1710_vm8 }
0x1587   :  { %v1706_v35 = vsub.f32 1.0, %v1705_v30 }
0x1589   :  { %v1707_v1 = vmul.f32 %v4192_v27, %v1706_v35 }
0x158b   :  { %v1708_v36 = vadd.f32 %v4192_v27, %v1707_v1 }
0x158d   :  { %v1712_v40 = vsel %vm1711_vm11, %v4192_v27, %v1708_v36 }
0x158e   :  { %v1717_v41 = vsel %vm1714_vm12, %v1716_v42, %v1712_v40 }
0x158f   :  { %v1730_v43 = vsub.f32 1.0, %v1717_v41  ;;  %v1736_v45 = vmul.f32 %v1717_v41, %v5124_v29 }
0x15cb   :  { %v1721_v21 = vpop.permute.xlu2 %1720 }
0x15cc   :  { %v1723_v2 = vmul.f32 %v1721_v21, %v1717_v41 }
0x15ce   :  { %1725 = vrot.lane.b32.xlu1 %v1723_v2, %s4462_s24 }
0x15f0   :  { %v1667_v16 = vpop.permute.xlu1 %1666 }
0x15f1   :  { %v5145_v62 = vadd.f32 %v1667_v16, %v1659_v3 }
0x15f3   :  { %4193 = vtanh.f32 %v5145_v62 }
0x15f9   :  { %v4194_v10 = vpop.eup %4193 }
0x15fa   :  { %1672 = vrot.lane.b32.xlu0 %v4194_v10, %s4463_s25 }
0x1640   :  { %v1726_v38 = vpop.permute.xlu1 %1725 }
0x1641   :  { %v1728_v31 = vadd.f32 %v1726_v38, %v1698_v19 }
0x1643   :  { %4195 = vtanh.f32 %v1728_v31 }
0x1649   :  { %v4196_v5 = vpop.eup %4195 }
0x164a   :  { %1732 = vrot.lane.b32.xlu0 %v4196_v5, %s4464_s28 }
0x166c   :  { %v1673_v22 = vpop.permute.xlu0 %1672 }
0x166d   :  { %v1675_v28 = vmul.f32 %v1673_v22, %v1656_v18 }
0x166f   :  { %1739 = vrot.lane.b32.xlu2 %v1675_v28, %s4462_s24  ;;  %v1881_v28 = vld [vmem:[#allocation2 + $0x8] sm:$0x3] }
0x16bc   :  { %v1733_v54 = vpop.permute.xlu0 %1732 }
0x16bd   :  { %v1735_v46 = vmul.f32 %v1733_v54, %v1730_v43 }
0x16bf   :  { %v5152_v47 = vadd.f32 %v1736_v45, %v1735_v46 }
0x16c1   :  { %1744 = vrot.lane.b32.xlu1 %v5152_v47, %s4464_s28 }
0x16c9   :  { %v1740_v6 = vpop.permute.xlu2 %1739 }
0x16ca   :  { %1742 = vst.msk [vmem:[#allocation4 + $0x4] sm:$0x3] %vm285_vm10, %v1740_v6  ;;  %3949 = vmatmul.msk.f32.vlgmr.msrb.gmra.mxu2 %vm80_vm0, %v1740_v6 }
0x16cb   :  { %2295 = vmatpush.msrb.mxu2 %v4934_v11  ;;  %v1748_v11 = vld [vmem:[#allocation2 + $0x6] sm:$0x3] }
0x16cd   :  { %2296 = vmatpush.msrb.mxu2 %v4939_v12 }
0x16cf   :  { %2297 = vmatpush.msrb.mxu2 %v4946_v17 }
0x16d1   :  { %2298 = vmatpush.msrb.mxu2 %v4953_v15 }
0x1733   :  { %v1745_v29 = vpop.permute.xlu1 %1744 }
0x1734   :  { %1747 = vst.msk [vmem:[#allocation5 + $0x4] sm:$0x3] %vm285_vm10, %v1745_v29  ;;  %3951 = vmatmul.msk.f32.vlgmr.msrb.gmra.mxu3 %vm80_vm0, %v1745_v29 }
0x1735   :  { %2355 = vmatpush.msrb.mxu3 %v4989_v32 }
0x1737   :  { %2356 = vmatpush.msrb.mxu3 %v4996_v33 }
0x1739   :  { %2357 = vmatpush.msrb.mxu3 %v5003_v9 }
0x173b   :  { %2358 = vmatpush.msrb.mxu3 %v5010_v34 }
0x174d   :  { %v1768_v26 = vpop.f32.mrf.mxu2 }
0x174e   :  { %v1771_v12 = vadd.f32 %v1768_v26, %v1748_v11 }
0x1750   :  { %4197 = vtanh.f32 %v1771_v12  ;;  %v3950_v15 = vmul.f32 -1.442695, %v1771_v12 }
0x1752   :  { %4199 = vpow2.f32 %v3950_v15 }
0x1756   :  { %v4198_v17 = vpop.eup %4197 }
0x1757   :  { %1794 = vrot.lane.b32.xlu2 %v4198_v17, %s4463_s25 }
0x1758   :  { %v4200_v13 = vpop.eup %4199 }
0x1759   :  { %v1775_v14 = vadd.f32 1.0, %v4200_v13 }
0x175b   :  { %4201 = vrcp.f32 %v1775_v14  ;;  %v1787_v9 = vand.u32 2147483648, %v1775_v14  ;;  %vm1781_vm14 = vweird.f32 %v1775_v14  ;;  %v1785_v34 = vand.u32 2147483647, %v1775_v14 }
0x175d   :  { %v1788_v56 = vor.u32 1.1754944e-38, %v1787_v9  ;;  %vm1786_vm2 = vcmp.eq.f32.partialorder %v1785_v34, 8.507059e+37 }
0x1761   :  { %v4202_v49 = vpop.eup %4201 }
0x1762   :  { %v1777_v32 = vmul.f32 %v4202_v49, %v1775_v14  ;;  %vm1782_vm13 = vweird.f32 %v4202_v49 }
0x1763   :  { %vm1783_vm15 = vmor %vm1781_vm14, %vm1782_vm13 }
0x1764   :  { %v1778_v51 = vsub.f32 1.0, %v1777_v32  ;;  %v1964_v32 = vld [vmem:[#allocation3 + $0x8] sm:$0x3] }
0x1766   :  { %v1779_v33 = vmul.f32 %v4202_v49, %v1778_v51 }
0x1768   :  { %v1780_v53 = vadd.f32 %v4202_v49, %v1779_v33 }
0x176a   :  { %v1784_v55 = vsel %vm1783_vm15, %v4202_v49, %v1780_v53 }
0x176b   :  { %v1789_v25 = vsel %vm1786_vm2, %v1788_v56, %v1784_v55 }
0x176c   :  { %v1792_v59 = vmul.f32 %v1789_v25, %v5145_v62 }
0x17b1   :  { %v1795_v57 = vpop.permute.xlu2 %1794 }
0x17b2   :  { %v1797_v7 = vmul.f32 %v1795_v57, %v1789_v25 }
0x17b4   :  { %1799 = vrot.lane.b32.xlu0 %v1797_v7, %s4463_s25 }
0x17b7   :  { %v1828_v58 = vpop.f32.mrf.mxu3 }
0x17b8   :  { %v1829_v52 = vadd.f32 %v5042_v48, %v1828_v58 }
0x17ba   :  { %1853 = vrot.lane.b32.xlu1 %v1829_v52, %s4462_s24  ;;  %v1832_v63 = vadd.f32 %v1831_v60, %v1829_v52 }
0x17bc   :  { %v3952_v44 = vmul.f32 -1.442695, %v1832_v63 }
0x17be   :  { %4203 = vpow2.f32 %v3952_v44 }
0x17c4   :  { %v4204_v0 = vpop.eup %4203 }
0x17c5   :  { %v1836_v4 = vadd.f32 1.0, %v4204_v0 }
0x17c7   :  { %4205 = vrcp.f32 %v1836_v4  ;;  %v1848_v24 = vand.u32 2147483648, %v1836_v4  ;;  %vm1842_vm4 = vweird.f32 %v1836_v4  ;;  %v1846_v30 = vand.u32 2147483647, %v1836_v4 }
0x17c9   :  { %v1849_v1 = vor.u32 1.1754944e-38, %v1848_v24  ;;  %vm1847_vm6 = vcmp.eq.f32.partialorder %v1846_v30, 8.507059e+37 }
0x17cd   :  { %v4206_v8 = vpop.eup %4205 }
0x17ce   :  { %v1838_v18 = vmul.f32 %v4206_v8, %v1836_v4  ;;  %vm1843_vm3 = vweird.f32 %v4206_v8 }
0x17cf   :  { %vm1844_vm5 = vmor %vm1842_vm4, %vm1843_vm3 }
0x17d0   :  { %v1839_v50 = vsub.f32 1.0, %v1838_v18 }
0x17d2   :  { %v1840_v19 = vmul.f32 %v4206_v8, %v1839_v50 }
0x17d4   :  { %v1841_v20 = vadd.f32 %v4206_v8, %v1840_v19 }
0x17d6   :  { %v1845_v35 = vsel %vm1844_vm5, %v4206_v8, %v1841_v20 }
0x17d7   :  { %v1850_v37 = vsel %vm1847_vm6, %v1849_v1, %v1845_v35 }
0x17d8   :  { %v1863_v16 = vsub.f32 1.0, %v1850_v37  ;;  %v1869_v10 = vmul.f32 %v1850_v37, %v5152_v47 }
0x1826   :  { %v1800_v23 = vpop.permute.xlu0 %1799 }
0x1827   :  { %v5173_v27 = vadd.f32 %v1800_v23, %v1792_v59 }
0x1829   :  { %4207 = vtanh.f32 %v5173_v27 }
0x182c   :  { %v1854_v36 = vpop.permute.xlu1 %1853 }
0x182d   :  { %v1856_v39 = vmul.f32 %v1854_v36, %v1850_v37 }
0x182f   :  { %v4208_v40 = vpop.eup %4207  ;;  %1858 = vrot.lane.b32.xlu2 %v1856_v39, %s4462_s24 }
0x1830   :  { %1805 = vrot.lane.b32.xlu0 %v4208_v40, %s4463_s25 }
0x1889   :  { %v1859_v42 = vpop.permute.xlu2 %1858 }
0x188a   :  { %v1861_v21 = vadd.f32 %v1859_v42, %v1831_v60 }
0x188c   :  { %4209 = vtanh.f32 %v1861_v21 }
0x1892   :  { %v4210_v41 = vpop.eup %4209 }
0x1893   :  { %1865 = vrot.lane.b32.xlu2 %v4210_v41, %s4464_s28 }
0x18a2   :  { %v1806_v2 = vpop.permute.xlu0 %1805 }
0x18a3   :  { %v1808_v3 = vmul.f32 %v1806_v2, %v1789_v25 }
0x18a5   :  { %1872 = vrot.lane.b32.xlu1 %v1808_v3, %s4462_s24  ;;  %v2014_v3 = vld [vmem:[#allocation2 + $0xa] sm:$0x3] }
0x18ed   :  { %v1866_v62 = vpop.permute.xlu2 %1865 }
0x18ee   :  { %v1868_v38 = vmul.f32 %v1866_v62, %v1863_v16 }
0x18f0   :  { %v5181_v31 = vadd.f32 %v1869_v10, %v1868_v38 }
0x18f2   :  { %1877 = vrot.lane.b32.xlu0 %v5181_v31, %s4464_s28 }
0x1917   :  { %v1873_v5 = vpop.permute.xlu1 %1872 }
0x1918   :  { %1875 = vst.msk [vmem:[#allocation4 + $0x6] sm:$0x3] %vm285_vm10, %v1873_v5  ;;  %3953 = vmatmul.msk.f32.vlgmr.msra.gmra.mxu0 %vm80_vm0, %v1873_v5 }
0x1964   :  { %v1878_v22 = vpop.permute.xlu0 %1877 }
0x1965   :  { %1880 = vst.msk [vmem:[#allocation5 + $0x6] sm:$0x3] %vm285_vm10, %v1878_v22  ;;  %3955 = vmatmul.msk.f32.vlgmr.msra.gmra.mxu1 %vm80_vm0, %v1878_v22 }
0x1995   :  { %v1901_v43 = vpop.f32.mrf.mxu0 }
0x1996   :  { %v1904_v54 = vadd.f32 %v1901_v43, %v1881_v28 }
0x1998   :  { %4211 = vtanh.f32 %v1904_v54  ;;  %v3954_v6 = vmul.f32 -1.442695, %v1904_v54 }
0x199a   :  { %4213 = vpow2.f32 %v3954_v6 }
0x199e   :  { %v4212_v45 = vpop.eup %4211 }
0x199f   :  { %1927 = vrot.lane.b32.xlu1 %v4212_v45, %s4463_s25 }
0x19a0   :  { %v4214_v29 = vpop.eup %4213 }
0x19a1   :  { %v1908_v11 = vadd.f32 1.0, %v4214_v29 }
0x19a3   :  { %4215 = vrcp.f32 %v1908_v11  ;;  %v1920_v14 = vand.u32 2147483648, %v1908_v11  ;;  %vm1914_vm8 = vweird.f32 %v1908_v11  ;;  %v1918_v49 = vand.u32 2147483647, %v1908_v11 }
0x19a5   :  { %v1921_v53 = vor.u32 1.1754944e-38, %v1920_v14  ;;  %vm1919_vm11 = vcmp.eq.f32.partialorder %v1918_v49, 8.507059e+37 }
0x19a9   :  { %v4216_v26 = vpop.eup %4215 }
0x19aa   :  { %v1910_v12 = vmul.f32 %v4216_v26, %v1908_v11  ;;  %vm1915_vm7 = vweird.f32 %v4216_v26 }
0x19ab   :  { %vm1916_vm9 = vmor %vm1914_vm8, %vm1915_vm7 }
0x19ac   :  { %v1911_v17 = vsub.f32 1.0, %v1910_v12 }
0x19ae   :  { %v1912_v15 = vmul.f32 %v4216_v26, %v1911_v17 }
0x19b0   :  { %v1913_v13 = vadd.f32 %v4216_v26, %v1912_v15 }
0x19b2   :  { %v1917_v33 = vsel %vm1916_vm9, %v4216_v26, %v1913_v13 }
0x19b3   :  { %v1922_v34 = vsel %vm1919_vm11, %v1921_v53, %v1917_v33 }
0x19b4   :  { %v1925_v59 = vmul.f32 %v1922_v34, %v5173_v27 }
0x19e2   :  { %v1961_v46 = vpop.f32.mrf.mxu1 }
0x19e3   :  { %v1962_v47 = vadd.f32 %v5042_v48, %v1961_v46 }
0x19e5   :  { %1986 = vrot.lane.b32.xlu2 %v1962_v47, %s4462_s24  ;;  %v1965_v51 = vadd.f32 %v1964_v32, %v1962_v47  ;;  %v2097_v47 = vld [vmem:[#allocation3 + $0xa] sm:$0x3] }
0x19e7   :  { %v3956_v55 = vmul.f32 -1.442695, %v1965_v51 }
0x19e9   :  { %4217 = vpow2.f32 %v3956_v55 }
0x19ef   :  { %v4218_v57 = vpop.eup %4217 }
0x19f0   :  { %v1969_v25 = vadd.f32 1.0, %v4218_v57 }
0x19f2   :  { %4219 = vrcp.f32 %v1969_v25  ;;  %v1981_v44 = vand.u32 2147483648, %v1969_v25  ;;  %vm1975_vm13 = vweird.f32 %v1969_v25  ;;  %v1979_v0 = vand.u32 2147483647, %v1969_v25 }
0x19f4   :  { %v1982_v8 = vor.u32 1.1754944e-38, %v1981_v44  ;;  %vm1980_vm15 = vcmp.eq.f32.partialorder %v1979_v0, 8.507059e+37 }
0x19f8   :  { %v4220_v7 = vpop.eup %4219 }
0x19f9   :  { %v1971_v58 = vmul.f32 %v4220_v7, %v1969_v25  ;;  %vm1976_vm12 = vweird.f32 %v4220_v7 }
0x19fa   :  { %vm1977_vm14 = vmor %vm1975_vm13, %vm1976_vm12 }
0x19fb   :  { %v1972_v52 = vsub.f32 1.0, %v1971_v58 }
0x19fd   :  { %v1973_v60 = vmul.f32 %v4220_v7, %v1972_v52 }
0x19ff   :  { %v1974_v63 = vadd.f32 %v4220_v7, %v1973_v60 }
0x1a01   :  { %v1978_v4 = vsel %vm1977_vm14, %v4220_v7, %v1974_v63 }
0x1a02   :  { %v1983_v50 = vsel %vm1980_vm15, %v1982_v8, %v1978_v4 }
0x1a03   :  { %v1996_v39 = vsub.f32 1.0, %v1983_v50  ;;  %v2002_v40 = vmul.f32 %v1983_v50, %v5181_v31 }
0x1a11   :  { %v1928_v9 = vpop.permute.xlu1 %1927 }
0x1a12   :  { %v1930_v56 = vmul.f32 %v1928_v9, %v1922_v34 }
0x1a14   :  { %1932 = vrot.lane.b32.xlu0 %v1930_v56, %s4463_s25 }
0x1a3f   :  { %v1987_v18 = vpop.permute.xlu2 %1986 }
0x1a40   :  { %v1989_v19 = vmul.f32 %v1987_v18, %v1983_v50 }
0x1a42   :  { %1991 = vrot.lane.b32.xlu1 %v1989_v19, %s4462_s24 }
0x1a86   :  { %v1933_v20 = vpop.permute.xlu0 %1932 }
0x1a87   :  { %v5195_v23 = vadd.f32 %v1933_v20, %v1925_v59 }
0x1a89   :  { %4221 = vtanh.f32 %v5195_v23 }
0x1a8f   :  { %v4222_v24 = vpop.eup %4221 }
0x1a90   :  { %1938 = vrot.lane.b32.xlu2 %v4222_v24, %s4463_s25 }
0x1ab4   :  { %v1992_v30 = vpop.permute.xlu1 %1991 }
0x1ab5   :  { %v1994_v35 = vadd.f32 %v1992_v30, %v1964_v32 }
0x1ab7   :  { %4223 = vtanh.f32 %v1994_v35  ;;  %v3983_v35 = vld [vmem:[%s5916_s29 + $0x58] sm:$0xff] }
0x1ab8   :  { %2473 = vmatpush.msra.mxu0 %v3983_v35 }
0x1abd   :  { %v4224_v1 = vpop.eup %4223 }
0x1abe   :  { %1998 = vrot.lane.b32.xlu0 %v4224_v1, %s4464_s28  ;;  %v3982_v1 = vld [vmem:[%s5916_s29 + $0x50] sm:$0xff] }
0x1abf   :  { %2474 = vmatpush.msra.mxu0 %v3982_v1 }
0x1aea   :  { %v1939_v36 = vpop.permute.xlu2 %1938 }
0x1aeb   :  { %v1941_v37 = vmul.f32 %v1939_v36, %v1922_v34  ;;  %v3981_v36 = vld [vmem:[%s5916_s29 + $0x48] sm:$0xff] }
0x1aec   :  { %2475 = vmatpush.msra.mxu0 %v3981_v36 }
0x1aed   :  { %2005 = vrot.lane.b32.xlu1 %v1941_v37, %s4462_s24  ;;  %v3980_v37 = vld [vmem:[%s5916_s29 + $0x40] sm:$0xff] }
0x1aee   :  { %2476 = vmatpush.msra.mxu0 %v3980_v37 }
0x1b30   :  { %v1999_v27 = vpop.permute.xlu0 %1998 }
0x1b31   :  { %v2001_v42 = vmul.f32 %v1999_v27, %v1996_v39  ;;  %v2443_v27 = vld [vmem:[#allocation4] sm:$0xff] }
0x1b33   :  { %v5202_v21 = vadd.f32 %v2002_v40, %v2001_v42  ;;  %v3989_v40 = vld [vmem:[%s5896_s5 + $0x58] sm:$0xff]  ;;  %v3988_v42 = vld [vmem:[%s5896_s5 + $0x50] sm:$0xff] }
0x1b34   :  { %2514 = vmatpush.msra.mxu1 %v3989_v40 }
0x1b35   :  { %2010 = vrot.lane.b32.xlu2 %v5202_v21, %s4464_s28 }
0x1b36   :  { %2515 = vmatpush.msra.mxu1 %v3988_v42 }
0x1b5f   :  { %v2006_v41 = vpop.permute.xlu1 %2005 }
0x1b60   :  { %2008 = vst.msk [vmem:[#allocation4 + $0x8] sm:$0x3] %vm285_vm10, %v2006_v41  ;;  %3957 = vmatmul.msk.f32.vlgmr.msra.gmra.mxu2 %vm80_vm0, %v2006_v41  ;;  %v3986_v41 = vld [vmem:[%s5896_s5 + $0x40] sm:$0xff] }
0x1b8f   :  { %v2011_v2 = vpop.permute.xlu2 %2010 }
0x1b90   :  { %2013 = vst.msk [vmem:[#allocation5 + $0x8] sm:$0x3] %vm285_vm10, %v2011_v2  ;;  %3959 = vmatmul.msk.f32.vlgmr.msra.gmra.mxu3 %vm80_vm0, %v2011_v2 }
0x1be3   :  { %v2034_v16 = vpop.f32.mrf.mxu2 }
0x1be4   :  { %v2037_v62 = vadd.f32 %v2034_v16, %v2014_v3  ;;  %v2445_v3 = vld [vmem:[#allocation5] sm:$0xff]  ;;  %v3977_v16 = vld [vmem:[%s5894_s3 + $0x2] sm:$0x1] }
0x1be6   :  { %4225 = vtanh.f32 %v2037_v62  ;;  %v3958_v5 = vmul.f32 -1.442695, %v2037_v62  ;;  %v3978_v62 = vld [vmem:[%s5895_s4 + $0x2] sm:$0x1] }
0x1be8   :  { %4227 = vpow2.f32 %v3958_v5  ;;  %v5263_v5 = vadd.f32 %v3978_v62, %v3977_v16  ;;  %v5300_v16 = vld [vmem:[%s5917_s20 + $0x58] sm:$0xff]  ;;  %v5305_v62 = vld [vmem:[%s5917_s20 + $0x50] sm:$0xff] }
0x1be9   :  { %2549 = vmatpush.msra.mxu2 %v5300_v16 }
0x1beb   :  { %2550 = vmatpush.msra.mxu2 %v5305_v62 }
0x1bec   :  { %v4226_v10 = vpop.eup %4225 }
0x1bed   :  { %2060 = vrot.lane.b32.xlu0 %v4226_v10, %s4463_s25  ;;  %v2147_v10 = vld [vmem:[#allocation2 + $0xc] sm:$0x3] }
0x1bee   :  { %v4228_v22 = vpop.eup %4227 }
0x1bef   :  { %v2041_v28 = vadd.f32 1.0, %v4228_v22  ;;  %v2453_v22 = vperm.slane %v5263_v5, 0 }
0x1bf1   :  { %4229 = vrcp.f32 %v2041_v28  ;;  %v2053_v11 = vand.u32 2147483648, %v2041_v28  ;;  %vm2047_vm3 = vweird.f32 %v2041_v28  ;;  %v2051_v26 = vand.u32 2147483647, %v2041_v28 }
0x1bf3   :  { %v2054_v17 = vor.u32 1.1754944e-38, %v2053_v11  ;;  %vm2052_vm5 = vcmp.eq.f32.partialorder %v2051_v26, 8.507059e+37 }
0x1bf7   :  { %v4230_v43 = vpop.eup %4229 }
0x1bf8   :  { %v2043_v54 = vmul.f32 %v4230_v43, %v2041_v28  ;;  %vm2048_vm2 = vweird.f32 %v4230_v43 }
0x1bf9   :  { %vm2049_vm4 = vmor %vm2047_vm3, %vm2048_vm2 }
0x1bfa   :  { %v2044_v45 = vsub.f32 1.0, %v2043_v54 }
0x1bfc   :  { %v2045_v46 = vmul.f32 %v4230_v43, %v2044_v45 }
0x1bfe   :  { %v2046_v29 = vadd.f32 %v4230_v43, %v2045_v46  ;;  %v5272_v46 = vld [vmem:[%s5899_s8 + $0x1] ss:$0 sm:$0xff] }
0x1c13   :  { %v2094_v38 = vpop.f32.mrf.mxu3 }
0x1c14   :  { %v2095_v31 = vadd.f32 %v5042_v48, %v2094_v38  ;;  %v2050_v48 = vsel %vm2049_vm4, %v4230_v43, %v2046_v29 }
0x1c15   :  { %v2055_v15 = vsel %vm2052_vm5, %v2054_v17, %v2050_v48 }
0x1c16   :  { %2119 = vrot.lane.b32.xlu1 %v2095_v31, %s4462_s24  ;;  %v2098_v6 = vadd.f32 %v2097_v47, %v2095_v31  ;;  %v2058_v60 = vmul.f32 %v2055_v15, %v5195_v23 }
0x1c18   :  { %v3960_v12 = vmul.f32 -1.442695, %v2098_v6  ;;  %v5279_v6 = vld [vmem:[%s5898_s7 + $0x2] ss:$0 sm:$0xff] }
0x1c1a   :  { %4231 = vpow2.f32 %v3960_v12 }
0x1c20   :  { %v4232_v49 = vpop.eup %4231 }
0x1c21   :  { %v2102_v32 = vadd.f32 1.0, %v4232_v49 }
0x1c23   :  { %4233 = vrcp.f32 %v2102_v32  ;;  %v2114_v55 = vand.u32 2147483648, %v2102_v32  ;;  %vm2108_vm7 = vweird.f32 %v2102_v32  ;;  %v2112_v56 = vand.u32 2147483647, %v2102_v32 }
0x1c25   :  { %v2115_v25 = vor.u32 1.1754944e-38, %v2114_v55  ;;  %vm2113_vm9 = vcmp.eq.f32.partialorder %v2112_v56, 8.507059e+37  ;;  %v2230_v56 = vld [vmem:[#allocation3 + $0xc] sm:$0x3] }
0x1c29   :  { %v4234_v51 = vpop.eup %4233 }
0x1c2a   :  { %v2104_v33 = vmul.f32 %v4234_v51, %v2102_v32  ;;  %vm2109_vm6 = vweird.f32 %v4234_v51 }
0x1c2b   :  { %vm2110_vm8 = vmor %vm2108_vm7, %vm2109_vm6 }
0x1c2c   :  { %v2105_v53 = vsub.f32 1.0, %v2104_v33 }
0x1c2e   :  { %v2106_v9 = vmul.f32 %v4234_v51, %v2105_v53 }
0x1c30   :  { %v2107_v34 = vadd.f32 %v4234_v51, %v2106_v9 }
0x1c32   :  { %v2111_v57 = vsel %vm2110_vm8, %v4234_v51, %v2107_v34 }
0x1c33   :  { %v2116_v58 = vsel %vm2113_vm9, %v2115_v25, %v2111_v57 }
0x1c34   :  { %v2129_v59 = vsub.f32 1.0, %v2116_v58  ;;  %v2135_v23 = vmul.f32 %v2116_v58, %v5202_v21  ;;  %v3987_v21 = vld [vmem:[%s5896_s5 + $0x48] sm:$0xff] }
0x1c35   :  { %2516 = vmatpush.msra.mxu1 %v3987_v21 }
0x1c37   :  { %2517 = vmatpush.msra.mxu1 %v3986_v41 }
0x1c5f   :  { %v2061_v13 = vpop.permute.xlu0 %2060 }
0x1c60   :  { %v2063_v14 = vmul.f32 %v2061_v13, %v2055_v15 }
0x1c62   :  { %2065 = vrot.lane.b32.xlu2 %v2063_v14, %s4463_s25 }
0x1c88   :  { %v2120_v7 = vpop.permute.xlu1 %2119 }
0x1c89   :  { %v2122_v52 = vmul.f32 %v2120_v7, %v2116_v58 }
0x1c8b   :  { %2124 = vrot.lane.b32.xlu0 %v2122_v52, %s4462_s24 }
0x1cbc   :  { %v2066_v63 = vpop.permute.xlu2 %2065 }
0x1cbd   :  { %v5216_v44 = vadd.f32 %v2066_v63, %v2058_v60 }
0x1cbf   :  { %4235 = vtanh.f32 %v5216_v44 }
0x1cc5   :  { %v4236_v0 = vpop.eup %4235 }
0x1cc6   :  { %2071 = vrot.lane.b32.xlu1 %v4236_v0, %s4463_s25 }
0x1cfd   :  { %v2125_v4 = vpop.permute.xlu0 %2124 }
0x1cfe   :  { %v2127_v8 = vadd.f32 %v2125_v4, %v2097_v47 }
0x1d00   :  { %4237 = vtanh.f32 %v2127_v8 }
0x1d06   :  { %v4238_v18 = vpop.eup %4237 }
0x1d07   :  { %2131 = vrot.lane.b32.xlu2 %v4238_v18, %s4464_s28 }
0x1d38   :  { %v2072_v50 = vpop.permute.xlu1 %2071 }
0x1d39   :  { %v2074_v19 = vmul.f32 %v2072_v50, %v2055_v15 }
0x1d3b   :  { %2138 = vrot.lane.b32.xlu0 %v2074_v19, %s4462_s24 }
0x1d61   :  { %v2132_v20 = vpop.permute.xlu2 %2131 }
0x1d62   :  { %v2134_v24 = vmul.f32 %v2132_v20, %v2129_v59 }
0x1d64   :  { %v5223_v30 = vadd.f32 %v2135_v23, %v2134_v24 }
0x1d66   :  { %2143 = vrot.lane.b32.xlu1 %v5223_v30, %s4464_s28 }
0x1dad   :  { %v2139_v39 = vpop.permute.xlu0 %2138 }
0x1dae   :  { %2141 = vst.msk [vmem:[#allocation4 + $0xa] sm:$0x3] %vm285_vm10, %v2139_v39  ;;  %3961 = vmatmul.msk.f32.vlgmr.msrb.gmra.mxu0 %vm80_vm0, %v2139_v39 }
0x1daf   :  { %2822 = vmatpush.msrb.mxu0 %v5300_v16 }
0x1db1   :  { %2823 = vmatpush.msrb.mxu0 %v5305_v62 }
0x1db6   :  { %3984 = vmatmul.msk.f32.vlgmr.msra.gmra.mxu0 %vm80_vm0, %v2443_v27 }
0x1dd8   :  { %v2144_v2 = vpop.permute.xlu1 %2143 }
0x1dd9   :  { %2146 = vst.msk [vmem:[#allocation5 + $0xa] sm:$0x3] %vm285_vm10, %v2144_v2  ;;  %3963 = vmatmul.msk.f32.vlgmr.msrb.gmra.mxu1 %vm80_vm0, %v2144_v2 }
0x1de1   :  { %3991 = vmatmul.msk.f32.vlgmr.msra.gmra.mxu1 %vm80_vm0, %v2445_v3 }
0x1e2b   :  { %v2167_v38 = vpop.f32.mrf.mxu0 }
0x1e2c   :  { %v2170_v31 = vadd.f32 %v2167_v38, %v2147_v10  ;;  %v5319_v10 = vld [vmem:[%s5917_s20 + $0x40] sm:$0xff] }
0x1e2d   :  { %v3994_v38 = vld [vmem:[%s5901_s10 + $0x4] sm:$0x3] }
0x1e2e   :  { %4239 = vtanh.f32 %v2170_v31  ;;  %v3962_v26 = vmul.f32 -1.442695, %v2170_v31 }
0x1e30   :  { %4241 = vpow2.f32 %v3962_v26 }
0x1e33   :  { %v2478_v28 = vpop.f32.mrf.mxu0 }
0x1e34   :  { %v4240_v43 = vpop.eup %4239  ;;  %v2479_v54 = vadd.f32 %v2478_v28, %v2453_v22  ;;  %v3993_v28 = vld [vmem:[%s5900_s9 + $0x4] sm:$0x3] }
0x1e35   :  { %2193 = vrot.lane.b32.xlu2 %v4240_v43, %s4463_s25  ;;  %v5350_v43 = vld [vmem:[%s5897_s6 + $0x58] sm:$0xff] }
0x1e36   :  { %2484 = vst [vmem:[#allocation2] sm:$0xff] %v2479_v54  ;;  %v4242_v12 = vpop.eup %4241  ;;  %v5355_v54 = vld [vmem:[%s5897_s6 + $0x50] sm:$0xff]  ;;  %2614 = vmatpush.msra.mxu3 %v5350_v43  ;;  %2885 = vmatpush.msrb.mxu1 %v5350_v43 }
0x1e37   :  { %v2174_v48 = vadd.f32 1.0, %v4242_v12 }
0x1e38   :  { %2615 = vmatpush.msra.mxu3 %v5355_v54  ;;  %2886 = vmatpush.msrb.mxu1 %v5355_v54 }
0x1e39   :  { %4243 = vrcp.f32 %v2174_v48  ;;  %v2186_v32 = vand.u32 2147483648, %v2174_v48  ;;  %vm2180_vm12 = vweird.f32 %v2174_v48  ;;  %v2184_v51 = vand.u32 2147483647, %v2174_v48 }
0x1e3b   :  { %v2187_v53 = vor.u32 1.1754944e-38, %v2186_v32  ;;  %vm2185_vm14 = vcmp.eq.f32.partialorder %v2184_v51, 8.507059e+37 }
0x1e3d   :  { %v2533_v12 = vld [vmem:[#allocation2] sm:$0x3] }
0x1e3f   :  { %v4244_v17 = vpop.eup %4243 }
0x1e40   :  { %v2176_v15 = vmul.f32 %v4244_v17, %v2174_v48  ;;  %vm2181_vm11 = vweird.f32 %v4244_v17 }
0x1e41   :  { %vm2182_vm13 = vmor %vm2180_vm12, %vm2181_vm11 }
0x1e42   :  { %v2177_v13 = vsub.f32 1.0, %v2176_v15 }
0x1e44   :  { %v2178_v14 = vmul.f32 %v4244_v17, %v2177_v13 }
0x1e46   :  { %v2179_v49 = vadd.f32 %v4244_v17, %v2178_v14  ;;  %v5402_v14 = vld [vmem:[%s5899_s8 + $0x2] ss:$0 sm:$0xff] }
0x1e48   :  { %v2183_v33 = vsel %vm2182_vm13, %v4244_v17, %v2179_v49 }
0x1e49   :  { %v2188_v34 = vsel %vm2185_vm14, %v2187_v53, %v2183_v33 }
0x1e4a   :  { %v2191_v24 = vmul.f32 %v2188_v34, %v5216_v44 }
0x1e56   :  { %v2227_v45 = vpop.f32.mrf.mxu1 }
0x1e57   :  { %v2228_v47 = vadd.f32 %v5272_v46, %v2227_v45  ;;  %v5362_v45 = vld [vmem:[%s5897_s6 + $0x48] sm:$0xff] }
0x1e58   :  { %2616 = vmatpush.msra.mxu3 %v5362_v45  ;;  %2887 = vmatpush.msrb.mxu1 %v5362_v45 }
0x1e59   :  { %2252 = vrot.lane.b32.xlu0 %v2228_v47, %s4462_s24  ;;  %v2231_v57 = vadd.f32 %v2230_v56, %v2228_v47  ;;  %v5369_v47 = vld [vmem:[%s5897_s6 + $0x40] sm:$0xff]  ;;  %s4466_s6 = smov 2  }
0x1e5a   :  { %2617 = vmatpush.msra.mxu3 %v5369_v47  ;;  %2888 = vmatpush.msrb.mxu1 %v5369_v47 }
0x1e5b   :  { %v3964_v25 = vmul.f32 -1.442695, %v2231_v57 }
0x1e5c   :  { %3158 = vmatpush.msra.mxu1 %v5350_v43 }
0x1e5d   :  { %4245 = vpow2.f32 %v3964_v25 }
0x1e5e   :  { %v2519_v29 = vpop.f32.mrf.mxu1  ;;  %3159 = vmatpush.msra.mxu1 %v5355_v54 }
0x1e5f   :  { %v2520_v11 = vadd.f32 %v5279_v6, %v2519_v29 }
0x1e60   :  { %3160 = vmatpush.msra.mxu1 %v5362_v45 }
0x1e61   :  { %2525 = vst.msk [vmem:[#allocation3] sm:$0xff] %vm143_vm1, %v2520_v11  ;;  %v5386_v11 = vld [vmem:[%s5902_s11 + $0x4] sm:$0x3]  ;;  %s3823_s11 = sshll.u32 %s4467_s0, 4  ;;  %s3824_s11 = int_to_ptr.vmem [resolvable:$true] %s3823_s11 }
0x1e62   :  { %3161 = vmatpush.msra.mxu1 %v5369_v47 }
0x1e63   :  { %v4246_v7 = vpop.eup %4245 }
0x1e64   :  { %v2235_v58 = vadd.f32 1.0, %v4246_v7 }
0x1e66   :  { %4247 = vrcp.f32 %v2235_v58  ;;  %v2247_v8 = vand.u32 2147483648, %v2235_v58  ;;  %vm2241_vm2 = vweird.f32 %v2235_v58  ;;  %v2245_v18 = vand.u32 2147483647, %v2235_v58 }
0x1e68   :  { %v2248_v19 = vor.u32 1.1754944e-38, %v2247_v8  ;;  %vm2246_vm4 = vcmp.eq.f32.partialorder %v2245_v18, 8.507059e+37  ;;  %v2893_v5 = vld [vmem:[#allocation3 + $0x4] sm:$0x3] }
0x1e6c   :  { %v4248_v52 = vpop.eup %4247 }
0x1e6d   :  { %v2237_v60 = vmul.f32 %v4248_v52, %v2235_v58  ;;  %vm2242_vm15 = vweird.f32 %v4248_v52 }
0x1e6e   :  { %vm2243_vm3 = vmor %vm2241_vm2, %vm2242_vm15 }
0x1e6f   :  { %v2238_v63 = vsub.f32 1.0, %v2237_v60 }
0x1e71   :  { %v2239_v0 = vmul.f32 %v4248_v52, %v2238_v63 }
0x1e73   :  { %v2240_v4 = vadd.f32 %v4248_v52, %v2239_v0 }
0x1e75   :  { %v2244_v50 = vsel %vm2243_vm3, %v4248_v52, %v2240_v4 }
0x1e76   :  { %v2249_v59 = vsel %vm2246_vm4, %v2248_v19, %v2244_v50 }
0x1e77   :  { %v2262_v21 = vsub.f32 1.0, %v2249_v59  ;;  %v2268_v41 = vmul.f32 %v2249_v59, %v5223_v30  ;;  %v5312_v30 = vld [vmem:[%s5917_s20 + $0x48] sm:$0xff] }
0x1e78   :  { %2551 = vmatpush.msra.mxu2 %v5312_v30  ;;  %2824 = vmatpush.msrb.mxu0 %v5312_v30 }
0x1e7a   :  { %2552 = vmatpush.msra.mxu2 %v5319_v10  ;;  %2825 = vmatpush.msrb.mxu0 %v5319_v10 }
0x1e7c   :  { %3096 = vmatpush.msra.mxu0 %v5300_v16 }
0x1e7e   :  { %3097 = vmatpush.msra.mxu0 %v5305_v62 }
0x1e80   :  { %3098 = vmatpush.msra.mxu0 %v5312_v30 }
0x1e82   :  { %3099 = vmatpush.msra.mxu0 %v5319_v10 }
0x1e8f   :  { %v2194_v9 = vpop.permute.xlu2 %2193 }
0x1e90   :  { %v2196_v55 = vmul.f32 %v2194_v9, %v2188_v34 }
0x1e92   :  { %2198 = vrot.lane.b32.xlu1 %v2196_v55, %s4463_s25  ;;  %v2622_v55 = vld [vmem:[#allocation3] sm:$0x3] }
0x1ecb   :  { %v2253_v20 = vpop.permute.xlu0 %2252 }
0x1ecc   :  { %v2255_v23 = vmul.f32 %v2253_v20, %v2249_v59 }
0x1ece   :  { %2257 = vrot.lane.b32.xlu2 %v2255_v23, %s4462_s24 }
0x1f04   :  { %v2199_v35 = vpop.permute.xlu1 %2198 }
0x1f05   :  { %v5286_v1 = vadd.f32 %v2199_v35, %v2191_v24 }
0x1f07   :  { %4249 = vtanh.f32 %v5286_v1 }
0x1f0d   :  { %v4250_v36 = vpop.eup %4249 }
0x1f0e   :  { %2204 = vrot.lane.b32.xlu0 %v4250_v36, %s4463_s25 }
0x1f28   :  { %v2258_v37 = vpop.permute.xlu2 %2257 }
0x1f29   :  { %v2260_v39 = vadd.f32 %v2258_v37, %v2230_v56 }
0x1f2b   :  { %4251 = vtanh.f32 %v2260_v39 }
0x1f31   :  { %v4252_v27 = vpop.eup %4251 }
0x1f32   :  { %2264 = vrot.lane.b32.xlu1 %v4252_v27, %s4464_s28 }
0x1f80   :  { %v2205_v40 = vpop.permute.xlu0 %2204 }
0x1f81   :  { %v2207_v42 = vmul.f32 %v2205_v40, %v2188_v34 }
0x1f83   :  { %2271 = vrot.lane.b32.xlu2 %v2207_v42, %s4462_s24 }
0x1fa4   :  { %v2265_v44 = vpop.permute.xlu1 %2264 }
0x1fa5   :  { %v2267_v2 = vmul.f32 %v2265_v44, %v2262_v21  ;;  %v2280_v44 = vld [vmem:[#allocation2 + $0xe] sm:$0x3] }
0x1fa7   :  { %v5293_v3 = vadd.f32 %v2268_v41, %v2267_v2 }
0x1fa9   :  { %2276 = vrot.lane.b32.xlu0 %v5293_v3, %s4464_s28 }
0x1fb1   :  { %2579 = vrot.lane.b32.xlu0 %v3994_v38, %s4463_s25 }
0x1fdd   :  { %v2272_v31 = vpop.permute.xlu2 %2271 }
0x1fde   :  { %2274 = vst.msk [vmem:[#allocation4 + $0xc] sm:$0x3] %vm285_vm10, %v2272_v31  ;;  %3965 = vmatmul.msk.f32.vlgmr.msrb.gmra.mxu2 %vm80_vm0, %v2272_v31 }
0x1fdf   :  { %2690 = vmatpush.msrb.mxu2 %v5300_v16 }
0x1fe1   :  { %2691 = vmatpush.msrb.mxu2 %v5305_v62 }
0x1fe3   :  { %2692 = vmatpush.msrb.mxu2 %v5312_v30 }
0x1fe5   :  { %2693 = vmatpush.msrb.mxu2 %v5319_v10 }
0x1fe6   :  { %3996 = vmatmul.msk.f32.vlgmr.msra.gmra.mxu2 %vm80_vm0, %v3993_v28 }
0x1fe7   :  { %2958 = vmatpush.msra.mxu2 %v5300_v16 }
0x1fe9   :  { %2959 = vmatpush.msra.mxu2 %v5305_v62 }
0x1feb   :  { %2960 = vmatpush.msra.mxu2 %v5312_v30 }
0x1fed   :  { %2961 = vmatpush.msra.mxu2 %v5319_v10 }
0x201b   :  { %v2277_v29 = vpop.permute.xlu0 %2276 }
0x201c   :  { %2279 = vst.msk [vmem:[#allocation5 + $0xc] sm:$0x3] %vm285_vm10, %v2277_v29  ;;  %3967 = vmatmul.msk.f32.vlgmr.msrb.gmra.mxu3 %vm80_vm0, %v2277_v29 }
0x201d   :  { %2750 = vmatpush.msrb.mxu3 %v5350_v43 }
0x201f   :  { %2751 = vmatpush.msrb.mxu3 %v5355_v54 }
0x2021   :  { %2752 = vmatpush.msrb.mxu3 %v5362_v45 }
0x2023   :  { %2753 = vmatpush.msrb.mxu3 %v5369_v47  ;;  %v2580_v38 = vpop.permute.xlu0 %2579 }
0x2024   :  { %3998 = vmatmul.msk.f32.vlgmr.msra.gmra.mxu3 %vm80_vm0, %v5386_v11 }
0x2025   :  { %3020 = vmatpush.msra.mxu3 %v5350_v43 }
0x2027   :  { %3021 = vmatpush.msra.mxu3 %v5355_v54 }
0x2029   :  { %3022 = vmatpush.msra.mxu3 %v5362_v45 }
0x202b   :  { %3023 = vmatpush.msra.mxu3 %v5369_v47 }
0x2061   :  { %v2300_v26 = vpop.f32.mrf.mxu2 }
0x2062   :  { %v2303_v41 = vadd.f32 %v2300_v26, %v2280_v44 }
0x2069   :  { %v2554_v48 = vpop.f32.mrf.mxu2 }
0x206a   :  { %v2557_v17 = vadd.f32 %v2554_v48, %v2533_v12 }
0x206c   :  { %4253 = vtanh.f32 %v2557_v17  ;;  %v3997_v51 = vmul.f32 -1.442695, %v2557_v17 }
0x206e   :  { %4255 = vpow2.f32 %v3997_v51 }
0x2072   :  { %v4254_v15 = vpop.eup %4253 }
0x2073   :  { %2584 = vrot.lane.b32.xlu1 %v4254_v15, %s4463_s25 }
0x2074   :  { %v4256_v33 = vpop.eup %4255 }
0x2075   :  { %v2561_v53 = vadd.f32 1.0, %v4256_v33 }
0x2077   :  { %4257 = vrcp.f32 %v2561_v53  ;;  %v2573_v52 = vand.u32 2147483648, %v2561_v53  ;;  %vm2567_vm6 = vweird.f32 %v2561_v53  ;;  %v2571_v60 = vand.u32 2147483647, %v2561_v53 }
0x2079   :  { %v2574_v4 = vor.u32 1.1754944e-38, %v2573_v52  ;;  %vm2572_vm8 = vcmp.eq.f32.partialorder %v2571_v60, 8.507059e+37 }
0x207d   :  { %v4258_v9 = vpop.eup %4257 }
0x207e   :  { %v2563_v34 = vmul.f32 %v4258_v9, %v2561_v53  ;;  %vm2568_vm5 = vweird.f32 %v4258_v9 }
0x207f   :  { %vm2569_vm7 = vmor %vm2567_vm6, %vm2568_vm5 }
0x2080   :  { %v2564_v57 = vsub.f32 1.0, %v2563_v34 }
0x2082   :  { %v2565_v7 = vmul.f32 %v4258_v9, %v2564_v57  ;;  %v3966_v57 = vmul.f32 -1.442695, %v2303_v41 }
0x2084   :  { %v2566_v58 = vadd.f32 %v4258_v9, %v2565_v7 }
0x2086   :  { %v2570_v0 = vsel %vm2569_vm7, %v4258_v9, %v2566_v58 }
0x2087   :  { %v2575_v18 = vsel %vm2572_vm8, %v2574_v4, %v2570_v0 }
0x2088   :  { %v2582_v31 = vmul.f32 %v2580_v38, %v2575_v18 }
0x209f   :  { %v5397_v13 = vpop.f32.mrf.mxu3 }
0x20a0   :  { %v2361_v34 = vadd.f32 %v5272_v46, %v5397_v13  ;;  %v5436_v46 = vld [vmem:[#allocation3 + $0xe] sm:$0x3] }
0x20a2   :  { %v2364_v13 = vadd.f32 %v5436_v46, %v2361_v34 }
0x20a7   :  { %v2619_v49 = vpop.f32.mrf.mxu3 }
0x20a8   :  { %v2620_v32 = vadd.f32 %v5402_v14, %v2619_v49 }
0x20aa   :  { %2644 = vrot.lane.b32.xlu2 %v2620_v32, %s4462_s24  ;;  %v2623_v56 = vadd.f32 %v2622_v55, %v2620_v32 }
0x20ac   :  { %v3999_v25 = vmul.f32 -1.442695, %v2623_v56 }
0x20ae   :  { %4259 = vpow2.f32 %v3999_v25  ;;  %v3968_v25 = vmul.f32 -1.442695, %v2364_v13 }
0x20b4   :  { %v4260_v63 = vpop.eup %4259 }
0x20b5   :  { %v2627_v8 = vadd.f32 1.0, %v4260_v63 }
0x20b7   :  { %4261 = vrcp.f32 %v2627_v8  ;;  %v2639_v36 = vand.u32 2147483648, %v2627_v8  ;;  %vm2633_vm11 = vweird.f32 %v2627_v8  ;;  %v2637_v37 = vand.u32 2147483647, %v2627_v8 }
0x20b8   :  { %4263 = vtanh.f32 %v2303_v41 }
0x20b9   :  { %v2640_v27 = vor.u32 1.1754944e-38, %v2639_v36  ;;  %vm2638_vm13 = vcmp.eq.f32.partialorder %v2637_v37, 8.507059e+37 }
0x20bd   :  { %v4262_v59 = vpop.eup %4261 }
0x20be   :  { %v2629_v20 = vmul.f32 %v4262_v59, %v2627_v8  ;;  %vm2634_vm9 = vweird.f32 %v4262_v59  ;;  %v4264_v2 = vpop.eup %4263 }
0x20bf   :  { %vm2635_vm12 = vmor %vm2633_vm11, %vm2634_vm9 }
0x20c0   :  { %v2630_v23 = vsub.f32 1.0, %v2629_v20 }
0x20c2   :  { %v2631_v24 = vmul.f32 %v4262_v59, %v2630_v23 }
0x20c4   :  { %v2632_v35 = vadd.f32 %v4262_v59, %v2631_v24 }
0x20c6   :  { %v2636_v39 = vsel %vm2635_vm12, %v4262_v59, %v2632_v35 }
0x20c7   :  { %v2641_v42 = vsel %vm2638_vm13, %v2640_v27, %v2636_v39 }
0x20c8   :  { %v2654_v32 = vsub.f32 1.0, %v2641_v42 }
0x20e5   :  { %v2585_v50 = vpop.permute.xlu1 %2584 }
0x20e6   :  { %v2587_v19 = vmul.f32 %v2585_v50, %v2575_v18  ;;  %v2675_v50 = vld [vmem:[#allocation2 + $0x2] sm:$0x3] }
0x20e8   :  { %2589 = vrot.lane.b32.xlu1 %v2587_v19, %s4463_s25 }
0x2104   :  { %v2645_v40 = vpop.permute.xlu2 %2644 }
0x2105   :  { %v2647_v21 = vmul.f32 %v2645_v40, %v2641_v42 }
0x2107   :  { %2649 = vrot.lane.b32.xlu2 %v2647_v21, %s4462_s24 }
0x210f   :  { %2660 = vrot.lane.b32.xlu2 %v5386_v11, %s4463_s25 }
0x2117   :  { %2326 = vrot.lane.b32.xlu2 %v4264_v2, %s4463_s25 }
0x215a   :  { %v2590_v28 = vpop.permute.xlu1 %2589 }
0x215b   :  { %v5411_v29 = vadd.f32 %v2590_v28, %v2582_v31 }
0x215d   :  { %4265 = vtanh.f32 %v5411_v29 }
0x2161   :  { %v2650_v12 = vpop.permute.xlu2 %2649 }
0x2162   :  { %v2652_v48 = vadd.f32 %v2650_v12, %v2622_v55 }
0x2163   :  { %v4266_v17 = vpop.eup %4265 }
0x2164   :  { %4267 = vtanh.f32 %v2652_v48  ;;  %2595 = vrot.lane.b32.xlu0 %v4266_v17, %s4463_s25 }
0x2165   :  { %4269 = vpow2.f32 %v3966_v57 }
0x2166   :  { %4271 = vpow2.f32 %v3968_v25 }
0x2169   :  { %v2661_v49 = vpop.permute.xlu2 %2660 }
0x216a   :  { %v4268_v26 = vpop.eup %4267  ;;  %v2663_v33 = vmul.f32 %v2661_v49, %v2641_v42 }
0x216b   :  { %2656 = vrot.lane.b32.xlu1 %v4268_v26, %s4464_s28  ;;  %v4270_v7 = vpop.eup %4269 }
0x216c   :  { %v4272_v58 = vpop.eup %4271  ;;  %v2307_v52 = vadd.f32 1.0, %v4270_v7 }
0x216d   :  { %v2368_v60 = vadd.f32 1.0, %v4272_v58 }
0x216e   :  { %4273 = vrcp.f32 %v2307_v52  ;;  %vm2313_vm15 = vweird.f32 %v2307_v52  ;;  %v2319_v37 = vand.u32 2147483648, %v2307_v52  ;;  %v2317_v27 = vand.u32 2147483647, %v2307_v52 }
0x216f   :  { %4275 = vrcp.f32 %v2368_v60  ;;  %v2380_v21 = vand.u32 2147483648, %v2368_v60  ;;  %vm2374_vm4 = vweird.f32 %v2368_v60  ;;  %v2378_v41 = vand.u32 2147483647, %v2368_v60 }
0x2170   :  { %v2320_v2 = vor.u32 1.1754944e-38, %v2319_v37  ;;  %vm2318_vm6 = vcmp.eq.f32.partialorder %v2317_v27, 8.507059e+37 }
0x2171   :  { %v2327_v38 = vpop.permute.xlu2 %2326  ;;  %v2381_v12 = vor.u32 1.1754944e-38, %v2380_v21  ;;  %vm2379_vm7 = vcmp.eq.f32.partialorder %v2378_v41, 8.507059e+37 }
0x2174   :  { %v4274_v63 = vpop.eup %4273 }
0x2175   :  { %v4276_v0 = vpop.eup %4275  ;;  %v2309_v4 = vmul.f32 %v4274_v63, %v2307_v52  ;;  %vm2314_vm14 = vweird.f32 %v4274_v63 }
0x2176   :  { %v2370_v8 = vmul.f32 %v4276_v0, %v2368_v60  ;;  %vm2375_vm2 = vweird.f32 %v4276_v0  ;;  %vm2315_vm3 = vmor %vm2313_vm15, %vm2314_vm14 }
0x2177   :  { %vm2376_vm5 = vmor %vm2374_vm4, %vm2375_vm2 }
0x2178   :  { %v2371_v20 = vsub.f32 1.0, %v2370_v8 }
0x217a   :  { %v2372_v24 = vmul.f32 %v4276_v0, %v2371_v20 }
0x217c   :  { %v2373_v40 = vadd.f32 %v4276_v0, %v2372_v24 }
0x217e   :  { %v2377_v31 = vsel %vm2376_vm5, %v4276_v0, %v2373_v40 }
0x217f   :  { %v5445_v26 = vsel %vm2379_vm7, %v2381_v12, %v2377_v31 }
0x21d6   :  { %v2596_v11 = vpop.permute.xlu0 %2595 }
0x21d7   :  { %v2598_v15 = vmul.f32 %v2596_v11, %v2575_v18  ;;  %v2310_v18 = vsub.f32 1.0, %v2309_v4 }
0x21d9   :  { %2666 = vrot.lane.b32.xlu0 %v2598_v15, %s4462_s24  ;;  %v2311_v23 = vmul.f32 %v4274_v63, %v2310_v18  ;;  %v2758_v15 = vld [vmem:[#allocation3 + $0x2] sm:$0x3] }
0x21db   :  { %v2312_v35 = vadd.f32 %v4274_v63, %v2311_v23 }
0x21dd   :  { %v2657_v51 = vpop.permute.xlu1 %2656  ;;  %v2316_v44 = vsel %vm2315_vm3, %v4274_v63, %v2312_v35  ;;  %vm2802_vm3 = vcmask 517376  }
0x21de   :  { %v2659_v53 = vmul.f32 %v2657_v51, %v2654_v32  ;;  %v5442_v28 = vsel %vm2318_vm6, %v2320_v2, %v2316_v44 }
0x21df   :  { %v2329_v17 = vmul.f32 %v2327_v38, %v5442_v28 }
0x21e0   :  { %v5417_v9 = vadd.f32 %v2663_v33, %v2659_v53 }
0x21e2   :  { %2671 = vrot.lane.b32.xlu1 %v5417_v9, %s4464_s28 }
0x21ea   :  { %2385 = vrot.lane.b32.xlu1 %v2361_v34, %s4462_s24 }
0x224b   :  { %v2667_v55 = vpop.permute.xlu0 %2666 }
0x224c   :  { %2669 = vst.msk [vmem:[#allocation6] sm:$0x3] %vm285_vm10, %v2667_v55  ;;  %4000 = vmatmul.msk.f32.vlgmr.msrb.gmra.mxu2 %vm80_vm0, %v2667_v55 }
0x224d   :  { %3231 = vmatpush.msrb.mxu2 %v5300_v16 }
0x224f   :  { %3232 = vmatpush.msrb.mxu2 %v5305_v62 }
0x2251   :  { %3233 = vmatpush.msrb.mxu2 %v5312_v30 }
0x2253   :  { %3234 = vmatpush.msrb.mxu2 %v5319_v10 }
0x2254   :  { %v2672_v56 = vpop.permute.xlu1 %2671 }
0x2255   :  { %2674 = vst.msk [vmem:[#allocation7] sm:$0x3] %vm285_vm10, %v2672_v56  ;;  %4002 = vmatmul.msk.f32.vlgmr.msrb.gmra.mxu3 %vm80_vm0, %v2672_v56 }
0x2256   :  { %3291 = vmatpush.msrb.mxu3 %v5350_v43 }
0x2258   :  { %3292 = vmatpush.msrb.mxu3 %v5355_v54 }
0x225a   :  { %3293 = vmatpush.msrb.mxu3 %v5362_v45 }
0x225c   :  { %3294 = vmatpush.msrb.mxu3 %v5369_v47  ;;  %v2386_v48 = vpop.permute.xlu1 %2385 }
0x225d   :  { %v2388_v11 = vmul.f32 %v2386_v48, %v5445_v26  ;;  %v2395_v48 = vsub.f32 1.0, %v5445_v26 }
0x22cf   :  { %v2695_v19 = vpop.f32.mrf.mxu2 }
0x22d0   :  { %v2698_v59 = vadd.f32 %v2695_v19, %v2675_v50 }
0x22d2   :  { %4277 = vtanh.f32 %v2698_v59  ;;  %v4001_v53 = vmul.f32 -1.442695, %v2698_v59 }
0x22d8   :  { %v4278_v36 = vpop.eup %4277  ;;  %v2755_v39 = vpop.f32.mrf.mxu3 }
0x22d9   :  { %v2756_v42 = vadd.f32 %v5402_v14, %v2755_v39  ;;  %2721 = vrot.lane.b32.xlu0 %v4278_v36, %s4463_s25 }
0x22db   :  { %2780 = vrot.lane.b32.xlu2 %v2756_v42, %s4462_s24  ;;  %v2759_v49 = vadd.f32 %v2758_v15, %v2756_v42 }
0x22dd   :  { %v4003_v32 = vmul.f32 -1.442695, %v2759_v49 }
0x22df   :  { %4279 = vpow2.f32 %v4003_v32 }
0x22e1   :  { %2331 = vrot.lane.b32.xlu0 %v2329_v17, %s4463_s25 }
0x22e3   :  { %2390 = vrot.lane.b32.xlu2 %v2388_v11, %s4462_s24 }
0x22e5   :  { %v4280_v51 = vpop.eup %4279 }
0x22e6   :  { %v2763_v33 = vadd.f32 1.0, %v4280_v51 }
0x22e8   :  { %4281 = vrcp.f32 %v2763_v33  ;;  %v2775_v58 = vand.u32 2147483648, %v2763_v33  ;;  %vm2769_vm9 = vweird.f32 %v2763_v33  ;;  %v2773_v52 = vand.u32 2147483647, %v2763_v33 }
0x22e9   :  { %4283 = vpow2.f32 %v4001_v53 }
0x22ea   :  { %v2776_v63 = vor.u32 1.1754944e-38, %v2775_v58  ;;  %vm2774_vm12 = vcmp.eq.f32.partialorder %v2773_v52, 8.507059e+37 }
0x22ee   :  { %v4282_v34 = vpop.eup %4281 }
0x22ef   :  { %v2765_v55 = vmul.f32 %v4282_v34, %v2763_v33  ;;  %v4284_v13 = vpop.eup %4283  ;;  %vm2770_vm8 = vweird.f32 %v4282_v34 }
0x22f0   :  { %v2702_v25 = vadd.f32 1.0, %v4284_v13  ;;  %vm2771_vm11 = vmor %vm2769_vm9, %vm2770_vm8 }
0x22f1   :  { %v2766_v56 = vsub.f32 1.0, %v2765_v55 }
0x22f2   :  { %4285 = vrcp.f32 %v2702_v25  ;;  %v2714_v35 = vand.u32 2147483648, %v2702_v25  ;;  %vm2708_vm14 = vweird.f32 %v2702_v25  ;;  %v2712_v37 = vand.u32 2147483647, %v2702_v25 }
0x22f3   :  { %v2767_v57 = vmul.f32 %v4282_v34, %v2766_v56 }
0x22f4   :  { %v2715_v27 = vor.u32 1.1754944e-38, %v2714_v35  ;;  %vm2713_vm2 = vcmp.eq.f32.partialorder %v2712_v37, 8.507059e+37 }
0x22f5   :  { %v2768_v7 = vadd.f32 %v4282_v34, %v2767_v57 }
0x22f7   :  { %v2772_v60 = vsel %vm2771_vm11, %v4282_v34, %v2768_v7 }
0x22f8   :  { %v4286_v0 = vpop.eup %4285  ;;  %v2777_v4 = vsel %vm2774_vm12, %v2776_v63, %v2772_v60 }
0x22f9   :  { %v2704_v50 = vmul.f32 %v4286_v0, %v2702_v25  ;;  %vm2709_vm13 = vweird.f32 %v4286_v0  ;;  %v2790_v55 = vsub.f32 1.0, %v2777_v4 }
0x22fa   :  { %vm2710_vm15 = vmor %vm2708_vm14, %vm2709_vm13 }
0x22fb   :  { %v2705_v19 = vsub.f32 1.0, %v2704_v50  ;;  %v2805_v50 = vld [vmem:[#allocation2 + $0x4] sm:$0x3] }
0x22fd   :  { %v2706_v23 = vmul.f32 %v4286_v0, %v2705_v19 }
0x22ff   :  { %v2707_v24 = vadd.f32 %v4286_v0, %v2706_v23 }
0x2301   :  { %v2711_v39 = vsel %vm2710_vm15, %v4286_v0, %v2707_v24 }
0x2302   :  { %v2716_v42 = vsel %vm2713_vm2, %v2715_v27, %v2711_v39 }
0x2303   :  { %v2719_v32 = vmul.f32 %v2716_v42, %v5411_v29  ;;  %v2796_v29 = vmul.f32 %v2777_v4, %v5417_v9 }
0x2335   :  { %v2781_v8 = vpop.permute.xlu2 %2780 }
0x2336   :  { %v2783_v18 = vmul.f32 %v2781_v8, %v2777_v4 }
0x2338   :  { %2785 = vrot.lane.b32.xlu0 %v2783_v18, %s4462_s24 }
0x233d   :  { %v2391_v59 = vpop.permute.xlu2 %2390 }
0x233e   :  { %v2393_v20 = vadd.f32 %v2391_v59, %v5436_v46  ;;  %v2324_v46 = vmul.f32 %v5442_v28, %v5286_v1  ;;  %v2401_v1 = vmul.f32 %v5445_v26, %v5293_v3 }
0x2340   :  { %4287 = vtanh.f32 %v2393_v20 }
0x2346   :  { %v4288_v36 = vpop.eup %4287 }
0x2347   :  { %2397 = vrot.lane.b32.xlu0 %v4288_v36, %s4464_s28 }
0x234b   :  { %v2722_v40 = vpop.permute.xlu0 %2721 }
0x234c   :  { %v2724_v21 = vmul.f32 %v2722_v40, %v2716_v42 }
0x234e   :  { %2726 = vrot.lane.b32.xlu1 %v2724_v21, %s4463_s25 }
0x2353   :  { %v2332_v44 = vpop.permute.xlu0 %2331 }
0x2354   :  { %v5456_v41 = vadd.f32 %v2332_v44, %v2324_v46 }
0x2356   :  { %4289 = vtanh.f32 %v5456_v41 }
0x235c   :  { %v4290_v2 = vpop.eup %4289 }
0x235d   :  { %2337 = vrot.lane.b32.xlu1 %v4290_v2, %s4463_s25 }
0x23aa   :  { %v2786_v38 = vpop.permute.xlu0 %2785 }
0x23ab   :  { %v2788_v31 = vadd.f32 %v2786_v38, %v2758_v15 }
0x23ad   :  { %4291 = vtanh.f32 %v2788_v31 }
0x23b3   :  { %v4292_v12 = vpop.eup %4291 }
0x23b4   :  { %2792 = vrot.lane.b32.xlu1 %v4292_v12, %s4464_s28 }
0x23b9   :  { %v2398_v17 = vpop.permute.xlu0 %2397 }
0x23ba   :  { %v2400_v11 = vmul.f32 %v2398_v17, %v2395_v48 }
0x23bc   :  { %v2402_v49 = vadd.f32 %v2401_v1, %v2400_v11 }
0x23be   :  { %2409 = vrot.lane.b32.xlu1 %v2402_v49, %s4464_s28 }
0x23c0   :  { %v2727_v51 = vpop.permute.xlu1 %2726 }
0x23c1   :  { %v5466_v33 = vadd.f32 %v2727_v51, %v2719_v32 }
0x23c3   :  { %4293 = vtanh.f32 %v5466_v33 }
0x23c9   :  { %v4294_v15 = vpop.eup %4293 }
0x23ca   :  { %2732 = vrot.lane.b32.xlu2 %v4294_v15, %s4463_s25 }
0x23cf   :  { %v2338_v53 = vpop.permute.xlu1 %2337 }
0x23d0   :  { %v2340_v34 = vmul.f32 %v2338_v53, %v5442_v28 }
0x23d2   :  { %2404 = vrot.lane.b32.xlu2 %v2340_v34, %s4462_s24 }
0x2424   :  { %v2733_v3 = vpop.permute.xlu2 %2732 }
0x2425   :  { %v5472_v26 = vmul.f32 %v2733_v3, %v2716_v42 }
0x2426   :  { %v2793_v56 = vpop.permute.xlu1 %2792 }
0x2427   :  { %v2795_v13 = vmul.f32 %v2793_v56, %v2790_v55  ;;  %2806 = vrot.lane.b32.xlu0 %v5472_v26, %s4462_s24 }
0x2429   :  { %v5477_v57 = vadd.f32 %v2796_v29, %v2795_v13 }
0x242b   :  { %2869 = vrot.lane.b32.xlu2 %v5477_v57, %s4464_s28  ;;  %2804 = vst.msk [vmem:[#allocation7] sm:$0x3] %vm2802_vm3, %v5477_v57 }
0x242c   :  { %v2405_v28 = vpop.permute.xlu2 %2404 }
0x242d   :  { %2407 = vst.msk [vmem:[#allocation4 + $0xe] sm:$0x3] %vm285_vm10, %v2405_v28 }
0x242e   :  { %2414 = vst.msk [vmem:[#allocation8 + $0x2] sm:$0x3] %vm285_vm10, %v2405_v28 }
0x2430   :  { %v2410_v25 = vpop.permute.xlu1 %2409 }
0x2431   :  { %2412 = vst.msk [vmem:[#allocation5 + $0xe] sm:$0x3] %vm285_vm10, %v2410_v25 }
0x2432   :  { %2422 = vst.msk [vmem:[#allocation12 + $0x2] sm:$0x3] %vm285_vm10, %v2410_v25 }
0x2434   :  { %v2444_v9 = vld [vmem:[#allocation4 + $0x8] sm:$0xff] }
0x2435   :  { %3985 = vmatmul.msk.f32.gmra.mxu0 %vm80_vm0, %v2444_v9 }
0x2438   :  { %v2446_v7 = vld [vmem:[#allocation5 + $0x8] sm:$0xff] }
0x2439   :  { %3992 = vmatmul.msk.f32.gmra.mxu1 %vm80_vm0, %v2446_v7 }
0x2485   :  { %v2870_v58 = vpop.permute.xlu2 %2869 }
0x2486   :  { %4006 = vmatmul.msk.f32.vlgmr.msrb.gmra.mxu1 %vm80_vm0, %v2870_v58 }
0x2487   :  { %3425 = vmatpush.msrb.mxu1 %v5350_v43 }
0x2489   :  { %3426 = vmatpush.msrb.mxu1 %v5355_v54 }
0x248b   :  { %3427 = vmatpush.msrb.mxu1 %v5362_v45 }
0x248d   :  { %3428 = vmatpush.msrb.mxu1 %v5369_v47 }
0x2499   :  { %v2807_v52 = vpop.permute.xlu0 %2806 }
0x249a   :  { %4004 = vmatmul.msk.f32.vlgmr.msrb.gmra.mxu0 %vm80_vm0, %v2807_v52 }
0x249b   :  { %3362 = vmatpush.msrb.mxu0 %v5300_v16 }
0x249d   :  { %3363 = vmatpush.msrb.mxu0 %v5305_v62 }
0x249f   :  { %3364 = vmatpush.msrb.mxu0 %v5312_v30 }
0x24a1   :  { %3365 = vmatpush.msrb.mxu0 %v5319_v10 }
0x24b2   :  { %v2481_v60 = vpop.f32.mrf.mxu0 }
0x24b3   :  { %v2482_v63 = vadd.f32 %v2481_v60, %v2453_v22 }
0x24b5   :  { %2485 = vst [vmem:[#allocation2 + $0x8] sm:$0xff] %v2482_v63 }
0x24b6   :  { %v2522_v0 = vpop.f32.mrf.mxu1 }
0x24b7   :  { %v2523_v4 = vadd.f32 %v5279_v6, %v2522_v0 }
0x24b9   :  { %2526 = vst.msk [vmem:[#allocation3 + $0x8] sm:$0xff] %vm143_vm1, %v2523_v4 }
0x2503   :  { %v2890_v8 = vpop.f32.mrf.mxu1 }
0x2504   :  { %v2891_v18 = vadd.f32 %v5402_v14, %v2890_v8 }
0x2506   :  { %2915 = vrot.lane.b32.xlu1 %v2891_v18, %s4462_s24  ;;  %v2894_v22 = vadd.f32 %v2893_v5, %v2891_v18 }
0x2508   :  { %v4007_v23 = vmul.f32 -1.442695, %v2894_v22 }
0x2517   :  { %v2827_v19 = vpop.f32.mrf.mxu0 }
0x2518   :  { %v2830_v59 = vadd.f32 %v2827_v19, %v2805_v50 }
0x251a   :  { %4295 = vtanh.f32 %v2830_v59  ;;  %v4005_v37 = vmul.f32 -1.442695, %v2830_v59  ;;  %v3028_v59 = vld [vmem:[#allocation3 + $0x6] sm:$0x3] }
0x251b   :  { %4297 = vpow2.f32 %v4007_v23 }
0x2520   :  { %v4296_v20 = vpop.eup %4295 }
0x2521   :  { %2853 = vrot.lane.b32.xlu0 %v4296_v20, %s4463_s25  ;;  %v4298_v24 = vpop.eup %4297 }
0x2522   :  { %v2898_v6 = vadd.f32 1.0, %v4298_v24 }
0x2524   :  { %4299 = vrcp.f32 %v2898_v6  ;;  %v2910_v21 = vand.u32 2147483648, %v2898_v6  ;;  %vm2904_vm4 = vweird.f32 %v2898_v6  ;;  %v2908_v44 = vand.u32 2147483647, %v2898_v6 }
0x2525   :  { %4301 = vpow2.f32 %v4005_v37 }
0x2526   :  { %v2911_v38 = vor.u32 1.1754944e-38, %v2910_v21  ;;  %vm2909_vm6 = vcmp.eq.f32.partialorder %v2908_v44, 8.507059e+37 }
0x252a   :  { %v4300_v35 = vpop.eup %4299 }
0x252b   :  { %v2900_v36 = vmul.f32 %v4300_v35, %v2898_v6  ;;  %v4302_v40 = vpop.eup %4301  ;;  %vm2905_vm1 = vweird.f32 %v4300_v35 }
0x252c   :  { %v2834_v46 = vadd.f32 1.0, %v4302_v40  ;;  %vm2906_vm5 = vmor %vm2904_vm4, %vm2905_vm1 }
0x252d   :  { %v2901_v39 = vsub.f32 1.0, %v2900_v36 }
0x252e   :  { %4303 = vrcp.f32 %v2834_v46  ;;  %v2846_v51 = vand.u32 2147483648, %v2834_v46  ;;  %vm2840_vm8 = vweird.f32 %v2834_v46  ;;  %v2844_v15 = vand.u32 2147483647, %v2834_v46 }
0x252f   :  { %v2902_v27 = vmul.f32 %v4300_v35, %v2901_v39 }
0x2530   :  { %v2847_v34 = vor.u32 1.1754944e-38, %v2846_v51  ;;  %vm2845_vm11 = vcmp.eq.f32.partialorder %v2844_v15, 8.507059e+37 }
0x2531   :  { %v2903_v42 = vadd.f32 %v4300_v35, %v2902_v27 }
0x2533   :  { %v2907_v2 = vsel %vm2906_vm5, %v4300_v35, %v2903_v42 }
0x2534   :  { %v2912_v12 = vsel %vm2909_vm6, %v2911_v38, %v2907_v2  ;;  %v4304_v17 = vpop.eup %4303 }
0x2535   :  { %v2836_v1 = vmul.f32 %v4304_v17, %v2834_v46  ;;  %vm2841_vm7 = vweird.f32 %v4304_v17  ;;  %v2925_v52 = vsub.f32 1.0, %v2912_v12  ;;  %v2931_v63 = vmul.f32 %v2912_v12, %v5477_v57 }
0x2536   :  { %vm2842_vm9 = vmor %vm2840_vm8, %vm2841_vm7 }
0x2537   :  { %v2837_v11 = vsub.f32 1.0, %v2836_v1 }
0x2539   :  { %v2838_v49 = vmul.f32 %v4304_v17, %v2837_v11 }
0x253b   :  { %v2839_v32 = vadd.f32 %v4304_v17, %v2838_v49 }
0x253d   :  { %v2843_v53 = vsel %vm2842_vm9, %v4304_v17, %v2839_v32 }
0x253e   :  { %v2848_v55 = vsel %vm2845_vm11, %v2847_v34, %v2843_v53 }
0x253f   :  { %v2851_v28 = vmul.f32 %v2848_v55, %v5466_v33 }
0x2578   :  { %v2916_v31 = vpop.permute.xlu1 %2915 }
0x2579   :  { %v2918_v48 = vmul.f32 %v2916_v31, %v2912_v12 }
0x257b   :  { %2920 = vrot.lane.b32.xlu0 %v2918_v48, %s4462_s24 }
0x2593   :  { %v2854_v3 = vpop.permute.xlu0 %2853 }
0x2594   :  { %v2856_v56 = vmul.f32 %v2854_v3, %v2848_v55 }
0x2596   :  { %2858 = vrot.lane.b32.xlu2 %v2856_v56, %s4463_s25 }
0x25ed   :  { %v2921_v29 = vpop.permute.xlu0 %2920 }
0x25ee   :  { %v2923_v13 = vadd.f32 %v2921_v29, %v2893_v5 }
0x25f0   :  { %4305 = vtanh.f32 %v2923_v13  ;;  %v2859_v25 = vpop.permute.xlu2 %2858 }
0x25f1   :  { %v5509_v9 = vadd.f32 %v2859_v25, %v2851_v28 }
0x25f3   :  { %4307 = vtanh.f32 %v5509_v9 }
0x25f6   :  { %v4306_v7 = vpop.eup %4305 }
0x25f7   :  { %2927 = vrot.lane.b32.xlu2 %v4306_v7, %s4464_s28 }
0x25f9   :  { %v4308_v58 = vpop.eup %4307 }
0x25fa   :  { %2864 = vrot.lane.b32.xlu1 %v4308_v58, %s4463_s25 }
0x2651   :  { %v2928_v60 = vpop.permute.xlu2 %2927 }
0x2652   :  { %v2930_v0 = vmul.f32 %v2928_v60, %v2925_v52 }
0x2654   :  { %v5515_v4 = vadd.f32 %v2931_v63, %v2930_v0 }
0x2656   :  { %3004 = vrot.lane.b32.xlu1 %v5515_v4, %s4464_s28 }
0x266c   :  { %v2865_v33 = vpop.permute.xlu1 %2864 }
0x266d   :  { %v5519_v8 = vmul.f32 %v2865_v33, %v2848_v55 }
0x266f   :  { %2942 = vrot.lane.b32.xlu0 %v5519_v8, %s4462_s24 }
0x26c8   :  { %v3005_v18 = vpop.permute.xlu1 %3004 }
0x26c9   :  { %4010 = vmatmul.msk.f32.vlgmr.msra.gmra.mxu3 %vm80_vm0, %v3005_v18  ;;  %v3079_v18 = vld [vmem:[#allocation2 + $0x8] sm:$0x3] }
0x26ca   :  { %3559 = vmatpush.msra.mxu3 %v5350_v43 }
0x26cc   :  { %3560 = vmatpush.msra.mxu3 %v5355_v54  ;;  %v2940_v54 = vld [vmem:[#allocation2 + $0x6] sm:$0x3] }
0x26ce   :  { %3561 = vmatpush.msra.mxu3 %v5362_v45 }
0x26d0   :  { %3562 = vmatpush.msra.mxu3 %v5369_v47 }
0x26e1   :  { %v2943_v57 = vpop.permute.xlu0 %2942 }
0x26e2   :  { %4008 = vmatmul.msk.f32.vlgmr.msra.gmra.mxu2 %vm80_vm0, %v2943_v57 }
0x26e3   :  { %3497 = vmatpush.msra.mxu2 %v5300_v16 }
0x26e5   :  { %3498 = vmatpush.msra.mxu2 %v5305_v62 }
0x26e7   :  { %3499 = vmatpush.msra.mxu2 %v5312_v30 }
0x26e9   :  { %3500 = vmatpush.msra.mxu2 %v5319_v10 }
0x274c   :  { %v3025_v50 = vpop.f32.mrf.mxu3 }
0x274d   :  { %v3026_v43 = vadd.f32 %v5402_v14, %v3025_v50 }
0x274f   :  { %3050 = vrot.lane.b32.xlu0 %v3026_v43, %s4462_s24  ;;  %v3029_v16 = vadd.f32 %v3028_v59, %v3026_v43 }
0x2751   :  { %v4011_v20 = vmul.f32 -1.442695, %v3029_v16 }
0x2765   :  { %v2963_v45 = vpop.f32.mrf.mxu2 }
0x2766   :  { %v2966_v19 = vadd.f32 %v2963_v45, %v2940_v54  ;;  %v3166_v54 = vld [vmem:[#allocation3 + $0x8] sm:$0x3] }
0x2768   :  { %4309 = vtanh.f32 %v2966_v19  ;;  %v4009_v62 = vmul.f32 -1.442695, %v2966_v19 }
0x2769   :  { %4311 = vpow2.f32 %v4011_v20 }
0x276a   :  { %4313 = vpow2.f32 %v4009_v62 }
0x276e   :  { %v4310_v47 = vpop.eup %4309 }
0x276f   :  { %2989 = vrot.lane.b32.xlu2 %v4310_v47, %s4463_s25  ;;  %v4312_v30 = vpop.eup %4311 }
0x2770   :  { %v3033_v10 = vadd.f32 1.0, %v4312_v30  ;;  %v4314_v5 = vpop.eup %4313 }
0x2771   :  { %v2970_v22 = vadd.f32 1.0, %v4314_v5 }
0x2772   :  { %4315 = vrcp.f32 %v3033_v10  ;;  %v3045_v40 = vand.u32 2147483648, %v3033_v10  ;;  %vm3039_vm13 = vweird.f32 %v3033_v10  ;;  %v3043_v42 = vand.u32 2147483647, %v3033_v10 }
0x2773   :  { %4317 = vrcp.f32 %v2970_v22  ;;  %v2982_v48 = vand.u32 2147483648, %v2970_v22  ;;  %vm2976_vm1 = vweird.f32 %v2970_v22  ;;  %v2980_v17 = vand.u32 2147483647, %v2970_v22 }
0x2774   :  { %v3046_v44 = vor.u32 1.1754944e-38, %v3045_v40  ;;  %vm3044_vm15 = vcmp.eq.f32.partialorder %v3043_v42, 8.507059e+37 }
0x2775   :  { %v2983_v11 = vor.u32 1.1754944e-38, %v2982_v48  ;;  %vm2981_vm5 = vcmp.eq.f32.partialorder %v2980_v17, 8.507059e+37 }
0x2778   :  { %v4316_v23 = vpop.eup %4315 }
0x2779   :  { %v3035_v24 = vmul.f32 %v4316_v23, %v3033_v10  ;;  %v4318_v35 = vpop.eup %4317  ;;  %vm3040_vm12 = vweird.f32 %v4316_v23 }
0x277a   :  { %v2972_v37 = vmul.f32 %v4318_v35, %v2970_v22  ;;  %vm3041_vm14 = vmor %vm3039_vm13, %vm3040_vm12  ;;  %vm2977_vm2 = vweird.f32 %v4318_v35 }
0x277b   :  { %v3036_v6 = vsub.f32 1.0, %v3035_v24  ;;  %vm2978_vm4 = vmor %vm2976_vm1, %vm2977_vm2 }
0x277c   :  { %v2973_v27 = vsub.f32 1.0, %v2972_v37 }
0x277d   :  { %v3037_v36 = vmul.f32 %v4316_v23, %v3036_v6 }
0x277e   :  { %v2974_v46 = vmul.f32 %v4318_v35, %v2973_v27 }
0x277f   :  { %v3038_v39 = vadd.f32 %v4316_v23, %v3037_v36 }
0x2780   :  { %v2975_v12 = vadd.f32 %v4318_v35, %v2974_v46 }
0x2781   :  { %v3042_v21 = vsel %vm3041_vm14, %v4316_v23, %v3038_v39 }
0x2782   :  { %v3047_v38 = vsel %vm3044_vm15, %v3046_v44, %v3042_v21  ;;  %v2979_v1 = vsel %vm2978_vm4, %v4318_v35, %v2975_v12 }
0x2783   :  { %v2984_v49 = vsel %vm2981_vm5, %v2983_v11, %v2979_v1  ;;  %v3060_v13 = vsub.f32 1.0, %v3047_v38  ;;  %v3066_v25 = vmul.f32 %v3047_v38, %v5515_v4 }
0x2784   :  { %v2987_v3 = vmul.f32 %v2984_v49, %v5509_v9 }
0x27c1   :  { %v3051_v2 = vpop.permute.xlu0 %3050 }
0x27c2   :  { %v3053_v31 = vmul.f32 %v3051_v2, %v3047_v38 }
0x27c4   :  { %3055 = vrot.lane.b32.xlu2 %v3053_v31, %s4462_s24 }
0x27c9   :  { %v2990_v32 = vpop.permute.xlu2 %2989 }
0x27ca   :  { %v2992_v51 = vmul.f32 %v2990_v32, %v2984_v49 }
0x27cc   :  { %2994 = vrot.lane.b32.xlu1 %v2992_v51, %s4463_s25 }
0x281e   :  { %v3056_v15 = vpop.permute.xlu2 %3055 }
0x281f   :  { %v3058_v53 = vadd.f32 %v3056_v15, %v3028_v59 }
0x2821   :  { %4319 = vtanh.f32 %v3058_v53 }
0x2827   :  { %v4320_v34 = vpop.eup %4319 }
0x2828   :  { %3062 = vrot.lane.b32.xlu1 %v4320_v34, %s4464_s28 }
0x283e   :  { %v2995_v55 = vpop.permute.xlu1 %2994 }
0x283f   :  { %v5540_v56 = vadd.f32 %v2995_v55, %v2987_v3 }
0x2841   :  { %4321 = vtanh.f32 %v5540_v56 }
0x2847   :  { %v4322_v29 = vpop.eup %4321 }
0x2848   :  { %3000 = vrot.lane.b32.xlu0 %v4322_v29, %s4463_s25 }
0x289a   :  { %v3063_v28 = vpop.permute.xlu1 %3062 }
0x289b   :  { %v3065_v7 = vmul.f32 %v3063_v28, %v3060_v13 }
0x289d   :  { %v5545_v58 = vadd.f32 %v3066_v25, %v3065_v7 }
0x289f   :  { %3142 = vrot.lane.b32.xlu0 %v5545_v58, %s4464_s28 }
0x28ba   :  { %v3001_v52 = vpop.permute.xlu0 %3000 }
0x28bb   :  { %v5549_v9 = vmul.f32 %v3001_v52, %v2984_v49 }
0x28bd   :  { %3080 = vrot.lane.b32.xlu2 %v5549_v9, %s4462_s24 }
0x2911   :  { %v3143_v60 = vpop.permute.xlu0 %3142 }
0x2912   :  { %4014 = vmatmul.msk.f32.vlgmr.msra.gmra.mxu1 %vm80_vm0, %v3143_v60  ;;  %v5579_v60 = vld [vmem:[%s5899_s8 + $0x2] ss:$0 sm:$0xff] }
0x2917   :  { %v3081_v63 = vpop.permute.xlu2 %3080 }
0x2918   :  { %4012 = vmatmul.msk.f32.vlgmr.msra.gmra.mxu0 %vm80_vm0, %v3081_v63 }
0x298f   :  { %v3163_v0 = vpop.f32.mrf.mxu1 }
0x2990   :  { %v3164_v33 = vadd.f32 %v5402_v14, %v3163_v0  ;;  %v3216_v0 = vld [vmem:[#allocation2 + $0xa] sm:$0x3] }
0x2992   :  { %3188 = vrot.lane.b32.xlu2 %v3164_v33, %s4462_s24  ;;  %v3167_v45 = vadd.f32 %v3166_v54, %v3164_v33 }
0x2994   :  { %v4015_v19 = vmul.f32 -1.442695, %v3167_v45 }
0x2995   :  { %v3101_v57 = vpop.f32.mrf.mxu0 }
0x2996   :  { %v3104_v50 = vadd.f32 %v3101_v57, %v3079_v18 }
0x2998   :  { %4323 = vtanh.f32 %v3104_v50  ;;  %v4013_v30 = vmul.f32 -1.442695, %v3104_v50  ;;  %v3299_v50 = vld [vmem:[#allocation3 + $0xa] sm:$0x3] }
0x2999   :  { %4325 = vpow2.f32 %v4015_v19 }
0x299e   :  { %v4324_v43 = vpop.eup %4323 }
0x299f   :  { %3127 = vrot.lane.b32.xlu1 %v4324_v43, %s4463_s25  ;;  %v4326_v47 = vpop.eup %4325 }
0x29a0   :  { %v3171_v59 = vadd.f32 1.0, %v4326_v47 }
0x29a2   :  { %4327 = vrcp.f32 %v3171_v59  ;;  %v3183_v5 = vand.u32 2147483648, %v3171_v59  ;;  %vm3177_vm7 = vweird.f32 %v3171_v59  ;;  %v3181_v22 = vand.u32 2147483647, %v3171_v59 }
0x29a3   :  { %4329 = vpow2.f32 %v4013_v30 }
0x29a4   :  { %v3184_v24 = vor.u32 1.1754944e-38, %v3183_v5  ;;  %vm3182_vm9 = vcmp.eq.f32.partialorder %v3181_v22, 8.507059e+37 }
0x29a8   :  { %v4328_v16 = vpop.eup %4327 }
0x29a9   :  { %v3173_v20 = vmul.f32 %v4328_v16, %v3171_v59  ;;  %vm3178_vm6 = vweird.f32 %v4328_v16  ;;  %v4330_v37 = vpop.eup %4329 }
0x29aa   :  { %vm3179_vm8 = vmor %vm3177_vm7, %vm3178_vm6  ;;  %v3108_v39 = vadd.f32 1.0, %v4330_v37 }
0x29ab   :  { %v3174_v62 = vsub.f32 1.0, %v3173_v20 }
0x29ac   :  { %4331 = vrcp.f32 %v3108_v39  ;;  %v3120_v44 = vand.u32 2147483648, %v3108_v39  ;;  %vm3114_vm12 = vweird.f32 %v3108_v39  ;;  %v3118_v2 = vand.u32 2147483647, %v3108_v39 }
0x29ad   :  { %v3175_v14 = vmul.f32 %v4328_v16, %v3174_v62 }
0x29ae   :  { %v3121_v31 = vor.u32 1.1754944e-38, %v3120_v44  ;;  %vm3119_vm14 = vcmp.eq.f32.partialorder %v3118_v2, 8.507059e+37 }
0x29af   :  { %v3176_v10 = vadd.f32 %v4328_v16, %v3175_v14 }
0x29b1   :  { %v3180_v23 = vsel %vm3179_vm8, %v4328_v16, %v3176_v10 }
0x29b2   :  { %v3185_v6 = vsel %vm3182_vm9, %v3184_v24, %v3180_v23  ;;  %v4332_v27 = vpop.eup %4331 }
0x29b3   :  { %v3110_v40 = vmul.f32 %v4332_v27, %v3108_v39  ;;  %vm3115_vm11 = vweird.f32 %v4332_v27  ;;  %v3198_v34 = vsub.f32 1.0, %v3185_v6  ;;  %v3204_v55 = vmul.f32 %v3185_v6, %v5545_v58 }
0x29b4   :  { %vm3116_vm13 = vmor %vm3114_vm12, %vm3115_vm11 }
0x29b5   :  { %v3111_v42 = vsub.f32 1.0, %v3110_v40 }
0x29b7   :  { %v3112_v21 = vmul.f32 %v4332_v27, %v3111_v42 }
0x29b9   :  { %v3113_v46 = vadd.f32 %v4332_v27, %v3112_v21 }
0x29bb   :  { %v3117_v38 = vsel %vm3116_vm13, %v4332_v27, %v3113_v46 }
0x29bc   :  { %v3122_v48 = vsel %vm3119_vm14, %v3121_v31, %v3117_v38 }
0x29bd   :  { %v3125_v32 = vmul.f32 %v3122_v48, %v5540_v56 }
0x29ec   :  { %v3189_v35 = vpop.permute.xlu2 %3188 }
0x29ed   :  { %v3191_v36 = vmul.f32 %v3189_v35, %v3185_v6 }
0x29ef   :  { %3193 = vrot.lane.b32.xlu1 %v3191_v36, %s4462_s24 }
0x2a11   :  { %v3128_v12 = vpop.permute.xlu1 %3127 }
0x2a12   :  { %v3130_v17 = vmul.f32 %v3128_v12, %v3122_v48 }
0x2a14   :  { %3132 = vrot.lane.b32.xlu0 %v3130_v17, %s4463_s25 }
0x2a61   :  { %v3194_v1 = vpop.permute.xlu1 %3193 }
0x2a62   :  { %v3196_v11 = vadd.f32 %v3194_v1, %v3166_v54 }
0x2a64   :  { %4333 = vtanh.f32 %v3196_v11 }
0x2a6a   :  { %v4334_v49 = vpop.eup %4333 }
0x2a6b   :  { %3200 = vrot.lane.b32.xlu0 %v4334_v49, %s4464_s28 }
0x2a86   :  { %v3133_v51 = vpop.permute.xlu0 %3132 }
0x2a87   :  { %v5562_v15 = vadd.f32 %v3133_v51, %v3125_v32 }
0x2a89   :  { %4335 = vtanh.f32 %v5562_v15 }
0x2a8f   :  { %v4336_v53 = vpop.eup %4335 }
0x2a90   :  { %3138 = vrot.lane.b32.xlu2 %v4336_v53, %s4463_s25 }
0x2add   :  { %v3201_v3 = vpop.permute.xlu0 %3200 }
0x2ade   :  { %v3203_v29 = vmul.f32 %v3201_v3, %v3198_v34 }
0x2ae0   :  { %v5567_v13 = vadd.f32 %v3204_v55, %v3203_v29 }
0x2ae2   :  { %3212 = vrot.lane.b32.xlu2 %v5567_v13, %s4464_s28 }
0x2aea   :  { %v3139_v28 = vpop.permute.xlu2 %3138 }
0x2aeb   :  { %v3141_v56 = vmul.f32 %v3139_v28, %v3122_v48 }
0x2aed   :  { %3207 = vrot.lane.b32.xlu1 %v3141_v56, %s4462_s24 }
0x2b3c   :  { %v3213_v25 = vpop.permute.xlu2 %3212 }
0x2b3d   :  { %3215 = vst.msk [vmem:[#allocation7 + $0x2] sm:$0x3] %vm285_vm10, %v3213_v25  ;;  %4018 = vmatmul.msk.f32.vlgmr.msrb.gmra.mxu3 %vm80_vm0, %v3213_v25 }
0x2b5f   :  { %v3208_v7 = vpop.permute.xlu1 %3207 }
0x2b60   :  { %3210 = vst.msk [vmem:[#allocation6 + $0x2] sm:$0x3] %vm285_vm10, %v3208_v7  ;;  %4016 = vmatmul.msk.f32.vlgmr.msrb.gmra.mxu2 %vm80_vm0, %v3208_v7 }
0x2bc0   :  { %v3296_v52 = vpop.f32.mrf.mxu3 }
0x2bc1   :  { %v3297_v63 = vadd.f32 %v5579_v60, %v3296_v52  ;;  %v3345_v52 = vld [vmem:[#allocation2 + $0xc] sm:$0x3] }
0x2bc3   :  { %3321 = vrot.lane.b32.xlu1 %v3297_v63, %s4462_s24  ;;  %v3300_v43 = vadd.f32 %v3299_v50, %v3297_v63 }
0x2bc5   :  { %v4019_v54 = vmul.f32 -1.442695, %v3300_v43 }
0x2be3   :  { %v3236_v33 = vpop.f32.mrf.mxu2 }
0x2be4   :  { %v3239_v18 = vadd.f32 %v3236_v33, %v3216_v0  ;;  %v3433_v33 = vld [vmem:[#allocation3 + $0xc] sm:$0x3] }
0x2be6   :  { %4337 = vtanh.f32 %v3239_v18  ;;  %v4017_v10 = vmul.f32 -1.442695, %v3239_v18 }
0x2be7   :  { %4339 = vpow2.f32 %v4019_v54 }
0x2bec   :  { %v4338_v57 = vpop.eup %4337 }
0x2bed   :  { %3262 = vrot.lane.b32.xlu0 %v4338_v57, %s4463_s25  ;;  %v4340_v45 = vpop.eup %4339 }
0x2bee   :  { %v3304_v19 = vadd.f32 1.0, %v4340_v45 }
0x2bf0   :  { %4341 = vrcp.f32 %v3304_v19  ;;  %v3316_v14 = vand.u32 2147483648, %v3304_v19  ;;  %vm3310_vm2 = vweird.f32 %v3304_v19  ;;  %v3314_v30 = vand.u32 2147483647, %v3304_v19 }
0x2bf1   :  { %4343 = vpow2.f32 %v4017_v10 }
0x2bf2   :  { %v3317_v22 = vor.u32 1.1754944e-38, %v3316_v14  ;;  %vm3315_vm4 = vcmp.eq.f32.partialorder %v3314_v30, 8.507059e+37 }
0x2bf6   :  { %v4342_v47 = vpop.eup %4341 }
0x2bf7   :  { %v3306_v59 = vmul.f32 %v4342_v47, %v3304_v19  ;;  %vm3311_vm15 = vweird.f32 %v4342_v47  ;;  %v4344_v35 = vpop.eup %4343 }
0x2bf8   :  { %vm3312_vm1 = vmor %vm3310_vm2, %vm3311_vm15  ;;  %v3243_v36 = vadd.f32 1.0, %v4344_v35 }
0x2bf9   :  { %v3307_v16 = vsub.f32 1.0, %v3306_v59 }
0x2bfa   :  { %4345 = vrcp.f32 %v3243_v36  ;;  %v3255_v21 = vand.u32 2147483648, %v3243_v36  ;;  %vm3249_vm6 = vweird.f32 %v3243_v36  ;;  %v3253_v46 = vand.u32 2147483647, %v3243_v36 }
0x2bfb   :  { %v3308_v20 = vmul.f32 %v4342_v47, %v3307_v16 }
0x2bfc   :  { %v3256_v2 = vor.u32 1.1754944e-38, %v3255_v21  ;;  %vm3254_vm8 = vcmp.eq.f32.partialorder %v3253_v46, 8.507059e+37 }
0x2bfd   :  { %v3309_v62 = vadd.f32 %v4342_v47, %v3308_v20 }
0x2bff   :  { %v3313_v5 = vsel %vm3312_vm1, %v4342_v47, %v3309_v62 }
0x2c00   :  { %v3318_v24 = vsel %vm3315_vm4, %v3317_v22, %v3313_v5  ;;  %v4346_v37 = vpop.eup %4345 }
0x2c01   :  { %v3245_v39 = vmul.f32 %v4346_v37, %v3243_v36  ;;  %vm3250_vm5 = vweird.f32 %v4346_v37  ;;  %v3331_v53 = vsub.f32 1.0, %v3318_v24  ;;  %v3337_v3 = vmul.f32 %v3318_v24, %v5567_v13 }
0x2c02   :  { %vm3251_vm7 = vmor %vm3249_vm6, %vm3250_vm5 }
0x2c03   :  { %v3246_v27 = vsub.f32 1.0, %v3245_v39 }
0x2c05   :  { %v3247_v40 = vmul.f32 %v4346_v37, %v3246_v27 }
0x2c07   :  { %v3248_v42 = vadd.f32 %v4346_v37, %v3247_v40 }
0x2c09   :  { %v3252_v44 = vsel %vm3251_vm7, %v4346_v37, %v3248_v42 }
0x2c0a   :  { %v3257_v31 = vsel %vm3254_vm8, %v3256_v2, %v3252_v44 }
0x2c0b   :  { %v3260_v11 = vmul.f32 %v3257_v31, %v5562_v15 }
0x2c35   :  { %v3322_v23 = vpop.permute.xlu1 %3321 }
0x2c36   :  { %v3324_v6 = vmul.f32 %v3322_v23, %v3318_v24 }
0x2c38   :  { %3326 = vrot.lane.b32.xlu0 %v3324_v6, %s4462_s24 }
0x2c5f   :  { %v3263_v38 = vpop.permute.xlu0 %3262 }
0x2c60   :  { %v3265_v12 = vmul.f32 %v3263_v38, %v3257_v31 }
0x2c62   :  { %3267 = vrot.lane.b32.xlu2 %v3265_v12, %s4463_s25 }
0x2caa   :  { %v3327_v48 = vpop.permute.xlu0 %3326 }
0x2cab   :  { %v3329_v17 = vadd.f32 %v3327_v48, %v3299_v50 }
0x2cad   :  { %4347 = vtanh.f32 %v3329_v17 }
0x2cb3   :  { %v4348_v1 = vpop.eup %4347 }
0x2cb4   :  { %3333 = vrot.lane.b32.xlu2 %v4348_v1, %s4464_s28 }
0x2cbc   :  { %v3268_v49 = vpop.permute.xlu2 %3267 }
0x2cbd   :  { %v5588_v32 = vadd.f32 %v3268_v49, %v3260_v11 }
0x2cbf   :  { %4349 = vtanh.f32 %v5588_v32 }
0x2cc5   :  { %v4350_v51 = vpop.eup %4349 }
0x2cc6   :  { %3273 = vrot.lane.b32.xlu1 %v4350_v51, %s4463_s25 }
0x2d0e   :  { %v3334_v34 = vpop.permute.xlu2 %3333 }
0x2d0f   :  { %v3336_v55 = vmul.f32 %v3334_v34, %v3331_v53 }
0x2d11   :  { %v5593_v29 = vadd.f32 %v3337_v3, %v3336_v55 }
0x2d13   :  { %3409 = vrot.lane.b32.xlu1 %v5593_v29, %s4464_s28  ;;  %3344 = vst.msk [vmem:[#allocation7 + $0x2] sm:$0x3] %vm2802_vm3, %v5593_v29 }
0x2d38   :  { %v3274_v15 = vpop.permute.xlu1 %3273 }
0x2d39   :  { %v5599_v28 = vmul.f32 %v3274_v15, %v3257_v31 }
0x2d3b   :  { %3346 = vrot.lane.b32.xlu0 %v5599_v28, %s4462_s24 }
0x2d85   :  { %v3410_v56 = vpop.permute.xlu1 %3409 }
0x2d86   :  { %4022 = vmatmul.msk.f32.vlgmr.msrb.gmra.mxu1 %vm80_vm0, %v3410_v56 }
0x2dad   :  { %v3347_v25 = vpop.permute.xlu0 %3346 }
0x2dae   :  { %4020 = vmatmul.msk.f32.vlgmr.msrb.gmra.mxu0 %vm80_vm0, %v3347_v25 }
0x2e03   :  { %v3430_v13 = vpop.f32.mrf.mxu1 }
0x2e04   :  { %v3431_v7 = vadd.f32 %v5579_v60, %v3430_v13 }
0x2e06   :  { %3455 = vrot.lane.b32.xlu2 %v3431_v7, %s4462_s24  ;;  %v3434_v18 = vadd.f32 %v3433_v33, %v3431_v7  ;;  %v3567_v7 = vld [vmem:[#allocation3 + $0xe] sm:$0x3] }
0x2e08   :  { %v4023_v57 = vmul.f32 -1.442695, %v3434_v18 }
0x2e2b   :  { %v3367_v63 = vpop.f32.mrf.mxu0 }
0x2e2c   :  { %v3370_v0 = vadd.f32 %v3367_v63, %v3345_v52  ;;  %v3479_v63 = vld [vmem:[#allocation2 + $0xe] sm:$0x3] }
0x2e2e   :  { %4351 = vtanh.f32 %v3370_v0  ;;  %v4021_v23 = vmul.f32 -1.442695, %v3370_v0 }
0x2e2f   :  { %4353 = vpow2.f32 %v4023_v57 }
0x2e34   :  { %v4352_v50 = vpop.eup %4351 }
0x2e35   :  { %3393 = vrot.lane.b32.xlu0 %v4352_v50, %s4463_s25  ;;  %v4354_v43 = vpop.eup %4353 }
0x2e36   :  { %v3438_v54 = vadd.f32 1.0, %v4354_v43 }
0x2e38   :  { %4355 = vrcp.f32 %v3438_v54  ;;  %v3450_v20 = vand.u32 2147483648, %v3438_v54  ;;  %vm3444_vm11 = vweird.f32 %v3438_v54  ;;  %v3448_v62 = vand.u32 2147483647, %v3438_v54 }
0x2e39   :  { %4357 = vpow2.f32 %v4021_v23 }
0x2e3a   :  { %v3451_v30 = vor.u32 1.1754944e-38, %v3450_v20  ;;  %vm3449_vm13 = vcmp.eq.f32.partialorder %v3448_v62, 8.507059e+37 }
0x2e3e   :  { %v4356_v45 = vpop.eup %4355 }
0x2e3f   :  { %v3440_v19 = vmul.f32 %v4356_v45, %v3438_v54  ;;  %vm3445_vm9 = vweird.f32 %v4356_v45  ;;  %v4358_v24 = vpop.eup %4357 }
0x2e40   :  { %vm3446_vm12 = vmor %vm3444_vm11, %vm3445_vm9  ;;  %v3374_v6 = vadd.f32 1.0, %v4358_v24 }
0x2e41   :  { %v3441_v47 = vsub.f32 1.0, %v3440_v19 }
0x2e42   :  { %4359 = vrcp.f32 %v3374_v6  ;;  %v3386_v40 = vand.u32 2147483648, %v3374_v6  ;;  %vm3380_vm15 = vweird.f32 %v3374_v6  ;;  %v3384_v42 = vand.u32 2147483647, %v3374_v6 }
0x2e43   :  { %v3442_v59 = vmul.f32 %v4356_v45, %v3441_v47 }
0x2e44   :  { %v3387_v46 = vor.u32 1.1754944e-38, %v3386_v40  ;;  %vm3385_vm1 = vcmp.eq.f32.partialorder %v3384_v42, 8.507059e+37 }
0x2e45   :  { %v3443_v16 = vadd.f32 %v4356_v45, %v3442_v59 }
0x2e47   :  { %v3447_v14 = vsel %vm3446_vm12, %v4356_v45, %v3443_v16  ;;  %vm2933_vm12 = vcmask 779776  }
0x2e48   :  { %v3452_v5 = vsel %vm3449_vm13, %v3451_v30, %v3447_v14  ;;  %v4360_v35 = vpop.eup %4359  ;;  %vm3072_vm13 = vcmask 1042176  }
0x2e49   :  { %v3376_v36 = vmul.f32 %v4360_v35, %v3374_v6  ;;  %vm3381_vm14 = vweird.f32 %v4360_v35  ;;  %v3465_v51 = vsub.f32 1.0, %v3452_v5  ;;  %v3471_v34 = vmul.f32 %v3452_v5, %v5593_v29 }
0x2e4a   :  { %vm3382_vm2 = vmor %vm3380_vm15, %vm3381_vm14  ;;  %vm3815_vm15 = vcmask 58368  }
0x2e4b   :  { %v3377_v37 = vsub.f32 1.0, %v3376_v36 }
0x2e4d   :  { %v3378_v39 = vmul.f32 %v4360_v35, %v3377_v37 }
0x2e4f   :  { %v3379_v27 = vadd.f32 %v4360_v35, %v3378_v39 }
0x2e51   :  { %v3383_v21 = vsel %vm3382_vm2, %v4360_v35, %v3379_v27 }
0x2e52   :  { %v3388_v2 = vsel %vm3385_vm1, %v3387_v46, %v3383_v21 }
0x2e53   :  { %v3391_v17 = vmul.f32 %v3388_v2, %v5588_v32 }
0x2e60   :  { %v3456_v10 = vpop.permute.xlu2 %3455 }
0x2e61   :  { %v3458_v22 = vmul.f32 %v3456_v10, %v3452_v5 }
0x2e63   :  { %3460 = vrot.lane.b32.xlu1 %v3458_v22, %s4462_s24 }
0x2ea7   :  { %v3394_v44 = vpop.permute.xlu0 %3393 }
0x2ea8   :  { %v3396_v38 = vmul.f32 %v3394_v44, %v3388_v2 }
0x2eaa   :  { %3398 = vrot.lane.b32.xlu2 %v3396_v38, %s4463_s25 }
0x2ed5   :  { %v3461_v31 = vpop.permute.xlu1 %3460 }
0x2ed6   :  { %v3463_v12 = vadd.f32 %v3461_v31, %v3433_v33 }
0x2ed8   :  { %4361 = vtanh.f32 %v3463_v12 }
0x2ede   :  { %v4362_v48 = vpop.eup %4361 }
0x2edf   :  { %3467 = vrot.lane.b32.xlu0 %v4362_v48, %s4464_s28 }
0x2f04   :  { %v3399_v1 = vpop.permute.xlu2 %3398 }
0x2f05   :  { %v5612_v11 = vadd.f32 %v3399_v1, %v3391_v17 }
0x2f07   :  { %4363 = vtanh.f32 %v5612_v11 }
0x2f0d   :  { %v4364_v49 = vpop.eup %4363 }
0x2f0e   :  { %3404 = vrot.lane.b32.xlu1 %v4364_v49, %s4463_s25 }
0x2f51   :  { %v3468_v53 = vpop.permute.xlu0 %3467 }
0x2f52   :  { %v3470_v3 = vmul.f32 %v3468_v53, %v3465_v51 }
0x2f54   :  { %v5617_v55 = vadd.f32 %v3471_v34, %v3470_v3  ;;  %v3696_v3 = vld [vmem:[%s5904_s13 + $0xe8] sm:$0xff] }
0x2f56   :  { %3543 = vrot.lane.b32.xlu2 %v5617_v55, %s4464_s28 }
0x2f80   :  { %v3405_v15 = vpop.permute.xlu1 %3404 }
0x2f81   :  { %v5621_v32 = vmul.f32 %v3405_v15, %v3388_v2  ;;  %v3695_v15 = vld [vmem:[%s5904_s13 + $0xe0] sm:$0xff] }
0x2f83   :  { %3481 = vrot.lane.b32.xlu0 %v5621_v32, %s4462_s24 }
0x2fb0   :  { %v3544_v56 = vpop.permute.xlu2 %3543 }
0x2fb1   :  { %4026 = vmatmul.msk.f32.vlgmr.msra.gmra.mxu3 %vm80_vm0, %v3544_v56  ;;  %v3678_v56 = vld [vmem:[%s5904_s13 + $0x58] sm:$0xff] }
0x2ff5   :  { %v3482_v25 = vpop.permute.xlu0 %3481 }
0x2ff6   :  { %4024 = vmatmul.msk.f32.vlgmr.msra.gmra.mxu2 %vm80_vm0, %v3482_v25  ;;  %v3694_v25 = vld [vmem:[%s5904_s13 + $0xd8] sm:$0xff] }
0x3034   :  { %v3564_v13 = vpop.f32.mrf.mxu3 }
0x3035   :  { %v3565_v29 = vadd.f32 %v5579_v60, %v3564_v13 }
0x3037   :  { %3589 = vrot.lane.b32.xlu1 %v3565_v29, %s4462_s24  ;;  %v3568_v52 = vadd.f32 %v3567_v7, %v3565_v29 }
0x3039   :  { %v4027_v18 = vmul.f32 -1.442695, %v3568_v52  ;;  %v3693_v52 = vld [vmem:[%s5904_s13 + $0xd0] sm:$0xff] }
0x3079   :  { %v3502_v0 = vpop.f32.mrf.mxu2 }
0x307a   :  { %v3505_v33 = vadd.f32 %v3502_v0, %v3479_v63  ;;  %v3676_v63 = vld [vmem:[%s5904_s13 + $0x48] sm:$0xff] }
0x307b   :  { %v3692_v0 = vld [vmem:[%s5904_s13 + $0xc8] sm:$0xff] }
0x307c   :  { %4365 = vtanh.f32 %v3505_v33  ;;  %v4025_v5 = vmul.f32 -1.442695, %v3505_v33  ;;  %v3675_v33 = vld [vmem:[%s5904_s13 + $0x40] sm:$0xff] }
0x307d   :  { %4367 = vpow2.f32 %v4027_v18  ;;  %v3691_v18 = vld [vmem:[%s5904_s13 + $0xc0] sm:$0xff] }
0x3082   :  { %v4366_v57 = vpop.eup %4365 }
0x3083   :  { %3528 = vrot.lane.b32.xlu2 %v4366_v57, %s4463_s25  ;;  %v4368_v50 = vpop.eup %4367 }
0x3084   :  { %v3572_v43 = vadd.f32 1.0, %v4368_v50  ;;  %v3674_v50 = vld [vmem:[%s5904_s13 + $0x38] sm:$0xff] }
0x3086   :  { %4369 = vrcp.f32 %v3572_v43  ;;  %v3584_v59 = vand.u32 2147483648, %v3572_v43  ;;  %vm3578_vm4 = vweird.f32 %v3572_v43  ;;  %v3582_v16 = vand.u32 2147483647, %v3572_v43 }
0x3087   :  { %4371 = vpow2.f32 %v4025_v5 }
0x3088   :  { %v3585_v62 = vor.u32 1.1754944e-38, %v3584_v59  ;;  %vm3583_vm6 = vcmp.eq.f32.partialorder %v3582_v16, 8.507059e+37  ;;  %v3671_v59 = vld [vmem:[%s5904_s13 + $0x20] sm:$0xff] }
0x3089   :  { %v3687_v16 = vld [vmem:[%s5904_s13 + $0xa0] sm:$0xff] }
0x308c   :  { %v4370_v54 = vpop.eup %4369 }
0x308d   :  { %v3574_v45 = vmul.f32 %v4370_v54, %v3572_v43  ;;  %vm3579_vm0 = vweird.f32 %v4370_v54  ;;  %v4372_v22 = vpop.eup %4371  ;;  %v3690_v43 = vld [vmem:[%s5904_s13 + $0xb8] sm:$0xff] }
0x308e   :  { %vm3580_vm5 = vmor %vm3578_vm4, %vm3579_vm0  ;;  %v3509_v23 = vadd.f32 1.0, %v4372_v22  ;;  %v3667_v22 = vld [vmem:[%s5904_s13] sm:$0xff] }
0x308f   :  { %v3575_v19 = vsub.f32 1.0, %v3574_v45  ;;  %v3689_v45 = vld [vmem:[%s5904_s13 + $0xb0] sm:$0xff] }
0x3090   :  { %4373 = vrcp.f32 %v3509_v23  ;;  %v3521_v39 = vand.u32 2147483648, %v3509_v23  ;;  %vm3515_vm8 = vweird.f32 %v3509_v23  ;;  %v3519_v27 = vand.u32 2147483647, %v3509_v23 }
0x3091   :  { %v3576_v60 = vmul.f32 %v4370_v54, %v3575_v19 }
0x3092   :  { %v3522_v42 = vor.u32 1.1754944e-38, %v3521_v39  ;;  %vm3520_vm11 = vcmp.eq.f32.partialorder %v3519_v27, 8.507059e+37  ;;  %v3663_v39 = vld [vmem:[%s5903_s12 + $0xe8] sm:$0xff]  ;;  %v3646_v27 = vld [vmem:[%s5903_s12 + $0x60] sm:$0xff] }
0x3093   :  { %v3577_v47 = vadd.f32 %v4370_v54, %v3576_v60  ;;  %v3672_v60 = vld [vmem:[%s5904_s13 + $0x28] sm:$0xff] }
0x3095   :  { %v3581_v20 = vsel %vm3580_vm5, %v4370_v54, %v3577_v47  ;;  %v3673_v54 = vld [vmem:[%s5904_s13 + $0x30] sm:$0xff]  ;;  %v3688_v47 = vld [vmem:[%s5904_s13 + $0xa8] sm:$0xff] }
0x3096   :  { %v3586_v14 = vsel %vm3583_vm6, %v3585_v62, %v3581_v20  ;;  %v4374_v24 = vpop.eup %4373  ;;  %v3670_v20 = vld [vmem:[%s5904_s13 + $0x18] sm:$0xff]  ;;  %v3669_v62 = vld [vmem:[%s5904_s13 + $0x10] sm:$0xff] }
0x3097   :  { %v3511_v6 = vmul.f32 %v4374_v24, %v3509_v23  ;;  %vm3516_vm7 = vweird.f32 %v4374_v24  ;;  %v3605_v49 = vmul.f32 %v3586_v14, %v5617_v55  ;;  %v3683_v23 = vld [vmem:[%s5904_s13 + $0x80] sm:$0xff] }
0x3098   :  { %vm3517_vm9 = vmor %vm3515_vm8, %vm3516_vm7 }
0x3099   :  { %v3512_v35 = vsub.f32 1.0, %v3511_v6  ;;  %v3665_v6 = vld [vmem:[%s5903_s12 + $0xf8] sm:$0xff] }
0x309a   :  { %3771 = vmatpush.msrb.mxu3 %v3665_v6 }
0x309b   :  { %v3513_v36 = vmul.f32 %v4374_v24, %v3512_v35  ;;  %v3648_v35 = vld [vmem:[%s5903_s12 + $0x70] sm:$0xff] }
0x309d   :  { %v3514_v37 = vadd.f32 %v4374_v24, %v3513_v36  ;;  %v3664_v36 = vld [vmem:[%s5903_s12 + $0xf0] sm:$0xff] }
0x309e   :  { %3772 = vmatpush.msrb.mxu3 %v3664_v36 }
0x309f   :  { %v3518_v40 = vsel %vm3517_vm9, %v4374_v24, %v3514_v37  ;;  %v3649_v24 = vld [vmem:[%s5903_s12 + $0x78] sm:$0xff]  ;;  %v3647_v37 = vld [vmem:[%s5903_s12 + $0x68] sm:$0xff] }
0x30a0   :  { %v3523_v46 = vsel %vm3520_vm11, %v3522_v42, %v3518_v40  ;;  %3751 = vmatpush.msrb.mxu2 %v3649_v24  ;;  %v3662_v40 = vld [vmem:[%s5903_s12 + $0xe0] sm:$0xff]  ;;  %3773 = vmatpush.msrb.mxu3 %v3663_v39  ;;  %v3645_v42 = vld [vmem:[%s5903_s12 + $0x58] sm:$0xff] }
0x30a1   :  { %v3526_v12 = vmul.f32 %v3523_v46, %v5612_v11 }
0x30a2   :  { %3752 = vmatpush.msrb.mxu2 %v3648_v35  ;;  %3774 = vmatpush.msrb.mxu3 %v3662_v40 }
0x30a4   :  { %3753 = vmatpush.msrb.mxu2 %v3647_v37 }
0x30a6   :  { %3754 = vmatpush.msrb.mxu2 %v3646_v27 }
0x30a8   :  { %3755 = vmatpush.msrb.mxu2 %v3645_v42 }
0x30a9   :  { %v3590_v30 = vpop.permute.xlu1 %3589 }
0x30aa   :  { %v3592_v10 = vmul.f32 %v3590_v30, %v3586_v14  ;;  %v3668_v30 = vld [vmem:[%s5904_s13 + $0x8] sm:$0xff] }
0x30ac   :  { %3594 = vrot.lane.b32.xlu0 %v3592_v10, %s4462_s24  ;;  %v3684_v10 = vld [vmem:[%s5904_s13 + $0x88] sm:$0xff] }
0x30dd   :  { %v3529_v21 = vpop.permute.xlu2 %3528 }
0x30de   :  { %v3531_v44 = vmul.f32 %v3529_v21, %v3523_v46  ;;  %v3661_v21 = vld [vmem:[%s5903_s12 + $0xd8] sm:$0xff] }
0x30df   :  { %3775 = vmatpush.msrb.mxu3 %v3661_v21 }
0x30e0   :  { %3533 = vrot.lane.b32.xlu1 %v3531_v44, %s4463_s25  ;;  %v3644_v44 = vld [vmem:[%s5903_s12 + $0x50] sm:$0xff] }
0x30e1   :  { %3756 = vmatpush.msrb.mxu2 %v3644_v44 }
0x30e8   :  { %2936 = vrot.lane.b32.xlu1 %v5515_v4, %s4463_s25 }
0x311e   :  { %v3595_v2 = vpop.permute.xlu0 %3594 }
0x311f   :  { %v3597_v38 = vadd.f32 %v3595_v2, %v3567_v7  ;;  %v3677_v7 = vld [vmem:[%s5904_s13 + $0x50] sm:$0xff] }
0x3120   :  { %v3660_v2 = vld [vmem:[%s5903_s12 + $0xd0] sm:$0xff] }
0x3121   :  { %4375 = vtanh.f32 %v3597_v38  ;;  %v3643_v38 = vld [vmem:[%s5903_s12 + $0x48] sm:$0xff]  ;;  %3776 = vmatpush.msrb.mxu3 %v3660_v2 }
0x3122   :  { %3757 = vmatpush.msrb.mxu2 %v3643_v38 }
0x3127   :  { %v4376_v31 = vpop.eup %4375 }
0x3128   :  { %3601 = vrot.lane.b32.xlu2 %v4376_v31, %s4464_s28  ;;  %v3659_v31 = vld [vmem:[%s5903_s12 + $0xc8] sm:$0xff] }
0x3129   :  { %3777 = vmatpush.msrb.mxu3 %v3659_v31 }
0x3130   :  { %3475 = vrot.lane.b32.xlu2 %v5617_v55, %s4463_s25  ;;  %v3679_v55 = vld [vmem:[%s5904_s13 + $0x60] sm:$0xff] }
0x3138   :  { %2799 = vrot.lane.b32.xlu2 %v5472_v26, %s4464_s28  ;;  %v3599_v26 = vsub.f32 1.0, %v3586_v14  ;;  %v3685_v14 = vld [vmem:[%s5904_s13 + $0x90] sm:$0xff] }
0x3152   :  { %v3534_v48 = vpop.permute.xlu1 %3533 }
0x3153   :  { %v5640_v17 = vadd.f32 %v3534_v48, %v3526_v12  ;;  %v3642_v12 = vld [vmem:[%s5903_s12 + $0x40] sm:$0xff] }
0x3154   :  { %v3658_v48 = vld [vmem:[%s5903_s12 + $0xc0] sm:$0xff]  ;;  %3758 = vmatpush.msrb.mxu2 %v3642_v12 }
0x3155   :  { %4377 = vtanh.f32 %v5640_v17  ;;  %3778 = vmatpush.msrb.mxu3 %v3658_v48 }
0x315a   :  { %v2937_v4 = vpop.permute.xlu1 %2936 }
0x315b   :  { %v4378_v1 = vpop.eup %4377  ;;  %2939 = vst.msk [vmem:[#allocation7] sm:$0x3] %vm2933_vm12, %v2937_v4 }
0x315c   :  { %3539 = vrot.lane.b32.xlu0 %v4378_v1, %s4463_s25 }
0x3164   :  { %3075 = vrot.lane.b32.xlu0 %v5545_v58, %s4462_s24 }
0x316c   :  { %3340 = vrot.lane.b32.xlu0 %v5599_v28, %s4464_s28  ;;  %v3698_v28 = vld [vmem:[%s5904_s13 + $0xf8] sm:$0xff] }
0x316d   :  { %3725 = vmatpush.msra.mxu1 %v3698_v28  ;;  %v3655_v28 = vld [vmem:[%s5903_s12 + $0xa8] sm:$0xff] }
0x3174   :  { %1225 = vrot.lane.b32.xlu0 %v5082_v61, %s4464_s28  ;;  %v3682_v61 = vld [vmem:[%s5904_s13 + $0x78] sm:$0xff] }
0x3175   :  { %3705 = vmatpush.msra.mxu0 %v3682_v61  ;;  %v3639_v61 = vld [vmem:[%s5903_s12 + $0x28] sm:$0xff] }
0x3182   :  { %v3602_v11 = vpop.permute.xlu2 %3601 }
0x3183   :  { %v3604_v51 = vmul.f32 %v3602_v11, %v3599_v26 }
0x3185   :  { %v3606_v53 = vadd.f32 %v3605_v49, %v3604_v51  ;;  %v3641_v49 = vld [vmem:[%s5903_s12 + $0x38] sm:$0xff] }
0x3186   :  { %v3657_v51 = vld [vmem:[%s5903_s12 + $0xb8] sm:$0xff]  ;;  %3759 = vmatpush.msrb.mxu2 %v3641_v49 }
0x3187   :  { %3613 = vrot.lane.b32.xlu1 %v3606_v53, %s4462_s24  ;;  %3779 = vmatpush.msrb.mxu3 %v3657_v51 }
0x318a   :  { %v3476_v34 = vpop.permute.xlu2 %3475 }
0x318b   :  { %3478 = vst.msk [vmem:[#allocation7 + $0x2] sm:$0x3] %vm2933_vm12, %v3476_v34  ;;  %v3656_v34 = vld [vmem:[%s5903_s12 + $0xb0] sm:$0xff] }
0x318c   :  { %3780 = vmatpush.msrb.mxu3 %v3656_v34 }
0x318e   :  { %3781 = vmatpush.msrb.mxu3 %v3655_v28 }
0x318f   :  { %3069 = vrot.lane.b32.xlu1 %v5549_v9, %s4463_s25  ;;  %v3681_v9 = vld [vmem:[%s5904_s13 + $0x70] sm:$0xff] }
0x3190   :  { %3706 = vmatpush.msra.mxu0 %v3681_v9  ;;  %v3638_v9 = vld [vmem:[%s5903_s12 + $0x20] sm:$0xff] }
0x3192   :  { %v2800_v58 = vpop.permute.xlu2 %2799 }
0x3193   :  { %2803 = vst.msk [vmem:[#allocation6] sm:$0x3] %vm2802_vm3, %v2800_v58 }
0x3194   :  { %2934 = vst.msk [vmem:[#allocation6] sm:$0x3] %vm2933_vm12, %v5519_v8  ;;  %v3680_v8 = vld [vmem:[%s5904_s13 + $0x68] sm:$0xff] }
0x3195   :  { %3707 = vmatpush.msra.mxu0 %v3680_v8  ;;  %v3637_v8 = vld [vmem:[%s5903_s12 + $0x18] sm:$0xff] }
0x3197   :  { %2416 = vrot.lane.b32.xlu1 %v5456_v41, %s4464_s28  ;;  %v3697_v41 = vld [vmem:[%s5904_s13 + $0xf0] sm:$0xff]  ;;  %3708 = vmatpush.msra.mxu0 %v3679_v55 }
0x3198   :  { %3726 = vmatpush.msra.mxu1 %v3697_v41  ;;  %v3654_v41 = vld [vmem:[%s5903_s12 + $0xa0] sm:$0xff]  ;;  %v3636_v55 = vld [vmem:[%s5903_s12 + $0x10] sm:$0xff] }
0x3199   :  { %3709 = vmatpush.msra.mxu0 %v3678_v56  ;;  %3782 = vmatpush.msrb.mxu3 %v3654_v41  ;;  %v3635_v56 = vld [vmem:[%s5903_s12 + $0x8] sm:$0xff] }
0x319a   :  { %3727 = vmatpush.msra.mxu1 %v3696_v3  ;;  %v3653_v3 = vld [vmem:[%s5903_s12 + $0x98] sm:$0xff] }
0x319b   :  { %3710 = vmatpush.msra.mxu0 %v3677_v7  ;;  %3783 = vmatpush.msrb.mxu3 %v3653_v3 }
0x319c   :  { %3728 = vmatpush.msra.mxu1 %v3695_v15  ;;  %v3652_v15 = vld [vmem:[%s5903_s12 + $0x90] sm:$0xff] }
0x319d   :  { %3711 = vmatpush.msra.mxu0 %v3676_v63  ;;  %3784 = vmatpush.msrb.mxu3 %v3652_v15 }
0x319e   :  { %3729 = vmatpush.msra.mxu1 %v3694_v25  ;;  %v3651_v25 = vld [vmem:[%s5903_s12 + $0x88] sm:$0xff] }
0x319f   :  { %3628 = vrot.lane.b32.xlu1 %v3606_v53, %s4464_s28  ;;  %3712 = vmatpush.msra.mxu0 %v3675_v33  ;;  %v3640_v53 = vld [vmem:[%s5903_s12 + $0x30] sm:$0xff] }
0x31a0   :  { %3730 = vmatpush.msra.mxu1 %v3693_v52  ;;  %3760 = vmatpush.msrb.mxu2 %v3640_v53 }
0x31a1   :  { %3713 = vmatpush.msra.mxu0 %v3674_v50  ;;  %3785 = vmatpush.msrb.mxu3 %v3651_v25 }
0x31a2   :  { %3731 = vmatpush.msra.mxu1 %v3692_v0  ;;  %3761 = vmatpush.msrb.mxu2 %v3639_v61 }
0x31a3   :  { %3714 = vmatpush.msra.mxu0 %v3673_v54 }
0x31a4   :  { %3732 = vmatpush.msra.mxu1 %v3691_v18  ;;  %3762 = vmatpush.msrb.mxu2 %v3638_v9 }
0x31a5   :  { %3715 = vmatpush.msra.mxu0 %v3672_v60 }
0x31a6   :  { %3733 = vmatpush.msra.mxu1 %v3690_v43  ;;  %3763 = vmatpush.msrb.mxu2 %v3637_v8 }
0x31a7   :  { %3716 = vmatpush.msra.mxu0 %v3671_v59 }
0x31a8   :  { %3734 = vmatpush.msra.mxu1 %v3689_v45  ;;  %3764 = vmatpush.msrb.mxu2 %v3636_v55 }
0x31a9   :  { %3717 = vmatpush.msra.mxu0 %v3670_v20 }
0x31aa   :  { %3735 = vmatpush.msra.mxu1 %v3688_v47  ;;  %3765 = vmatpush.msrb.mxu2 %v3635_v56 }
0x31ab   :  { %3718 = vmatpush.msra.mxu0 %v3669_v62 }
0x31ac   :  { %3736 = vmatpush.msra.mxu1 %v3687_v16 }
0x31ad   :  { %3719 = vmatpush.msra.mxu0 %v3668_v30 }
0x31af   :  { %3720 = vmatpush.msra.mxu0 %v3667_v22 }
0x31ce   :  { %v3540_v13 = vpop.permute.xlu0 %3539 }
0x31cf   :  { %v3542_v29 = vmul.f32 %v3540_v13, %v3523_v46  ;;  %v3634_v13 = vld [vmem:[%s5903_s12] sm:$0xff] }
0x31d0   :  { %3766 = vmatpush.msrb.mxu2 %v3634_v13 }
0x31d1   :  { %3617 = vrot.lane.b32.xlu0 %v3542_v29, %s4462_s24  ;;  %3608 = vrot.lane.b32.xlu2 %v3542_v29, %s4463_s25  ;;  %v3650_v29 = vld [vmem:[%s5903_s12 + $0x80] sm:$0xff]  ;;  %s4465_s12 = smov [#allocation10]  }
0x31d2   :  { %3786 = vmatpush.msrb.mxu3 %v3650_v29  ;;  %s3836_s4 = sshll.u32 %s4465_s12, 4  ;;  %s3837_s4 = int_to_ptr.vmem [resolvable:$true] %s3836_s4 }
0x31d6   :  { %v3076_v57 = vpop.permute.xlu0 %3075 }
0x31d7   :  { %3078 = vst.msk [vmem:[#allocation7] sm:$0x3] %vm3072_vm13, %v3076_v57 }
0x31d9   :  { %3623 = vrot.lane.b32.xlu2 %v5640_v17, %s4464_s28 }
0x31de   :  { %v3341_v19 = vpop.permute.xlu0 %3340 }
0x31df   :  { %3343 = vst.msk [vmem:[#allocation6 + $0x2] sm:$0x3] %vm2802_vm3, %v3341_v19  ;;  %v4042_v19 = vld [vmem:[%s5905_s14] ss:$0 sm:$0xff] }
0x31e0   :  { %3473 = vst.msk [vmem:[#allocation6 + $0x2] sm:$0x3] %vm2933_vm12, %v5621_v32  ;;  %v3686_v32 = vld [vmem:[%s5904_s13 + $0x98] sm:$0xff] }
0x31e1   :  { %3737 = vmatpush.msra.mxu1 %v3686_v32 }
0x31e3   :  { %3738 = vmatpush.msra.mxu1 %v3685_v14 }
0x31e5   :  { %3739 = vmatpush.msra.mxu1 %v3684_v10 }
0x31e6   :  { %v1226_v5 = vpop.permute.xlu0 %1225 }
0x31e7   :  { %1228 = vst.msk [vmem:[#allocation10] sm:$0x3] %vm285_vm10, %v1226_v5  ;;  %3740 = vmatpush.msra.mxu1 %v3683_v23 }
0x31f9   :  { %v3614_v46 = vpop.permute.xlu1 %3613 }
0x31fa   :  { %3616 = vst.msk [vmem:[#allocation7 + $0x2] sm:$0x3] %vm3072_vm13, %v3614_v46 }
0x3201   :  { %v3666_v17 = vld [vmem:[#allocation7] sm:$0xf]  ;;  %v3070_v4 = vpop.permute.xlu1 %3069 }
0x3202   :  { %3700 = vst [vmem:[#allocation1] ss:$4 sm:$0xff] %v3666_v17 }
0x3203   :  { %3073 = vst.msk [vmem:[#allocation6] sm:$0x3] %vm3072_vm13, %v3070_v4 }
0x3209   :  { %v2417_v1 = vpop.permute.xlu1 %2416  ;;  %v3701_v26 = vld.sshfl [vmem:[#allocation1] sm:$0xff pattern:$0x73625140]  ;;  %v3702_v11 = vld.sshfl [vmem:[#allocation1 + $0x8] sm:$0xff pattern:$0x73625140] }
0x320a   :  { %2420 = vst.msk [vmem:[#allocation10 + $0x2] sm:$0x3] %vm285_vm10, %v2417_v1  ;;  %3721 = vmatmul.f32.vlgmr.msra.gmra.mxu0 %v3701_v26  ;;  %3741 = vmatmul.f32.vlgmr.msra.gmra.mxu1 %v3702_v11 }
0x3211   :  { %v3629_v58 = vpop.permute.xlu1 %3628 }
0x3212   :  { %3632 = vst.msk [vmem:[#allocation12 + $0x4] sm:$0x3] %vm285_vm10, %v3629_v58 }
0x322b   :  { %v3609_v7 = vpop.permute.xlu2 %3608 }
0x322c   :  { %3611 = vst.msk [vmem:[#allocation6 + $0x2] sm:$0x3] %vm3072_vm13, %v3609_v7 }
0x3233   :  { %v3633_v52 = vld [vmem:[#allocation6] sm:$0xf]  ;;  %v3624_v63 = vpop.permute.xlu2 %3623 }
0x3234   :  { %3746 = vst [vmem:[#allocation1] ss:$4 sm:$0xff] %v3633_v52 }
0x3235   :  { %3627 = vst.msk [vmem:[#allocation10 + $0x4] sm:$0x3] %vm285_vm10, %v3624_v63 }
0x3236   :  { %3844 = dma.vmem_to_hbm [thread:$0]  %s3837_s4, 96, %s3839_s30, [#allocation11], %s4463_s25, %s4463_s25, %s4466_s6  }
0x3237   :  { %3857 = dma.vmem_to_hbm [thread:$0]  %s3850_s21, 96, %s3852_s17, [#allocation11], %s4463_s25, %s4463_s25, %s4466_s6  }
0x323b   :  { %v3747_v0 = vld.sshfl [vmem:[#allocation1] sm:$0xff pattern:$0x73625140]  ;;  %v3748_v33 = vld.sshfl [vmem:[#allocation1 + $0x8] sm:$0xff pattern:$0x73625140] }
0x323c   :  { %3767 = vmatmul.f32.vlgmr.msrb.gmra.mxu2 %v3747_v0  ;;  %3787 = vmatmul.f32.vlgmr.msrb.gmra.mxu3 %v3748_v33 }
0x3243   :  { %v3618_v18 = vpop.permute.xlu0 %3617 }
0x3244   :  { %3621 = vst.msk [vmem:[#allocation8 + $0x4] sm:$0x3] %vm285_vm10, %v3618_v18 }
0x3245   :  { %3831 = dma.vmem_to_hbm [thread:$0]  %s3824_s11, 96, %s3826_s22, [#allocation9], %s4463_s25, %s4463_s25, %s4466_s6  }
0x3287   :  { %v3722_v57 = vpop.f32.mrf.mxu0  ;;  %v3742_v50 = vpop.f32.mrf.mxu1 }
0x3288   :  { %v3743_v43 = vadd.f32 %v3742_v50, %v3722_v57 }
0x32bf   :  { %v3768_v54 = vpop.f32.mrf.mxu2  ;;  %v3788_v60 = vpop.f32.mrf.mxu3 }
0x32c0   :  { %v3769_v45 = vadd.f32 %v3768_v54, %v3743_v43 }
0x32c2   :  { %v3789_v47 = vadd.f32 %v3788_v60, %v3769_v45 }
0x32c4   :  { %v3795_v59 = vadd.f32 %v4042_v19, %v3789_v47 }
0x32c6   :  { %v4028_v16 = vmul.f32 -1.442695, %v3795_v59 }
0x32c8   :  { %4379 = vpow2.f32 %v4028_v16 }
0x32ce   :  { %v4380_v20 = vpop.eup %4379 }
0x32cf   :  { %v3799_v32 = vadd.f32 1.0, %v4380_v20 }
0x32d1   :  { %4381 = vrcp.f32 %v3799_v32  ;;  %v3811_v10 = vand.u32 2147483648, %v3799_v32  ;;  %v3809_v22 = vand.u32 2147483647, %v3799_v32  ;;  %vm3805_vm3 = vweird.f32 %v3799_v32 }
0x32d3   :  { %v3812_v24 = vor.u32 1.1754944e-38, %v3811_v10  ;;  %vm3810_vm2 = vcmp.eq.f32.partialorder %v3809_v22, 8.507059e+37 }
0x32d7   :  { %v4382_v62 = vpop.eup %4381 }
0x32d8   :  { %v3801_v14 = vmul.f32 %v4382_v62, %v3799_v32  ;;  %vm3806_vm10 = vweird.f32 %v4382_v62 }
0x32d9   :  { %vm3807_vm14 = vmor %vm3805_vm3, %vm3806_vm10 }
0x32da   :  { %v3802_v30 = vsub.f32 1.0, %v3801_v14 }
0x32dc   :  { %v3803_v5 = vmul.f32 %v4382_v62, %v3802_v30 }
0x32de   :  { %v3804_v23 = vadd.f32 %v4382_v62, %v3803_v5 }
0x32e0   :  { %v3808_v6 = vsel %vm3807_vm14, %v4382_v62, %v3804_v23 }
0x32e1   :  { %v3813_v35 = vsel %vm3810_vm2, %v3812_v24, %v3808_v6 }
0x32e2   :  { %3816 = vst.msk [vmem:[%s5906_s15] sm:$0x3] %vm3815_vm15, %v3813_v35 }
0x32e3   :  { %4458 = dma.done.wait [#allocation9], 96  }
0x32e4   :  { %4459 = vsyncadd [#allocation9], 4294967200 }
0x32e5   :  { %4460 = dma.done.wait [#allocation11], 192  }
0x32e6   :  { %4461 = vsyncadd [#allocation11], 4294967104 }
0x32e7   :  { %3872 = vsyncpa [#allocation9], 1 }
0x32e8   :  { %3873 = vsyncpa [#allocation11], 1 }

</bundles_post_ra>
